<compile_context>
chip_gen: v7x
topology: tpu7x:2x2x1
jax: 0.10.0
libtpu: 0.0.40
codegen_flags: <defaults>
</compile_context>

<pallas_src>
import functools

import jax
import jax.numpy as jnp
from jax.experimental import pallas as pl
from jax.experimental.pallas import tpu as pltpu


def _round_up(x, m):
    return (x + m - 1) // m * m


# Double-buffered, K-proportional tile budget (patch + weight tiles), chosen so
# it fits comfortably inside every generation's scoped VMEM.
_VMEM_SOFT_BUDGET = 12 * 1024 * 1024
_VMEM_LIMIT_BYTES = 32 * 1024 * 1024


# ----------------------------------------------------------------------------
# Pallas kernels: (patches @ weights) -> * scale + bias -> activation
# ----------------------------------------------------------------------------
def _epilogue(y, sb_ref, o_ref, act):
    y = y * sb_ref[0:1, :] + sb_ref[1:2, :]
    if act == "leaky":
        y = jnp.where(y >= 0.0, y, 0.2 * y)
    else:  # "sigmoid" -- numerically stable tanh form, runs on the EUP slot
        y = 0.5 * (jnp.tanh(0.5 * y) + 1.0)
    o_ref[...] = y.astype(o_ref.dtype)


def _conv_mm_single_k_kernel(p_ref, w_ref, sb_ref, o_ref, *, act):
    # Whole reduction in one step: no accumulator scratch, no pl.when branches.
    y = jnp.dot(p_ref[...], w_ref[...], preferred_element_type=jnp.float32)
    _epilogue(y, sb_ref, o_ref, act)


def _conv_mm_ksplit_kernel(p_ref, w_ref, sb_ref, o_ref, acc_ref, *, act):
    # Fallback for reductions too large to hold in VMEM in one tile.
    k = pl.program_id(2)

    @pl.when(k == 0)
    def _():
        acc_ref[...] = jnp.zeros_like(acc_ref)

    acc_ref[...] += jnp.dot(p_ref[...], w_ref[...],
                            preferred_element_type=jnp.float32)

    @pl.when(k == pl.num_programs(2) - 1)
    def _():
        _epilogue(acc_ref[...], sb_ref, o_ref, act)


def _fused_matmul(patches, w_mat, scale_bias, act, out_dtype):
    """Tiled bf16 matmul with fused per-channel scale/bias + activation.

    patches:    (M, K) bf16 im2col patches
    w_mat:      (K, Cout) f32 weights (cast to bf16 here)
    scale_bias: (2, Cout) f32 folded BN scale (row 0) and bias (row 1)
    returns:    (M, Cout) out_dtype
    """
    M, K = patches.shape
    _, Cout = w_mat.shape
    coutp = _round_up(Cout, 128)

    # Lane tiling: keep tn >= 128; split the 512-channel layer into two 256-wide
    # tiles so the 'parallel' grid axes have >1 tile (v7x megacore).
    tn = 256 if coutp >= 512 else coutp
    # Sublane tiling: multiples of 16 (bf16 packs 16 sublanes per vreg).
    tm = min(256, _round_up(M, 16))
    mp = _round_up(M, tm)

    # Full-K single reduction step whenever the double-buffered K-proportional
    # tiles (bf16 patch row block + weight column block) fit the soft budget.
    per_k_bytes = 2 * 2 * (tm + tn)          # bf16, double-buffered
    tk_cap = _VMEM_SOFT_BUDGET // per_k_bytes
    single_step = K <= tk_cap

    if single_step:
        tk, kp = K, K                        # no zero-padding along K
    else:
        tk = max(128, (tk_cap // 128) * 128)
        kp = _round_up(K, tk)

    p = patches.astype(jnp.bfloat16)
    w = w_mat.astype(jnp.bfloat16)
    sb = scale_bias.astype(jnp.float32)

    if mp != M or kp != K:
        p = jnp.pad(p, ((0, mp - M), (0, kp - K)))
    if kp != K or coutp != Cout:
        w = jnp.pad(w, ((0, kp - K), (0, coutp - Cout)))
    if coutp != Cout:
        sb = jnp.pad(sb, ((0, 0), (0, coutp - Cout)))

    if single_step:
        grid = (mp // tm, coutp // tn)
        out = pl.pallas_call(
            functools.partial(_conv_mm_single_k_kernel, act=act),
            out_shape=jax.ShapeDtypeStruct((mp, coutp), out_dtype),
            grid=grid,
            in_specs=[
                pl.BlockSpec((tm, kp), lambda i, j: (i, 0)),
                pl.BlockSpec((kp, tn), lambda i, j: (0, j)),
                pl.BlockSpec((2, tn), lambda i, j: (0, j)),
            ],
            out_specs=pl.BlockSpec((tm, tn), lambda i, j: (i, j)),
            compiler_params=pltpu.CompilerParams(
                dimension_semantics=("parallel", "parallel"),
                vmem_limit_bytes=_VMEM_LIMIT_BYTES),
        )(p, w, sb)
    else:
        grid = (mp // tm, coutp // tn, kp // tk)
        out = pl.pallas_call(
            functools.partial(_conv_mm_ksplit_kernel, act=act),
            out_shape=jax.ShapeDtypeStruct((mp, coutp), out_dtype),
            grid=grid,
            in_specs=[
                pl.BlockSpec((tm, tk), lambda i, j, k: (i, k)),
                pl.BlockSpec((tk, tn), lambda i, j, k: (k, j)),
                pl.BlockSpec((2, tn), lambda i, j, k: (0, j)),
            ],
            out_specs=pl.BlockSpec((tm, tn), lambda i, j, k: (i, j)),
            scratch_shapes=[pltpu.VMEM((tm, tn), jnp.float32)],
            compiler_params=pltpu.CompilerParams(
                dimension_semantics=("parallel", "parallel", "arbitrary"),
                vmem_limit_bytes=_VMEM_LIMIT_BYTES),
        )(p, w, sb)

    if mp != M or coutp != Cout:
        out = out[:M, :Cout]
    return out


def _conv_layer(x, w, scale_bias, stride, act, out_dtype):
    """One Conv(4x4, reflect pad=1) + folded-BN + activation layer (NHWC)."""
    N, H, W, Cin = x.shape
    KH, KW, _, Cout = w.shape

    # Reflect padding, same as padding_mode='reflect'.  Activations are bf16
    # end-to-end between layers, halving the im2col glue HBM traffic.
    xp = jnp.pad(x.astype(jnp.bfloat16),
                 ((0, 0), (1, 1), (1, 1), (0, 0)), mode="reflect")

    Ho = (H + 2 - KH) // stride + 1
    Wo = (W + 2 - KW) // stride + 1

    # im2col (glue): tap order (kh, kw, cin) matches w.reshape below.
    cols = []
    for kh in range(KH):
        for kw in range(KW):
            cols.append(
                xp[:, kh:kh + stride * (Ho - 1) + 1:stride,
                      kw:kw + stride * (Wo - 1) + 1:stride, :]
            )
    patches = jnp.stack(cols, axis=3).reshape(N * Ho * Wo, KH * KW * Cin)
    w_mat = w.reshape(KH * KW * Cin, Cout)

    out = _fused_matmul(patches, w_mat, scale_bias, act, out_dtype)
    return out.reshape(N, Ho, Wo, Cout)


# ----------------------------------------------------------------------------
# Static architecture config (kept OUT of the jitted pytree -> fixes the jit
# "string argument" error) and parameter initialization.
# ----------------------------------------------------------------------------
_STRIDES = (2, 2, 2, 1, 1)                       # initial, 3 Blocks, final conv
_ACTS = ("leaky", "leaky", "leaky", "leaky", "sigmoid")


def init_params(key, in_channels=3, features=(64, 128, 256, 512)):
    """Returns a list of (weight, scale_bias) array tuples (arrays only)."""
    eps = 1e-5
    feats = list(features)

    params = []
    cin = in_channels
    for cout in feats:
        key, k1, k2, k3, k4, k5, k6 = jax.random.split(key, 7)
        w = 0.05 * jax.random.normal(k1, (4, 4, cin, cout), jnp.float32)
        b = 0.05 * jax.random.normal(k2, (cout,), jnp.float32)
        gamma = 1.0 + 0.1 * jax.random.normal(k3, (cout,), jnp.float32)
        beta = 0.1 * jax.random.normal(k4, (cout,), jnp.float32)
        rmean = 0.1 * jax.random.normal(k5, (cout,), jnp.float32)
        rvar = 0.5 + jax.random.uniform(k6, (cout,), jnp.float32)
        # Fold conv bias + BatchNorm (inference) into per-channel scale/bias.
        scale = gamma / jnp.sqrt(rvar + eps)
        bias = beta + (b - rmean) * scale
        params.append((w, jnp.stack([scale, bias], axis=0)))   # (2, cout)
        cin = cout

    # Final Conv2d(cin -> 1, k=4, s=1, p=1, reflect) + Sigmoid (no BN).
    key, k1, k2 = jax.random.split(key, 3)
    w = 0.05 * jax.random.normal(k1, (4, 4, cin, 1), jnp.float32)
    b = 0.05 * jax.random.normal(k2, (1,), jnp.float32)
    params.append((w, jnp.stack([jnp.ones((1,), jnp.float32), b], axis=0)))
    return params


def discriminator_forward(x_nchw, params):
    # layout: input NCHW -> internal NHWC (bf16) -> output NCHW (f32)
    x = jnp.transpose(x_nchw, (0, 2, 3, 1)).astype(jnp.bfloat16)
    n_layers = len(params)
    for i, (w, sb) in enumerate(params):
        out_dtype = jnp.float32 if i == n_layers - 1 else jnp.bfloat16
        x = _conv_layer(x, w, sb, _STRIDES[i], _ACTS[i], out_dtype)
    return jnp.transpose(x, (0, 3, 1, 2))


if __name__ == "__main__":
    key = jax.random.PRNGKey(0)
    kx, kp = jax.random.split(key)

    # Small, module-consistent input: batch=2, in_channels=3, spatial=32
    x = jax.random.normal(kx, (2, 3, 32, 32), jnp.float32)
    params = init_params(kp)

    out = jax.jit(discriminator_forward)(x, params)
    out = jax.block_until_ready(out)

    # 32 -> 16 -> 8 -> 4 -> 3 -> 2 spatial; channels -> 1
    assert out.shape == (2, 1, 2, 2), out.shape
    assert bool(jnp.all(jnp.isfinite(out)))
    assert bool(jnp.all((out >= 0.0) & (out <= 1.0)))  # sigmoid output range
    print("KERNEL_OK")
</pallas_src>

<mosaic_0001>
module attributes {stable_mosaic.version = 11 : i64} {
  func.func @_conv_mm_single_k_kernel(%arg0: i32, %arg1: i32, %arg2: memref<256x48xbf16, #tpu.memory_space<vmem>>, %arg3: memref<48x128xbf16, #tpu.memory_space<vmem>>, %arg4: memref<2x128xf32, #tpu.memory_space<vmem>>, %arg5: memref<256x128xbf16, #tpu.memory_space<vmem>>) attributes {dimension_semantics = [#tpu.dimension_semantics<parallel>, #tpu.dimension_semantics<parallel>], iteration_bounds = array<i64: 2, 1>, scalar_prefetch = 0 : i64, scratch_operands = 0 : i64, tpu.core_type = #tpu.core_type<tc>, window_params = [{transform_indices = @transform_0, window_bounds = array<i64: 256, 48>}, {transform_indices = @transform_1, window_bounds = array<i64: 48, 128>}, {transform_indices = @transform_2, window_bounds = array<i64: 2, 128>}, {transform_indices = @transform_3, window_bounds = array<i64: 256, 128>}]} {
    %c0 = arith.constant 0 : index
    %c0_0 = arith.constant 0 : index
    %0 = vector.load %arg2[%c0, %c0_0] : memref<256x48xbf16, #tpu.memory_space<vmem>>, vector<256x48xbf16>
    %c0_1 = arith.constant 0 : index
    %c0_2 = arith.constant 0 : index
    %1 = vector.load %arg3[%c0_1, %c0_2] : memref<48x128xbf16, #tpu.memory_space<vmem>>, vector<48x128xbf16>
    %cst = arith.constant dense<0.000000e+00> : vector<256x128xf32>
    %2 = tpu.matmul %0, %1, %cst {dimension_numbers = #tpu.dot_dimension_numbers<[1], [0], [0], [1], [0, 0, 1, 1], [], []>} : vector<256x48xbf16>, vector<48x128xbf16>, vector<256x128xf32> -> vector<256x128xf32>
    %c0_3 = arith.constant 0 : index
    %c0_4 = arith.constant 0 : index
    %3 = vector.load %arg4[%c0_3, %c0_4] : memref<2x128xf32, #tpu.memory_space<vmem>>, vector<1x128xf32>
    %4 = vector.broadcast %3 : vector<1x128xf32> to vector<256x128xf32>
    %5 = arith.mulf %2, %4 : vector<256x128xf32>
    %c1 = arith.constant 1 : index
    %c0_5 = arith.constant 0 : index
    %6 = vector.load %arg4[%c1, %c0_5] : memref<2x128xf32, #tpu.memory_space<vmem>>, vector<1x128xf32>
    %7 = vector.broadcast %6 : vector<1x128xf32> to vector<256x128xf32>
    %8 = arith.addf %5, %7 : vector<256x128xf32>
    %cst_6 = arith.constant 0.000000e+00 : f32
    %9 = vector.broadcast %cst_6 : f32 to vector<256x128xf32>
    %10 = arith.cmpf oge, %8, %9 : vector<256x128xf32>
    %cst_7 = arith.constant 2.000000e-01 : f32
    %11 = vector.broadcast %cst_7 : f32 to vector<256x128xf32>
    %12 = arith.mulf %11, %8 : vector<256x128xf32>
    %13 = arith.select %10, %8, %12 : vector<256x128xi1>, vector<256x128xf32>
    %14 = arith.truncf %13 : vector<256x128xf32> to vector<256x128xbf16>
    %c0_8 = arith.constant 0 : index
    %c0_9 = arith.constant 0 : index
    %15 = vector.load %arg5[%c0_8, %c0_9] : memref<256x128xbf16, #tpu.memory_space<vmem>>, vector<256x128xbf16>
    tpu.vector_store %arg5[%c0_8, %c0_9], %14 {strides = array<i32>} : memref<256x128xbf16, #tpu.memory_space<vmem>>, vector<256x128xbf16>,
    return
  }
  func.func @transform_0(%arg0: i32, %arg1: i32) -> (i32, i32) {
    %c0_i32 = arith.constant 0 : i32
    %c0_i32_0 = arith.constant 0 : i32
    return %arg0, %c0_i32 : i32, i32
  }
  func.func @transform_1(%arg0: i32, %arg1: i32) -> (i32, i32) {
    %c0_i32 = arith.constant 0 : i32
    %c0_i32_0 = arith.constant 0 : i32
    return %c0_i32, %arg1 : i32, i32
  }
  func.func @transform_2(%arg0: i32, %arg1: i32) -> (i32, i32) {
    %c0_i32 = arith.constant 0 : i32
    %c0_i32_0 = arith.constant 0 : i32
    return %c0_i32, %arg1 : i32, i32
  }
  func.func @transform_3(%arg0: i32, %arg1: i32) -> (i32, i32) {
    %c0_i32 = arith.constant 0 : i32
    return %arg0, %arg1 : i32, i32
  }
}

module attributes {stable_mosaic.version = 11 : i64} {
  func.func @_conv_mm_single_k_kernel(%arg0: i32, %arg1: i32, %arg2: memref<128x1024xbf16, #tpu.memory_space<vmem>>, %arg3: memref<1024x128xbf16, #tpu.memory_space<vmem>>, %arg4: memref<2x128xf32, #tpu.memory_space<vmem>>, %arg5: memref<128x128xbf16, #tpu.memory_space<vmem>>) attributes {dimension_semantics = [#tpu.dimension_semantics<parallel>, #tpu.dimension_semantics<parallel>], iteration_bounds = array<i64: 1, 1>, scalar_prefetch = 0 : i64, scratch_operands = 0 : i64, tpu.core_type = #tpu.core_type<tc>, window_params = [{transform_indices = @transform_0, window_bounds = array<i64: 128, 1024>}, {transform_indices = @transform_1, window_bounds = array<i64: 1024, 128>}, {transform_indices = @transform_2, window_bounds = array<i64: 2, 128>}, {transform_indices = @transform_3, window_bounds = array<i64: 128, 128>}]} {
    %c0 = arith.constant 0 : index
    %c0_0 = arith.constant 0 : index
    %0 = vector.load %arg2[%c0, %c0_0] : memref<128x1024xbf16, #tpu.memory_space<vmem>>, vector<128x1024xbf16>
    %c0_1 = arith.constant 0 : index
    %c0_2 = arith.constant 0 : index
    %1 = vector.load %arg3[%c0_1, %c0_2] : memref<1024x128xbf16, #tpu.memory_space<vmem>>, vector<1024x128xbf16>
    %cst = arith.constant dense<0.000000e+00> : vector<128x128xf32>
    %2 = tpu.matmul %0, %1, %cst {dimension_numbers = #tpu.dot_dimension_numbers<[1], [0], [0], [1], [0, 0, 1, 1], [], []>} : vector<128x1024xbf16>, vector<1024x128xbf16>, vector<128x128xf32> -> vector<128x128xf32>
    %c0_3 = arith.constant 0 : index
    %c0_4 = arith.constant 0 : index
    %3 = vector.load %arg4[%c0_3, %c0_4] : memref<2x128xf32, #tpu.memory_space<vmem>>, vector<1x128xf32>
    %4 = vector.broadcast %3 : vector<1x128xf32> to vector<128x128xf32>
    %5 = arith.mulf %2, %4 : vector<128x128xf32>
    %c1 = arith.constant 1 : index
    %c0_5 = arith.constant 0 : index
    %6 = vector.load %arg4[%c1, %c0_5] : memref<2x128xf32, #tpu.memory_space<vmem>>, vector<1x128xf32>
    %7 = vector.broadcast %6 : vector<1x128xf32> to vector<128x128xf32>
    %8 = arith.addf %5, %7 : vector<128x128xf32>
    %cst_6 = arith.constant 0.000000e+00 : f32
    %9 = vector.broadcast %cst_6 : f32 to vector<128x128xf32>
    %10 = arith.cmpf oge, %8, %9 : vector<128x128xf32>
    %cst_7 = arith.constant 2.000000e-01 : f32
    %11 = vector.broadcast %cst_7 : f32 to vector<128x128xf32>
    %12 = arith.mulf %11, %8 : vector<128x128xf32>
    %13 = arith.select %10, %8, %12 : vector<128x128xi1>, vector<128x128xf32>
    %14 = arith.truncf %13 : vector<128x128xf32> to vector<128x128xbf16>
    %c0_8 = arith.constant 0 : index
    %c0_9 = arith.constant 0 : index
    %15 = vector.load %arg5[%c0_8, %c0_9] : memref<128x128xbf16, #tpu.memory_space<vmem>>, vector<128x128xbf16>
    tpu.vector_store %arg5[%c0_8, %c0_9], %14 {strides = array<i32>} : memref<128x128xbf16, #tpu.memory_space<vmem>>, vector<128x128xbf16>,
    return
  }
  func.func @transform_0(%arg0: i32, %arg1: i32) -> (i32, i32) {
    %c0_i32 = arith.constant 0 : i32
    %c0_i32_0 = arith.constant 0 : i32
    return %arg0, %c0_i32 : i32, i32
  }
  func.func @transform_1(%arg0: i32, %arg1: i32) -> (i32, i32) {
    %c0_i32 = arith.constant 0 : i32
    %c0_i32_0 = arith.constant 0 : i32
    return %c0_i32, %arg1 : i32, i32
  }
  func.func @transform_2(%arg0: i32, %arg1: i32) -> (i32, i32) {
    %c0_i32 = arith.constant 0 : i32
    %c0_i32_0 = arith.constant 0 : i32
    return %c0_i32, %arg1 : i32, i32
  }
  func.func @transform_3(%arg0: i32, %arg1: i32) -> (i32, i32) {
    %c0_i32 = arith.constant 0 : i32
    return %arg0, %arg1 : i32, i32
  }
}

module attributes {stable_mosaic.version = 11 : i64} {
  func.func @_conv_mm_single_k_kernel(%arg0: i32, %arg1: i32, %arg2: memref<32x2048xbf16, #tpu.memory_space<vmem>>, %arg3: memref<2048x256xbf16, #tpu.memory_space<vmem>>, %arg4: memref<2x256xf32, #tpu.memory_space<vmem>>, %arg5: memref<32x256xbf16, #tpu.memory_space<vmem>>) attributes {dimension_semantics = [#tpu.dimension_semantics<parallel>, #tpu.dimension_semantics<parallel>], iteration_bounds = array<i64: 1, 1>, scalar_prefetch = 0 : i64, scratch_operands = 0 : i64, tpu.core_type = #tpu.core_type<tc>, window_params = [{transform_indices = @transform_0, window_bounds = array<i64: 32, 2048>}, {transform_indices = @transform_1, window_bounds = array<i64: 2048, 256>}, {transform_indices = @transform_2, window_bounds = array<i64: 2, 256>}, {transform_indices = @transform_3, window_bounds = array<i64: 32, 256>}]} {
    %c0 = arith.constant 0 : index
    %c0_0 = arith.constant 0 : index
    %0 = vector.load %arg2[%c0, %c0_0] : memref<32x2048xbf16, #tpu.memory_space<vmem>>, vector<32x2048xbf16>
    %c0_1 = arith.constant 0 : index
    %c0_2 = arith.constant 0 : index
    %1 = vector.load %arg3[%c0_1, %c0_2] : memref<2048x256xbf16, #tpu.memory_space<vmem>>, vector<2048x256xbf16>
    %cst = arith.constant dense<0.000000e+00> : vector<32x256xf32>
    %2 = tpu.matmul %0, %1, %cst {dimension_numbers = #tpu.dot_dimension_numbers<[1], [0], [0], [1], [0, 0, 1, 1], [], []>} : vector<32x2048xbf16>, vector<2048x256xbf16>, vector<32x256xf32> -> vector<32x256xf32>
    %c0_3 = arith.constant 0 : index
    %c0_4 = arith.constant 0 : index
    %3 = vector.load %arg4[%c0_3, %c0_4] : memref<2x256xf32, #tpu.memory_space<vmem>>, vector<1x256xf32>
    %4 = vector.broadcast %3 : vector<1x256xf32> to vector<32x256xf32>
    %5 = arith.mulf %2, %4 : vector<32x256xf32>
    %c1 = arith.constant 1 : index
    %c0_5 = arith.constant 0 : index
    %6 = vector.load %arg4[%c1, %c0_5] : memref<2x256xf32, #tpu.memory_space<vmem>>, vector<1x256xf32>
    %7 = vector.broadcast %6 : vector<1x256xf32> to vector<32x256xf32>
    %8 = arith.addf %5, %7 : vector<32x256xf32>
    %cst_6 = arith.constant 0.000000e+00 : f32
    %9 = vector.broadcast %cst_6 : f32 to vector<32x256xf32>
    %10 = arith.cmpf oge, %8, %9 : vector<32x256xf32>
    %cst_7 = arith.constant 2.000000e-01 : f32
    %11 = vector.broadcast %cst_7 : f32 to vector<32x256xf32>
    %12 = arith.mulf %11, %8 : vector<32x256xf32>
    %13 = arith.select %10, %8, %12 : vector<32x256xi1>, vector<32x256xf32>
    %14 = arith.truncf %13 : vector<32x256xf32> to vector<32x256xbf16>
    %c0_8 = arith.constant 0 : index
    %c0_9 = arith.constant 0 : index
    %15 = vector.load %arg5[%c0_8, %c0_9] : memref<32x256xbf16, #tpu.memory_space<vmem>>, vector<32x256xbf16>
    tpu.vector_store %arg5[%c0_8, %c0_9], %14 {strides = array<i32>} : memref<32x256xbf16, #tpu.memory_space<vmem>>, vector<32x256xbf16>,
    return
  }
  func.func @transform_0(%arg0: i32, %arg1: i32) -> (i32, i32) {
    %c0_i32 = arith.constant 0 : i32
    %c0_i32_0 = arith.constant 0 : i32
    return %arg0, %c0_i32 : i32, i32
  }
  func.func @transform_1(%arg0: i32, %arg1: i32) -> (i32, i32) {
    %c0_i32 = arith.constant 0 : i32
    %c0_i32_0 = arith.constant 0 : i32
    return %c0_i32, %arg1 : i32, i32
  }
  func.func @transform_2(%arg0: i32, %arg1: i32) -> (i32, i32) {
    %c0_i32 = arith.constant 0 : i32
    %c0_i32_0 = arith.constant 0 : i32
    return %c0_i32, %arg1 : i32, i32
  }
  func.func @transform_3(%arg0: i32, %arg1: i32) -> (i32, i32) {
    %c0_i32 = arith.constant 0 : i32
    return %arg0, %arg1 : i32, i32
  }
}

module attributes {stable_mosaic.version = 11 : i64} {
  func.func @_conv_mm_single_k_kernel(%arg0: i32, %arg1: i32, %arg2: memref<32x4096xbf16, #tpu.memory_space<vmem>>, %arg3: memref<4096x256xbf16, #tpu.memory_space<vmem>>, %arg4: memref<2x256xf32, #tpu.memory_space<vmem>>, %arg5: memref<32x256xbf16, #tpu.memory_space<vmem>>) attributes {dimension_semantics = [#tpu.dimension_semantics<parallel>, #tpu.dimension_semantics<parallel>], iteration_bounds = array<i64: 1, 2>, scalar_prefetch = 0 : i64, scratch_operands = 0 : i64, tpu.core_type = #tpu.core_type<tc>, window_params = [{transform_indices = @transform_0, window_bounds = array<i64: 32, 4096>}, {transform_indices = @transform_1, window_bounds = array<i64: 4096, 256>}, {transform_indices = @transform_2, window_bounds = array<i64: 2, 256>}, {transform_indices = @transform_3, window_bounds = array<i64: 32, 256>}]} {
    %c0 = arith.constant 0 : index
    %c0_0 = arith.constant 0 : index
    %0 = vector.load %arg2[%c0, %c0_0] : memref<32x4096xbf16, #tpu.memory_space<vmem>>, vector<32x4096xbf16>
    %c0_1 = arith.constant 0 : index
    %c0_2 = arith.constant 0 : index
    %1 = vector.load %arg3[%c0_1, %c0_2] : memref<4096x256xbf16, #tpu.memory_space<vmem>>, vector<4096x256xbf16>
    %cst = arith.constant dense<0.000000e+00> : vector<32x256xf32>
    %2 = tpu.matmul %0, %1, %cst {dimension_numbers = #tpu.dot_dimension_numbers<[1], [0], [0], [1], [0, 0, 1, 1], [], []>} : vector<32x4096xbf16>, vector<4096x256xbf16>, vector<32x256xf32> -> vector<32x256xf32>
    %c0_3 = arith.constant 0 : index
    %c0_4 = arith.constant 0 : index
    %3 = vector.load %arg4[%c0_3, %c0_4] : memref<2x256xf32, #tpu.memory_space<vmem>>, vector<1x256xf32>
    %4 = vector.broadcast %3 : vector<1x256xf32> to vector<32x256xf32>
    %5 = arith.mulf %2, %4 : vector<32x256xf32>
    %c1 = arith.constant 1 : index
    %c0_5 = arith.constant 0 : index
    %6 = vector.load %arg4[%c1, %c0_5] : memref<2x256xf32, #tpu.memory_space<vmem>>, vector<1x256xf32>
    %7 = vector.broadcast %6 : vector<1x256xf32> to vector<32x256xf32>
    %8 = arith.addf %5, %7 : vector<32x256xf32>
    %cst_6 = arith.constant 0.000000e+00 : f32
    %9 = vector.broadcast %cst_6 : f32 to vector<32x256xf32>
    %10 = arith.cmpf oge, %8, %9 : vector<32x256xf32>
    %cst_7 = arith.constant 2.000000e-01 : f32
    %11 = vector.broadcast %cst_7 : f32 to vector<32x256xf32>
    %12 = arith.mulf %11, %8 : vector<32x256xf32>
    %13 = arith.select %10, %8, %12 : vector<32x256xi1>, vector<32x256xf32>
    %14 = arith.truncf %13 : vector<32x256xf32> to vector<32x256xbf16>
    %c0_8 = arith.constant 0 : index
    %c0_9 = arith.constant 0 : index
    %15 = vector.load %arg5[%c0_8, %c0_9] : memref<32x256xbf16, #tpu.memory_space<vmem>>, vector<32x256xbf16>
    tpu.vector_store %arg5[%c0_8, %c0_9], %14 {strides = array<i32>} : memref<32x256xbf16, #tpu.memory_space<vmem>>, vector<32x256xbf16>,
    return
  }
  func.func @transform_0(%arg0: i32, %arg1: i32) -> (i32, i32) {
    %c0_i32 = arith.constant 0 : i32
    %c0_i32_0 = arith.constant 0 : i32
    return %arg0, %c0_i32 : i32, i32
  }
  func.func @transform_1(%arg0: i32, %arg1: i32) -> (i32, i32) {
    %c0_i32 = arith.constant 0 : i32
    %c0_i32_0 = arith.constant 0 : i32
    return %c0_i32, %arg1 : i32, i32
  }
  func.func @transform_2(%arg0: i32, %arg1: i32) -> (i32, i32) {
    %c0_i32 = arith.constant 0 : i32
    %c0_i32_0 = arith.constant 0 : i32
    return %c0_i32, %arg1 : i32, i32
  }
  func.func @transform_3(%arg0: i32, %arg1: i32) -> (i32, i32) {
    %c0_i32 = arith.constant 0 : i32
    return %arg0, %arg1 : i32, i32
  }
}

module attributes {stable_mosaic.version = 11 : i64} {
  func.func @_conv_mm_single_k_kernel(%arg0: i32, %arg1: i32, %arg2: memref<16x8192xbf16, #tpu.memory_space<vmem>>, %arg3: memref<8192x128xbf16, #tpu.memory_space<vmem>>, %arg4: memref<2x128xf32, #tpu.memory_space<vmem>>, %arg5: memref<16x128xf32, #tpu.memory_space<vmem>>) attributes {dimension_semantics = [#tpu.dimension_semantics<parallel>, #tpu.dimension_semantics<parallel>], iteration_bounds = array<i64: 1, 1>, scalar_prefetch = 0 : i64, scratch_operands = 0 : i64, tpu.core_type = #tpu.core_type<tc>, window_params = [{transform_indices = @transform_0, window_bounds = array<i64: 16, 8192>}, {transform_indices = @transform_1, window_bounds = array<i64: 8192, 128>}, {transform_indices = @transform_2, window_bounds = array<i64: 2, 128>}, {transform_indices = @transform_3, window_bounds = array<i64: 16, 128>}]} {
    %c0 = arith.constant 0 : index
    %c0_0 = arith.constant 0 : index
    %0 = vector.load %arg2[%c0, %c0_0] : memref<16x8192xbf16, #tpu.memory_space<vmem>>, vector<16x8192xbf16>
    %c0_1 = arith.constant 0 : index
    %c0_2 = arith.constant 0 : index
    %1 = vector.load %arg3[%c0_1, %c0_2] : memref<8192x128xbf16, #tpu.memory_space<vmem>>, vector<8192x128xbf16>
    %cst = arith.constant dense<0.000000e+00> : vector<16x128xf32>
    %2 = tpu.matmul %0, %1, %cst {dimension_numbers = #tpu.dot_dimension_numbers<[1], [0], [0], [1], [0, 0, 1, 1], [], []>} : vector<16x8192xbf16>, vector<8192x128xbf16>, vector<16x128xf32> -> vector<16x128xf32>
    %c0_3 = arith.constant 0 : index
    %c0_4 = arith.constant 0 : index
    %3 = vector.load %arg4[%c0_3, %c0_4] : memref<2x128xf32, #tpu.memory_space<vmem>>, vector<1x128xf32>
    %4 = vector.broadcast %3 : vector<1x128xf32> to vector<16x128xf32>
    %5 = arith.mulf %2, %4 : vector<16x128xf32>
    %c1 = arith.constant 1 : index
    %c0_5 = arith.constant 0 : index
    %6 = vector.load %arg4[%c1, %c0_5] : memref<2x128xf32, #tpu.memory_space<vmem>>, vector<1x128xf32>
    %7 = vector.broadcast %6 : vector<1x128xf32> to vector<16x128xf32>
    %8 = arith.addf %5, %7 : vector<16x128xf32>
    %cst_6 = arith.constant 5.000000e-01 : f32
    %9 = vector.broadcast %cst_6 : f32 to vector<16x128xf32>
    %10 = arith.mulf %9, %8 : vector<16x128xf32>
    %11 = math.tanh %10 : vector<16x128xf32>
    %cst_7 = arith.constant 1.000000e+00 : f32
    %12 = vector.broadcast %cst_7 : f32 to vector<16x128xf32>
    %13 = arith.addf %11, %12 : vector<16x128xf32>
    %cst_8 = arith.constant 5.000000e-01 : f32
    %14 = vector.broadcast %cst_8 : f32 to vector<16x128xf32>
    %15 = arith.mulf %14, %13 : vector<16x128xf32>
    %c0_9 = arith.constant 0 : index
    %c0_10 = arith.constant 0 : index
    %16 = vector.load %arg5[%c0_9, %c0_10] : memref<16x128xf32, #tpu.memory_space<vmem>>, vector<16x128xf32>
    tpu.vector_store %arg5[%c0_9, %c0_10], %15 {strides = array<i32>} : memref<16x128xf32, #tpu.memory_space<vmem>>, vector<16x128xf32>,
    return
  }
  func.func @transform_0(%arg0: i32, %arg1: i32) -> (i32, i32) {
    %c0_i32 = arith.constant 0 : i32
    %c0_i32_0 = arith.constant 0 : i32
    return %arg0, %c0_i32 : i32, i32
  }
  func.func @transform_1(%arg0: i32, %arg1: i32) -> (i32, i32) {
    %c0_i32 = arith.constant 0 : i32
    %c0_i32_0 = arith.constant 0 : i32
    return %c0_i32, %arg1 : i32, i32
  }
  func.func @transform_2(%arg0: i32, %arg1: i32) -> (i32, i32) {
    %c0_i32 = arith.constant 0 : i32
    %c0_i32_0 = arith.constant 0 : i32
    return %c0_i32, %arg1 : i32, i32
  }
  func.func @transform_3(%arg0: i32, %arg1: i32) -> (i32, i32) {
    %c0_i32 = arith.constant 0 : i32
    return %arg0, %arg1 : i32, i32
  }
}

</mosaic_0001>

<bundles_post_ra>
// kernel: discriminator_forward.5
= control target key start
LH: loop header
LB: loop body
LE: loop exit
PB: predicated region body
PF: predicated region fallthrough
CT: control target
= control target key end

     0   :  { %s1369_s12 = smov 0   ;;  %s1371_s13 = smov 0   ;;  %s1547_s0 = inlined_call_operand.vmem [shape: bf16[512,48], index: 0, kind: input, shape index: {}]   ;;  %s1548_s1 = inlined_call_operand.vmem [shape: bf16[48,128], index: 1, kind: input, shape index: {}]   ;;  %s1549_s2 = inlined_call_operand.vmem [shape: f32[2,128], index: 2, kind: input, shape index: {}]   ;;  %s1550_s3 = inlined_call_operand.vmem [shape: bf16[512,128], index: 3, kind: output, shape index: {}]  }
   0x1   :  { %s1373_s14 = smov 0  }
   0x2 LB: > { %s25_s15 = sadd.s32 1, %s1343_s13  ;;  %p1016_p0 = scmp.ge.s32.totalorder %s1347_s14, 1  ;;  %s1347_s14 = sphi %s1373_s14, %s13_s14   ;;  %s1343_s13 = sphi %s1371_s13, %s1552_s13   ;;  %s1339_s12 = sphi %s1369_s12, %s1551_s12  }
   0x3   : > { %p27_p1 = scmp.ge.s32.totalorder %s25_s15, 2  ;;  %p170_p2 = scmp.lt.s32.totalorder %s1347_s14, 3 }
   0x5   : > { %s1554_s15 = smov (%p27_p1, %s25_s15), 0  ;;  %p171_p3 = pnand %p1016_p0, %p170_p2 }
   0x6   : > { %v1306_v0 = vld [vmem:[%s1548_s1] sm:$0xff] (!%p171_p3)   ;;  %s1017_s18 = sshll.u32 (!%p171_p3), %s1339_s12, 5  ;;  %v1307_v1 = vld [vmem:[%s1548_s1 + $0x8] sm:$0xff] (!%p171_p3)   ;;  %v1308_v2 = vld [vmem:[%s1548_s1 + $0x10] sm:$0xff] (!%p171_p3)   ;;  %vm365_vm0 = vcmask (!%p171_p3), 392192  }
   0x7   : > { %174 = sbr.rel (%p171_p3) target bundleno = 281 (0x119), region = 32  ;;  %p206_p4 = scmp.lt.s32.totalorder (!%p171_p3), %s1017_s18, 63  ;;  %1238 = vmatprep.subr.bf16.mxu0 (!%p171_p3), %v1306_v0  ;;  %1276 = vmatprep.subr.bf16.mxu1 (!%p171_p3), %v1306_v0  ;;  %v1441_v19 = vld [vmem:[%s1549_s2] ss:$0 sm:$0xff] (!%p171_p3)  ;;  %v1446_v21 = vld [vmem:[%s1549_s2 + $0x1] ss:$0 sm:$0xff] (!%p171_p3) }
   0x8   : > { %1239 = vmatpush3.bf16.msra.mxu0 (!%p171_p3), %v1306_v0  ;;  %1279 = vmatpush3.bf16.msra.mxu1 (!%p171_p3), %v1306_v0 }
   0x9   : > { %1240 = vmatprep.subr.bf16.mxu0 (!%p171_p3), %v1307_v1  ;;  %1277 = vmatprep.subr.bf16.mxu1 (!%p171_p3), %v1307_v1 }
   0xc   : > { %1241 = vmatpush3.bf16.msra.mxu0 (!%p171_p3), %v1307_v1  ;;  %1280 = vmatpush3.bf16.msra.mxu1 (!%p171_p3), %v1307_v1 }
   0xd   : > { %1242 = vmatprep.subr.bf16.mxu0 (!%p171_p3), %v1308_v2  ;;  %1278 = vmatprep.subr.bf16.mxu1 (!%p171_p3), %v1308_v2 }
   0xe   : > { %s1556_s18 = smov (!%p206_p4, %s1017_s18), 63 }
   0xf   : > { %s1018_s23 = sshll.u32 %s1556_s18, 2 }
  0x10   : > { %s1404_s26 = scalar_lea.vmem %s1547_s0, %s1018_s23  ;;  %1243 = vmatpush3.bf16.msra.mxu0 %v1308_v2  ;;  %1281 = vmatpush3.bf16.msra.mxu1 %v1308_v2  ;;  %s1469_s6 = scalar_lea.vmem %s1550_s3, %s1018_s23 }
  0x11   : > { %v1309_v3 = vld [vmem:[%s1404_s26] sm:$0xff]   ;;  %v1311_v5 = vld [vmem:[%s1404_s26 + $0x8] sm:$0xff]   ;;  %v1313_v7 = vld [vmem:[%s1404_s26 + $0x10] sm:$0xff]  }
  0x12   : > { %v1310_v4 = vld [vmem:[%s1404_s26 + $0x40] sm:$0xff]   ;;  %1244 = vmatprep.mubr.msk.bf16.mxu0 %vm365_vm0, %v1309_v3  ;;  %v1312_v6 = vld [vmem:[%s1404_s26 + $0x48] sm:$0xff]   ;;  %v1314_v8 = vld [vmem:[%s1404_s26 + $0x50] sm:$0xff]  }
  0x13   : > { %1260 = vmatprep.mubr.msk.bf16.mxu1 %vm365_vm0, %v1310_v4  ;;  %1245 = vmatmul.mubr.msk.bf16.vlgmr.msra.gmra.mrb[0].mxu0 %vm365_vm0, %v1311_v5  ;;  %v1315_v9 = vld [vmem:[%s1404_s26 + $0x18] sm:$0xff]   ;;  %v1317_v11 = vld [vmem:[%s1404_s26 + $0x20] sm:$0xff]   ;;  %v1319_v13 = vld [vmem:[%s1404_s26 + $0x28] sm:$0xff]  }
  0x14   : > { %1261 = vmatmul.mubr.msk.bf16.vlgmr.msra.gmra.mrb[0].mxu1 %vm365_vm0, %v1312_v6  ;;  %1248 = vmatprep.mubr.msk.bf16.mxu0 %vm365_vm0, %v1313_v7  ;;  %v1316_v10 = vld [vmem:[%s1404_s26 + $0x58] sm:$0xff]   ;;  %v1318_v12 = vld [vmem:[%s1404_s26 + $0x60] sm:$0xff]   ;;  %v1320_v14 = vld [vmem:[%s1404_s26 + $0x68] sm:$0xff]  }
  0x15   : > { %1264 = vmatprep.mubr.msk.bf16.mxu1 %vm365_vm0, %v1314_v8  ;;  %v1321_v15 = vld [vmem:[%s1404_s26 + $0x30] sm:$0xff]   ;;  %v1323_v17 = vld [vmem:[%s1404_s26 + $0x38] sm:$0xff]  }
  0x16   : > { %v1322_v16 = vld [vmem:[%s1404_s26 + $0x70] sm:$0xff]   ;;  %v1324_v18 = vld [vmem:[%s1404_s26 + $0x78] sm:$0xff]  }
  0x1b   : > { %1249 = vmatmul.mubr.msk.bf16.gmra.mrb[4].mxu0 %vm365_vm0, %v1315_v9 }
  0x1c   : > { %1265 = vmatmul.mubr.msk.bf16.gmra.mrb[4].mxu1 %vm365_vm0, %v1316_v10  ;;  %1252 = vmatprep.mubr.msk.bf16.mxu0 %vm365_vm0, %v1317_v11 }
  0x1d   : > { %1268 = vmatprep.mubr.msk.bf16.mxu1 %vm365_vm0, %v1318_v12 }
  0x23   : > { %1253 = vmatmul.mubr.msk.bf16.gmra.mrb[8].mxu0 %vm365_vm0, %v1319_v13 }
  0x24   : > { %1269 = vmatmul.mubr.msk.bf16.gmra.mrb[8].mxu1 %vm365_vm0, %v1320_v14  ;;  %1256 = vmatprep.mubr.msk.bf16.mxu0 %vm365_vm0, %v1321_v15 }
  0x25   : > { %1272 = vmatprep.mubr.msk.bf16.mxu1 %vm365_vm0, %v1322_v16 }
  0x2b   : > { %1257 = vmatmul.mubr.msk.bf16.gmra.mrb[12].mxu0 %vm365_vm0, %v1323_v17 }
  0x2c   : > { %1273 = vmatmul.mubr.msk.bf16.gmra.mrb[12].mxu1 %vm365_vm0, %v1324_v18 }
  0xe6   : > { %v1246_v20 = vpop.f32.mrb[0].mxu0 }
  0xe7   : > { %v1262_v22 = vpop.f32.mrb[0].mxu1  ;;  %v582_v23 = vmul.f32 %v1246_v20, %v1441_v19  ;;  %v448_v25 = vpop.f32.mrb[1].mxu0 }
  0xe8   : > { %v598_v24 = vmul.f32 %v1262_v22, %v1441_v19  ;;  %v512_v26 = vpop.f32.mrb[1].mxu1  ;;  %v580_v27 = vmul.f32 %v1441_v19, %v448_v25  ;;  %v1247_v29 = vpop.f32.mrb[2].mxu0 }
  0xe9   : > { %v596_v28 = vmul.f32 %v1441_v19, %v512_v26  ;;  %v1263_v30 = vpop.f32.mrb[2].mxu1  ;;  %v619_v31 = vadd.f32 %v1446_v21, %v582_v23  ;;  %v583_v33 = vmul.f32 %v1247_v29, %v1441_v19  ;;  %v451_v35 = vpop.f32.mrb[3].mxu0 }
  0xea   : > { %v635_v32 = vadd.f32 %v1446_v21, %v598_v24  ;;  %v599_v34 = vmul.f32 %v1263_v30, %v1441_v19  ;;  %v515_v36 = vpop.f32.mrb[3].mxu1  ;;  %v617_v37 = vadd.f32 %v1446_v21, %v580_v27  ;;  %v581_v39 = vmul.f32 %v1441_v19, %v451_v35 }
  0xeb   : > { %v633_v38 = vadd.f32 %v1446_v21, %v596_v28  ;;  %v597_v40 = vmul.f32 %v1441_v19, %v515_v36  ;;  %vm651_vm1 = vcmp.ge.f32.partialorder %v619_v31, 0.0  ;;  %v683_v41 = vmul.f32 0.2, %v619_v31 }
  0xec   : > { %vm667_vm2 = vcmp.ge.f32.partialorder %v635_v32, 0.0  ;;  %v699_v42 = vmul.f32 0.2, %v635_v32  ;;  %vm649_vm3 = vcmp.ge.f32.partialorder %v617_v37, 0.0  ;;  %v681_v43 = vmul.f32 0.2, %v617_v37 }
  0xed   : > { %vm665_vm4 = vcmp.ge.f32.partialorder %v633_v38, 0.0  ;;  %v697_v44 = vmul.f32 0.2, %v633_v38  ;;  %v715_v45 = vsel %vm651_vm1, %v619_v31, %v683_v41  ;;  %v620_v47 = vadd.f32 %v1446_v21, %v583_v33 }
  0xee   : > { %v731_v46 = vsel %vm667_vm2, %v635_v32, %v699_v42  ;;  %v636_v48 = vadd.f32 %v1446_v21, %v599_v34  ;;  %v713_v49 = vsel %vm649_vm3, %v617_v37, %v681_v43  ;;  %v618_v51 = vadd.f32 %v1446_v21, %v581_v39  ;;  %v1250_v53 = vpop.f32.mrb[4].mxu0 }
  0xef   : > { %v729_v50 = vsel %vm665_vm4, %v633_v38, %v697_v44  ;;  %v634_v52 = vadd.f32 %v1446_v21, %v597_v40  ;;  %v1266_v54 = vpop.f32.mrb[4].mxu1  ;;  %vm652_vm5 = vcmp.ge.f32.partialorder %v620_v47, 0.0  ;;  %v684_v55 = vmul.f32 0.2, %v620_v47  ;;  %v464_v63 = vpop.f32.mrb[5].mxu0 }
  0xf0   : > { %vm668_vm6 = vcmp.ge.f32.partialorder %v636_v48, 0.0  ;;  %v700_v56 = vmul.f32 0.2, %v636_v48  ;;  %vm650_vm7 = vcmp.ge.f32.partialorder %v618_v51, 0.0  ;;  %v682_v57 = vmul.f32 0.2, %v618_v51 }
  0xf1   : > { %vm666_vm8 = vcmp.ge.f32.partialorder %v634_v52, 0.0  ;;  %v698_v58 = vmul.f32 0.2, %v634_v52  ;;  %v716_v59 = vsel %vm652_vm5, %v620_v47, %v684_v55  ;;  %v586_v61 = vmul.f32 %v1250_v53, %v1441_v19  ;;  %v528_v0 = vpop.f32.mrb[5].mxu1  ;;  %v1251_v5 = vpop.f32.mrb[6].mxu0 }
  0xf2   : > { %v732_v60 = vsel %vm668_vm6, %v636_v48, %v700_v56  ;;  %v602_v62 = vmul.f32 %v1266_v54, %v1441_v19  ;;  %v1132_v1 = vpack.c.bf16 %v716_v59, %v715_v45  ;;  %v714_v3 = vsel %vm650_vm7, %v618_v51, %v682_v57  ;;  %v1267_v6 = vpop.f32.mrb[6].mxu1  ;;  %v467_v11 = vpop.f32.mrb[7].mxu0 }
  0xf3   : > { %v1172_v2 = vpack.c.bf16 %v732_v60, %v731_v46  ;;  %v730_v4 = vsel %vm666_vm8, %v634_v52, %v698_v58  ;;  %v1127_v7 = vpack.c.bf16 %v714_v3, %v713_v49  ;;  %v623_v9 = vadd.f32 %v1446_v21, %v586_v61  ;;  %v531_v12 = vpop.f32.mrb[7].mxu1 }
  0xf4   : > { %v1167_v8 = vpack.c.bf16 %v730_v4, %v729_v50  ;;  %v639_v10 = vadd.f32 %v1446_v21, %v602_v62  ;;  %1204 = vst [vmem:[%s1469_s6 + $0x8] sm:$0xff] %v1132_v1   ;;  %v584_v13 = vmul.f32 %v1441_v19, %v464_v63  ;;  %v600_v14 = vmul.f32 %v1441_v19, %v528_v0 }
  0xf5   : > { %1212 = vst [vmem:[%s1469_s6 + $0x48] sm:$0xff] %v1172_v2   ;;  %v587_v15 = vmul.f32 %v1251_v5, %v1441_v19  ;;  %v603_v16 = vmul.f32 %v1267_v6, %v1441_v19  ;;  %1128 = vst [vmem:[%s1469_s6] sm:$0xff] %v1127_v7   ;;  %vm655_vm9 = vcmp.ge.f32.partialorder %v623_v9, 0.0  ;;  %v687_v17 = vmul.f32 0.2, %v623_v9 }
  0xf6   : > { %1211 = vst [vmem:[%s1469_s6 + $0x40] sm:$0xff] %v1167_v8   ;;  %vm671_vm10 = vcmp.ge.f32.partialorder %v639_v10, 0.0  ;;  %v703_v18 = vmul.f32 0.2, %v639_v10  ;;  %v621_v20 = vadd.f32 %v1446_v21, %v584_v13  ;;  %v637_v22 = vadd.f32 %v1446_v21, %v600_v14  ;;  %v1254_v25 = vpop.f32.mrb[8].mxu0 }
  0xf7   : > { %v624_v23 = vadd.f32 %v1446_v21, %v587_v15  ;;  %v640_v24 = vadd.f32 %v1446_v21, %v603_v16  ;;  %v1270_v26 = vpop.f32.mrb[8].mxu1  ;;  %v719_v27 = vsel %vm655_vm9, %v623_v9, %v687_v17  ;;  %v585_v29 = vmul.f32 %v1441_v19, %v467_v11  ;;  %v480_v31 = vpop.f32.mrb[9].mxu0 }
  0xf8   : > { %v735_v28 = vsel %vm671_vm10, %v639_v10, %v703_v18  ;;  %v601_v30 = vmul.f32 %v1441_v19, %v531_v12  ;;  %v544_v32 = vpop.f32.mrb[9].mxu1  ;;  %vm653_vm11 = vcmp.ge.f32.partialorder %v621_v20, 0.0  ;;  %v685_v33 = vmul.f32 0.2, %v621_v20  ;;  %v1255_v41 = vpop.f32.mrb[10].mxu0 }
  0xf9   : > { %vm669_vm12 = vcmp.ge.f32.partialorder %v637_v22, 0.0  ;;  %v701_v34 = vmul.f32 0.2, %v637_v22  ;;  %vm656_vm13 = vcmp.ge.f32.partialorder %v624_v23, 0.0  ;;  %v688_v35 = vmul.f32 0.2, %v624_v23 }
  0xfa   : > { %vm672_vm14 = vcmp.ge.f32.partialorder %v640_v24, 0.0  ;;  %v704_v36 = vmul.f32 0.2, %v640_v24  ;;  %v717_v37 = vsel %vm653_vm11, %v621_v20, %v685_v33  ;;  %v622_v39 = vadd.f32 %v1446_v21, %v585_v29  ;;  %v1271_v42 = vpop.f32.mrb[10].mxu1  ;;  %v483_v47 = vpop.f32.mrb[11].mxu0 }
  0xfb   : > { %v733_v38 = vsel %vm669_vm12, %v637_v22, %v701_v34  ;;  %v638_v40 = vadd.f32 %v1446_v21, %v601_v30  ;;  %v720_v43 = vsel %vm656_vm13, %v624_v23, %v688_v35  ;;  %v590_v45 = vmul.f32 %v1254_v25, %v1441_v19  ;;  %v547_v48 = vpop.f32.mrb[11].mxu1 }
  0xfc   : > { %v736_v44 = vsel %vm672_vm14, %v640_v24, %v704_v36  ;;  %v606_v46 = vmul.f32 %v1270_v26, %v1441_v19  ;;  %v1142_v49 = vpack.c.bf16 %v720_v43, %v719_v27  ;;  %vm654_vm15 = vcmp.ge.f32.partialorder %v622_v39, 0.0 }
  0xfd   : > { %v1182_v50 = vpack.c.bf16 %v736_v44, %v735_v28  ;;  %v686_v51 = vmul.f32 0.2, %v622_v39  ;;  %vm670_vm0 = vcmp.ge.f32.partialorder %v638_v40, 0.0  ;;  %v702_v52 = vmul.f32 0.2, %v638_v40 }
  0xfe   : > { %v627_v53 = vadd.f32 %v1446_v21, %v590_v45  ;;  %v643_v54 = vadd.f32 %v1446_v21, %v606_v46  ;;  %1206 = vst [vmem:[%s1469_s6 + $0x18] sm:$0xff] %v1142_v49   ;;  %v588_v56 = vmul.f32 %v1441_v19, %v480_v31  ;;  %v604_v57 = vmul.f32 %v1441_v19, %v544_v32  ;;  %v1258_v59 = vpop.f32.mrb[12].mxu0 }
  0xff   : > { %1214 = vst [vmem:[%s1469_s6 + $0x58] sm:$0xff] %v1182_v50   ;;  %v718_v55 = vsel %vm654_vm15, %v622_v39, %v686_v51  ;;  %v591_v58 = vmul.f32 %v1255_v41, %v1441_v19  ;;  %v1274_v60 = vpop.f32.mrb[12].mxu1  ;;  %v734_v62 = vsel %vm670_vm0, %v638_v40, %v702_v52  ;;  %v496_v0 = vpop.f32.mrb[13].mxu0  ;;  %v607_v9 = vmul.f32 %v1271_v42, %v1441_v19 }
 0x100   : > { %v1137_v61 = vpack.c.bf16 %v718_v55, %v717_v37  ;;  %vm659_vm1 = vcmp.ge.f32.partialorder %v627_v53, 0.0  ;;  %v691_v63 = vmul.f32 0.2, %v627_v53  ;;  %v560_v1 = vpop.f32.mrb[13].mxu1  ;;  %v1177_v2 = vpack.c.bf16 %v734_v62, %v733_v38  ;;  %v1259_v5 = vpop.f32.mrb[14].mxu0 }
 0x101   : > { %vm675_vm2 = vcmp.ge.f32.partialorder %v643_v54, 0.0  ;;  %v707_v3 = vmul.f32 0.2, %v643_v54  ;;  %v625_v4 = vadd.f32 %v1446_v21, %v588_v56  ;;  %v1275_v6 = vpop.f32.mrb[14].mxu1  ;;  %v641_v7 = vadd.f32 %v1446_v21, %v604_v57  ;;  %v499_v10 = vpop.f32.mrb[15].mxu0 }
 0x102   : > { %1205 = vst [vmem:[%s1469_s6 + $0x10] sm:$0xff] %v1137_v61   ;;  %v628_v8 = vadd.f32 %v1446_v21, %v591_v58  ;;  %v563_v11 = vpop.f32.mrb[15].mxu1  ;;  %1213 = vst [vmem:[%s1469_s6 + $0x50] sm:$0xff] %v1177_v2   ;;  %v723_v12 = vsel %vm659_vm1, %v627_v53, %v691_v63  ;;  %v589_v14 = vmul.f32 %v1441_v19, %v483_v47 }
 0x103   : > { %v739_v13 = vsel %vm675_vm2, %v643_v54, %v707_v3  ;;  %vm657_vm3 = vcmp.ge.f32.partialorder %v625_v4, 0.0  ;;  %v689_v15 = vmul.f32 0.2, %v625_v4  ;;  %vm673_vm5 = vcmp.ge.f32.partialorder %v641_v7, 0.0 }
 0x104   : > { %vm660_vm4 = vcmp.ge.f32.partialorder %v628_v8, 0.0  ;;  %v692_v16 = vmul.f32 0.2, %v628_v8  ;;  %v644_v17 = vadd.f32 %v1446_v21, %v607_v9  ;;  %v626_v18 = vadd.f32 %v1446_v21, %v589_v14 }
 0x105   : > { %v605_v20 = vmul.f32 %v1441_v19, %v547_v48  ;;  %v705_v22 = vmul.f32 0.2, %v641_v7  ;;  %v594_v24 = vmul.f32 %v1258_v59, %v1441_v19  ;;  %v610_v25 = vmul.f32 %v1274_v60, %v1441_v19 }
 0x106   : > { %v724_v23 = vsel %vm660_vm4, %v628_v8, %v692_v16  ;;  %vm676_vm6 = vcmp.ge.f32.partialorder %v644_v17, 0.0  ;;  %v708_v27 = vmul.f32 0.2, %v644_v17  ;;  %vm658_vm7 = vcmp.ge.f32.partialorder %v626_v18, 0.0 }
 0x107   : > { %v1152_v26 = vpack.c.bf16 %v724_v23, %v723_v12  ;;  %v721_v28 = vsel %vm657_vm3, %v625_v4, %v689_v15  ;;  %v690_v29 = vmul.f32 0.2, %v626_v18  ;;  %v642_v30 = vadd.f32 %v1446_v21, %v605_v20 }
 0x108   : > { %v631_v31 = vadd.f32 %v1446_v21, %v594_v24  ;;  %v740_v32 = vsel %vm676_vm6, %v644_v17, %v708_v27  ;;  %v647_v33 = vadd.f32 %v1446_v21, %v610_v25  ;;  %v592_v34 = vmul.f32 %v1441_v19, %v496_v0 }
 0x109   : > { %1208 = vst [vmem:[%s1469_s6 + $0x28] sm:$0xff] %v1152_v26   ;;  %v595_v35 = vmul.f32 %v1259_v5, %v1441_v19  ;;  %v1192_v36 = vpack.c.bf16 %v740_v32, %v739_v13  ;;  %v722_v37 = vsel %vm658_vm7, %v626_v18, %v690_v29  ;;  %vm674_vm8 = vcmp.ge.f32.partialorder %v642_v30, 0.0 }
 0x10a   : > { %v706_v38 = vmul.f32 0.2, %v642_v30  ;;  %v1147_v39 = vpack.c.bf16 %v722_v37, %v721_v28  ;;  %v608_v40 = vmul.f32 %v1441_v19, %v560_v1  ;;  %v737_v41 = vsel %vm673_vm5, %v641_v7, %v705_v22 }
 0x10b   : > { %1216 = vst [vmem:[%s1469_s6 + $0x68] sm:$0xff] %v1192_v36   ;;  %vm663_vm9 = vcmp.ge.f32.partialorder %v631_v31, 0.0  ;;  %v695_v43 = vmul.f32 0.2, %v631_v31  ;;  %v711_v45 = vmul.f32 0.2, %v647_v33  ;;  %v632_v46 = vadd.f32 %v1446_v21, %v595_v35 }
 0x10c   : > { %v738_v42 = vsel %vm674_vm8, %v642_v30, %v706_v38  ;;  %1207 = vst [vmem:[%s1469_s6 + $0x20] sm:$0xff] %v1147_v39   ;;  %v611_v47 = vmul.f32 %v1275_v6, %v1441_v19  ;;  %vm679_vm10 = vcmp.ge.f32.partialorder %v647_v33, 0.0  ;;  %v629_v48 = vadd.f32 %v1446_v21, %v592_v34 }
 0x10d   : > { %v1187_v44 = vpack.c.bf16 %v738_v42, %v737_v41  ;;  %v645_v49 = vadd.f32 %v1446_v21, %v608_v40  ;;  %vm664_vm11 = vcmp.ge.f32.partialorder %v632_v46, 0.0  ;;  %v696_v50 = vmul.f32 0.2, %v632_v46 }
 0x10e   : > { %v648_v51 = vadd.f32 %v1446_v21, %v611_v47  ;;  %v727_v52 = vsel %vm663_vm9, %v631_v31, %v695_v43  ;;  %v593_v53 = vmul.f32 %v1441_v19, %v499_v10  ;;  %v609_v54 = vmul.f32 %v1441_v19, %v563_v11 }
 0x10f   : > { %1215 = vst [vmem:[%s1469_s6 + $0x60] sm:$0xff] %v1187_v44   ;;  %v743_v55 = vsel %vm679_vm10, %v647_v33, %v711_v45  ;;  %v728_v56 = vsel %vm664_vm11, %v632_v46, %v696_v50  ;;  %v693_v58 = vmul.f32 0.2, %v629_v48  ;;  %vm661_vm13 = vcmp.ge.f32.partialorder %v629_v48, 0.0 }
 0x110   : > { %vm680_vm12 = vcmp.ge.f32.partialorder %v648_v51, 0.0  ;;  %v712_v57 = vmul.f32 0.2, %v648_v51  ;;  %v1162_v59 = vpack.c.bf16 %v728_v56, %v727_v52  ;;  %v630_v60 = vadd.f32 %v1446_v21, %v593_v53 }
 0x111   : > { %v646_v61 = vadd.f32 %v1446_v21, %v609_v54  ;;  %vm677_vm14 = vcmp.ge.f32.partialorder %v645_v49, 0.0  ;;  %v709_v62 = vmul.f32 0.2, %v645_v49  ;;  %v725_v2 = vsel %vm661_vm13, %v629_v48, %v693_v58 }
 0x112   : > { %v744_v63 = vsel %vm680_vm12, %v648_v51, %v712_v57  ;;  %1210 = vst [vmem:[%s1469_s6 + $0x38] sm:$0xff] %v1162_v59   ;;  %vm662_vm15 = vcmp.ge.f32.partialorder %v630_v60, 0.0  ;;  %v694_v19 = vmul.f32 0.2, %v630_v60 }
 0x113   : > { %v1202_v0 = vpack.c.bf16 %v744_v63, %v743_v55  ;;  %vm678_vm0 = vcmp.ge.f32.partialorder %v646_v61, 0.0  ;;  %v710_v1 = vmul.f32 0.2, %v646_v61  ;;  %v741_v4 = vsel %vm677_vm14, %v645_v49, %v709_v62 }
 0x114   : > { %v726_v3 = vsel %vm662_vm15, %v630_v60, %v694_v19 }
 0x115   : > { %1218 = vst [vmem:[%s1469_s6 + $0x78] sm:$0xff] %v1202_v0   ;;  %v1157_v5 = vpack.c.bf16 %v726_v3, %v725_v2  ;;  %v742_v6 = vsel %vm678_vm0, %v646_v61, %v710_v1 }
 0x116   : > { %v1197_v7 = vpack.c.bf16 %v742_v6, %v741_v4 }
 0x117   : > { %1209 = vst [vmem:[%s1469_s6 + $0x30] sm:$0xff] %v1157_v5  }
 0x118   : > { %1217 = vst [vmem:[%s1469_s6 + $0x70] sm:$0xff] %v1197_v7  }
 0x119 PF: > { %s13_s14 = sadd.s32 1, %s1347_s14   ;;  %s1551_s12 = smov %s1343_s13 }
 0x11a   : > { %p10_p5 = scmp.ge.s32.totalorder %s13_s14, 4   ;;  %s1552_s13 = smov %s1554_s15 }
 0x11c   :  { %12 = sbr.rel (!%p10_p5) target bundleno = 2 (0x2), region = 68 }

// kernel: discriminator_forward.6
= control target key start
LH: loop header
LB: loop body
LE: loop exit
PB: predicated region body
PF: predicated region fallthrough
CT: control target
= control target key end

     0   :  { %s2520_s1 = inlined_call_operand.vmem [shape: bf16[1024,128], index: 1, kind: input, shape index: {}]   ;;  %s2521_s0 = inlined_call_operand.vmem [shape: bf16[128,1024], index: 0, kind: input, shape index: {}]   ;;  %s2522_s2 = inlined_call_operand.vmem [shape: f32[2,128], index: 2, kind: input, shape index: {}]   ;;  %s2523_s3 = inlined_call_operand.vmem [shape: bf16[128,128], index: 3, kind: output, shape index: {}]  }
   0x1   :  { %v1938_v0 = vld [vmem:[%s2520_s1 + $0x40] sm:$0xff]   ;;  %v1942_v4 = vld [vmem:[%s2520_s1 + $0x48] sm:$0xff]   ;;  %v1946_v8 = vld [vmem:[%s2520_s1 + $0x50] sm:$0xff]  }
   0x2   :  { %v1939_v1 = vld [vmem:[%s2520_s1 + $0xc0] sm:$0xff]   ;;  %1682 = vmatprep.subr.bf16.mxu0 %v1938_v0  ;;  %v1943_v5 = vld [vmem:[%s2520_s1 + $0xc8] sm:$0xff]   ;;  %v1947_v9 = vld [vmem:[%s2520_s1 + $0xd0] sm:$0xff]  }
   0x3   :  { %v1940_v2 = vld [vmem:[%s2520_s1] sm:$0xff]   ;;  %1746 = vmatprep.subr.bf16.mxu1 %v1939_v1  ;;  %v1944_v6 = vld [vmem:[%s2520_s1 + $0x8] sm:$0xff]   ;;  %v1948_v10 = vld [vmem:[%s2520_s1 + $0x10] sm:$0xff]  }
   0x4   :  { %v1941_v3 = vld [vmem:[%s2520_s1 + $0x80] sm:$0xff]   ;;  %1683 = vmatpush3.bf16.msra.mxu0 %v1940_v2  ;;  %v1945_v7 = vld [vmem:[%s2520_s1 + $0x88] sm:$0xff]   ;;  %v1949_v11 = vld [vmem:[%s2520_s1 + $0x90] sm:$0xff]  }
   0x5   :  { %1747 = vmatpush3.bf16.msra.mxu1 %v1941_v3  ;;  %1684 = vmatprep.subr.bf16.mxu0 %v1942_v4  ;;  %v1950_v12 = vld [vmem:[%s2520_s1 + $0x58] sm:$0xff]   ;;  %v1954_v16 = vld [vmem:[%s2520_s1 + $0x60] sm:$0xff]   ;;  %v1958_v20 = vld [vmem:[%s2520_s1 + $0x68] sm:$0xff]  }
   0x6   :  { %1748 = vmatprep.subr.bf16.mxu1 %v1943_v5  ;;  %v1951_v13 = vld [vmem:[%s2520_s1 + $0xd8] sm:$0xff]   ;;  %v1955_v17 = vld [vmem:[%s2520_s1 + $0xe0] sm:$0xff]   ;;  %v1959_v21 = vld [vmem:[%s2520_s1 + $0xe8] sm:$0xff]  }
   0x7   :  { %v1952_v14 = vld [vmem:[%s2520_s1 + $0x18] sm:$0xff]   ;;  %v1956_v18 = vld [vmem:[%s2520_s1 + $0x20] sm:$0xff]   ;;  %v1960_v22 = vld [vmem:[%s2520_s1 + $0x28] sm:$0xff]  }
   0x8   :  { %1685 = vmatpush3.bf16.msra.mxu0 %v1944_v6  ;;  %v1953_v15 = vld [vmem:[%s2520_s1 + $0x98] sm:$0xff]   ;;  %v1957_v19 = vld [vmem:[%s2520_s1 + $0xa0] sm:$0xff]   ;;  %v1961_v23 = vld [vmem:[%s2520_s1 + $0xa8] sm:$0xff]  }
   0x9   :  { %1749 = vmatpush3.bf16.msra.mxu1 %v1945_v7  ;;  %1686 = vmatprep.subr.bf16.mxu0 %v1946_v8  ;;  %v1962_v24 = vld [vmem:[%s2520_s1 + $0x70] sm:$0xff]   ;;  %v1966_v28 = vld [vmem:[%s2520_s1 + $0x78] sm:$0xff]   ;;  %v15_v32 = vld [vmem:[%s2521_s0] sm:$0xff] }
   0xa   :  { %1750 = vmatprep.subr.bf16.mxu1 %v1947_v9  ;;  %v1963_v25 = vld [vmem:[%s2520_s1 + $0xf0] sm:$0xff]   ;;  %v1967_v29 = vld [vmem:[%s2520_s1 + $0xf8] sm:$0xff]   ;;  %v19_v33 = vld [vmem:[%s2521_s0 + $0x20] sm:$0xff] }
   0xb   :  { %v1964_v26 = vld [vmem:[%s2520_s1 + $0x30] sm:$0xff]   ;;  %v1968_v30 = vld [vmem:[%s2520_s1 + $0x38] sm:$0xff]   ;;  %v16_v34 = vld [vmem:[%s2521_s0 + $0x8] sm:$0xff]  ;;  %v1473_v35 = vcombine.low %v15_v32, %v19_v33  ;;  %v1474_v36 = vcombine.high %v15_v32, %v19_v33 }
   0xc   :  { %1687 = vmatpush3.bf16.msra.mxu0 %v1948_v10  ;;  %v1965_v27 = vld [vmem:[%s2520_s1 + $0xb0] sm:$0xff]   ;;  %v1969_v31 = vld [vmem:[%s2520_s1 + $0xb8] sm:$0xff]   ;;  %v20_v37 = vld [vmem:[%s2521_s0 + $0x28] sm:$0xff] }
   0xd   :  { %1751 = vmatpush3.bf16.msra.mxu1 %v1949_v11  ;;  %1688 = vmatprep.subr.bf16.mxu0 %v1950_v12  ;;  %v1475_v38 = vcombine.low %v16_v34, %v20_v37  ;;  %v1476_v39 = vcombine.high %v16_v34, %v20_v37  ;;  %v1970_v40 = vld [vmem:[%s2520_s1 + $0x140] sm:$0xff]   ;;  %v24_v47 = vld [vmem:[%s2521_s0 + $0x48] sm:$0xff]  ;;  %v1978_v62 = vld [vmem:[%s2520_s1 + $0x150] sm:$0xff]  }
   0xe   :  { %1752 = vmatprep.subr.bf16.mxu1 %v1951_v13  ;;  %943 = vmatprep.mubr.bf16.mxu0 %v1474_v36  ;;  %v1971_v41 = vld [vmem:[%s2520_s1 + $0x100] sm:$0xff]   ;;  %v28_v48 = vld [vmem:[%s2521_s0 + $0x68] sm:$0xff]  ;;  %v1979_v63 = vld [vmem:[%s2520_s1 + $0x110] sm:$0xff]  }
   0xf   :  { %1040 = vmatprep.mubr.bf16.mxu1 %v1476_v39  ;;  %v1972_v42 = vld [vmem:[%s2520_s1 + $0x1c0] sm:$0xff]   ;;  %v1484_v49 = vcombine.high %v24_v47, %v28_v48  ;;  %v1974_v50 = vld [vmem:[%s2520_s1 + $0x148] sm:$0xff]   ;;  %v1483_v53 = vcombine.low %v24_v47, %v28_v48  ;;  %v1980_v0 = vld [vmem:[%s2520_s1 + $0x1d0] sm:$0xff]  }
  0x10   :  { %1689 = vmatpush3.bf16.msra.mxu0 %v1952_v14  ;;  %v1973_v43 = vld [vmem:[%s2520_s1 + $0x180] sm:$0xff]   ;;  %v1975_v52 = vld [vmem:[%s2520_s1 + $0x108] sm:$0xff]   ;;  %v1981_v1 = vld [vmem:[%s2520_s1 + $0x190] sm:$0xff]  }
  0x11   :  { %1753 = vmatpush3.bf16.msra.mxu1 %v1953_v15  ;;  %1690 = vmatprep.subr.bf16.mxu0 %v1954_v16  ;;  %v23_v44 = vld [vmem:[%s2521_s0 + $0x40] sm:$0xff]  ;;  %v1976_v54 = vld [vmem:[%s2520_s1 + $0x1c8] sm:$0xff]   ;;  %v1982_v10 = vld [vmem:[%s2520_s1 + $0x158] sm:$0xff]  }
  0x12   :  { %1754 = vmatprep.subr.bf16.mxu1 %v1955_v17  ;;  %v27_v45 = vld [vmem:[%s2521_s0 + $0x60] sm:$0xff]  ;;  %v1977_v55 = vld [vmem:[%s2520_s1 + $0x188] sm:$0xff]   ;;  %v1983_v11 = vld [vmem:[%s2520_s1 + $0x118] sm:$0xff]  }
  0x13   :  { %v1482_v46 = vcombine.high %v23_v44, %v27_v45  ;;  %v1481_v51 = vcombine.low %v23_v44, %v27_v45  ;;  %v31_v56 = vld [vmem:[%s2521_s0 + $0x80] sm:$0xff]  ;;  %v32_v58 = vld [vmem:[%s2521_s0 + $0x88] sm:$0xff]  ;;  %v1984_v12 = vld [vmem:[%s2520_s1 + $0x1d8] sm:$0xff]  }
  0x14   :  { %1691 = vmatpush3.bf16.msra.mxu0 %v1956_v18  ;;  %v35_v57 = vld [vmem:[%s2521_s0 + $0xa0] sm:$0xff]  ;;  %v36_v59 = vld [vmem:[%s2521_s0 + $0xa8] sm:$0xff]  ;;  %v1985_v13 = vld [vmem:[%s2520_s1 + $0x198] sm:$0xff]  }
  0x15   :  { %1755 = vmatpush3.bf16.msra.mxu1 %v1957_v19  ;;  %1692 = vmatprep.subr.bf16.mxu0 %v1958_v20  ;;  %v1490_v60 = vcombine.high %v31_v56, %v35_v57  ;;  %v1492_v61 = vcombine.high %v32_v58, %v36_v59  ;;  %v1489_v2 = vcombine.low %v31_v56, %v35_v57  ;;  %v39_v3 = vld [vmem:[%s2521_s0 + $0xc0] sm:$0xff]  ;;  %v40_v5 = vld [vmem:[%s2521_s0 + $0xc8] sm:$0xff]  ;;  %v1995_v39 = vld [vmem:[%s2520_s1 + $0x130] sm:$0xff]  }
  0x16   :  { %1756 = vmatprep.subr.bf16.mxu1 %v1959_v21  ;;  %v43_v4 = vld [vmem:[%s2521_s0 + $0xe0] sm:$0xff]  ;;  %v1491_v6 = vcombine.low %v32_v58, %v36_v59  ;;  %v44_v8 = vld [vmem:[%s2521_s0 + $0xe8] sm:$0xff]  ;;  %v1999_v48 = vld [vmem:[%s2520_s1 + $0x138] sm:$0xff]  }
  0x17   :  { %v1498_v7 = vcombine.high %v39_v3, %v43_v4  ;;  %v1500_v9 = vcombine.high %v40_v5, %v44_v8  ;;  %v47_v14 = vld [vmem:[%s2521_s0 + $0x100] sm:$0xff]  ;;  %v48_v16 = vld [vmem:[%s2521_s0 + $0x108] sm:$0xff]  ;;  %v1497_v19 = vcombine.low %v39_v3, %v43_v4  ;;  %v1499_v21 = vcombine.low %v40_v5, %v44_v8  ;;  %v26_v8 = vld [vmem:[%s2521_s0 + $0x58] sm:$0xff] }
  0x18   :  { %1693 = vmatpush3.bf16.msra.mxu0 %v1960_v22  ;;  %v51_v15 = vld [vmem:[%s2521_s0 + $0x120] sm:$0xff]  ;;  %v52_v17 = vld [vmem:[%s2521_s0 + $0x128] sm:$0xff] }
  0x19   :  { %1757 = vmatpush3.bf16.msra.mxu1 %v1961_v23  ;;  %1694 = vmatprep.subr.bf16.mxu0 %v1962_v24  ;;  %v1986_v18 = vld [vmem:[%s2520_s1 + $0x160] sm:$0xff]   ;;  %v1506_v22 = vcombine.high %v47_v14, %v51_v15  ;;  %v1508_v24 = vcombine.high %v48_v16, %v52_v17  ;;  %v1992_v32 = vld [vmem:[%s2520_s1 + $0x1e8] sm:$0xff]   ;;  %v1505_v34 = vcombine.low %v47_v14, %v51_v15  ;;  %v33_v14 = vld [vmem:[%s2521_s0 + $0x90] sm:$0xff] }
  0x1a   :  { %1758 = vmatprep.subr.bf16.mxu1 %v1963_v25  ;;  %v1987_v20 = vld [vmem:[%s2520_s1 + $0x120] sm:$0xff]   ;;  %v1993_v33 = vld [vmem:[%s2520_s1 + $0x1a8] sm:$0xff]   ;;  %v37_v15 = vld [vmem:[%s2521_s0 + $0xb0] sm:$0xff] }
  0x1b   :  { %v1988_v23 = vld [vmem:[%s2520_s1 + $0x1e0] sm:$0xff]   ;;  %v64_v44 = vld [vmem:[%s2521_s0 + $0x188] sm:$0xff] }
  0x1c   :  { %1695 = vmatpush3.bf16.msra.mxu0 %v1964_v26  ;;  %v1989_v25 = vld [vmem:[%s2520_s1 + $0x1a0] sm:$0xff]   ;;  %v68_v45 = vld [vmem:[%s2521_s0 + $0x1a8] sm:$0xff] }
  0x1d   :  { %1759 = vmatpush3.bf16.msra.mxu1 %v1965_v27  ;;  %1696 = vmatprep.subr.bf16.mxu0 %v1966_v28  ;;  %v55_v26 = vld [vmem:[%s2521_s0 + $0x140] sm:$0xff]  ;;  %v1990_v28 = vld [vmem:[%s2520_s1 + $0x168] sm:$0xff]   ;;  %v1523_v59 = vcombine.low %v64_v44, %v68_v45 }
  0x1e   :  { %1760 = vmatprep.subr.bf16.mxu1 %v1967_v29  ;;  %v59_v27 = vld [vmem:[%s2521_s0 + $0x160] sm:$0xff]  ;;  %v56_v29 = vld [vmem:[%s2521_s0 + $0x148] sm:$0xff] }
  0x1f   :  { %v1514_v36 = vcombine.high %v55_v26, %v59_v27  ;;  %v1513_v47 = vcombine.low %v55_v26, %v59_v27  ;;  %v72_v56 = vld [vmem:[%s2521_s0 + $0x1c8] sm:$0xff]  ;;  %v1493_v26 = vcombine.low %v33_v14, %v37_v15 }
  0x20   :  { %1697 = vmatpush3.bf16.msra.mxu0 %v1968_v30  ;;  %v60_v30 = vld [vmem:[%s2521_s0 + $0x168] sm:$0xff] }
  0x21   :  { %1761 = vmatpush3.bf16.msra.mxu1 %v1969_v31  ;;  %1810 = vmatprep.subr.bf16.mxu0 %v1970_v40  ;;  %v1991_v31 = vld [vmem:[%s2520_s1 + $0x128] sm:$0xff]   ;;  %v1516_v37 = vcombine.high %v56_v29, %v60_v30  ;;  %v1996_v40 = vld [vmem:[%s2520_s1 + $0x1f0] sm:$0xff]  }
  0x22   :  { %1874 = vmatprep.subr.bf16.mxu1 %v1972_v42  ;;  %v67_v42 = vld [vmem:[%s2521_s0 + $0x1a0] sm:$0xff]  ;;  %v76_v57 = vld [vmem:[%s2521_s0 + $0x1e8] sm:$0xff] }
  0x23   :  { %944 = vmatmul.mubr.bf16.vlgmr.msra.gmra.mrb[0].mxu0 %v1473_v35  ;;  %v1507_v35 = vcombine.low %v48_v16, %v52_v17  ;;  %v1531_v3 = vcombine.low %v72_v56, %v76_v57  ;;  %v34_v16 = vld [vmem:[%s2521_s0 + $0x98] sm:$0xff] }
  0x24   :  { %1041 = vmatmul.mubr.bf16.vlgmr.msra.gmra.mrb[0].mxu1 %v1475_v38  ;;  %1811 = vmatpush3.bf16.msra.mxu0 %v1971_v41  ;;  %v1994_v38 = vld [vmem:[%s2520_s1 + $0x170] sm:$0xff]   ;;  %v63_v41 = vld [vmem:[%s2521_s0 + $0x180] sm:$0xff]  ;;  %v38_v17 = vld [vmem:[%s2521_s0 + $0xb8] sm:$0xff] }
  0x25   :  { %1875 = vmatpush3.bf16.msra.mxu1 %v1973_v43  ;;  %951 = vmatprep.mubr.bf16.mxu0 %v1482_v46  ;;  %v1997_v43 = vld [vmem:[%s2520_s1 + $0x1b0] sm:$0xff]   ;;  %v1998_v46 = vld [vmem:[%s2520_s1 + $0x178] sm:$0xff]   ;;  %v1521_v58 = vcombine.low %v63_v41, %v67_v42  ;;  %v1495_v27 = vcombine.low %v34_v16, %v38_v17 }
  0x26   :  { %1048 = vmatprep.mubr.bf16.mxu1 %v1484_v49  ;;  %1812 = vmatprep.subr.bf16.mxu0 %v1974_v50  ;;  %v1515_v49 = vcombine.low %v56_v29, %v60_v30  ;;  %v1522_v50 = vcombine.high %v63_v41, %v67_v42  ;;  %v49_v30 = vld [vmem:[%s2521_s0 + $0x110] sm:$0xff]  ;;  %v62_v41 = vld [vmem:[%s2521_s0 + $0x178] sm:$0xff] }
  0x27   :  { %1876 = vmatprep.subr.bf16.mxu1 %v1976_v54  ;;  %v71_v54 = vld [vmem:[%s2521_s0 + $0x1c0] sm:$0xff] }
  0x28   :  { %1813 = vmatpush3.bf16.msra.mxu0 %v1975_v52  ;;  %v1524_v52 = vcombine.high %v64_v44, %v68_v45 }
  0x29   :  { %1877 = vmatpush3.bf16.msra.mxu1 %v1977_v55  ;;  %1814 = vmatprep.subr.bf16.mxu0 %v1978_v62  ;;  %v75_v55 = vld [vmem:[%s2521_s0 + $0x1e0] sm:$0xff]  ;;  %v17_v62 = vld [vmem:[%s2521_s0 + $0x10] sm:$0xff] }
  0x2a   :  { %1878 = vmatprep.subr.bf16.mxu1 %v1980_v0  ;;  %v18_v0 = vld [vmem:[%s2521_s0 + $0x18] sm:$0xff] }
  0x2b   :  { %952 = vmatmul.mubr.bf16.gmra.mrb[4].mxu0 %v1481_v51  ;;  %v2000_v51 = vld [vmem:[%s2520_s1 + $0x1f8] sm:$0xff]  }
  0x2c   :  { %1049 = vmatmul.mubr.bf16.gmra.mrb[4].mxu1 %v1483_v53  ;;  %959 = vmatprep.mubr.bf16.mxu0 %v1490_v60  ;;  %v2001_v53 = vld [vmem:[%s2520_s1 + $0x1b8] sm:$0xff]   ;;  %v1530_v60 = vcombine.high %v71_v54, %v75_v55 }
  0x2d   :  { %1056 = vmatprep.mubr.bf16.mxu1 %v1492_v61  ;;  %1815 = vmatpush3.bf16.msra.mxu0 %v1979_v63  ;;  %v1532_v61 = vcombine.high %v72_v56, %v76_v57  ;;  %v21_v63 = vld [vmem:[%s2521_s0 + $0x30] sm:$0xff]  ;;  %v74_v56 = vld [vmem:[%s2521_s0 + $0x1d8] sm:$0xff] }
  0x2e   :  { %1879 = vmatpush3.bf16.msra.mxu1 %v1981_v1  ;;  %1816 = vmatprep.subr.bf16.mxu0 %v1982_v10  ;;  %v22_v1 = vld [vmem:[%s2521_s0 + $0x38] sm:$0xff]  ;;  %v1478_v4 = vcombine.high %v17_v62, %v21_v63  ;;  %v1477_v10 = vcombine.low %v17_v62, %v21_v63 }
  0x2f   :  { %1880 = vmatprep.subr.bf16.mxu1 %v1984_v12  ;;  %v1480_v5 = vcombine.high %v18_v0, %v22_v1  ;;  %v78_v57 = vld [vmem:[%s2521_s0 + $0x1f8] sm:$0xff] }
  0x30   :  { %v1535_v63 = vcombine.low %v74_v56, %v78_v57 }
  0x31   :  { %1817 = vmatpush3.bf16.msra.mxu0 %v1983_v11  ;;  %v1479_v11 = vcombine.low %v18_v0, %v22_v1 }
  0x32   :  { %1881 = vmatpush3.bf16.msra.mxu1 %v1985_v13  ;;  %1818 = vmatprep.subr.bf16.mxu0 %v1986_v18 }
  0x33   :  { %960 = vmatmul.mubr.bf16.gmra.mrb[8].mxu0 %v1489_v2  ;;  %1882 = vmatprep.subr.bf16.mxu1 %v1988_v23  ;;  %v1529_v2 = vcombine.low %v71_v54, %v75_v55  ;;  %v45_v23 = vld [vmem:[%s2521_s0 + $0xf0] sm:$0xff] }
  0x34   :  { %1057 = vmatmul.mubr.bf16.gmra.mrb[8].mxu1 %v1491_v6  ;;  %967 = vmatprep.mubr.bf16.mxu0 %v1498_v7  ;;  %v25_v6 = vld [vmem:[%s2521_s0 + $0x50] sm:$0xff] }
  0x35   :  { %1064 = vmatprep.mubr.bf16.mxu1 %v1500_v9  ;;  %1819 = vmatpush3.bf16.msra.mxu0 %v1987_v20  ;;  %v29_v7 = vld [vmem:[%s2521_s0 + $0x70] sm:$0xff]  ;;  %v30_v9 = vld [vmem:[%s2521_s0 + $0x78] sm:$0xff]  ;;  %v1494_v20 = vcombine.high %v33_v14, %v37_v15 }
  0x36   :  { %1883 = vmatpush3.bf16.msra.mxu1 %v1989_v25  ;;  %1820 = vmatprep.subr.bf16.mxu0 %v1990_v28  ;;  %v1486_v12 = vcombine.high %v25_v6, %v29_v7  ;;  %v1488_v13 = vcombine.high %v26_v8, %v30_v9  ;;  %v1485_v18 = vcombine.low %v25_v6, %v29_v7  ;;  %v46_v25 = vld [vmem:[%s2521_s0 + $0xf8] sm:$0xff]  ;;  %v73_v54 = vld [vmem:[%s2521_s0 + $0x1d0] sm:$0xff] }
  0x37   :  { %1884 = vmatprep.subr.bf16.mxu1 %v1992_v32  ;;  %v50_v32 = vld [vmem:[%s2521_s0 + $0x118] sm:$0xff]  ;;  %v77_v55 = vld [vmem:[%s2521_s0 + $0x1f0] sm:$0xff] }
  0x38   :  { %v1533_v62 = vcombine.low %v73_v54, %v77_v55 }
  0x39   :  { %1821 = vmatpush3.bf16.msra.mxu0 %v1991_v31  ;;  %v53_v31 = vld [vmem:[%s2521_s0 + $0x130] sm:$0xff] }
  0x3a   :  { %1885 = vmatpush3.bf16.msra.mxu1 %v1993_v33  ;;  %1822 = vmatprep.subr.bf16.mxu0 %v1994_v38  ;;  %v54_v33 = vld [vmem:[%s2521_s0 + $0x138] sm:$0xff]  ;;  %v57_v38 = vld [vmem:[%s2521_s0 + $0x150] sm:$0xff]  ;;  %v1509_v42 = vcombine.low %v49_v30, %v53_v31 }
  0x3b   :  { %968 = vmatmul.mubr.bf16.gmra.mrb[12].mxu0 %v1497_v19  ;;  %1886 = vmatprep.subr.bf16.mxu1 %v1996_v40  ;;  %v1487_v19 = vcombine.low %v26_v8, %v30_v9  ;;  %v58_v40 = vld [vmem:[%s2521_s0 + $0x158] sm:$0xff] }
  0x3c   :  { %1065 = vmatmul.mubr.bf16.gmra.mrb[12].mxu1 %v1499_v21  ;;  %975 = vmatprep.mubr.bf16.mxu0 %v1506_v22  ;;  %v1496_v21 = vcombine.high %v34_v16, %v38_v17  ;;  %v41_v22 = vld [vmem:[%s2521_s0 + $0xd0] sm:$0xff]  ;;  %v1520_v45 = vcombine.high %v58_v40, %v62_v41 }
  0x3d   :  { %1072 = vmatprep.mubr.bf16.mxu1 %v1508_v24  ;;  %1823 = vmatpush3.bf16.msra.mxu0 %v1995_v39  ;;  %v42_v24 = vld [vmem:[%s2521_s0 + $0xd8] sm:$0xff]  ;;  %v1502_v28 = vcombine.high %v41_v22, %v45_v23  ;;  %v61_v39 = vld [vmem:[%s2521_s0 + $0x170] sm:$0xff] }
  0x3e   :  { %1887 = vmatpush3.bf16.msra.mxu1 %v1997_v43  ;;  %1824 = vmatprep.subr.bf16.mxu0 %v1998_v46  ;;  %v1504_v29 = vcombine.high %v42_v24, %v46_v25  ;;  %v1511_v43 = vcombine.low %v50_v32, %v54_v33  ;;  %v1518_v44 = vcombine.high %v57_v38, %v61_v39  ;;  %v65_v46 = vld [vmem:[%s2521_s0 + $0x190] sm:$0xff] }
  0x3f   :  { %1888 = vmatprep.subr.bf16.mxu1 %v2000_v51  ;;  %v1519_v51 = vcombine.low %v58_v40, %v62_v41 }
  0x41   :  { %1825 = vmatpush3.bf16.msra.mxu0 %v1999_v48  ;;  %v66_v48 = vld [vmem:[%s2521_s0 + $0x198] sm:$0xff] }
  0x42   :  { %1889 = vmatpush3.bf16.msra.mxu1 %v2001_v53 }
  0x43   :  { %976 = vmatmul.mubr.bf16.gmra.mrb[16].mxu0 %v1505_v34  ;;  %v1501_v34 = vcombine.low %v41_v22, %v45_v23 }
  0x44   :  { %1073 = vmatmul.mubr.bf16.gmra.mrb[16].mxu1 %v1507_v35  ;;  %983 = vmatprep.mubr.bf16.mxu0 %v1514_v36  ;;  %v1503_v35 = vcombine.low %v42_v24, %v46_v25  ;;  %v1510_v36 = vcombine.high %v49_v30, %v53_v31 }
  0x45   :  { %1080 = vmatprep.mubr.bf16.mxu1 %v1516_v37  ;;  %v1512_v37 = vcombine.high %v50_v32, %v54_v33 }
  0x4b   :  { %984 = vmatmul.mubr.bf16.gmra.mrb[20].mxu0 %v1513_v47  ;;  %v69_v47 = vld [vmem:[%s2521_s0 + $0x1b0] sm:$0xff] }
  0x4c   :  { %1081 = vmatmul.mubr.bf16.gmra.mrb[20].mxu1 %v1515_v49  ;;  %991 = vmatprep.mubr.bf16.mxu0 %v1522_v50  ;;  %v70_v49 = vld [vmem:[%s2521_s0 + $0x1b8] sm:$0xff]  ;;  %v1517_v50 = vcombine.low %v57_v38, %v61_v39 }
  0x4d   :  { %1088 = vmatprep.mubr.bf16.mxu1 %v1524_v52  ;;  %v1526_v52 = vcombine.high %v65_v46, %v69_v47  ;;  %v1528_v53 = vcombine.high %v66_v48, %v70_v49 }
  0x53   :  { %992 = vmatmul.mubr.bf16.gmra.mrb[24].mxu0 %v1521_v58  ;;  %v1525_v58 = vcombine.low %v65_v46, %v69_v47 }
  0x54   :  { %1089 = vmatmul.mubr.bf16.gmra.mrb[24].mxu1 %v1523_v59  ;;  %999 = vmatprep.mubr.bf16.mxu0 %v1530_v60  ;;  %v1527_v59 = vcombine.low %v66_v48, %v70_v49  ;;  %v1534_v60 = vcombine.high %v73_v54, %v77_v55 }
  0x55   :  { %1096 = vmatprep.mubr.bf16.mxu1 %v1532_v61  ;;  %v1536_v61 = vcombine.high %v74_v56, %v78_v57 }
  0x5b   :  { %1000 = vmatmul.mubr.bf16.gmra.mrb[28].mxu0 %v1529_v2 }
  0x5c   :  { %1097 = vmatmul.mubr.bf16.gmra.mrb[28].mxu1 %v1531_v3  ;;  %1137 = vmatprep.mubr.bf16.mxu0 %v1478_v4 }
  0x5d   :  { %1234 = vmatprep.mubr.bf16.mxu1 %v1480_v5 }
  0x63   :  { %1138 = vmatmul.mubr.bf16.vlgmr.msra.gmra.mrb[32].mxu0 %v1477_v10 }
  0x64   :  { %1235 = vmatmul.mubr.bf16.vlgmr.msra.gmra.mrb[32].mxu1 %v1479_v11  ;;  %1145 = vmatprep.mubr.bf16.mxu0 %v1486_v12 }
  0x65   :  { %1242 = vmatprep.mubr.bf16.mxu1 %v1488_v13 }
  0x6b   :  { %1146 = vmatmul.mubr.bf16.gmra.mrb[36].mxu0 %v1485_v18 }
  0x6c   :  { %1243 = vmatmul.mubr.bf16.gmra.mrb[36].mxu1 %v1487_v19  ;;  %1153 = vmatprep.mubr.bf16.mxu0 %v1494_v20 }
  0x6d   :  { %1250 = vmatprep.mubr.bf16.mxu1 %v1496_v21 }
  0x73   :  { %1154 = vmatmul.mubr.bf16.gmra.mrb[40].mxu0 %v1493_v26 }
  0x74   :  { %1251 = vmatmul.mubr.bf16.gmra.mrb[40].mxu1 %v1495_v27  ;;  %1161 = vmatprep.mubr.bf16.mxu0 %v1502_v28 }
  0x75   :  { %1258 = vmatprep.mubr.bf16.mxu1 %v1504_v29 }
  0x7b   :  { %1162 = vmatmul.mubr.bf16.gmra.mrb[44].mxu0 %v1501_v34 }
  0x7c   :  { %1259 = vmatmul.mubr.bf16.gmra.mrb[44].mxu1 %v1503_v35  ;;  %1169 = vmatprep.mubr.bf16.mxu0 %v1510_v36 }
  0x7d   :  { %1266 = vmatprep.mubr.bf16.mxu1 %v1512_v37 }
  0x83   :  { %1170 = vmatmul.mubr.bf16.gmra.mrb[48].mxu0 %v1509_v42 }
  0x84   :  { %1267 = vmatmul.mubr.bf16.gmra.mrb[48].mxu1 %v1511_v43  ;;  %1177 = vmatprep.mubr.bf16.mxu0 %v1518_v44 }
  0x85   :  { %1274 = vmatprep.mubr.bf16.mxu1 %v1520_v45 }
  0x8b   :  { %1178 = vmatmul.mubr.bf16.gmra.mrb[52].mxu0 %v1517_v50 }
  0x8c   :  { %1275 = vmatmul.mubr.bf16.gmra.mrb[52].mxu1 %v1519_v51  ;;  %1185 = vmatprep.mubr.bf16.mxu0 %v1526_v52 }
  0x8d   :  { %1282 = vmatprep.mubr.bf16.mxu1 %v1528_v53 }
  0x93   :  { %1186 = vmatmul.mubr.bf16.gmra.mrb[56].mxu0 %v1525_v58 }
  0x94   :  { %1283 = vmatmul.mubr.bf16.gmra.mrb[56].mxu1 %v1527_v59  ;;  %1193 = vmatprep.mubr.bf16.mxu0 %v1534_v60 }
  0x95   :  { %1290 = vmatprep.mubr.bf16.mxu1 %v1536_v61 }
  0x9b   :  { %1194 = vmatmul.mubr.bf16.gmra.mrb[60].mxu0 %v1533_v62 }
  0x9c   :  { %1291 = vmatmul.mubr.bf16.gmra.mrb[60].mxu1 %v1535_v63 }
  0xf6   :  { %v1698_v0 = vpop.f32.mrb[0].mxu0 }
  0xf7   :  { %v1762_v1 = vpop.f32.mrb[0].mxu1  ;;  %v1699_v2 = vpop.f32.mrb[1].mxu0 }
  0xf8   :  { %v1700_v3 = vadd.f32 %v1699_v2, %v1698_v0  ;;  %v1763_v4 = vpop.f32.mrb[1].mxu1  ;;  %v1701_v5 = vpop.f32.mrb[2].mxu0 }
  0xf9   :  { %v1764_v6 = vadd.f32 %v1763_v4, %v1762_v1  ;;  %v1765_v7 = vpop.f32.mrb[2].mxu1  ;;  %v1702_v8 = vpop.f32.mrb[3].mxu0 }
  0xfa   :  { %v1703_v9 = vadd.f32 %v1702_v8, %v1701_v5  ;;  %v1766_v10 = vpop.f32.mrb[3].mxu1 }
  0xfb   :  { %v2406_v11 = vadd.f32 %v1764_v6, %v1700_v3  ;;  %v1767_v12 = vadd.f32 %v1766_v10, %v1765_v7 }
  0xfd   :  { %v2408_v13 = vadd.f32 %v1767_v12, %v1703_v9 }
  0xfe   :  { %v1704_v14 = vpop.f32.mrb[4].mxu0 }
  0xff   :  { %v1768_v15 = vpop.f32.mrb[4].mxu1  ;;  %v1705_v16 = vpop.f32.mrb[5].mxu0 }
 0x100   :  { %v1706_v17 = vadd.f32 %v1705_v16, %v1704_v14  ;;  %v1769_v18 = vpop.f32.mrb[5].mxu1  ;;  %v1707_v19 = vpop.f32.mrb[6].mxu0 }
 0x101   :  { %v1770_v20 = vadd.f32 %v1769_v18, %v1768_v15  ;;  %v1771_v21 = vpop.f32.mrb[6].mxu1  ;;  %v1708_v22 = vpop.f32.mrb[7].mxu0 }
 0x102   :  { %v1709_v23 = vadd.f32 %v1708_v22, %v1707_v19  ;;  %v1772_v24 = vpop.f32.mrb[7].mxu1 }
 0x103   :  { %v2410_v25 = vadd.f32 %v1770_v20, %v1706_v17  ;;  %v1773_v26 = vadd.f32 %v1772_v24, %v1771_v21 }
 0x105   :  { %v2412_v27 = vadd.f32 %v1773_v26, %v1709_v23 }
 0x106   :  { %v1710_v28 = vpop.f32.mrb[8].mxu0 }
 0x107   :  { %v1774_v29 = vpop.f32.mrb[8].mxu1  ;;  %v1711_v30 = vpop.f32.mrb[9].mxu0 }
 0x108   :  { %v1712_v31 = vadd.f32 %v1711_v30, %v1710_v28  ;;  %v1775_v32 = vpop.f32.mrb[9].mxu1  ;;  %v1713_v33 = vpop.f32.mrb[10].mxu0 }
 0x109   :  { %v1776_v34 = vadd.f32 %v1775_v32, %v1774_v29  ;;  %v1777_v35 = vpop.f32.mrb[10].mxu1  ;;  %v1714_v36 = vpop.f32.mrb[11].mxu0 }
 0x10a   :  { %v1715_v37 = vadd.f32 %v1714_v36, %v1713_v33  ;;  %v1778_v38 = vpop.f32.mrb[11].mxu1 }
 0x10b   :  { %v2414_v39 = vadd.f32 %v1776_v34, %v1712_v31  ;;  %v1779_v40 = vadd.f32 %v1778_v38, %v1777_v35 }
 0x10d   :  { %v2416_v41 = vadd.f32 %v1779_v40, %v1715_v37 }
 0x10e   :  { %v1716_v42 = vpop.f32.mrb[12].mxu0 }
 0x10f   :  { %v1780_v43 = vpop.f32.mrb[12].mxu1  ;;  %v1717_v44 = vpop.f32.mrb[13].mxu0 }
 0x110   :  { %v1718_v45 = vadd.f32 %v1717_v44, %v1716_v42  ;;  %v1781_v46 = vpop.f32.mrb[13].mxu1  ;;  %v1719_v47 = vpop.f32.mrb[14].mxu0 }
 0x111   :  { %v1782_v48 = vadd.f32 %v1781_v46, %v1780_v43  ;;  %v1783_v49 = vpop.f32.mrb[14].mxu1  ;;  %v1720_v50 = vpop.f32.mrb[15].mxu0 }
 0x112   :  { %v1721_v51 = vadd.f32 %v1720_v50, %v1719_v47  ;;  %v1784_v52 = vpop.f32.mrb[15].mxu1 }
 0x113   :  { %v2418_v53 = vadd.f32 %v1782_v48, %v1718_v45  ;;  %v1785_v54 = vadd.f32 %v1784_v52, %v1783_v49 }
 0x115   :  { %v2420_v55 = vadd.f32 %v1785_v54, %v1721_v51 }
 0x116   :  { %v1722_v56 = vpop.f32.mrb[16].mxu0 }
 0x117   :  { %v1786_v57 = vpop.f32.mrb[16].mxu1  ;;  %v1723_v58 = vpop.f32.mrb[17].mxu0 }
 0x118   :  { %v1724_v59 = vadd.f32 %v1723_v58, %v1722_v56  ;;  %v1787_v60 = vpop.f32.mrb[17].mxu1  ;;  %v1725_v61 = vpop.f32.mrb[18].mxu0 }
 0x119   :  { %v1788_v62 = vadd.f32 %v1787_v60, %v1786_v57  ;;  %v1789_v63 = vpop.f32.mrb[18].mxu1  ;;  %v1726_v0 = vpop.f32.mrb[19].mxu0 }
 0x11a   :  { %v1727_v1 = vadd.f32 %v1726_v0, %v1725_v61  ;;  %v1790_v2 = vpop.f32.mrb[19].mxu1 }
 0x11b   :  { %v2422_v3 = vadd.f32 %v1788_v62, %v1724_v59  ;;  %v1791_v4 = vadd.f32 %v1790_v2, %v1789_v63 }
 0x11d   :  { %v2424_v5 = vadd.f32 %v1791_v4, %v1727_v1 }
 0x11e   :  { %v1728_v6 = vpop.f32.mrb[20].mxu0 }
 0x11f   :  { %v1792_v7 = vpop.f32.mrb[20].mxu1  ;;  %v1729_v8 = vpop.f32.mrb[21].mxu0 }
 0x120   :  { %v1730_v9 = vadd.f32 %v1729_v8, %v1728_v6  ;;  %v1793_v10 = vpop.f32.mrb[21].mxu1  ;;  %v1731_v12 = vpop.f32.mrb[22].mxu0  ;;  %v2442_v6 = vld [vmem:[%s2522_s2] ss:$0 sm:$0xff] }
 0x121   :  { %v1794_v14 = vadd.f32 %v1793_v10, %v1792_v7  ;;  %v1795_v15 = vpop.f32.mrb[22].mxu1  ;;  %v1732_v16 = vpop.f32.mrb[23].mxu0  ;;  %v2448_v10 = vld [vmem:[%s2522_s2 + $0x1] ss:$0 sm:$0xff] }
 0x122   :  { %v1733_v17 = vadd.f32 %v1732_v16, %v1731_v12  ;;  %v1796_v18 = vpop.f32.mrb[23].mxu1 }
 0x123   :  { %v2426_v19 = vadd.f32 %v1794_v14, %v1730_v9  ;;  %v1797_v20 = vadd.f32 %v1796_v18, %v1795_v15 }
 0x125   :  { %v2428_v21 = vadd.f32 %v1797_v20, %v1733_v17 }
 0x126   :  { %v1734_v22 = vpop.f32.mrb[24].mxu0 }
 0x127   :  { %v1798_v23 = vpop.f32.mrb[24].mxu1  ;;  %v1735_v24 = vpop.f32.mrb[25].mxu0 }
 0x128   :  { %v1736_v26 = vadd.f32 %v1735_v24, %v1734_v22  ;;  %v1799_v28 = vpop.f32.mrb[25].mxu1  ;;  %v1737_v29 = vpop.f32.mrb[26].mxu0 }
 0x129   :  { %v1800_v30 = vadd.f32 %v1799_v28, %v1798_v23  ;;  %v1801_v31 = vpop.f32.mrb[26].mxu1  ;;  %v1738_v32 = vpop.f32.mrb[27].mxu0 }
 0x12a   :  { %v1739_v33 = vadd.f32 %v1738_v32, %v1737_v29  ;;  %v1802_v34 = vpop.f32.mrb[27].mxu1 }
 0x12b   :  { %v2430_v35 = vadd.f32 %v1800_v30, %v1736_v26  ;;  %v1803_v36 = vadd.f32 %v1802_v34, %v1801_v31 }
 0x12d   :  { %v2432_v37 = vadd.f32 %v1803_v36, %v1739_v33 }
 0x12e   :  { %v1740_v38 = vpop.f32.mrb[28].mxu0 }
 0x12f   :  { %v1804_v40 = vpop.f32.mrb[28].mxu1  ;;  %v1741_v42 = vpop.f32.mrb[29].mxu0 }
 0x130   :  { %v1742_v43 = vadd.f32 %v1741_v42, %v1740_v38  ;;  %v1805_v44 = vpop.f32.mrb[29].mxu1  ;;  %v1743_v45 = vpop.f32.mrb[30].mxu0 }
 0x131   :  { %v1806_v46 = vadd.f32 %v1805_v44, %v1804_v40  ;;  %v1807_v47 = vpop.f32.mrb[30].mxu1  ;;  %v1744_v48 = vpop.f32.mrb[31].mxu0 }
 0x132   :  { %v1745_v49 = vadd.f32 %v1744_v48, %v1743_v45  ;;  %v1808_v50 = vpop.f32.mrb[31].mxu1 }
 0x133   :  { %v2434_v51 = vadd.f32 %v1806_v46, %v1742_v43  ;;  %v1809_v52 = vadd.f32 %v1808_v50, %v1807_v47 }
 0x135   :  { %v2436_v54 = vadd.f32 %v1809_v52, %v1745_v49 }
 0x136   :  { %v1826_v56 = vpop.f32.mrb[32].mxu0 }
 0x137   :  { %v1890_v57 = vpop.f32.mrb[32].mxu1  ;;  %v1827_v58 = vpop.f32.mrb[33].mxu0 }
 0x138   :  { %v1828_v59 = vadd.f32 %v1827_v58, %v1826_v56  ;;  %v1891_v60 = vpop.f32.mrb[33].mxu1  ;;  %v1829_v61 = vpop.f32.mrb[34].mxu0 }
 0x139   :  { %v1892_v62 = vadd.f32 %v1891_v60, %v1890_v57  ;;  %v1893_v63 = vpop.f32.mrb[34].mxu1  ;;  %v1830_v0 = vpop.f32.mrb[35].mxu0 }
 0x13a   :  { %v1140_v1 = vadd.f32 %v1828_v59, %v2406_v11  ;;  %v1831_v2 = vadd.f32 %v1830_v0, %v1829_v61  ;;  %v1894_v4 = vpop.f32.mrb[35].mxu1 }
 0x13b   :  { %v1895_v7 = vadd.f32 %v1894_v4, %v1893_v63 }
 0x13c   :  { %v1237_v8 = vadd.f32 %v1892_v62, %v1140_v1  ;;  %v1143_v9 = vadd.f32 %v1831_v2, %v2408_v13 }
 0x13e   :  { %v1304_v12 = vmul.f32 %v2442_v6, %v1237_v8  ;;  %v1240_v14 = vadd.f32 %v1895_v7, %v1143_v9  ;;  %v1832_v11 = vpop.f32.mrb[36].mxu0 }
 0x13f   :  { %v1896_v15 = vpop.f32.mrb[36].mxu1  ;;  %v1833_v16 = vpop.f32.mrb[37].mxu0 }
 0x140   :  { %v1325_v17 = vadd.f32 %v2448_v10, %v1304_v12  ;;  %v1305_v18 = vmul.f32 %v2442_v6, %v1240_v14  ;;  %v1834_v20 = vadd.f32 %v1833_v16, %v1832_v11  ;;  %v1897_v22 = vpop.f32.mrb[37].mxu1  ;;  %v1835_v23 = vpop.f32.mrb[38].mxu0 }
 0x141   :  { %v1898_v24 = vadd.f32 %v1897_v22, %v1896_v15  ;;  %v1899_v13 = vpop.f32.mrb[38].mxu1  ;;  %v1836_v26 = vpop.f32.mrb[39].mxu0 }
 0x142   :  { %v1357_v28 = vmul.f32 0.2, %v1325_v17  ;;  %v1326_v29 = vadd.f32 %v2448_v10, %v1305_v18  ;;  %v1148_v30 = vadd.f32 %v1834_v20, %v2410_v25  ;;  %v1900_v31 = vpop.f32.mrb[39].mxu1  ;;  %vm1341_vm0 = vcmp.ge.f32.partialorder %v1325_v17, 0.0 }
 0x143   :  { %v1837_v32 = vadd.f32 %v1836_v26, %v1835_v23  ;;  %v1901_v33 = vadd.f32 %v1900_v31, %v1899_v13 }
 0x144   :  { %vm1342_vm1 = vcmp.ge.f32.partialorder %v1326_v29, 0.0  ;;  %v1358_v34 = vmul.f32 0.2, %v1326_v29  ;;  %v1245_v36 = vadd.f32 %v1898_v24, %v1148_v30  ;;  %v1373_v40 = vsel %vm1341_vm0, %v1325_v17, %v1357_v28 }
 0x145   :  { %v1151_v38 = vadd.f32 %v1837_v32, %v2412_v27 }
 0x146   :  { %v1374_v42 = vsel %vm1342_vm1, %v1326_v29, %v1358_v34  ;;  %v1306_v43 = vmul.f32 %v2442_v6, %v1245_v36  ;;  %v1838_v44 = vpop.f32.mrb[40].mxu0 }
 0x147   :  { %v1638_v45 = vpack.c.bf16 %v1374_v42, %v1373_v40  ;;  %v1248_v46 = vadd.f32 %v1901_v33, %v1151_v38  ;;  %v1902_v47 = vpop.f32.mrb[40].mxu1  ;;  %v1839_v48 = vpop.f32.mrb[41].mxu0 }
 0x148   :  { %v1327_v25 = vadd.f32 %v2448_v10, %v1306_v43  ;;  %v1840_v49 = vadd.f32 %v1839_v48, %v1838_v44  ;;  %v1903_v50 = vpop.f32.mrb[41].mxu1  ;;  %v1841_v52 = vpop.f32.mrb[42].mxu0 }
 0x149   :  { %1639 = vst [vmem:[%s2523_s3] sm:$0xff] %v1638_v45   ;;  %v1307_v27 = vmul.f32 %v2442_v6, %v1248_v46  ;;  %v1904_v56 = vadd.f32 %v1903_v50, %v1902_v47  ;;  %v1905_v57 = vpop.f32.mrb[42].mxu1  ;;  %v1842_v58 = vpop.f32.mrb[43].mxu0 }
 0x14a   :  { %v1156_v59 = vadd.f32 %v1840_v49, %v2414_v39  ;;  %v1843_v60 = vadd.f32 %v1842_v58, %v1841_v52  ;;  %v1906_v61 = vpop.f32.mrb[43].mxu1  ;;  %v1359_v62 = vmul.f32 0.2, %v1327_v25  ;;  %vm1343_vm2 = vcmp.ge.f32.partialorder %v1327_v25, 0.0 }
 0x14b   :  { %v1328_v63 = vadd.f32 %v2448_v10, %v1307_v27  ;;  %v1907_v0 = vadd.f32 %v1906_v61, %v1905_v57 }
 0x14c   :  { %v1253_v1 = vadd.f32 %v1904_v56, %v1156_v59  ;;  %v1159_v2 = vadd.f32 %v1843_v60, %v2416_v41  ;;  %v1375_v12 = vsel %vm1343_vm2, %v1327_v25, %v1359_v62 }
 0x14d   :  { %vm1344_vm3 = vcmp.ge.f32.partialorder %v1328_v63, 0.0  ;;  %v1360_v4 = vmul.f32 0.2, %v1328_v63 }
 0x14e   :  { %v1308_v7 = vmul.f32 %v2442_v6, %v1253_v1  ;;  %v1256_v8 = vadd.f32 %v1907_v0, %v1159_v2  ;;  %v1844_v9 = vpop.f32.mrb[44].mxu0 }
 0x14f   :  { %v1376_v14 = vsel %vm1344_vm3, %v1328_v63, %v1360_v4  ;;  %v1908_v11 = vpop.f32.mrb[44].mxu1  ;;  %v1845_v39 = vpop.f32.mrb[45].mxu0 }
 0x150   :  { %v1643_v15 = vpack.c.bf16 %v1376_v14, %v1375_v12  ;;  %v1329_v16 = vadd.f32 %v2448_v10, %v1308_v7  ;;  %v1309_v17 = vmul.f32 %v2442_v6, %v1256_v8  ;;  %v1846_v18 = vadd.f32 %v1845_v39, %v1844_v9  ;;  %v1909_v20 = vpop.f32.mrb[45].mxu1  ;;  %v1847_v22 = vpop.f32.mrb[46].mxu0 }
 0x151   :  { %v1910_v23 = vadd.f32 %v1909_v20, %v1908_v11  ;;  %v1911_v41 = vpop.f32.mrb[46].mxu1  ;;  %v1848_v24 = vpop.f32.mrb[47].mxu0 }
 0x152   :  { %1675 = vst [vmem:[%s2523_s3 + $0x8] sm:$0xff] %v1643_v15   ;;  %v1361_v13 = vmul.f32 0.2, %v1329_v16  ;;  %v1330_v26 = vadd.f32 %v2448_v10, %v1309_v17  ;;  %v1164_v28 = vadd.f32 %v1846_v18, %v2418_v53  ;;  %v1912_v29 = vpop.f32.mrb[47].mxu1  ;;  %vm1345_vm4 = vcmp.ge.f32.partialorder %v1329_v16, 0.0 }
 0x153   :  { %v1849_v30 = vadd.f32 %v1848_v24, %v1847_v22  ;;  %v1913_v31 = vadd.f32 %v1912_v29, %v1911_v41 }
 0x154   :  { %vm1346_vm5 = vcmp.ge.f32.partialorder %v1330_v26, 0.0  ;;  %v1362_v32 = vmul.f32 0.2, %v1330_v26  ;;  %v1261_v33 = vadd.f32 %v1910_v23, %v1164_v28  ;;  %v1377_v36 = vsel %vm1345_vm4, %v1329_v16, %v1361_v13 }
 0x155   :  { %v1167_v34 = vadd.f32 %v1849_v30, %v2420_v55 }
 0x156   :  { %v1378_v38 = vsel %vm1346_vm5, %v1330_v26, %v1362_v32  ;;  %v1310_v40 = vmul.f32 %v2442_v6, %v1261_v33  ;;  %v1850_v42 = vpop.f32.mrb[48].mxu0 }
 0x157   :  { %v1648_v43 = vpack.c.bf16 %v1378_v38, %v1377_v36  ;;  %v1264_v44 = vadd.f32 %v1913_v31, %v1167_v34  ;;  %v1914_v45 = vpop.f32.mrb[48].mxu1  ;;  %v1851_v46 = vpop.f32.mrb[49].mxu0 }
 0x158   :  { %v1331_v53 = vadd.f32 %v2448_v10, %v1310_v40  ;;  %v1852_v47 = vadd.f32 %v1851_v46, %v1850_v42  ;;  %v1915_v48 = vpop.f32.mrb[49].mxu1  ;;  %v1853_v25 = vpop.f32.mrb[50].mxu0 }
 0x159   :  { %1676 = vst [vmem:[%s2523_s3 + $0x10] sm:$0xff] %v1648_v43   ;;  %v1311_v55 = vmul.f32 %v2442_v6, %v1264_v44  ;;  %v1916_v49 = vadd.f32 %v1915_v48, %v1914_v45  ;;  %v1917_v50 = vpop.f32.mrb[50].mxu1  ;;  %v1854_v52 = vpop.f32.mrb[51].mxu0 }
 0x15a   :  { %v1172_v27 = vadd.f32 %v1852_v47, %v2422_v3  ;;  %v1855_v56 = vadd.f32 %v1854_v52, %v1853_v25  ;;  %v1918_v57 = vpop.f32.mrb[51].mxu1  ;;  %v1363_v58 = vmul.f32 0.2, %v1331_v53  ;;  %vm1347_vm6 = vcmp.ge.f32.partialorder %v1331_v53, 0.0 }
 0x15b   :  { %v1332_v59 = vadd.f32 %v2448_v10, %v1311_v55  ;;  %v1919_v60 = vadd.f32 %v1918_v57, %v1917_v50 }
 0x15c   :  { %v1269_v61 = vadd.f32 %v1916_v49, %v1172_v27  ;;  %v1175_v62 = vadd.f32 %v1855_v56, %v2424_v5  ;;  %v1379_v4 = vsel %vm1347_vm6, %v1331_v53, %v1363_v58 }
 0x15d   :  { %vm1348_vm7 = vcmp.ge.f32.partialorder %v1332_v59, 0.0  ;;  %v1364_v63 = vmul.f32 0.2, %v1332_v59 }
 0x15e   :  { %v1312_v0 = vmul.f32 %v2442_v6, %v1269_v61  ;;  %v1272_v1 = vadd.f32 %v1919_v60, %v1175_v62  ;;  %v1856_v2 = vpop.f32.mrb[52].mxu0 }
 0x15f   :  { %v1380_v7 = vsel %vm1348_vm7, %v1332_v59, %v1364_v63  ;;  %v1920_v8 = vpop.f32.mrb[52].mxu1  ;;  %v1857_v3 = vpop.f32.mrb[53].mxu0 }
 0x160   :  { %v1653_v9 = vpack.c.bf16 %v1380_v7, %v1379_v4  ;;  %v1333_v12 = vadd.f32 %v2448_v10, %v1312_v0  ;;  %v1313_v14 = vmul.f32 %v2442_v6, %v1272_v1  ;;  %v1858_v11 = vadd.f32 %v1857_v3, %v1856_v2  ;;  %v1921_v39 = vpop.f32.mrb[53].mxu1  ;;  %v1859_v15 = vpop.f32.mrb[54].mxu0 }
 0x161   :  { %v1922_v16 = vadd.f32 %v1921_v39, %v1920_v8  ;;  %v1923_v5 = vpop.f32.mrb[54].mxu1  ;;  %v1860_v17 = vpop.f32.mrb[55].mxu0 }
 0x162   :  { %1677 = vst [vmem:[%s2523_s3 + $0x18] sm:$0xff] %v1653_v9   ;;  %v1365_v18 = vmul.f32 0.2, %v1333_v12  ;;  %v1334_v20 = vadd.f32 %v2448_v10, %v1313_v14  ;;  %v1180_v22 = vadd.f32 %v1858_v11, %v2426_v19  ;;  %v1924_v23 = vpop.f32.mrb[55].mxu1  ;;  %vm1349_vm8 = vcmp.ge.f32.partialorder %v1333_v12, 0.0 }
 0x163   :  { %v1861_v41 = vadd.f32 %v1860_v17, %v1859_v15  ;;  %v1925_v24 = vadd.f32 %v1924_v23, %v1923_v5 }
 0x164   :  { %vm1350_vm9 = vcmp.ge.f32.partialorder %v1334_v20, 0.0  ;;  %v1366_v13 = vmul.f32 0.2, %v1334_v20  ;;  %v1277_v26 = vadd.f32 %v1922_v16, %v1180_v22  ;;  %v1381_v29 = vsel %vm1349_vm8, %v1333_v12, %v1365_v18 }
 0x165   :  { %v1183_v28 = vadd.f32 %v1861_v41, %v2428_v21 }
 0x166   :  { %v1382_v30 = vsel %vm1350_vm9, %v1334_v20, %v1366_v13  ;;  %v1314_v31 = vmul.f32 %v2442_v6, %v1277_v26  ;;  %v1862_v32 = vpop.f32.mrb[56].mxu0 }
 0x167   :  { %v1658_v33 = vpack.c.bf16 %v1382_v30, %v1381_v29  ;;  %v1280_v34 = vadd.f32 %v1925_v24, %v1183_v28  ;;  %v1926_v36 = vpop.f32.mrb[56].mxu1  ;;  %v1863_v38 = vpop.f32.mrb[57].mxu0 }
 0x168   :  { %v1335_v19 = vadd.f32 %v2448_v10, %v1314_v31  ;;  %v1864_v40 = vadd.f32 %v1863_v38, %v1862_v32  ;;  %v1927_v42 = vpop.f32.mrb[57].mxu1  ;;  %v1865_v43 = vpop.f32.mrb[58].mxu0 }
 0x169   :  { %1678 = vst [vmem:[%s2523_s3 + $0x20] sm:$0xff] %v1658_v33   ;;  %v1315_v21 = vmul.f32 %v2442_v6, %v1280_v34  ;;  %v1928_v44 = vadd.f32 %v1927_v42, %v1926_v36  ;;  %v1929_v45 = vpop.f32.mrb[58].mxu1  ;;  %v1866_v46 = vpop.f32.mrb[59].mxu0 }
 0x16a   :  { %v1188_v53 = vadd.f32 %v1864_v40, %v2430_v35  ;;  %v1867_v47 = vadd.f32 %v1866_v46, %v1865_v43  ;;  %v1930_v48 = vpop.f32.mrb[59].mxu1  ;;  %v1367_v25 = vmul.f32 0.2, %v1335_v19  ;;  %vm1351_vm10 = vcmp.ge.f32.partialorder %v1335_v19, 0.0 }
 0x16b   :  { %v1336_v55 = vadd.f32 %v2448_v10, %v1315_v21  ;;  %v1931_v49 = vadd.f32 %v1930_v48, %v1929_v45 }
 0x16c   :  { %v1285_v50 = vadd.f32 %v1928_v44, %v1188_v53  ;;  %v1191_v52 = vadd.f32 %v1867_v47, %v2432_v37  ;;  %v1383_v59 = vsel %vm1351_vm10, %v1335_v19, %v1367_v25 }
 0x16d   :  { %vm1352_vm11 = vcmp.ge.f32.partialorder %v1336_v55, 0.0  ;;  %v1368_v27 = vmul.f32 0.2, %v1336_v55 }
 0x16e   :  { %v1316_v56 = vmul.f32 %v2442_v6, %v1285_v50  ;;  %v1288_v57 = vadd.f32 %v1931_v49, %v1191_v52  ;;  %v1868_v58 = vpop.f32.mrb[60].mxu0 }
 0x16f   :  { %v1384_v60 = vsel %vm1352_vm11, %v1336_v55, %v1368_v27  ;;  %v1932_v61 = vpop.f32.mrb[60].mxu1  ;;  %v1869_v35 = vpop.f32.mrb[61].mxu0 }
 0x170   :  { %v1663_v62 = vpack.c.bf16 %v1384_v60, %v1383_v59  ;;  %v1337_v63 = vadd.f32 %v2448_v10, %v1316_v56  ;;  %v1317_v0 = vmul.f32 %v2442_v6, %v1288_v57  ;;  %v1870_v1 = vadd.f32 %v1869_v35, %v1868_v58  ;;  %v1933_v2 = vpop.f32.mrb[61].mxu1  ;;  %v1871_v4 = vpop.f32.mrb[62].mxu0 }
 0x171   :  { %v1934_v7 = vadd.f32 %v1933_v2, %v1932_v61  ;;  %v1935_v37 = vpop.f32.mrb[62].mxu1  ;;  %v1872_v8 = vpop.f32.mrb[63].mxu0 }
 0x172   :  { %1679 = vst [vmem:[%s2523_s3 + $0x28] sm:$0xff] %v1663_v62   ;;  %v1369_v3 = vmul.f32 0.2, %v1337_v63  ;;  %v1338_v9 = vadd.f32 %v2448_v10, %v1317_v0  ;;  %v1196_v12 = vadd.f32 %v1870_v1, %v2434_v51  ;;  %v1936_v14 = vpop.f32.mrb[63].mxu1  ;;  %vm1353_vm12 = vcmp.ge.f32.partialorder %v1337_v63, 0.0 }
 0x173   :  { %v1873_v11 = vadd.f32 %v1872_v8, %v1871_v4  ;;  %v1937_v39 = vadd.f32 %v1936_v14, %v1935_v37 }
 0x174   :  { %vm1354_vm13 = vcmp.ge.f32.partialorder %v1338_v9, 0.0  ;;  %v1370_v15 = vmul.f32 0.2, %v1338_v9  ;;  %v1293_v16 = vadd.f32 %v1934_v7, %v1196_v12  ;;  %v1385_v17 = vsel %vm1353_vm12, %v1337_v63, %v1369_v3 }
 0x175   :  { %v1199_v5 = vadd.f32 %v1873_v11, %v2436_v54 }
 0x176   :  { %v1386_v18 = vsel %vm1354_vm13, %v1338_v9, %v1370_v15  ;;  %v1318_v20 = vmul.f32 %v2442_v6, %v1293_v16 }
 0x177   :  { %v1668_v22 = vpack.c.bf16 %v1386_v18, %v1385_v17  ;;  %v1296_v23 = vadd.f32 %v1937_v39, %v1199_v5 }
 0x178   :  { %v1339_v41 = vadd.f32 %v2448_v10, %v1318_v20 }
 0x179   :  { %1680 = vst [vmem:[%s2523_s3 + $0x30] sm:$0xff] %v1668_v22   ;;  %v1319_v51 = vmul.f32 %v2442_v6, %v1296_v23 }
 0x17a   :  { %v1371_v24 = vmul.f32 0.2, %v1339_v41  ;;  %vm1355_vm14 = vcmp.ge.f32.partialorder %v1339_v41, 0.0 }
 0x17b   :  { %v1340_v13 = vadd.f32 %v2448_v10, %v1319_v51 }
 0x17c   :  { %v1387_v26 = vsel %vm1355_vm14, %v1339_v41, %v1371_v24 }
 0x17d   :  { %vm1356_vm15 = vcmp.ge.f32.partialorder %v1340_v13, 0.0  ;;  %v1372_v54 = vmul.f32 0.2, %v1340_v13 }
 0x17f   :  { %v1388_v28 = vsel %vm1356_vm15, %v1340_v13, %v1372_v54 }
 0x180   :  { %v1673_v29 = vpack.c.bf16 %v1388_v28, %v1387_v26 }
 0x182   :  { %1681 = vst [vmem:[%s2523_s3 + $0x38] sm:$0xff] %v1673_v29  }

// kernel: discriminator_forward.7
= control target key start
LH: loop header
LB: loop body
LE: loop exit
PB: predicated region body
PF: predicated region fallthrough
CT: control target
= control target key end

     0   :  { %s3950_s1 = inlined_call_operand.vmem [shape: bf16[2048,256], index: 1, kind: input, shape index: {}]   ;;  %s3951_s0 = inlined_call_operand.vmem [shape: bf16[32,2048], index: 0, kind: input, shape index: {}]   ;;  %s3952_s2 = inlined_call_operand.vmem [shape: f32[2,256], index: 2, kind: input, shape index: {}]   ;;  %s3953_s3 = inlined_call_operand.vmem [shape: bf16[32,256], index: 3, kind: output, shape index: {}]  }
   0x1   :  { %v2616_v0 = vld [vmem:[%s3950_s1 + $0x4] ss:$8 sps:$4 sm:$0xff]   ;;  %v2620_v2 = vld [vmem:[%s3950_s1] ss:$8 sps:$4 sm:$0xff]   ;;  %v2622_v4 = vld [vmem:[%s3950_s1 + $0x14] ss:$8 sps:$4 sm:$0xff]  }
   0x2   :  { %v2618_v1 = vld [vmem:[%s3950_s1 + $0x404] ss:$8 sps:$4 sm:$0xff]   ;;  %1742 = vmatprep.subr.bf16.mxu1 %v2616_v0  ;;  %v2621_v3 = vld [vmem:[%s3950_s1 + $0x400] ss:$8 sps:$4 sm:$0xff]   ;;  %v2624_v5 = vld [vmem:[%s3950_s1 + $0x414] ss:$8 sps:$4 sm:$0xff]  }
   0x3   :  { %1954 = vmatprep.subr.bf16.mxu0 %v2618_v1  ;;  %1743 = vmatpush1.bf16.msra.mxu1 %v2620_v2  ;;  %v2626_v6 = vld [vmem:[%s3950_s1 + $0x10] ss:$8 sps:$4 sm:$0xff]   ;;  %v2628_v8 = vld [vmem:[%s3950_s1 + $0x24] ss:$8 sps:$4 sm:$0xff]   ;;  %v2632_v10 = vld [vmem:[%s3950_s1 + $0x20] ss:$8 sps:$4 sm:$0xff]  }
   0x4   :  { %1955 = vmatpush1.bf16.msra.mxu0 %v2621_v3  ;;  %1744 = vmatprep.subr.bf16.mxu1 %v2622_v4  ;;  %v2627_v7 = vld [vmem:[%s3950_s1 + $0x410] ss:$8 sps:$4 sm:$0xff]   ;;  %v2630_v9 = vld [vmem:[%s3950_s1 + $0x424] ss:$8 sps:$4 sm:$0xff]   ;;  %v2633_v11 = vld [vmem:[%s3950_s1 + $0x420] ss:$8 sps:$4 sm:$0xff]  }
   0x5   :  { %1956 = vmatprep.subr.bf16.mxu0 %v2624_v5  ;;  %v2634_v12 = vld [vmem:[%s3950_s1 + $0x34] ss:$8 sps:$4 sm:$0xff]   ;;  %v2638_v14 = vld [vmem:[%s3950_s1 + $0x30] ss:$8 sps:$4 sm:$0xff]   ;;  %v2640_v16 = vld [vmem:[%s3950_s1 + $0x44] ss:$8 sps:$4 sm:$0xff]  }
   0x6   :  { %v2636_v13 = vld [vmem:[%s3950_s1 + $0x434] ss:$8 sps:$4 sm:$0xff]   ;;  %v2639_v15 = vld [vmem:[%s3950_s1 + $0x430] ss:$8 sps:$4 sm:$0xff]   ;;  %v2642_v17 = vld [vmem:[%s3950_s1 + $0x444] ss:$8 sps:$4 sm:$0xff]  }
   0x7   :  { %1745 = vmatpush1.bf16.msra.mxu1 %v2626_v6  ;;  %v2644_v18 = vld [vmem:[%s3950_s1 + $0x40] ss:$8 sps:$4 sm:$0xff]   ;;  %v2646_v20 = vld [vmem:[%s3950_s1 + $0x54] ss:$8 sps:$4 sm:$0xff]   ;;  %v2650_v22 = vld [vmem:[%s3950_s1 + $0x50] ss:$8 sps:$4 sm:$0xff]  }
   0x8   :  { %1957 = vmatpush1.bf16.msra.mxu0 %v2627_v7  ;;  %1746 = vmatprep.subr.bf16.mxu1 %v2628_v8  ;;  %v2645_v19 = vld [vmem:[%s3950_s1 + $0x440] ss:$8 sps:$4 sm:$0xff]   ;;  %v2648_v21 = vld [vmem:[%s3950_s1 + $0x454] ss:$8 sps:$4 sm:$0xff]   ;;  %v2651_v23 = vld [vmem:[%s3950_s1 + $0x450] ss:$8 sps:$4 sm:$0xff]  }
   0x9   :  { %1958 = vmatprep.subr.bf16.mxu0 %v2630_v9  ;;  %v2652_v24 = vld [vmem:[%s3950_s1 + $0x64] ss:$8 sps:$4 sm:$0xff]   ;;  %v2656_v26 = vld [vmem:[%s3950_s1 + $0x60] ss:$8 sps:$4 sm:$0xff]   ;;  %v2658_v28 = vld [vmem:[%s3950_s1 + $0x74] ss:$8 sps:$4 sm:$0xff]  }
   0xa   :  { %v2654_v25 = vld [vmem:[%s3950_s1 + $0x464] ss:$8 sps:$4 sm:$0xff]   ;;  %v2657_v27 = vld [vmem:[%s3950_s1 + $0x460] ss:$8 sps:$4 sm:$0xff]   ;;  %v2660_v29 = vld [vmem:[%s3950_s1 + $0x474] ss:$8 sps:$4 sm:$0xff]  }
   0xb   :  { %1747 = vmatpush1.bf16.msra.mxu1 %v2632_v10  ;;  %v2662_v30 = vld [vmem:[%s3950_s1 + $0x70] ss:$8 sps:$4 sm:$0xff]   ;;  %v2664_v32 = vld [vmem:[%s3950_s1 + $0x84] ss:$8 sps:$4 sm:$0xff]   ;;  %v2668_v34 = vld [vmem:[%s3950_s1 + $0x80] ss:$8 sps:$4 sm:$0xff]  }
   0xc   :  { %1959 = vmatpush1.bf16.msra.mxu0 %v2633_v11  ;;  %1748 = vmatprep.subr.bf16.mxu1 %v2634_v12  ;;  %v2663_v31 = vld [vmem:[%s3950_s1 + $0x470] ss:$8 sps:$4 sm:$0xff]   ;;  %v2666_v33 = vld [vmem:[%s3950_s1 + $0x484] ss:$8 sps:$4 sm:$0xff]   ;;  %v2669_v35 = vld [vmem:[%s3950_s1 + $0x480] ss:$8 sps:$4 sm:$0xff]  }
   0xd   :  { %1960 = vmatprep.subr.bf16.mxu0 %v2636_v13  ;;  %v2670_v36 = vld [vmem:[%s3950_s1 + $0x94] ss:$8 sps:$4 sm:$0xff]   ;;  %v2674_v38 = vld [vmem:[%s3950_s1 + $0x90] ss:$8 sps:$4 sm:$0xff]   ;;  %v2676_v40 = vld [vmem:[%s3950_s1 + $0xa4] ss:$8 sps:$4 sm:$0xff]  }
   0xe   :  { %v2672_v37 = vld [vmem:[%s3950_s1 + $0x494] ss:$8 sps:$4 sm:$0xff]   ;;  %v2675_v39 = vld [vmem:[%s3950_s1 + $0x490] ss:$8 sps:$4 sm:$0xff]   ;;  %v2678_v41 = vld [vmem:[%s3950_s1 + $0x4a4] ss:$8 sps:$4 sm:$0xff]  }
   0xf   :  { %1749 = vmatpush1.bf16.msra.mxu1 %v2638_v14  ;;  %v2680_v42 = vld [vmem:[%s3950_s1 + $0xa0] ss:$8 sps:$4 sm:$0xff]   ;;  %v2682_v44 = vld [vmem:[%s3950_s1 + $0xb4] ss:$8 sps:$4 sm:$0xff]   ;;  %v2686_v46 = vld [vmem:[%s3950_s1 + $0xb0] ss:$8 sps:$4 sm:$0xff]  }
  0x10   :  { %1961 = vmatpush1.bf16.msra.mxu0 %v2639_v15  ;;  %1750 = vmatprep.subr.bf16.mxu1 %v2640_v16  ;;  %v2681_v43 = vld [vmem:[%s3950_s1 + $0x4a0] ss:$8 sps:$4 sm:$0xff]   ;;  %v2684_v45 = vld [vmem:[%s3950_s1 + $0x4b4] ss:$8 sps:$4 sm:$0xff]   ;;  %v2687_v47 = vld [vmem:[%s3950_s1 + $0x4b0] ss:$8 sps:$4 sm:$0xff]  }
  0x11   :  { %1962 = vmatprep.subr.bf16.mxu0 %v2642_v17  ;;  %v14_v48 = vld [vmem:[%s3951_s0] sm:$0xff]  ;;  %v2694_v58 = vld [vmem:[%s3950_s1 + $0xd4] ss:$8 sps:$4 sm:$0xff]   ;;  %v2698_v60 = vld [vmem:[%s3950_s1 + $0xd0] ss:$8 sps:$4 sm:$0xff]  }
  0x12   :  { %v22_v49 = vld [vmem:[%s3951_s0 + $0x40] sm:$0xff]  ;;  %v2696_v59 = vld [vmem:[%s3950_s1 + $0x4d4] ss:$8 sps:$4 sm:$0xff]   ;;  %v2699_v61 = vld [vmem:[%s3950_s1 + $0x4d0] ss:$8 sps:$4 sm:$0xff]  }
  0x13   :  { %1751 = vmatpush1.bf16.msra.mxu1 %v2644_v18  ;;  %v2688_v50 = vld [vmem:[%s3950_s1 + $0xc4] ss:$8 sps:$4 sm:$0xff]   ;;  %v2264_v52 = vcombine.high %v14_v48, %v22_v49  ;;  %v2692_v56 = vld [vmem:[%s3950_s1 + $0xc0] ss:$8 sps:$4 sm:$0xff]   ;;  %v2706_v2 = vld [vmem:[%s3950_s1 + $0xf4] ss:$8 sps:$4 sm:$0xff]   ;;  %v2263_v8 = vcombine.low %v14_v48, %v22_v49 }
  0x14   :  { %1963 = vmatpush1.bf16.msra.mxu0 %v2645_v19  ;;  %1752 = vmatprep.subr.bf16.mxu1 %v2646_v20  ;;  %v2690_v51 = vld [vmem:[%s3950_s1 + $0x4c4] ss:$8 sps:$4 sm:$0xff]   ;;  %v2693_v57 = vld [vmem:[%s3950_s1 + $0x4c0] ss:$8 sps:$4 sm:$0xff]   ;;  %v2708_v3 = vld [vmem:[%s3950_s1 + $0x4f4] ss:$8 sps:$4 sm:$0xff]  }
  0x15   :  { %1964 = vmatprep.subr.bf16.mxu0 %v2648_v21  ;;  %v18_v53 = vld [vmem:[%s3951_s0 + $0x20] sm:$0xff]  ;;  %1774 = vmatprep.mubr.bf16.mxu1 %v2264_v52  ;;  %v2710_v4 = vld [vmem:[%s3950_s1 + $0xf0] ss:$8 sps:$4 sm:$0xff]   ;;  %v2720_v12 = vld [vmem:[%s3950_s1 + $0x114] ss:$8 sps:$4 sm:$0xff]  }
  0x16   :  { %v26_v54 = vld [vmem:[%s3951_s0 + $0x60] sm:$0xff]  ;;  %v2711_v5 = vld [vmem:[%s3950_s1 + $0x4f0] ss:$8 sps:$4 sm:$0xff]   ;;  %v2723_v13 = vld [vmem:[%s3950_s1 + $0x514] ss:$8 sps:$4 sm:$0xff]  }
  0x17   :  { %1753 = vmatpush1.bf16.msra.mxu1 %v2650_v22  ;;  %v2272_v55 = vcombine.high %v18_v53, %v26_v54  ;;  %v2700_v62 = vld [vmem:[%s3950_s1 + $0xe4] ss:$8 sps:$4 sm:$0xff]   ;;  %v2704_v0 = vld [vmem:[%s3950_s1 + $0xe0] ss:$8 sps:$4 sm:$0xff]   ;;  %v2271_v10 = vcombine.low %v18_v53, %v26_v54  ;;  %v2718_v14 = vld [vmem:[%s3950_s1 + $0x110] ss:$8 sps:$4 sm:$0xff]  }
  0x18   :  { %1965 = vmatpush1.bf16.msra.mxu0 %v2651_v23  ;;  %1754 = vmatprep.subr.bf16.mxu1 %v2652_v24  ;;  %v2702_v63 = vld [vmem:[%s3950_s1 + $0x4e4] ss:$8 sps:$4 sm:$0xff]   ;;  %v2705_v1 = vld [vmem:[%s3950_s1 + $0x4e0] ss:$8 sps:$4 sm:$0xff]   ;;  %v2721_v15 = vld [vmem:[%s3950_s1 + $0x510] ss:$8 sps:$4 sm:$0xff]  }
  0x19   :  { %1966 = vmatprep.subr.bf16.mxu0 %v2654_v25  ;;  %1986 = vmatprep.mubr.bf16.mxu0 %v2272_v55  ;;  %v2714_v6 = vld [vmem:[%s3950_s1 + $0x104] ss:$8 sps:$4 sm:$0xff]   ;;  %v2712_v9 = vld [vmem:[%s3950_s1 + $0x100] ss:$8 sps:$4 sm:$0xff]   ;;  %v2732_v20 = vld [vmem:[%s3950_s1 + $0x134] ss:$8 sps:$4 sm:$0xff]  }
  0x1a   :  { %v2717_v7 = vld [vmem:[%s3950_s1 + $0x504] ss:$8 sps:$4 sm:$0xff]   ;;  %v2715_v11 = vld [vmem:[%s3950_s1 + $0x500] ss:$8 sps:$4 sm:$0xff]   ;;  %v2735_v21 = vld [vmem:[%s3950_s1 + $0x534] ss:$8 sps:$4 sm:$0xff]  }
  0x1b   :  { %1755 = vmatpush1.bf16.msra.mxu1 %v2656_v26  ;;  %v2726_v16 = vld [vmem:[%s3950_s1 + $0x124] ss:$8 sps:$4 sm:$0xff]   ;;  %v2724_v18 = vld [vmem:[%s3950_s1 + $0x120] ss:$8 sps:$4 sm:$0xff]   ;;  %v2730_v22 = vld [vmem:[%s3950_s1 + $0x130] ss:$8 sps:$4 sm:$0xff]  }
  0x1c   :  { %1967 = vmatpush1.bf16.msra.mxu0 %v2657_v27  ;;  %1756 = vmatprep.subr.bf16.mxu1 %v2658_v28  ;;  %v2729_v17 = vld [vmem:[%s3950_s1 + $0x524] ss:$8 sps:$4 sm:$0xff]   ;;  %v2727_v19 = vld [vmem:[%s3950_s1 + $0x520] ss:$8 sps:$4 sm:$0xff]   ;;  %v2733_v23 = vld [vmem:[%s3950_s1 + $0x530] ss:$8 sps:$4 sm:$0xff]  }
  0x1d   :  { %1968 = vmatprep.subr.bf16.mxu0 %v2660_v29  ;;  %v2738_v24 = vld [vmem:[%s3950_s1 + $0x144] ss:$8 sps:$4 sm:$0xff]   ;;  %v2736_v26 = vld [vmem:[%s3950_s1 + $0x140] ss:$8 sps:$4 sm:$0xff]   ;;  %v2744_v28 = vld [vmem:[%s3950_s1 + $0x154] ss:$8 sps:$4 sm:$0xff]  }
  0x1e   :  { %v2741_v25 = vld [vmem:[%s3950_s1 + $0x544] ss:$8 sps:$4 sm:$0xff]   ;;  %v2739_v27 = vld [vmem:[%s3950_s1 + $0x540] ss:$8 sps:$4 sm:$0xff]   ;;  %v2747_v29 = vld [vmem:[%s3950_s1 + $0x554] ss:$8 sps:$4 sm:$0xff]  }
  0x1f   :  { %1757 = vmatpush1.bf16.msra.mxu1 %v2662_v30  ;;  %v30_v30 = vld [vmem:[%s3951_s0 + $0x80] sm:$0xff]  ;;  %v3341_v49 = vld [vmem:[%s3951_s0 + $0x28] sm:$0xff]  ;;  %v2757_v52 = vld [vmem:[%s3950_s1 + $0x570] ss:$8 sps:$4 sm:$0xff]  }
  0x20   :  { %1969 = vmatpush1.bf16.msra.mxu0 %v2663_v31  ;;  %1758 = vmatprep.subr.bf16.mxu1 %v2664_v32  ;;  %v38_v31 = vld [vmem:[%s3951_s0 + $0xc0] sm:$0xff]  ;;  %v2742_v32 = vld [vmem:[%s3950_s1 + $0x150] ss:$8 sps:$4 sm:$0xff]  }
  0x21   :  { %1970 = vmatprep.subr.bf16.mxu0 %v2666_v33  ;;  %v2280_v33 = vcombine.high %v30_v30, %v38_v31  ;;  %v2762_v54 = vld [vmem:[%s3950_s1 + $0x184] ss:$8 sps:$4 sm:$0xff]  }
  0x22   :  { %v2765_v55 = vld [vmem:[%s3950_s1 + $0x584] ss:$8 sps:$4 sm:$0xff]  }
  0x23   :  { %1759 = vmatpush1.bf16.msra.mxu1 %v2668_v34  ;;  %v2745_v34 = vld [vmem:[%s3950_s1 + $0x550] ss:$8 sps:$4 sm:$0xff]  }
  0x24   :  { %1971 = vmatpush1.bf16.msra.mxu0 %v2669_v35  ;;  %1760 = vmatprep.subr.bf16.mxu1 %v2670_v36  ;;  %v34_v35 = vld [vmem:[%s3951_s0 + $0xa0] sm:$0xff] }
  0x25   :  { %1972 = vmatprep.subr.bf16.mxu0 %v2672_v37  ;;  %v42_v36 = vld [vmem:[%s3951_s0 + $0xe0] sm:$0xff]  ;;  %v2279_v37 = vcombine.low %v30_v30, %v38_v31  ;;  %v2816_v30 = vld [vmem:[%s3950_s1 + $0x214] ss:$8 sps:$4 sm:$0xff]  }
  0x26   :  { %v2819_v31 = vld [vmem:[%s3950_s1 + $0x614] ss:$8 sps:$4 sm:$0xff]  }
  0x27   :  { %1761 = vmatpush1.bf16.msra.mxu1 %v2674_v38  ;;  %v2750_v38 = vld [vmem:[%s3950_s1 + $0x164] ss:$8 sps:$4 sm:$0xff]  }
  0x28   :  { %1973 = vmatpush1.bf16.msra.mxu0 %v2675_v39  ;;  %1762 = vmatprep.subr.bf16.mxu1 %v2676_v40  ;;  %v2288_v39 = vcombine.high %v34_v35, %v42_v36  ;;  %v2287_v40 = vcombine.low %v34_v35, %v42_v36  ;;  %v2814_v36 = vld [vmem:[%s3950_s1 + $0x210] ss:$8 sps:$4 sm:$0xff]  }
  0x29   :  { %1974 = vmatprep.subr.bf16.mxu0 %v2678_v41  ;;  %v2753_v41 = vld [vmem:[%s3950_s1 + $0x564] ss:$8 sps:$4 sm:$0xff]  }
  0x2b   :  { %1763 = vmatpush1.bf16.msra.mxu1 %v2680_v42  ;;  %v2748_v42 = vld [vmem:[%s3950_s1 + $0x160] ss:$8 sps:$4 sm:$0xff]  }
  0x2c   :  { %1975 = vmatpush1.bf16.msra.mxu0 %v2681_v43  ;;  %1764 = vmatprep.subr.bf16.mxu1 %v2682_v44  ;;  %v2751_v43 = vld [vmem:[%s3950_s1 + $0x560] ss:$8 sps:$4 sm:$0xff]  }
  0x2d   :  { %1976 = vmatprep.subr.bf16.mxu0 %v2684_v45  ;;  %v3323_v44 = vld [vmem:[%s3951_s0 + $0x8] sm:$0xff] }
  0x2e   :  { %v3328_v45 = vld [vmem:[%s3951_s0 + $0x48] sm:$0xff] }
  0x2f   :  { %1765 = vmatpush1.bf16.msra.mxu1 %v2686_v46  ;;  %v2756_v46 = vld [vmem:[%s3950_s1 + $0x174] ss:$8 sps:$4 sm:$0xff]   ;;  %v2266_v48 = vcombine.high %v3323_v44, %v3328_v45 }
  0x30   :  { %1977 = vmatpush1.bf16.msra.mxu0 %v2687_v47  ;;  %1766 = vmatprep.subr.bf16.mxu1 %v2688_v50  ;;  %v2759_v47 = vld [vmem:[%s3950_s1 + $0x574] ss:$8 sps:$4 sm:$0xff]   ;;  %v3346_v50 = vld [vmem:[%s3951_s0 + $0x68] sm:$0xff] }
  0x31   :  { %1978 = vmatprep.subr.bf16.mxu0 %v2690_v51  ;;  %v2754_v51 = vld [vmem:[%s3950_s1 + $0x170] ss:$8 sps:$4 sm:$0xff]   ;;  %v2274_v53 = vcombine.high %v3341_v49, %v3346_v50 }
  0x33   :  { %1767 = vmatpush1.bf16.msra.mxu1 %v2692_v56  ;;  %v2760_v56 = vld [vmem:[%s3950_s1 + $0x180] ss:$8 sps:$4 sm:$0xff]  }
  0x34   :  { %1979 = vmatpush1.bf16.msra.mxu0 %v2693_v57  ;;  %1768 = vmatprep.subr.bf16.mxu1 %v2694_v58  ;;  %v2763_v57 = vld [vmem:[%s3950_s1 + $0x580] ss:$8 sps:$4 sm:$0xff]   ;;  %v2768_v58 = vld [vmem:[%s3950_s1 + $0x194] ss:$8 sps:$4 sm:$0xff]  }
  0x35   :  { %1980 = vmatprep.subr.bf16.mxu0 %v2696_v59  ;;  %v2771_v59 = vld [vmem:[%s3950_s1 + $0x594] ss:$8 sps:$4 sm:$0xff]  }
  0x37   :  { %1769 = vmatpush1.bf16.msra.mxu1 %v2698_v60  ;;  %v2766_v60 = vld [vmem:[%s3950_s1 + $0x190] ss:$8 sps:$4 sm:$0xff]  }
  0x38   :  { %1981 = vmatpush1.bf16.msra.mxu0 %v2699_v61  ;;  %1770 = vmatprep.subr.bf16.mxu1 %v2700_v62  ;;  %v2769_v61 = vld [vmem:[%s3950_s1 + $0x590] ss:$8 sps:$4 sm:$0xff]   ;;  %v2774_v62 = vld [vmem:[%s3950_s1 + $0x1a4] ss:$8 sps:$4 sm:$0xff]  }
  0x39   :  { %1982 = vmatprep.subr.bf16.mxu0 %v2702_v63  ;;  %v2777_v63 = vld [vmem:[%s3950_s1 + $0x5a4] ss:$8 sps:$4 sm:$0xff]  }
  0x3b   :  { %1771 = vmatpush1.bf16.msra.mxu1 %v2704_v0  ;;  %v2772_v0 = vld [vmem:[%s3950_s1 + $0x1a0] ss:$8 sps:$4 sm:$0xff]  }
  0x3c   :  { %1983 = vmatpush1.bf16.msra.mxu0 %v2705_v1  ;;  %1772 = vmatprep.subr.bf16.mxu1 %v2706_v2  ;;  %v2775_v1 = vld [vmem:[%s3950_s1 + $0x5a0] ss:$8 sps:$4 sm:$0xff]   ;;  %v2780_v2 = vld [vmem:[%s3950_s1 + $0x1b4] ss:$8 sps:$4 sm:$0xff]  }
  0x3d   :  { %1984 = vmatprep.subr.bf16.mxu0 %v2708_v3  ;;  %v2783_v3 = vld [vmem:[%s3950_s1 + $0x5b4] ss:$8 sps:$4 sm:$0xff]  }
  0x3f   :  { %1773 = vmatpush1.bf16.msra.mxu1 %v2710_v4  ;;  %v2778_v4 = vld [vmem:[%s3950_s1 + $0x1b0] ss:$8 sps:$4 sm:$0xff]  }
  0x40   :  { %1985 = vmatpush1.bf16.msra.mxu0 %v2711_v5  ;;  %1795 = vmatprep.subr.bf16.mxu1 %v2714_v6  ;;  %v2781_v5 = vld [vmem:[%s3950_s1 + $0x5b0] ss:$8 sps:$4 sm:$0xff]   ;;  %v2786_v6 = vld [vmem:[%s3950_s1 + $0x1c4] ss:$8 sps:$4 sm:$0xff]  }
  0x41   :  { %2007 = vmatprep.subr.bf16.mxu0 %v2717_v7  ;;  %v2789_v7 = vld [vmem:[%s3950_s1 + $0x5c4] ss:$8 sps:$4 sm:$0xff]  }
  0x42   :  { %1775 = vmatmul.mubr.bf16.vlgmr.msra.gmra.mrb[0].mxu1 %v2263_v8  ;;  %v2784_v8 = vld [vmem:[%s3950_s1 + $0x1c0] ss:$8 sps:$4 sm:$0xff]  }
  0x43   :  { %1987 = vmatmul.mubr.bf16.vlgmr.msra.gmra.mrb[0].mxu0 %v2271_v10  ;;  %1796 = vmatpush1.bf16.msra.mxu1 %v2712_v9  ;;  %v2787_v9 = vld [vmem:[%s3950_s1 + $0x5c0] ss:$8 sps:$4 sm:$0xff]   ;;  %v2792_v10 = vld [vmem:[%s3950_s1 + $0x1d4] ss:$8 sps:$4 sm:$0xff]  }
  0x44   :  { %2008 = vmatpush1.bf16.msra.mxu0 %v2715_v11  ;;  %1797 = vmatprep.subr.bf16.mxu1 %v2720_v12  ;;  %v2795_v11 = vld [vmem:[%s3950_s1 + $0x5d4] ss:$8 sps:$4 sm:$0xff]   ;;  %v2790_v12 = vld [vmem:[%s3950_s1 + $0x1d0] ss:$8 sps:$4 sm:$0xff]  }
  0x45   :  { %2009 = vmatprep.subr.bf16.mxu0 %v2723_v13  ;;  %1784 = vmatprep.mubr.bf16.mxu1 %v2280_v33  ;;  %v2793_v13 = vld [vmem:[%s3950_s1 + $0x5d0] ss:$8 sps:$4 sm:$0xff]   ;;  %v43_v33 = vld [vmem:[%s3951_s0 + $0xe8] sm:$0xff] }
  0x46   :  { %1996 = vmatprep.mubr.bf16.mxu0 %v2288_v39  ;;  %v2825_v39 = vld [vmem:[%s3950_s1 + $0x624] ss:$8 sps:$4 sm:$0xff]  }
  0x47   :  { %1798 = vmatpush1.bf16.msra.mxu1 %v2718_v14  ;;  %v2798_v14 = vld [vmem:[%s3950_s1 + $0x1e4] ss:$8 sps:$4 sm:$0xff]  }
  0x48   :  { %2010 = vmatpush1.bf16.msra.mxu0 %v2721_v15  ;;  %1799 = vmatprep.subr.bf16.mxu1 %v2726_v16  ;;  %v2801_v15 = vld [vmem:[%s3950_s1 + $0x5e4] ss:$8 sps:$4 sm:$0xff]   ;;  %v2796_v16 = vld [vmem:[%s3950_s1 + $0x1e0] ss:$8 sps:$4 sm:$0xff]  }
  0x49   :  { %2011 = vmatprep.subr.bf16.mxu0 %v2729_v17  ;;  %v2799_v17 = vld [vmem:[%s3950_s1 + $0x5e0] ss:$8 sps:$4 sm:$0xff]  }
  0x4a   :  { %1785 = vmatmul.mubr.bf16.gmra.mrb[4].mxu1 %v2279_v37  ;;  %v2817_v37 = vld [vmem:[%s3950_s1 + $0x610] ss:$8 sps:$4 sm:$0xff]  }
  0x4b   :  { %1800 = vmatpush1.bf16.msra.mxu1 %v2724_v18  ;;  %1997 = vmatmul.mubr.bf16.gmra.mrb[4].mxu0 %v2287_v40  ;;  %v2804_v18 = vld [vmem:[%s3950_s1 + $0x1f4] ss:$8 sps:$4 sm:$0xff]   ;;  %v2820_v40 = vld [vmem:[%s3950_s1 + $0x220] ss:$8 sps:$4 sm:$0xff]  }
  0x4c   :  { %2012 = vmatpush1.bf16.msra.mxu0 %v2727_v19  ;;  %1801 = vmatprep.subr.bf16.mxu1 %v2732_v20  ;;  %v2807_v19 = vld [vmem:[%s3950_s1 + $0x5f4] ss:$8 sps:$4 sm:$0xff]   ;;  %v2802_v20 = vld [vmem:[%s3950_s1 + $0x1f0] ss:$8 sps:$4 sm:$0xff]  }
  0x4d   :  { %2013 = vmatprep.subr.bf16.mxu0 %v2735_v21  ;;  %1827 = vmatprep.mubr.bf16.mxu1 %v2266_v48  ;;  %v2805_v21 = vld [vmem:[%s3950_s1 + $0x5f0] ss:$8 sps:$4 sm:$0xff]   ;;  %v2828_v48 = vld [vmem:[%s3950_s1 + $0x234] ss:$8 sps:$4 sm:$0xff]  }
  0x4e   :  { %2039 = vmatprep.mubr.bf16.mxu0 %v2274_v53  ;;  %v2829_v53 = vld [vmem:[%s3950_s1 + $0x630] ss:$8 sps:$4 sm:$0xff]  }
  0x4f   :  { %1802 = vmatpush1.bf16.msra.mxu1 %v2730_v22  ;;  %v2810_v22 = vld [vmem:[%s3950_s1 + $0x204] ss:$8 sps:$4 sm:$0xff]  }
  0x50   :  { %2014 = vmatpush1.bf16.msra.mxu0 %v2733_v23  ;;  %1803 = vmatprep.subr.bf16.mxu1 %v2738_v24  ;;  %v2813_v23 = vld [vmem:[%s3950_s1 + $0x604] ss:$8 sps:$4 sm:$0xff]   ;;  %v2808_v24 = vld [vmem:[%s3950_s1 + $0x200] ss:$8 sps:$4 sm:$0xff]  }
  0x51   :  { %2015 = vmatprep.subr.bf16.mxu0 %v2741_v25  ;;  %v2811_v25 = vld [vmem:[%s3950_s1 + $0x600] ss:$8 sps:$4 sm:$0xff]  }
  0x53   :  { %1804 = vmatpush1.bf16.msra.mxu1 %v2736_v26  ;;  %v31_v26 = vld [vmem:[%s3951_s0 + $0x88] sm:$0xff] }
  0x54   :  { %2016 = vmatpush1.bf16.msra.mxu0 %v2739_v27  ;;  %1805 = vmatprep.subr.bf16.mxu1 %v2744_v28  ;;  %v2265_v27 = vcombine.low %v3323_v44, %v3328_v45  ;;  %v2273_v28 = vcombine.low %v3341_v49, %v3346_v50  ;;  %v3512_v45 = vld [vmem:[%s3951_s0 + $0x50] sm:$0xff] }
  0x55   :  { %2017 = vmatprep.subr.bf16.mxu0 %v2747_v29  ;;  %v39_v29 = vld [vmem:[%s3951_s0 + $0xc8] sm:$0xff]  ;;  %v2831_v49 = vld [vmem:[%s3950_s1 + $0x634] ss:$8 sps:$4 sm:$0xff]  }
  0x57   :  { %1806 = vmatpush1.bf16.msra.mxu1 %v2742_v32  ;;  %v35_v32 = vld [vmem:[%s3951_s0 + $0xa8] sm:$0xff] }
  0x58   :  { %2018 = vmatpush1.bf16.msra.mxu0 %v2745_v34  ;;  %1807 = vmatprep.subr.bf16.mxu1 %v2750_v38  ;;  %v2282_v34 = vcombine.high %v31_v26, %v39_v29  ;;  %v2290_v35 = vcombine.high %v35_v32, %v43_v33  ;;  %v2822_v38 = vld [vmem:[%s3950_s1 + $0x224] ss:$8 sps:$4 sm:$0xff]   ;;  %v2289_v44 = vcombine.low %v35_v32, %v43_v33  ;;  %v2892_v32 = vld [vmem:[%s3950_s1 + $0x2e0] ss:$8 sps:$4 sm:$0xff]  }
  0x59   :  { %2019 = vmatprep.subr.bf16.mxu0 %v2753_v41  ;;  %v2823_v41 = vld [vmem:[%s3950_s1 + $0x620] ss:$8 sps:$4 sm:$0xff]  }
  0x5a   :  { %v2895_v33 = vld [vmem:[%s3950_s1 + $0x6e0] ss:$8 sps:$4 sm:$0xff]  }
  0x5b   :  { %1808 = vmatpush1.bf16.msra.mxu1 %v2748_v42  ;;  %v3507_v42 = vld [vmem:[%s3951_s0 + $0x10] sm:$0xff] }
  0x5c   :  { %2020 = vmatpush1.bf16.msra.mxu0 %v2751_v43  ;;  %1809 = vmatprep.subr.bf16.mxu1 %v2756_v46  ;;  %v2281_v43 = vcombine.low %v31_v26, %v39_v29  ;;  %v3517_v46 = vld [vmem:[%s3951_s0 + $0x30] sm:$0xff]  ;;  %v2268_v50 = vcombine.high %v3507_v42, %v3512_v45 }
  0x5d   :  { %2021 = vmatprep.subr.bf16.mxu0 %v2759_v47  ;;  %v3522_v47 = vld [vmem:[%s3951_s0 + $0x70] sm:$0xff] }
  0x5e   :  { %v2888_v26 = vld [vmem:[%s3950_s1 + $0x2d4] ss:$8 sps:$4 sm:$0xff]   ;;  %v2889_v29 = vld [vmem:[%s3950_s1 + $0x6d0] ss:$8 sps:$4 sm:$0xff]  }
  0x5f   :  { %1810 = vmatpush1.bf16.msra.mxu1 %v2754_v51  ;;  %v2276_v51 = vcombine.high %v3517_v46, %v3522_v47 }
  0x60   :  { %2022 = vmatpush1.bf16.msra.mxu0 %v2757_v52  ;;  %1811 = vmatprep.subr.bf16.mxu1 %v2762_v54  ;;  %v2826_v52 = vld [vmem:[%s3950_s1 + $0x230] ss:$8 sps:$4 sm:$0xff]   ;;  %v2834_v54 = vld [vmem:[%s3950_s1 + $0x244] ss:$8 sps:$4 sm:$0xff]  }
  0x61   :  { %2023 = vmatprep.subr.bf16.mxu0 %v2765_v55  ;;  %v2837_v55 = vld [vmem:[%s3950_s1 + $0x644] ss:$8 sps:$4 sm:$0xff]  }
  0x63   :  { %1812 = vmatpush1.bf16.msra.mxu1 %v2760_v56  ;;  %v2832_v56 = vld [vmem:[%s3950_s1 + $0x240] ss:$8 sps:$4 sm:$0xff]  }
  0x64   :  { %2024 = vmatpush1.bf16.msra.mxu0 %v2763_v57  ;;  %1813 = vmatprep.subr.bf16.mxu1 %v2768_v58  ;;  %v2835_v57 = vld [vmem:[%s3950_s1 + $0x640] ss:$8 sps:$4 sm:$0xff]   ;;  %v2840_v58 = vld [vmem:[%s3950_s1 + $0x254] ss:$8 sps:$4 sm:$0xff]  }
  0x65   :  { %2025 = vmatprep.subr.bf16.mxu0 %v2771_v59  ;;  %v2843_v59 = vld [vmem:[%s3950_s1 + $0x654] ss:$8 sps:$4 sm:$0xff]  }
  0x67   :  { %1814 = vmatpush1.bf16.msra.mxu1 %v2766_v60  ;;  %v2838_v60 = vld [vmem:[%s3950_s1 + $0x250] ss:$8 sps:$4 sm:$0xff]  }
  0x68   :  { %2026 = vmatpush1.bf16.msra.mxu0 %v2769_v61  ;;  %1815 = vmatprep.subr.bf16.mxu1 %v2774_v62  ;;  %v2841_v61 = vld [vmem:[%s3950_s1 + $0x650] ss:$8 sps:$4 sm:$0xff]   ;;  %v2846_v62 = vld [vmem:[%s3950_s1 + $0x264] ss:$8 sps:$4 sm:$0xff]  }
  0x69   :  { %2027 = vmatprep.subr.bf16.mxu0 %v2777_v63  ;;  %v2849_v63 = vld [vmem:[%s3950_s1 + $0x664] ss:$8 sps:$4 sm:$0xff]  }
  0x6b   :  { %1816 = vmatpush1.bf16.msra.mxu1 %v2772_v0  ;;  %v2844_v0 = vld [vmem:[%s3950_s1 + $0x260] ss:$8 sps:$4 sm:$0xff]  }
  0x6c   :  { %2028 = vmatpush1.bf16.msra.mxu0 %v2775_v1  ;;  %1817 = vmatprep.subr.bf16.mxu1 %v2780_v2  ;;  %v2847_v1 = vld [vmem:[%s3950_s1 + $0x660] ss:$8 sps:$4 sm:$0xff]   ;;  %v2852_v2 = vld [vmem:[%s3950_s1 + $0x274] ss:$8 sps:$4 sm:$0xff]  }
  0x6d   :  { %2029 = vmatprep.subr.bf16.mxu0 %v2783_v3  ;;  %v2855_v3 = vld [vmem:[%s3950_s1 + $0x674] ss:$8 sps:$4 sm:$0xff]  }
  0x6f   :  { %1818 = vmatpush1.bf16.msra.mxu1 %v2778_v4  ;;  %v2850_v4 = vld [vmem:[%s3950_s1 + $0x270] ss:$8 sps:$4 sm:$0xff]  }
  0x70   :  { %2030 = vmatpush1.bf16.msra.mxu0 %v2781_v5  ;;  %1819 = vmatprep.subr.bf16.mxu1 %v2786_v6  ;;  %v2853_v5 = vld [vmem:[%s3950_s1 + $0x670] ss:$8 sps:$4 sm:$0xff]   ;;  %v2858_v6 = vld [vmem:[%s3950_s1 + $0x284] ss:$8 sps:$4 sm:$0xff]  }
  0x71   :  { %2031 = vmatprep.subr.bf16.mxu0 %v2789_v7  ;;  %v2861_v7 = vld [vmem:[%s3950_s1 + $0x684] ss:$8 sps:$4 sm:$0xff]  }
  0x73   :  { %1820 = vmatpush1.bf16.msra.mxu1 %v2784_v8  ;;  %v2856_v8 = vld [vmem:[%s3950_s1 + $0x280] ss:$8 sps:$4 sm:$0xff]  }
  0x74   :  { %2032 = vmatpush1.bf16.msra.mxu0 %v2787_v9  ;;  %1821 = vmatprep.subr.bf16.mxu1 %v2792_v10  ;;  %v2859_v9 = vld [vmem:[%s3950_s1 + $0x680] ss:$8 sps:$4 sm:$0xff]   ;;  %v2864_v10 = vld [vmem:[%s3950_s1 + $0x294] ss:$8 sps:$4 sm:$0xff]  }
  0x75   :  { %2033 = vmatprep.subr.bf16.mxu0 %v2795_v11  ;;  %v2867_v11 = vld [vmem:[%s3950_s1 + $0x694] ss:$8 sps:$4 sm:$0xff]  }
  0x77   :  { %1822 = vmatpush1.bf16.msra.mxu1 %v2790_v12  ;;  %v2862_v12 = vld [vmem:[%s3950_s1 + $0x290] ss:$8 sps:$4 sm:$0xff]  }
  0x78   :  { %2034 = vmatpush1.bf16.msra.mxu0 %v2793_v13  ;;  %1823 = vmatprep.subr.bf16.mxu1 %v2798_v14  ;;  %v2865_v13 = vld [vmem:[%s3950_s1 + $0x690] ss:$8 sps:$4 sm:$0xff]   ;;  %v2870_v14 = vld [vmem:[%s3950_s1 + $0x2a4] ss:$8 sps:$4 sm:$0xff]  }
  0x79   :  { %2035 = vmatprep.subr.bf16.mxu0 %v2801_v15  ;;  %v2873_v15 = vld [vmem:[%s3950_s1 + $0x6a4] ss:$8 sps:$4 sm:$0xff]  }
  0x7b   :  { %1824 = vmatpush1.bf16.msra.mxu1 %v2796_v16  ;;  %v2868_v16 = vld [vmem:[%s3950_s1 + $0x2a0] ss:$8 sps:$4 sm:$0xff]  }
  0x7c   :  { %2036 = vmatpush1.bf16.msra.mxu0 %v2799_v17  ;;  %1825 = vmatprep.subr.bf16.mxu1 %v2804_v18  ;;  %v2871_v17 = vld [vmem:[%s3950_s1 + $0x6a0] ss:$8 sps:$4 sm:$0xff]   ;;  %v2876_v18 = vld [vmem:[%s3950_s1 + $0x2b4] ss:$8 sps:$4 sm:$0xff]  }
  0x7d   :  { %2037 = vmatprep.subr.bf16.mxu0 %v2807_v19  ;;  %v2879_v19 = vld [vmem:[%s3950_s1 + $0x6b4] ss:$8 sps:$4 sm:$0xff]  }
  0x7f   :  { %1826 = vmatpush1.bf16.msra.mxu1 %v2802_v20  ;;  %v2874_v20 = vld [vmem:[%s3950_s1 + $0x2b0] ss:$8 sps:$4 sm:$0xff]  }
  0x80   :  { %2038 = vmatpush1.bf16.msra.mxu0 %v2805_v21  ;;  %1848 = vmatprep.subr.bf16.mxu1 %v2810_v22  ;;  %v2877_v21 = vld [vmem:[%s3950_s1 + $0x6b0] ss:$8 sps:$4 sm:$0xff]   ;;  %v2882_v22 = vld [vmem:[%s3950_s1 + $0x2c4] ss:$8 sps:$4 sm:$0xff]  }
  0x81   :  { %2060 = vmatprep.subr.bf16.mxu0 %v2813_v23  ;;  %v2885_v23 = vld [vmem:[%s3950_s1 + $0x6c4] ss:$8 sps:$4 sm:$0xff]  }
  0x82   :  { %1828 = vmatmul.mubr.bf16.vlgmr.msra.gmra.mrb[0].mxu1 %v2265_v27  ;;  %v2891_v27 = vld [vmem:[%s3950_s1 + $0x6d4] ss:$8 sps:$4 sm:$0xff]  }
  0x83   :  { %2040 = vmatmul.mubr.bf16.vlgmr.msra.gmra.mrb[0].mxu0 %v2273_v28  ;;  %1849 = vmatpush1.bf16.msra.mxu1 %v2808_v24  ;;  %v2880_v24 = vld [vmem:[%s3950_s1 + $0x2c0] ss:$8 sps:$4 sm:$0xff]   ;;  %v2886_v28 = vld [vmem:[%s3950_s1 + $0x2d0] ss:$8 sps:$4 sm:$0xff]  }
  0x84   :  { %2061 = vmatpush1.bf16.msra.mxu0 %v2811_v25  ;;  %1850 = vmatprep.subr.bf16.mxu1 %v2816_v30  ;;  %v2883_v25 = vld [vmem:[%s3950_s1 + $0x6c0] ss:$8 sps:$4 sm:$0xff]   ;;  %v2894_v30 = vld [vmem:[%s3950_s1 + $0x2e4] ss:$8 sps:$4 sm:$0xff]  }
  0x85   :  { %2062 = vmatprep.subr.bf16.mxu0 %v2819_v31  ;;  %1837 = vmatprep.mubr.bf16.mxu1 %v2282_v34  ;;  %v2897_v31 = vld [vmem:[%s3950_s1 + $0x6e4] ss:$8 sps:$4 sm:$0xff]   ;;  %v2900_v34 = vld [vmem:[%s3950_s1 + $0x2f4] ss:$8 sps:$4 sm:$0xff]  }
  0x86   :  { %2049 = vmatprep.mubr.bf16.mxu0 %v2290_v35  ;;  %v2903_v35 = vld [vmem:[%s3950_s1 + $0x6f4] ss:$8 sps:$4 sm:$0xff]  }
  0x87   :  { %1851 = vmatpush1.bf16.msra.mxu1 %v2814_v36  ;;  %v2898_v36 = vld [vmem:[%s3950_s1 + $0x2f0] ss:$8 sps:$4 sm:$0xff]  }
  0x88   :  { %2063 = vmatpush1.bf16.msra.mxu0 %v2817_v37  ;;  %1852 = vmatprep.subr.bf16.mxu1 %v2822_v38  ;;  %v2901_v37 = vld [vmem:[%s3950_s1 + $0x6f0] ss:$8 sps:$4 sm:$0xff]   ;;  %v2906_v38 = vld [vmem:[%s3950_s1 + $0x304] ss:$8 sps:$4 sm:$0xff]  }
  0x89   :  { %2064 = vmatprep.subr.bf16.mxu0 %v2825_v39  ;;  %v2909_v39 = vld [vmem:[%s3950_s1 + $0x704] ss:$8 sps:$4 sm:$0xff]  }
  0x8a   :  { %1838 = vmatmul.mubr.bf16.gmra.mrb[4].mxu1 %v2281_v43  ;;  %v2275_v43 = vcombine.low %v3517_v46, %v3522_v47  ;;  %v2912_v46 = vld [vmem:[%s3950_s1 + $0x314] ss:$8 sps:$4 sm:$0xff]  }
  0x8b   :  { %2050 = vmatmul.mubr.bf16.gmra.mrb[4].mxu0 %v2289_v44  ;;  %1853 = vmatpush1.bf16.msra.mxu1 %v2820_v40  ;;  %v32_v40 = vld [vmem:[%s3951_s0 + $0x90] sm:$0xff] }
  0x8c   :  { %2065 = vmatpush1.bf16.msra.mxu0 %v2823_v41  ;;  %1854 = vmatprep.subr.bf16.mxu1 %v2828_v48  ;;  %v2267_v41 = vcombine.low %v3507_v42, %v3512_v45  ;;  %v40_v44 = vld [vmem:[%s3951_s0 + $0xd0] sm:$0xff]  ;;  %v2904_v42 = vld [vmem:[%s3950_s1 + $0x300] ss:$8 sps:$4 sm:$0xff]  }
  0x8d   :  { %2066 = vmatprep.subr.bf16.mxu0 %v2831_v49  ;;  %1880 = vmatprep.mubr.bf16.mxu1 %v2268_v50  ;;  %v36_v48 = vld [vmem:[%s3951_s0 + $0xb0] sm:$0xff]  ;;  %v2907_v45 = vld [vmem:[%s3950_s1 + $0x700] ss:$8 sps:$4 sm:$0xff]   ;;  %v2284_v50 = vcombine.high %v32_v40, %v40_v44 }
  0x8e   :  { %2092 = vmatprep.mubr.bf16.mxu0 %v2276_v51  ;;  %v44_v49 = vld [vmem:[%s3951_s0 + $0xf0] sm:$0xff] }
  0x8f   :  { %1855 = vmatpush1.bf16.msra.mxu1 %v2826_v52  ;;  %v2915_v47 = vld [vmem:[%s3950_s1 + $0x714] ss:$8 sps:$4 sm:$0xff]   ;;  %v2292_v51 = vcombine.high %v36_v48, %v44_v49  ;;  %v2910_v52 = vld [vmem:[%s3950_s1 + $0x310] ss:$8 sps:$4 sm:$0xff]  }
  0x90   :  { %2067 = vmatpush1.bf16.msra.mxu0 %v2829_v53  ;;  %1856 = vmatprep.subr.bf16.mxu1 %v2834_v54  ;;  %v2913_v53 = vld [vmem:[%s3950_s1 + $0x710] ss:$8 sps:$4 sm:$0xff]   ;;  %v2918_v54 = vld [vmem:[%s3950_s1 + $0x324] ss:$8 sps:$4 sm:$0xff]  }
  0x91   :  { %2068 = vmatprep.subr.bf16.mxu0 %v2837_v55  ;;  %v2921_v55 = vld [vmem:[%s3950_s1 + $0x724] ss:$8 sps:$4 sm:$0xff]  }
  0x93   :  { %1857 = vmatpush1.bf16.msra.mxu1 %v2832_v56  ;;  %v3733_v56 = vld [vmem:[%s3951_s0 + $0x18] sm:$0xff] }
  0x94   :  { %2069 = vmatpush1.bf16.msra.mxu0 %v2835_v57  ;;  %1858 = vmatprep.subr.bf16.mxu1 %v2840_v58  ;;  %v2283_v57 = vcombine.low %v32_v40, %v40_v44  ;;  %v2291_v58 = vcombine.low %v36_v48, %v44_v49  ;;  %v2976_v40 = vld [vmem:[%s3950_s1 + $0x3c0] ss:$8 sps:$4 sm:$0xff]   ;;  %v2987_v44 = vld [vmem:[%s3950_s1 + $0x7d4] ss:$8 sps:$4 sm:$0xff]   ;;  %v2982_v48 = vld [vmem:[%s3950_s1 + $0x3d0] ss:$8 sps:$4 sm:$0xff]  }
  0x95   :  { %2070 = vmatprep.subr.bf16.mxu0 %v2843_v59  ;;  %v3738_v59 = vld [vmem:[%s3951_s0 + $0x58] sm:$0xff] }
  0x96   :  { %v2985_v49 = vld [vmem:[%s3950_s1 + $0x7d0] ss:$8 sps:$4 sm:$0xff]  }
  0x97   :  { %1859 = vmatpush1.bf16.msra.mxu1 %v2838_v60  ;;  %v3743_v60 = vld [vmem:[%s3951_s0 + $0x38] sm:$0xff] }
  0x98   :  { %2071 = vmatpush1.bf16.msra.mxu0 %v2841_v61  ;;  %1860 = vmatprep.subr.bf16.mxu1 %v2846_v62  ;;  %v3748_v61 = vld [vmem:[%s3951_s0 + $0x78] sm:$0xff]  ;;  %v2916_v62 = vld [vmem:[%s3950_s1 + $0x320] ss:$8 sps:$4 sm:$0xff]  }
  0x99   :  { %2072 = vmatprep.subr.bf16.mxu0 %v2849_v63  ;;  %v2919_v63 = vld [vmem:[%s3950_s1 + $0x720] ss:$8 sps:$4 sm:$0xff]  }
  0x9b   :  { %1861 = vmatpush1.bf16.msra.mxu1 %v2844_v0  ;;  %v2924_v0 = vld [vmem:[%s3950_s1 + $0x334] ss:$8 sps:$4 sm:$0xff]  }
  0x9c   :  { %2073 = vmatpush1.bf16.msra.mxu0 %v2847_v1  ;;  %1862 = vmatprep.subr.bf16.mxu1 %v2852_v2  ;;  %v2927_v1 = vld [vmem:[%s3950_s1 + $0x734] ss:$8 sps:$4 sm:$0xff]   ;;  %v2270_v2 = vcombine.high %v3733_v56, %v3738_v59 }
  0x9d   :  { %2074 = vmatprep.subr.bf16.mxu0 %v2855_v3  ;;  %v2278_v3 = vcombine.high %v3743_v60, %v3748_v61 }
  0x9f   :  { %1863 = vmatpush1.bf16.msra.mxu1 %v2850_v4  ;;  %v2922_v4 = vld [vmem:[%s3950_s1 + $0x330] ss:$8 sps:$4 sm:$0xff]  }
  0xa0   :  { %2075 = vmatpush1.bf16.msra.mxu0 %v2853_v5  ;;  %1864 = vmatprep.subr.bf16.mxu1 %v2858_v6  ;;  %v2925_v5 = vld [vmem:[%s3950_s1 + $0x730] ss:$8 sps:$4 sm:$0xff]   ;;  %v2930_v6 = vld [vmem:[%s3950_s1 + $0x344] ss:$8 sps:$4 sm:$0xff]  }
  0xa1   :  { %2076 = vmatprep.subr.bf16.mxu0 %v2861_v7  ;;  %v2933_v7 = vld [vmem:[%s3950_s1 + $0x744] ss:$8 sps:$4 sm:$0xff]  }
  0xa3   :  { %1865 = vmatpush1.bf16.msra.mxu1 %v2856_v8  ;;  %v2928_v8 = vld [vmem:[%s3950_s1 + $0x340] ss:$8 sps:$4 sm:$0xff]  }
  0xa4   :  { %2077 = vmatpush1.bf16.msra.mxu0 %v2859_v9  ;;  %1866 = vmatprep.subr.bf16.mxu1 %v2864_v10  ;;  %v2931_v9 = vld [vmem:[%s3950_s1 + $0x740] ss:$8 sps:$4 sm:$0xff]   ;;  %v2936_v10 = vld [vmem:[%s3950_s1 + $0x354] ss:$8 sps:$4 sm:$0xff]  }
  0xa5   :  { %2078 = vmatprep.subr.bf16.mxu0 %v2867_v11  ;;  %v2939_v11 = vld [vmem:[%s3950_s1 + $0x754] ss:$8 sps:$4 sm:$0xff]  }
  0xa7   :  { %1867 = vmatpush1.bf16.msra.mxu1 %v2862_v12  ;;  %v2934_v12 = vld [vmem:[%s3950_s1 + $0x350] ss:$8 sps:$4 sm:$0xff]  }
  0xa8   :  { %2079 = vmatpush1.bf16.msra.mxu0 %v2865_v13  ;;  %1868 = vmatprep.subr.bf16.mxu1 %v2870_v14  ;;  %v2937_v13 = vld [vmem:[%s3950_s1 + $0x750] ss:$8 sps:$4 sm:$0xff]   ;;  %v2942_v14 = vld [vmem:[%s3950_s1 + $0x364] ss:$8 sps:$4 sm:$0xff]  }
  0xa9   :  { %2080 = vmatprep.subr.bf16.mxu0 %v2873_v15  ;;  %v2945_v15 = vld [vmem:[%s3950_s1 + $0x764] ss:$8 sps:$4 sm:$0xff]  }
  0xab   :  { %1869 = vmatpush1.bf16.msra.mxu1 %v2868_v16  ;;  %v2940_v16 = vld [vmem:[%s3950_s1 + $0x360] ss:$8 sps:$4 sm:$0xff]  }
  0xac   :  { %2081 = vmatpush1.bf16.msra.mxu0 %v2871_v17  ;;  %1870 = vmatprep.subr.bf16.mxu1 %v2876_v18  ;;  %v2943_v17 = vld [vmem:[%s3950_s1 + $0x760] ss:$8 sps:$4 sm:$0xff]   ;;  %v2948_v18 = vld [vmem:[%s3950_s1 + $0x374] ss:$8 sps:$4 sm:$0xff]  }
  0xad   :  { %2082 = vmatprep.subr.bf16.mxu0 %v2879_v19  ;;  %v2951_v19 = vld [vmem:[%s3950_s1 + $0x774] ss:$8 sps:$4 sm:$0xff]  }
  0xaf   :  { %1871 = vmatpush1.bf16.msra.mxu1 %v2874_v20  ;;  %v2946_v20 = vld [vmem:[%s3950_s1 + $0x370] ss:$8 sps:$4 sm:$0xff]  }
  0xb0   :  { %2083 = vmatpush1.bf16.msra.mxu0 %v2877_v21  ;;  %1872 = vmatprep.subr.bf16.mxu1 %v2882_v22  ;;  %v2949_v21 = vld [vmem:[%s3950_s1 + $0x770] ss:$8 sps:$4 sm:$0xff]   ;;  %v2954_v22 = vld [vmem:[%s3950_s1 + $0x384] ss:$8 sps:$4 sm:$0xff]  }
  0xb1   :  { %2084 = vmatprep.subr.bf16.mxu0 %v2885_v23  ;;  %v2957_v23 = vld [vmem:[%s3950_s1 + $0x784] ss:$8 sps:$4 sm:$0xff]  }
  0xb3   :  { %1873 = vmatpush1.bf16.msra.mxu1 %v2880_v24  ;;  %v2952_v24 = vld [vmem:[%s3950_s1 + $0x380] ss:$8 sps:$4 sm:$0xff]  }
  0xb4   :  { %2085 = vmatpush1.bf16.msra.mxu0 %v2883_v25  ;;  %1874 = vmatprep.subr.bf16.mxu1 %v2888_v26  ;;  %v2955_v25 = vld [vmem:[%s3950_s1 + $0x780] ss:$8 sps:$4 sm:$0xff]   ;;  %v2960_v26 = vld [vmem:[%s3950_s1 + $0x394] ss:$8 sps:$4 sm:$0xff]  }
  0xb5   :  { %2086 = vmatprep.subr.bf16.mxu0 %v2891_v27  ;;  %v2963_v27 = vld [vmem:[%s3950_s1 + $0x794] ss:$8 sps:$4 sm:$0xff]  }
  0xb7   :  { %1875 = vmatpush1.bf16.msra.mxu1 %v2886_v28  ;;  %v2958_v28 = vld [vmem:[%s3950_s1 + $0x390] ss:$8 sps:$4 sm:$0xff]  }
  0xb8   :  { %2087 = vmatpush1.bf16.msra.mxu0 %v2889_v29  ;;  %1876 = vmatprep.subr.bf16.mxu1 %v2894_v30  ;;  %v2961_v29 = vld [vmem:[%s3950_s1 + $0x790] ss:$8 sps:$4 sm:$0xff]   ;;  %v2966_v30 = vld [vmem:[%s3950_s1 + $0x3a4] ss:$8 sps:$4 sm:$0xff]  }
  0xb9   :  { %2088 = vmatprep.subr.bf16.mxu0 %v2897_v31  ;;  %v2969_v31 = vld [vmem:[%s3950_s1 + $0x7a4] ss:$8 sps:$4 sm:$0xff]  }
  0xbb   :  { %1877 = vmatpush1.bf16.msra.mxu1 %v2892_v32  ;;  %v2964_v32 = vld [vmem:[%s3950_s1 + $0x3a0] ss:$8 sps:$4 sm:$0xff]  }
  0xbc   :  { %2089 = vmatpush1.bf16.msra.mxu0 %v2895_v33  ;;  %1878 = vmatprep.subr.bf16.mxu1 %v2900_v34  ;;  %v2967_v33 = vld [vmem:[%s3950_s1 + $0x7a0] ss:$8 sps:$4 sm:$0xff]   ;;  %v2972_v34 = vld [vmem:[%s3950_s1 + $0x3b4] ss:$8 sps:$4 sm:$0xff]  }
  0xbd   :  { %2090 = vmatprep.subr.bf16.mxu0 %v2903_v35  ;;  %v2975_v35 = vld [vmem:[%s3950_s1 + $0x7b4] ss:$8 sps:$4 sm:$0xff]  }
  0xbf   :  { %1879 = vmatpush1.bf16.msra.mxu1 %v2898_v36  ;;  %v2970_v36 = vld [vmem:[%s3950_s1 + $0x3b0] ss:$8 sps:$4 sm:$0xff]  }
  0xc0   :  { %2091 = vmatpush1.bf16.msra.mxu0 %v2901_v37  ;;  %1901 = vmatprep.subr.bf16.mxu1 %v2906_v38  ;;  %v2973_v37 = vld [vmem:[%s3950_s1 + $0x7b0] ss:$8 sps:$4 sm:$0xff]   ;;  %v2978_v38 = vld [vmem:[%s3950_s1 + $0x3c4] ss:$8 sps:$4 sm:$0xff]  }
  0xc1   :  { %2113 = vmatprep.subr.bf16.mxu0 %v2909_v39  ;;  %v2981_v39 = vld [vmem:[%s3950_s1 + $0x7c4] ss:$8 sps:$4 sm:$0xff]  }
  0xc2   :  { %1881 = vmatmul.mubr.bf16.vlgmr.msra.gmra.mrb[0].mxu1 %v2267_v41  ;;  %v2979_v41 = vld [vmem:[%s3950_s1 + $0x7c0] ss:$8 sps:$4 sm:$0xff]  }
  0xc3   :  { %2093 = vmatmul.mubr.bf16.vlgmr.msra.gmra.mrb[0].mxu0 %v2275_v43  ;;  %1902 = vmatpush1.bf16.msra.mxu1 %v2904_v42  ;;  %v2984_v43 = vld [vmem:[%s3950_s1 + $0x3d4] ss:$8 sps:$4 sm:$0xff]   ;;  %v2990_v42 = vld [vmem:[%s3950_s1 + $0x3e4] ss:$8 sps:$4 sm:$0xff]  }
  0xc4   :  { %2114 = vmatpush1.bf16.msra.mxu0 %v2907_v45  ;;  %1903 = vmatprep.subr.bf16.mxu1 %v2912_v46  ;;  %v2993_v45 = vld [vmem:[%s3950_s1 + $0x7e4] ss:$8 sps:$4 sm:$0xff]   ;;  %v2988_v46 = vld [vmem:[%s3950_s1 + $0x3e0] ss:$8 sps:$4 sm:$0xff]  }
  0xc5   :  { %2115 = vmatprep.subr.bf16.mxu0 %v2915_v47  ;;  %1890 = vmatprep.mubr.bf16.mxu1 %v2284_v50  ;;  %v2991_v47 = vld [vmem:[%s3950_s1 + $0x7e0] ss:$8 sps:$4 sm:$0xff]   ;;  %v2996_v50 = vld [vmem:[%s3950_s1 + $0x3f4] ss:$8 sps:$4 sm:$0xff]  }
  0xc6   :  { %2102 = vmatprep.mubr.bf16.mxu0 %v2292_v51  ;;  %v2999_v51 = vld [vmem:[%s3950_s1 + $0x7f4] ss:$8 sps:$4 sm:$0xff]  }
  0xc7   :  { %1904 = vmatpush1.bf16.msra.mxu1 %v2910_v52  ;;  %v2994_v52 = vld [vmem:[%s3950_s1 + $0x3f0] ss:$8 sps:$4 sm:$0xff]  }
  0xc8   :  { %2116 = vmatpush1.bf16.msra.mxu0 %v2913_v53  ;;  %1905 = vmatprep.subr.bf16.mxu1 %v2918_v54  ;;  %v2997_v53 = vld [vmem:[%s3950_s1 + $0x7f0] ss:$8 sps:$4 sm:$0xff]  }
  0xc9   :  { %2117 = vmatprep.subr.bf16.mxu0 %v2921_v55  ;;  %v33_v54 = vld [vmem:[%s3951_s0 + $0x98] sm:$0xff] }
  0xca   :  { %1891 = vmatmul.mubr.bf16.gmra.mrb[4].mxu1 %v2283_v57  ;;  %v41_v55 = vld [vmem:[%s3951_s0 + $0xd8] sm:$0xff] }
  0xcb   :  { %2103 = vmatmul.mubr.bf16.gmra.mrb[4].mxu0 %v2291_v58  ;;  %1906 = vmatpush1.bf16.msra.mxu1 %v2916_v62  ;;  %v37_v57 = vld [vmem:[%s3951_s0 + $0xb8] sm:$0xff]  ;;  %v2269_v62 = vcombine.low %v3733_v56, %v3738_v59  ;;  %v2166_v56 = vld [vmem:[%s3952_s2] ss:$2 sm:$0x3] }
  0xcc   :  { %2118 = vmatpush1.bf16.msra.mxu0 %v2919_v63  ;;  %1907 = vmatprep.subr.bf16.mxu1 %v2924_v0  ;;  %v45_v58 = vld [vmem:[%s3951_s0 + $0xf8] sm:$0xff]  ;;  %v2277_v63 = vcombine.low %v3743_v60, %v3748_v61  ;;  %v2286_v0 = vcombine.high %v33_v54, %v41_v55  ;;  %v2551_v60 = vld [vmem:[%s3952_s2 + $0x1] ss:$2 sm:$0x3] }
  0xcd   :  { %2119 = vmatprep.subr.bf16.mxu0 %v2927_v1  ;;  %1933 = vmatprep.mubr.bf16.mxu1 %v2270_v2  ;;  %v2294_v1 = vcombine.high %v37_v57, %v45_v58  ;;  %v2285_v2 = vcombine.low %v33_v54, %v41_v55 }
  0xce   :  { %2145 = vmatprep.mubr.bf16.mxu0 %v2278_v3  ;;  %v2293_v3 = vcombine.low %v37_v57, %v45_v58 }
  0xcf   :  { %1908 = vmatpush1.bf16.msra.mxu1 %v2922_v4  ;;  %v2168_v4 = vlaneseq }
  0xd0   :  { %2120 = vmatpush1.bf16.msra.mxu0 %v2925_v5  ;;  %1909 = vmatprep.subr.bf16.mxu1 %v2930_v6 }
  0xd1   :  { %2121 = vmatprep.subr.bf16.mxu0 %v2933_v7  ;;  %v2169_v5 = vshrl.u32 %v2168_v4, 7 }
  0xd3   :  { %1910 = vmatpush1.bf16.msra.mxu1 %v2928_v8  ;;  %v2170_v6 = vsub.s32 0, %v2169_v5  ;;  %v2174_v59 = vsub.s32 1, %v2169_v5 }
  0xd4   :  { %2122 = vmatpush1.bf16.msra.mxu0 %v2931_v9  ;;  %1911 = vmatprep.subr.bf16.mxu1 %v2936_v10 }
  0xd5   :  { %2123 = vmatprep.subr.bf16.mxu0 %v2939_v11  ;;  %v2171_v61 = vrot.slane %v2166_v56, %v2170_v6  ;;  %v2175_v9 = vrot.slane %v2166_v56, %v2174_v59  ;;  %v2192_v11 = vrot.slane %v2551_v60, %v2170_v6 }
  0xd7   :  { %1912 = vmatpush1.bf16.msra.mxu1 %v2934_v12 }
  0xd8   :  { %2124 = vmatpush1.bf16.msra.mxu0 %v2937_v13  ;;  %1913 = vmatprep.subr.bf16.mxu1 %v2942_v14 }
  0xd9   :  { %2125 = vmatprep.subr.bf16.mxu0 %v2945_v15  ;;  %v2196_v15 = vrot.slane %v2551_v60, %v2174_v59 }
  0xdb   :  { %1914 = vmatpush1.bf16.msra.mxu1 %v2940_v16 }
  0xdc   :  { %2126 = vmatpush1.bf16.msra.mxu0 %v2943_v17  ;;  %1915 = vmatprep.subr.bf16.mxu1 %v2948_v18 }
  0xdd   :  { %2127 = vmatprep.subr.bf16.mxu0 %v2951_v19 }
  0xdf   :  { %1916 = vmatpush1.bf16.msra.mxu1 %v2946_v20 }
  0xe0   :  { %2128 = vmatpush1.bf16.msra.mxu0 %v2949_v21  ;;  %1917 = vmatprep.subr.bf16.mxu1 %v2954_v22 }
  0xe1   :  { %2129 = vmatprep.subr.bf16.mxu0 %v2957_v23 }
  0xe3   :  { %1918 = vmatpush1.bf16.msra.mxu1 %v2952_v24 }
  0xe4   :  { %2130 = vmatpush1.bf16.msra.mxu0 %v2955_v25  ;;  %1919 = vmatprep.subr.bf16.mxu1 %v2960_v26 }
  0xe5   :  { %2131 = vmatprep.subr.bf16.mxu0 %v2963_v27 }
  0xe7   :  { %1920 = vmatpush1.bf16.msra.mxu1 %v2958_v28 }
  0xe8   :  { %2132 = vmatpush1.bf16.msra.mxu0 %v2961_v29  ;;  %1921 = vmatprep.subr.bf16.mxu1 %v2966_v30 }
  0xe9   :  { %2133 = vmatprep.subr.bf16.mxu0 %v2969_v31 }
  0xeb   :  { %1922 = vmatpush1.bf16.msra.mxu1 %v2964_v32 }
  0xec   :  { %2134 = vmatpush1.bf16.msra.mxu0 %v2967_v33  ;;  %1923 = vmatprep.subr.bf16.mxu1 %v2972_v34 }
  0xed   :  { %2135 = vmatprep.subr.bf16.mxu0 %v2975_v35 }
  0xef   :  { %1924 = vmatpush1.bf16.msra.mxu1 %v2970_v36 }
  0xf0   :  { %2136 = vmatpush1.bf16.msra.mxu0 %v2973_v37  ;;  %1925 = vmatprep.subr.bf16.mxu1 %v2978_v38 }
  0xf1   :  { %2137 = vmatprep.subr.bf16.mxu0 %v2981_v39 }
  0xf3   :  { %1926 = vmatpush1.bf16.msra.mxu1 %v2976_v40 }
  0xf4   :  { %2138 = vmatpush1.bf16.msra.mxu0 %v2979_v41  ;;  %1927 = vmatprep.subr.bf16.mxu1 %v2984_v43 }
  0xf5   :  { %2139 = vmatprep.subr.bf16.mxu0 %v2987_v44 }
  0xf7   :  { %1928 = vmatpush1.bf16.msra.mxu1 %v2982_v48 }
  0xf8   :  { %2140 = vmatpush1.bf16.msra.mxu0 %v2985_v49  ;;  %1929 = vmatprep.subr.bf16.mxu1 %v2990_v42 }
  0xf9   :  { %2141 = vmatprep.subr.bf16.mxu0 %v2993_v45 }
  0xfb   :  { %1930 = vmatpush1.bf16.msra.mxu1 %v2988_v46 }
  0xfc   :  { %2142 = vmatpush1.bf16.msra.mxu0 %v2991_v47  ;;  %1931 = vmatprep.subr.bf16.mxu1 %v2996_v50 }
  0xfd   :  { %2143 = vmatprep.subr.bf16.mxu0 %v2999_v51 }
  0xff   :  { %1932 = vmatpush1.bf16.msra.mxu1 %v2994_v52 }
 0x100   :  { %2144 = vmatpush1.bf16.msra.mxu0 %v2997_v53 }
 0x102   :  { %1934 = vmatmul.mubr.bf16.vlgmr.msra.gmra.mrb[0].mxu1 %v2269_v62 }
 0x103   :  { %2146 = vmatmul.mubr.bf16.vlgmr.msra.gmra.mrb[0].mxu0 %v2277_v63  ;;  %1943 = vmatprep.mubr.bf16.mxu1 %v2286_v0 }
 0x104   :  { %2155 = vmatprep.mubr.bf16.mxu0 %v2294_v1 }
 0x10a   :  { %1944 = vmatmul.mubr.bf16.gmra.mrb[4].mxu1 %v2285_v2 }
 0x10b   :  { %2156 = vmatmul.mubr.bf16.gmra.mrb[4].mxu0 %v2293_v3 }
 0x1d5   :  { %v1935_v7 = vpop.f32.mrb[0].mxu1 }
 0x1d6   :  { %v2147_v8 = vpop.f32.mrb[0].mxu0  ;;  %v1937_v12 = vpop.f32.mrb[1].mxu1 }
 0x1d7   :  { %v2560_v10 = vadd.f32 %v2147_v8, %v1935_v7  ;;  %v2149_v13 = vpop.f32.mrb[1].mxu0  ;;  %v1939_v16 = vpop.f32.mrb[2].mxu1 }
 0x1d8   :  { %v2561_v14 = vadd.f32 %v2149_v13, %v1937_v12  ;;  %v2151_v17 = vpop.f32.mrb[2].mxu0  ;;  %v1941_v20 = vpop.f32.mrb[3].mxu1 }
 0x1d9   :  { %v2178_v18 = vmul.f32 %v2560_v10, %v2171_v61  ;;  %v2562_v19 = vadd.f32 %v2151_v17, %v1939_v16  ;;  %v2153_v21 = vpop.f32.mrb[3].mxu0 }
 0x1da   :  { %v2179_v22 = vmul.f32 %v2561_v14, %v2175_v9  ;;  %v2563_v23 = vadd.f32 %v2153_v21, %v1941_v20 }
 0x1db   :  { %v2199_v24 = vadd.f32 %v2192_v11, %v2178_v18  ;;  %v2180_v25 = vmul.f32 %v2562_v19, %v2171_v61 }
 0x1dc   :  { %v2200_v26 = vadd.f32 %v2196_v15, %v2179_v22  ;;  %v2181_v27 = vmul.f32 %v2563_v23, %v2175_v9 }
 0x1dd   :  { %vm2207_vm0 = vcmp.ge.f32.partialorder %v2199_v24, 0.0  ;;  %v2215_v28 = vmul.f32 0.2, %v2199_v24  ;;  %v2201_v29 = vadd.f32 %v2192_v11, %v2180_v25  ;;  %v1945_v32 = vpop.f32.mrb[4].mxu1 }
 0x1de   :  { %vm2208_vm1 = vcmp.ge.f32.partialorder %v2200_v26, 0.0  ;;  %v2216_v30 = vmul.f32 0.2, %v2200_v26  ;;  %v2202_v31 = vadd.f32 %v2196_v15, %v2181_v27  ;;  %v2157_v33 = vpop.f32.mrb[4].mxu0  ;;  %v1947_v37 = vpop.f32.mrb[5].mxu1 }
 0x1df   :  { %v2223_v34 = vsel %vm2207_vm0, %v2199_v24, %v2215_v28  ;;  %vm2209_vm2 = vcmp.ge.f32.partialorder %v2201_v29, 0.0  ;;  %v2217_v35 = vmul.f32 0.2, %v2201_v29  ;;  %v2564_v36 = vadd.f32 %v2157_v33, %v1945_v32  ;;  %v2159_v38 = vpop.f32.mrb[5].mxu0  ;;  %v1949_v43 = vpop.f32.mrb[6].mxu1 }
 0x1e0   :  { %v2224_v39 = vsel %vm2208_vm1, %v2200_v26, %v2216_v30  ;;  %vm2210_vm3 = vcmp.ge.f32.partialorder %v2202_v31, 0.0  ;;  %v2218_v40 = vmul.f32 0.2, %v2202_v31  ;;  %v2565_v41 = vadd.f32 %v2159_v38, %v1947_v37  ;;  %v2161_v44 = vpop.f32.mrb[6].mxu0  ;;  %v1951_v46 = vpop.f32.mrb[7].mxu1 }
 0x1e1   :  { %v2556_v48 = vpack.c.bf16 %v2224_v39, %v2223_v34  ;;  %v2225_v49 = vsel %vm2209_vm2, %v2201_v29, %v2217_v35  ;;  %v2182_v42 = vmul.f32 %v2564_v36, %v2171_v61  ;;  %v2566_v45 = vadd.f32 %v2161_v44, %v1949_v43  ;;  %v2163_v47 = vpop.f32.mrb[7].mxu0 }
 0x1e2   :  { %v2226_v50 = vsel %vm2210_vm3, %v2202_v31, %v2218_v40  ;;  %v2183_v51 = vmul.f32 %v2565_v41, %v2175_v9  ;;  %v2567_v52 = vadd.f32 %v2163_v47, %v1951_v46 }
 0x1e3   :  { %2255 = vst [vmem:[%s3953_s3] sm:$0xff] %v2556_v48  ;;  %v2557_v53 = vpack.c.bf16 %v2226_v50, %v2225_v49  ;;  %v2203_v54 = vadd.f32 %v2192_v11, %v2182_v42  ;;  %v2184_v55 = vmul.f32 %v2566_v45, %v2171_v61 }
 0x1e4   :  { %v2204_v57 = vadd.f32 %v2196_v15, %v2183_v51  ;;  %v2185_v58 = vmul.f32 %v2567_v52, %v2175_v9 }
 0x1e5   :  { %2256 = vst [vmem:[%s3953_s3 + $0x8] sm:$0xff] %v2557_v53  ;;  %vm2211_vm4 = vcmp.ge.f32.partialorder %v2203_v54, 0.0  ;;  %v2219_v62 = vmul.f32 0.2, %v2203_v54  ;;  %v2205_v63 = vadd.f32 %v2192_v11, %v2184_v55 }
 0x1e6   :  { %vm2212_vm5 = vcmp.ge.f32.partialorder %v2204_v57, 0.0  ;;  %v2220_v0 = vmul.f32 0.2, %v2204_v57  ;;  %v2206_v1 = vadd.f32 %v2196_v15, %v2185_v58 }
 0x1e7   :  { %v2227_v2 = vsel %vm2211_vm4, %v2203_v54, %v2219_v62  ;;  %vm2213_vm6 = vcmp.ge.f32.partialorder %v2205_v63, 0.0  ;;  %v2221_v3 = vmul.f32 0.2, %v2205_v63 }
 0x1e8   :  { %v2228_v4 = vsel %vm2212_vm5, %v2204_v57, %v2220_v0  ;;  %vm2214_vm7 = vcmp.ge.f32.partialorder %v2206_v1, 0.0  ;;  %v2222_v5 = vmul.f32 0.2, %v2206_v1 }
 0x1e9   :  { %v2558_v6 = vpack.c.bf16 %v2228_v4, %v2227_v2  ;;  %v2229_v56 = vsel %vm2213_vm6, %v2205_v63, %v2221_v3 }
 0x1ea   :  { %v2230_v59 = vsel %vm2214_vm7, %v2206_v1, %v2222_v5 }
 0x1eb   :  { %2257 = vst [vmem:[%s3953_s3 + $0x10] sm:$0xff] %v2558_v6  ;;  %v2559_v60 = vpack.c.bf16 %v2230_v59, %v2229_v56 }
 0x1ed   :  { %2258 = vst [vmem:[%s3953_s3 + $0x18] sm:$0xff] %v2559_v60 }

// kernel: discriminator_forward.8
= control target key start
LH: loop header
LB: loop body
LE: loop exit
PB: predicated region body
PF: predicated region fallthrough
CT: control target
= control target key end

     0   :  { %s10546_s12 = smov 0   ;;  %s10548_s13 = smov 0   ;;  %s12504_s0 = inlined_call_operand.vmem [shape: bf16[32,4096], index: 0, kind: input, shape index: {}]   ;;  %s12505_s1 = inlined_call_operand.vmem [shape: bf16[4096,512], index: 1, kind: input, shape index: {}]   ;;  %s12506_s2 = inlined_call_operand.vmem [shape: f32[2,512], index: 2, kind: input, shape index: {}]   ;;  %s12507_s3 = inlined_call_operand.vmem [shape: bf16[32,512], index: 3, kind: output, shape index: {}]  }
   0x1   :  { %s10550_s14 = smov 0   ;;  %s10552_s15 = smov 0  }
   0x2   :  { %s10554_s16 = smov 0  }
   0x3 LB: > { %s22_s17 = sadd.s32 1, %s10520_s15  ;;  %s8953_s18 = sadd.s32 4294967295, %s10524_s16   ;;  %s10524_s16 = sphi %s10554_s16, %s13_s16   ;;  %s10520_s15 = sphi %s10552_s15, %s12512_s15   ;;  %s10516_s14 = sphi %s10550_s14, %s12511_s14   ;;  %s10512_s13 = sphi %s10548_s13, %s12510_s13   ;;  %s10508_s12 = sphi %s10546_s12, %s12509_s12  }
   0x4   : > { %p23_p0 = scmp.ge.s32.totalorder %s22_s17, 2  ;;  %p65_p1 = scmp.ne.s32.totalorder %s10512_s13, %s10508_s12 }
   0x5   : > { %p66_p2 = scmp.eq.s32.totalorder %s10524_s16, 0  ;;  %p123_p4 = scmp.eq.s32.totalorder %s8953_s18, 1 }
   0x6   : > { %s12514_s17 = smov (%p23_p0, %s22_s17), 0  ;;  %s58_s20 = sadd.s32 1, %s10512_s13 }
   0x7   : > { %p67_p3 = por %p66_p2, %p65_p1  ;;  %s55_s19 = ssub.s32 %s10520_s15, %s12514_s17 }
   0x8   : > { %p56_p5 = scmp.eq.s32.totalorder %s55_s19, 0  ;;  %p10581_p6 = por %p123_p4, %p65_p1 }
   0x9   : > { %p8957_p7 = scmp.ge.s32.totalorder %s10524_s16, 2 }
   0xa   : > { %s10586_s22 = scalar_select %p56_p5, %s10512_s13, %s58_s20  }
   0xb   : > { %155 = sbr.rel (%p8957_p7) target bundleno = 278 (0x116), region = 20 }
  0x12   : > { %158 = sbr.rel (!%p67_p3) target bundleno = 278 (0x116), region = 24  ;;  %s160_s23 = sand.u32 (%p67_p3), 1, %s10512_s13  }
  0x13   : > { %s9552_s24 = sshll.u32 (%p67_p3), %s10520_s15, 3  ;;  %s8958_s25 = sshll.u32 (%p67_p3), %s160_s23, 12 }
  0x14   : > { %s10594_s28 = scalar_lea.vmem (%p67_p3), %s12505_s1, %s9552_s24  ;;  %s10599_s29 = scalar_lea.vmem (%p67_p3), [#allocation2], %s8958_s25 }
  0x15   : > { %v1218_v0 = vld [vmem:[%s10594_s28] sm:$0xff] (%p67_p3)  ;;  %v1220_v1 = vld [vmem:[%s10594_s28 + $0x10] sm:$0xff] (%p67_p3) }
  0x16   : > { %v1222_v2 = vld [vmem:[%s10594_s28 + $0x20] sm:$0xff] (%p67_p3)  ;;  %1219 = vst [vmem:[%s10599_s29] sm:$0xff] (%p67_p3), %v1218_v0  ;;  %1221 = vst [vmem:[%s10599_s29 + $0x8] sm:$0xff] (%p67_p3), %v1220_v1  ;;  %v1224_v3 = vld [vmem:[%s10594_s28 + $0x30] sm:$0xff] (%p67_p3) }
  0x17   : > { %1223 = vst [vmem:[%s10599_s29 + $0x10] sm:$0xff] (%p67_p3), %v1222_v2  ;;  %v1226_v4 = vld [vmem:[%s10594_s28 + $0x40] sm:$0xff] (%p67_p3)  ;;  %v1228_v5 = vld [vmem:[%s10594_s28 + $0x50] sm:$0xff] (%p67_p3)  ;;  %1225 = vst [vmem:[%s10599_s29 + $0x18] sm:$0xff] (%p67_p3), %v1224_v3 }
  0x18   : > { %1227 = vst [vmem:[%s10599_s29 + $0x20] sm:$0xff] (%p67_p3), %v1226_v4  ;;  %1229 = vst [vmem:[%s10599_s29 + $0x28] sm:$0xff] (%p67_p3), %v1228_v5  ;;  %v1230_v6 = vld [vmem:[%s10594_s28 + $0x60] sm:$0xff] (%p67_p3)  ;;  %v1232_v7 = vld [vmem:[%s10594_s28 + $0x70] sm:$0xff] (%p67_p3) }
  0x19   : > { %v1234_v8 = vld [vmem:[%s10594_s28 + $0x80] sm:$0xff]  ;;  %1231 = vst [vmem:[%s10599_s29 + $0x30] sm:$0xff] %v1230_v6  ;;  %1233 = vst [vmem:[%s10599_s29 + $0x38] sm:$0xff] %v1232_v7  ;;  %v1236_v9 = vld [vmem:[%s10594_s28 + $0x90] sm:$0xff] }
  0x1a   : > { %1235 = vst [vmem:[%s10599_s29 + $0x40] sm:$0xff] %v1234_v8  ;;  %v1238_v10 = vld [vmem:[%s10594_s28 + $0xa0] sm:$0xff]  ;;  %v1240_v11 = vld [vmem:[%s10594_s28 + $0xb0] sm:$0xff]  ;;  %1237 = vst [vmem:[%s10599_s29 + $0x48] sm:$0xff] %v1236_v9 }
  0x1b   : > { %1239 = vst [vmem:[%s10599_s29 + $0x50] sm:$0xff] %v1238_v10  ;;  %1241 = vst [vmem:[%s10599_s29 + $0x58] sm:$0xff] %v1240_v11  ;;  %v1242_v12 = vld [vmem:[%s10594_s28 + $0xc0] sm:$0xff]  ;;  %v1244_v13 = vld [vmem:[%s10594_s28 + $0xd0] sm:$0xff] }
  0x1c   : > { %v1246_v14 = vld [vmem:[%s10594_s28 + $0xe0] sm:$0xff]  ;;  %1243 = vst [vmem:[%s10599_s29 + $0x60] sm:$0xff] %v1242_v12  ;;  %1245 = vst [vmem:[%s10599_s29 + $0x68] sm:$0xff] %v1244_v13  ;;  %v1248_v15 = vld [vmem:[%s10594_s28 + $0xf0] sm:$0xff] }
  0x1d   : > { %1247 = vst [vmem:[%s10599_s29 + $0x70] sm:$0xff] %v1246_v14  ;;  %v1250_v16 = vld [vmem:[%s10594_s28 + $0x100] sm:$0xff]  ;;  %v1252_v17 = vld [vmem:[%s10594_s28 + $0x110] sm:$0xff]  ;;  %1249 = vst [vmem:[%s10599_s29 + $0x78] sm:$0xff] %v1248_v15 }
  0x1e   : > { %1251 = vst [vmem:[%s10599_s29 + $0x80] sm:$0xff] %v1250_v16  ;;  %1253 = vst [vmem:[%s10599_s29 + $0x88] sm:$0xff] %v1252_v17  ;;  %v1254_v18 = vld [vmem:[%s10594_s28 + $0x120] sm:$0xff]  ;;  %v1256_v19 = vld [vmem:[%s10594_s28 + $0x130] sm:$0xff] }
  0x1f   : > { %v1258_v20 = vld [vmem:[%s10594_s28 + $0x140] sm:$0xff]  ;;  %1255 = vst [vmem:[%s10599_s29 + $0x90] sm:$0xff] %v1254_v18  ;;  %1257 = vst [vmem:[%s10599_s29 + $0x98] sm:$0xff] %v1256_v19  ;;  %v1260_v21 = vld [vmem:[%s10594_s28 + $0x150] sm:$0xff] }
  0x20   : > { %1259 = vst [vmem:[%s10599_s29 + $0xa0] sm:$0xff] %v1258_v20  ;;  %v1262_v22 = vld [vmem:[%s10594_s28 + $0x160] sm:$0xff]  ;;  %v1264_v23 = vld [vmem:[%s10594_s28 + $0x170] sm:$0xff]  ;;  %1261 = vst [vmem:[%s10599_s29 + $0xa8] sm:$0xff] %v1260_v21 }
  0x21   : > { %1263 = vst [vmem:[%s10599_s29 + $0xb0] sm:$0xff] %v1262_v22  ;;  %1265 = vst [vmem:[%s10599_s29 + $0xb8] sm:$0xff] %v1264_v23  ;;  %v1266_v24 = vld [vmem:[%s10594_s28 + $0x180] sm:$0xff]  ;;  %v1268_v25 = vld [vmem:[%s10594_s28 + $0x190] sm:$0xff] }
  0x22   : > { %v1270_v26 = vld [vmem:[%s10594_s28 + $0x1a0] sm:$0xff]  ;;  %1267 = vst [vmem:[%s10599_s29 + $0xc0] sm:$0xff] %v1266_v24  ;;  %1269 = vst [vmem:[%s10599_s29 + $0xc8] sm:$0xff] %v1268_v25  ;;  %v1272_v27 = vld [vmem:[%s10594_s28 + $0x1b0] sm:$0xff] }
  0x23   : > { %1271 = vst [vmem:[%s10599_s29 + $0xd0] sm:$0xff] %v1270_v26  ;;  %v1274_v28 = vld [vmem:[%s10594_s28 + $0x1c0] sm:$0xff]  ;;  %v1276_v29 = vld [vmem:[%s10594_s28 + $0x1d0] sm:$0xff]  ;;  %1273 = vst [vmem:[%s10599_s29 + $0xd8] sm:$0xff] %v1272_v27 }
  0x24   : > { %1275 = vst [vmem:[%s10599_s29 + $0xe0] sm:$0xff] %v1274_v28  ;;  %1277 = vst [vmem:[%s10599_s29 + $0xe8] sm:$0xff] %v1276_v29  ;;  %v1278_v30 = vld [vmem:[%s10594_s28 + $0x1e0] sm:$0xff]  ;;  %v1280_v31 = vld [vmem:[%s10594_s28 + $0x1f0] sm:$0xff] }
  0x25   : > { %v1282_v32 = vld [vmem:[%s10594_s28 + $0x200] sm:$0xff]  ;;  %1279 = vst [vmem:[%s10599_s29 + $0xf0] sm:$0xff] %v1278_v30  ;;  %1281 = vst [vmem:[%s10599_s29 + $0xf8] sm:$0xff] %v1280_v31  ;;  %v1284_v33 = vld [vmem:[%s10594_s28 + $0x210] sm:$0xff] }
  0x26   : > { %1283 = vst [vmem:[%s10599_s29 + $0x100] sm:$0xff] %v1282_v32  ;;  %v1286_v34 = vld [vmem:[%s10594_s28 + $0x220] sm:$0xff]  ;;  %v1288_v35 = vld [vmem:[%s10594_s28 + $0x230] sm:$0xff]  ;;  %1285 = vst [vmem:[%s10599_s29 + $0x108] sm:$0xff] %v1284_v33 }
  0x27   : > { %1287 = vst [vmem:[%s10599_s29 + $0x110] sm:$0xff] %v1286_v34  ;;  %1289 = vst [vmem:[%s10599_s29 + $0x118] sm:$0xff] %v1288_v35  ;;  %v1290_v36 = vld [vmem:[%s10594_s28 + $0x240] sm:$0xff]  ;;  %v1292_v37 = vld [vmem:[%s10594_s28 + $0x250] sm:$0xff] }
  0x28   : > { %v1294_v38 = vld [vmem:[%s10594_s28 + $0x260] sm:$0xff]  ;;  %1291 = vst [vmem:[%s10599_s29 + $0x120] sm:$0xff] %v1290_v36  ;;  %1293 = vst [vmem:[%s10599_s29 + $0x128] sm:$0xff] %v1292_v37  ;;  %v1296_v39 = vld [vmem:[%s10594_s28 + $0x270] sm:$0xff] }
  0x29   : > { %1295 = vst [vmem:[%s10599_s29 + $0x130] sm:$0xff] %v1294_v38  ;;  %v1298_v40 = vld [vmem:[%s10594_s28 + $0x280] sm:$0xff]  ;;  %v1300_v41 = vld [vmem:[%s10594_s28 + $0x290] sm:$0xff]  ;;  %1297 = vst [vmem:[%s10599_s29 + $0x138] sm:$0xff] %v1296_v39 }
  0x2a   : > { %1299 = vst [vmem:[%s10599_s29 + $0x140] sm:$0xff] %v1298_v40  ;;  %1301 = vst [vmem:[%s10599_s29 + $0x148] sm:$0xff] %v1300_v41  ;;  %v1302_v42 = vld [vmem:[%s10594_s28 + $0x2a0] sm:$0xff]  ;;  %v1304_v43 = vld [vmem:[%s10594_s28 + $0x2b0] sm:$0xff] }
  0x2b   : > { %v1306_v44 = vld [vmem:[%s10594_s28 + $0x2c0] sm:$0xff]  ;;  %1303 = vst [vmem:[%s10599_s29 + $0x150] sm:$0xff] %v1302_v42  ;;  %1305 = vst [vmem:[%s10599_s29 + $0x158] sm:$0xff] %v1304_v43  ;;  %v1308_v45 = vld [vmem:[%s10594_s28 + $0x2d0] sm:$0xff] }
  0x2c   : > { %1307 = vst [vmem:[%s10599_s29 + $0x160] sm:$0xff] %v1306_v44  ;;  %v1310_v46 = vld [vmem:[%s10594_s28 + $0x2e0] sm:$0xff]  ;;  %v1312_v47 = vld [vmem:[%s10594_s28 + $0x2f0] sm:$0xff]  ;;  %1309 = vst [vmem:[%s10599_s29 + $0x168] sm:$0xff] %v1308_v45 }
  0x2d   : > { %1311 = vst [vmem:[%s10599_s29 + $0x170] sm:$0xff] %v1310_v46  ;;  %1313 = vst [vmem:[%s10599_s29 + $0x178] sm:$0xff] %v1312_v47  ;;  %v1314_v48 = vld [vmem:[%s10594_s28 + $0x300] sm:$0xff]  ;;  %v1316_v49 = vld [vmem:[%s10594_s28 + $0x310] sm:$0xff] }
  0x2e   : > { %v1318_v50 = vld [vmem:[%s10594_s28 + $0x320] sm:$0xff]  ;;  %1315 = vst [vmem:[%s10599_s29 + $0x180] sm:$0xff] %v1314_v48  ;;  %1317 = vst [vmem:[%s10599_s29 + $0x188] sm:$0xff] %v1316_v49  ;;  %v1320_v51 = vld [vmem:[%s10594_s28 + $0x330] sm:$0xff] }
  0x2f   : > { %1319 = vst [vmem:[%s10599_s29 + $0x190] sm:$0xff] %v1318_v50  ;;  %v1322_v52 = vld [vmem:[%s10594_s28 + $0x340] sm:$0xff]  ;;  %v1324_v53 = vld [vmem:[%s10594_s28 + $0x350] sm:$0xff]  ;;  %1321 = vst [vmem:[%s10599_s29 + $0x198] sm:$0xff] %v1320_v51 }
  0x30   : > { %1323 = vst [vmem:[%s10599_s29 + $0x1a0] sm:$0xff] %v1322_v52  ;;  %1325 = vst [vmem:[%s10599_s29 + $0x1a8] sm:$0xff] %v1324_v53  ;;  %v1326_v54 = vld [vmem:[%s10594_s28 + $0x360] sm:$0xff]  ;;  %v1328_v55 = vld [vmem:[%s10594_s28 + $0x370] sm:$0xff] }
  0x31   : > { %v1330_v56 = vld [vmem:[%s10594_s28 + $0x380] sm:$0xff]  ;;  %1327 = vst [vmem:[%s10599_s29 + $0x1b0] sm:$0xff] %v1326_v54  ;;  %1329 = vst [vmem:[%s10599_s29 + $0x1b8] sm:$0xff] %v1328_v55  ;;  %v1332_v57 = vld [vmem:[%s10594_s28 + $0x390] sm:$0xff] }
  0x32   : > { %1331 = vst [vmem:[%s10599_s29 + $0x1c0] sm:$0xff] %v1330_v56  ;;  %v1334_v58 = vld [vmem:[%s10594_s28 + $0x3a0] sm:$0xff]  ;;  %v1336_v59 = vld [vmem:[%s10594_s28 + $0x3b0] sm:$0xff]  ;;  %1333 = vst [vmem:[%s10599_s29 + $0x1c8] sm:$0xff] %v1332_v57 }
  0x33   : > { %1335 = vst [vmem:[%s10599_s29 + $0x1d0] sm:$0xff] %v1334_v58  ;;  %1337 = vst [vmem:[%s10599_s29 + $0x1d8] sm:$0xff] %v1336_v59  ;;  %v1338_v60 = vld [vmem:[%s10594_s28 + $0x3c0] sm:$0xff]  ;;  %v1340_v61 = vld [vmem:[%s10594_s28 + $0x3d0] sm:$0xff] }
  0x34   : > { %v1342_v62 = vld [vmem:[%s10594_s28 + $0x3e0] sm:$0xff]  ;;  %1339 = vst [vmem:[%s10599_s29 + $0x1e0] sm:$0xff] %v1338_v60  ;;  %1341 = vst [vmem:[%s10599_s29 + $0x1e8] sm:$0xff] %v1340_v61  ;;  %v1344_v63 = vld [vmem:[%s10594_s28 + $0x3f0] sm:$0xff] }
  0x35   : > { %1343 = vst [vmem:[%s10599_s29 + $0x1f0] sm:$0xff] %v1342_v62  ;;  %v1346_v0 = vld [vmem:[%s10594_s28 + $0x400] sm:$0xff]  ;;  %v1348_v1 = vld [vmem:[%s10594_s28 + $0x410] sm:$0xff]  ;;  %1345 = vst [vmem:[%s10599_s29 + $0x1f8] sm:$0xff] %v1344_v63 }
  0x36   : > { %1347 = vst [vmem:[%s10599_s29 + $0x200] sm:$0xff] %v1346_v0  ;;  %1349 = vst [vmem:[%s10599_s29 + $0x208] sm:$0xff] %v1348_v1  ;;  %v1350_v2 = vld [vmem:[%s10594_s28 + $0x420] sm:$0xff]  ;;  %v1352_v3 = vld [vmem:[%s10594_s28 + $0x430] sm:$0xff] }
  0x37   : > { %v1354_v4 = vld [vmem:[%s10594_s28 + $0x440] sm:$0xff]  ;;  %1351 = vst [vmem:[%s10599_s29 + $0x210] sm:$0xff] %v1350_v2  ;;  %1353 = vst [vmem:[%s10599_s29 + $0x218] sm:$0xff] %v1352_v3  ;;  %v1356_v5 = vld [vmem:[%s10594_s28 + $0x450] sm:$0xff] }
  0x38   : > { %1355 = vst [vmem:[%s10599_s29 + $0x220] sm:$0xff] %v1354_v4  ;;  %v1358_v6 = vld [vmem:[%s10594_s28 + $0x460] sm:$0xff]  ;;  %v1360_v7 = vld [vmem:[%s10594_s28 + $0x470] sm:$0xff]  ;;  %1357 = vst [vmem:[%s10599_s29 + $0x228] sm:$0xff] %v1356_v5 }
  0x39   : > { %1359 = vst [vmem:[%s10599_s29 + $0x230] sm:$0xff] %v1358_v6  ;;  %1361 = vst [vmem:[%s10599_s29 + $0x238] sm:$0xff] %v1360_v7  ;;  %v1362_v8 = vld [vmem:[%s10594_s28 + $0x480] sm:$0xff]  ;;  %v1364_v9 = vld [vmem:[%s10594_s28 + $0x490] sm:$0xff] }
  0x3a   : > { %v1366_v10 = vld [vmem:[%s10594_s28 + $0x4a0] sm:$0xff]  ;;  %1363 = vst [vmem:[%s10599_s29 + $0x240] sm:$0xff] %v1362_v8  ;;  %1365 = vst [vmem:[%s10599_s29 + $0x248] sm:$0xff] %v1364_v9  ;;  %v1368_v11 = vld [vmem:[%s10594_s28 + $0x4b0] sm:$0xff] }
  0x3b   : > { %1367 = vst [vmem:[%s10599_s29 + $0x250] sm:$0xff] %v1366_v10  ;;  %v1370_v12 = vld [vmem:[%s10594_s28 + $0x4c0] sm:$0xff]  ;;  %v1372_v13 = vld [vmem:[%s10594_s28 + $0x4d0] sm:$0xff]  ;;  %1369 = vst [vmem:[%s10599_s29 + $0x258] sm:$0xff] %v1368_v11 }
  0x3c   : > { %1371 = vst [vmem:[%s10599_s29 + $0x260] sm:$0xff] %v1370_v12  ;;  %1373 = vst [vmem:[%s10599_s29 + $0x268] sm:$0xff] %v1372_v13  ;;  %v1374_v14 = vld [vmem:[%s10594_s28 + $0x4e0] sm:$0xff]  ;;  %v1376_v15 = vld [vmem:[%s10594_s28 + $0x4f0] sm:$0xff] }
  0x3d   : > { %v1378_v16 = vld [vmem:[%s10594_s28 + $0x500] sm:$0xff]  ;;  %1375 = vst [vmem:[%s10599_s29 + $0x270] sm:$0xff] %v1374_v14  ;;  %1377 = vst [vmem:[%s10599_s29 + $0x278] sm:$0xff] %v1376_v15  ;;  %v1380_v17 = vld [vmem:[%s10594_s28 + $0x510] sm:$0xff] }
  0x3e   : > { %1379 = vst [vmem:[%s10599_s29 + $0x280] sm:$0xff] %v1378_v16  ;;  %v1382_v18 = vld [vmem:[%s10594_s28 + $0x520] sm:$0xff]  ;;  %v1384_v19 = vld [vmem:[%s10594_s28 + $0x530] sm:$0xff]  ;;  %1381 = vst [vmem:[%s10599_s29 + $0x288] sm:$0xff] %v1380_v17 }
  0x3f   : > { %1383 = vst [vmem:[%s10599_s29 + $0x290] sm:$0xff] %v1382_v18  ;;  %1385 = vst [vmem:[%s10599_s29 + $0x298] sm:$0xff] %v1384_v19  ;;  %v1386_v20 = vld [vmem:[%s10594_s28 + $0x540] sm:$0xff]  ;;  %v1388_v21 = vld [vmem:[%s10594_s28 + $0x550] sm:$0xff] }
  0x40   : > { %v1390_v22 = vld [vmem:[%s10594_s28 + $0x560] sm:$0xff]  ;;  %1387 = vst [vmem:[%s10599_s29 + $0x2a0] sm:$0xff] %v1386_v20  ;;  %1389 = vst [vmem:[%s10599_s29 + $0x2a8] sm:$0xff] %v1388_v21  ;;  %v1392_v23 = vld [vmem:[%s10594_s28 + $0x570] sm:$0xff] }
  0x41   : > { %1391 = vst [vmem:[%s10599_s29 + $0x2b0] sm:$0xff] %v1390_v22  ;;  %v1394_v24 = vld [vmem:[%s10594_s28 + $0x580] sm:$0xff]  ;;  %v1396_v25 = vld [vmem:[%s10594_s28 + $0x590] sm:$0xff]  ;;  %1393 = vst [vmem:[%s10599_s29 + $0x2b8] sm:$0xff] %v1392_v23 }
  0x42   : > { %1395 = vst [vmem:[%s10599_s29 + $0x2c0] sm:$0xff] %v1394_v24  ;;  %1397 = vst [vmem:[%s10599_s29 + $0x2c8] sm:$0xff] %v1396_v25  ;;  %v1398_v26 = vld [vmem:[%s10594_s28 + $0x5a0] sm:$0xff]  ;;  %v1400_v27 = vld [vmem:[%s10594_s28 + $0x5b0] sm:$0xff] }
  0x43   : > { %v1402_v28 = vld [vmem:[%s10594_s28 + $0x5c0] sm:$0xff]  ;;  %1399 = vst [vmem:[%s10599_s29 + $0x2d0] sm:$0xff] %v1398_v26  ;;  %1401 = vst [vmem:[%s10599_s29 + $0x2d8] sm:$0xff] %v1400_v27  ;;  %v1404_v29 = vld [vmem:[%s10594_s28 + $0x5d0] sm:$0xff] }
  0x44   : > { %1403 = vst [vmem:[%s10599_s29 + $0x2e0] sm:$0xff] %v1402_v28  ;;  %v1406_v30 = vld [vmem:[%s10594_s28 + $0x5e0] sm:$0xff]  ;;  %v1408_v31 = vld [vmem:[%s10594_s28 + $0x5f0] sm:$0xff]  ;;  %1405 = vst [vmem:[%s10599_s29 + $0x2e8] sm:$0xff] %v1404_v29 }
  0x45   : > { %1407 = vst [vmem:[%s10599_s29 + $0x2f0] sm:$0xff] %v1406_v30  ;;  %1409 = vst [vmem:[%s10599_s29 + $0x2f8] sm:$0xff] %v1408_v31  ;;  %v1410_v32 = vld [vmem:[%s10594_s28 + $0x600] sm:$0xff]  ;;  %v1412_v33 = vld [vmem:[%s10594_s28 + $0x610] sm:$0xff] }
  0x46   : > { %v1414_v34 = vld [vmem:[%s10594_s28 + $0x620] sm:$0xff]  ;;  %1411 = vst [vmem:[%s10599_s29 + $0x300] sm:$0xff] %v1410_v32  ;;  %1413 = vst [vmem:[%s10599_s29 + $0x308] sm:$0xff] %v1412_v33  ;;  %v1416_v35 = vld [vmem:[%s10594_s28 + $0x630] sm:$0xff] }
  0x47   : > { %1415 = vst [vmem:[%s10599_s29 + $0x310] sm:$0xff] %v1414_v34  ;;  %v1418_v36 = vld [vmem:[%s10594_s28 + $0x640] sm:$0xff]  ;;  %v1420_v37 = vld [vmem:[%s10594_s28 + $0x650] sm:$0xff]  ;;  %1417 = vst [vmem:[%s10599_s29 + $0x318] sm:$0xff] %v1416_v35 }
  0x48   : > { %1419 = vst [vmem:[%s10599_s29 + $0x320] sm:$0xff] %v1418_v36  ;;  %1421 = vst [vmem:[%s10599_s29 + $0x328] sm:$0xff] %v1420_v37  ;;  %v1422_v38 = vld [vmem:[%s10594_s28 + $0x660] sm:$0xff]  ;;  %v1424_v39 = vld [vmem:[%s10594_s28 + $0x670] sm:$0xff] }
  0x49   : > { %v1426_v40 = vld [vmem:[%s10594_s28 + $0x680] sm:$0xff]  ;;  %1423 = vst [vmem:[%s10599_s29 + $0x330] sm:$0xff] %v1422_v38  ;;  %1425 = vst [vmem:[%s10599_s29 + $0x338] sm:$0xff] %v1424_v39  ;;  %v1428_v41 = vld [vmem:[%s10594_s28 + $0x690] sm:$0xff] }
  0x4a   : > { %1427 = vst [vmem:[%s10599_s29 + $0x340] sm:$0xff] %v1426_v40  ;;  %v1430_v42 = vld [vmem:[%s10594_s28 + $0x6a0] sm:$0xff]  ;;  %v1432_v43 = vld [vmem:[%s10594_s28 + $0x6b0] sm:$0xff]  ;;  %1429 = vst [vmem:[%s10599_s29 + $0x348] sm:$0xff] %v1428_v41 }
  0x4b   : > { %1431 = vst [vmem:[%s10599_s29 + $0x350] sm:$0xff] %v1430_v42  ;;  %1433 = vst [vmem:[%s10599_s29 + $0x358] sm:$0xff] %v1432_v43  ;;  %v1434_v44 = vld [vmem:[%s10594_s28 + $0x6c0] sm:$0xff]  ;;  %v1436_v45 = vld [vmem:[%s10594_s28 + $0x6d0] sm:$0xff] }
  0x4c   : > { %v1438_v46 = vld [vmem:[%s10594_s28 + $0x6e0] sm:$0xff]  ;;  %1435 = vst [vmem:[%s10599_s29 + $0x360] sm:$0xff] %v1434_v44  ;;  %1437 = vst [vmem:[%s10599_s29 + $0x368] sm:$0xff] %v1436_v45  ;;  %v1440_v47 = vld [vmem:[%s10594_s28 + $0x6f0] sm:$0xff] }
  0x4d   : > { %1439 = vst [vmem:[%s10599_s29 + $0x370] sm:$0xff] %v1438_v46  ;;  %v1442_v48 = vld [vmem:[%s10594_s28 + $0x700] sm:$0xff]  ;;  %v1444_v49 = vld [vmem:[%s10594_s28 + $0x710] sm:$0xff]  ;;  %1441 = vst [vmem:[%s10599_s29 + $0x378] sm:$0xff] %v1440_v47 }
  0x4e   : > { %1443 = vst [vmem:[%s10599_s29 + $0x380] sm:$0xff] %v1442_v48  ;;  %1445 = vst [vmem:[%s10599_s29 + $0x388] sm:$0xff] %v1444_v49  ;;  %v1446_v50 = vld [vmem:[%s10594_s28 + $0x720] sm:$0xff]  ;;  %v1448_v51 = vld [vmem:[%s10594_s28 + $0x730] sm:$0xff] }
  0x4f   : > { %v1450_v52 = vld [vmem:[%s10594_s28 + $0x740] sm:$0xff]  ;;  %1447 = vst [vmem:[%s10599_s29 + $0x390] sm:$0xff] %v1446_v50  ;;  %1449 = vst [vmem:[%s10599_s29 + $0x398] sm:$0xff] %v1448_v51  ;;  %v1452_v53 = vld [vmem:[%s10594_s28 + $0x750] sm:$0xff] }
  0x50   : > { %1451 = vst [vmem:[%s10599_s29 + $0x3a0] sm:$0xff] %v1450_v52  ;;  %v1454_v54 = vld [vmem:[%s10594_s28 + $0x760] sm:$0xff]  ;;  %v1456_v55 = vld [vmem:[%s10594_s28 + $0x770] sm:$0xff]  ;;  %1453 = vst [vmem:[%s10599_s29 + $0x3a8] sm:$0xff] %v1452_v53 }
  0x51   : > { %1455 = vst [vmem:[%s10599_s29 + $0x3b0] sm:$0xff] %v1454_v54  ;;  %1457 = vst [vmem:[%s10599_s29 + $0x3b8] sm:$0xff] %v1456_v55  ;;  %v1458_v56 = vld [vmem:[%s10594_s28 + $0x780] sm:$0xff]  ;;  %v1460_v57 = vld [vmem:[%s10594_s28 + $0x790] sm:$0xff] }
  0x52   : > { %v1462_v58 = vld [vmem:[%s10594_s28 + $0x7a0] sm:$0xff]  ;;  %1459 = vst [vmem:[%s10599_s29 + $0x3c0] sm:$0xff] %v1458_v56  ;;  %1461 = vst [vmem:[%s10599_s29 + $0x3c8] sm:$0xff] %v1460_v57  ;;  %v1464_v59 = vld [vmem:[%s10594_s28 + $0x7b0] sm:$0xff] }
  0x53   : > { %1463 = vst [vmem:[%s10599_s29 + $0x3d0] sm:$0xff] %v1462_v58  ;;  %v1466_v60 = vld [vmem:[%s10594_s28 + $0x7c0] sm:$0xff]  ;;  %v1468_v61 = vld [vmem:[%s10594_s28 + $0x7d0] sm:$0xff]  ;;  %1465 = vst [vmem:[%s10599_s29 + $0x3d8] sm:$0xff] %v1464_v59 }
  0x54   : > { %1467 = vst [vmem:[%s10599_s29 + $0x3e0] sm:$0xff] %v1466_v60  ;;  %1469 = vst [vmem:[%s10599_s29 + $0x3e8] sm:$0xff] %v1468_v61  ;;  %v1470_v62 = vld [vmem:[%s10594_s28 + $0x7e0] sm:$0xff]  ;;  %v1472_v63 = vld [vmem:[%s10594_s28 + $0x7f0] sm:$0xff] }
  0x55   : > { %v1474_v0 = vld [vmem:[%s10594_s28 + $0x800] sm:$0xff]  ;;  %1471 = vst [vmem:[%s10599_s29 + $0x3f0] sm:$0xff] %v1470_v62  ;;  %1473 = vst [vmem:[%s10599_s29 + $0x3f8] sm:$0xff] %v1472_v63  ;;  %v1476_v1 = vld [vmem:[%s10594_s28 + $0x810] sm:$0xff] }
  0x56   : > { %1475 = vst [vmem:[%s10599_s29 + $0x400] sm:$0xff] %v1474_v0  ;;  %v1478_v2 = vld [vmem:[%s10594_s28 + $0x820] sm:$0xff]  ;;  %v1480_v3 = vld [vmem:[%s10594_s28 + $0x830] sm:$0xff]  ;;  %1477 = vst [vmem:[%s10599_s29 + $0x408] sm:$0xff] %v1476_v1 }
  0x57   : > { %1479 = vst [vmem:[%s10599_s29 + $0x410] sm:$0xff] %v1478_v2  ;;  %1481 = vst [vmem:[%s10599_s29 + $0x418] sm:$0xff] %v1480_v3  ;;  %v1482_v4 = vld [vmem:[%s10594_s28 + $0x840] sm:$0xff]  ;;  %v1484_v5 = vld [vmem:[%s10594_s28 + $0x850] sm:$0xff] }
  0x58   : > { %v1486_v6 = vld [vmem:[%s10594_s28 + $0x860] sm:$0xff]  ;;  %1483 = vst [vmem:[%s10599_s29 + $0x420] sm:$0xff] %v1482_v4  ;;  %1485 = vst [vmem:[%s10599_s29 + $0x428] sm:$0xff] %v1484_v5  ;;  %v1488_v7 = vld [vmem:[%s10594_s28 + $0x870] sm:$0xff] }
  0x59   : > { %1487 = vst [vmem:[%s10599_s29 + $0x430] sm:$0xff] %v1486_v6  ;;  %v1490_v8 = vld [vmem:[%s10594_s28 + $0x880] sm:$0xff]  ;;  %v1492_v9 = vld [vmem:[%s10594_s28 + $0x890] sm:$0xff]  ;;  %1489 = vst [vmem:[%s10599_s29 + $0x438] sm:$0xff] %v1488_v7 }
  0x5a   : > { %1491 = vst [vmem:[%s10599_s29 + $0x440] sm:$0xff] %v1490_v8  ;;  %1493 = vst [vmem:[%s10599_s29 + $0x448] sm:$0xff] %v1492_v9  ;;  %v1494_v10 = vld [vmem:[%s10594_s28 + $0x8a0] sm:$0xff]  ;;  %v1496_v11 = vld [vmem:[%s10594_s28 + $0x8b0] sm:$0xff] }
  0x5b   : > { %v1498_v12 = vld [vmem:[%s10594_s28 + $0x8c0] sm:$0xff]  ;;  %1495 = vst [vmem:[%s10599_s29 + $0x450] sm:$0xff] %v1494_v10  ;;  %1497 = vst [vmem:[%s10599_s29 + $0x458] sm:$0xff] %v1496_v11  ;;  %v1500_v13 = vld [vmem:[%s10594_s28 + $0x8d0] sm:$0xff] }
  0x5c   : > { %1499 = vst [vmem:[%s10599_s29 + $0x460] sm:$0xff] %v1498_v12  ;;  %v1502_v14 = vld [vmem:[%s10594_s28 + $0x8e0] sm:$0xff]  ;;  %v1504_v15 = vld [vmem:[%s10594_s28 + $0x8f0] sm:$0xff]  ;;  %1501 = vst [vmem:[%s10599_s29 + $0x468] sm:$0xff] %v1500_v13 }
  0x5d   : > { %1503 = vst [vmem:[%s10599_s29 + $0x470] sm:$0xff] %v1502_v14  ;;  %1505 = vst [vmem:[%s10599_s29 + $0x478] sm:$0xff] %v1504_v15  ;;  %v1506_v16 = vld [vmem:[%s10594_s28 + $0x900] sm:$0xff]  ;;  %v1508_v17 = vld [vmem:[%s10594_s28 + $0x910] sm:$0xff] }
  0x5e   : > { %v1510_v18 = vld [vmem:[%s10594_s28 + $0x920] sm:$0xff]  ;;  %1507 = vst [vmem:[%s10599_s29 + $0x480] sm:$0xff] %v1506_v16  ;;  %1509 = vst [vmem:[%s10599_s29 + $0x488] sm:$0xff] %v1508_v17  ;;  %v1512_v19 = vld [vmem:[%s10594_s28 + $0x930] sm:$0xff] }
  0x5f   : > { %1511 = vst [vmem:[%s10599_s29 + $0x490] sm:$0xff] %v1510_v18  ;;  %v1514_v20 = vld [vmem:[%s10594_s28 + $0x940] sm:$0xff]  ;;  %v1516_v21 = vld [vmem:[%s10594_s28 + $0x950] sm:$0xff]  ;;  %1513 = vst [vmem:[%s10599_s29 + $0x498] sm:$0xff] %v1512_v19 }
  0x60   : > { %1515 = vst [vmem:[%s10599_s29 + $0x4a0] sm:$0xff] %v1514_v20  ;;  %1517 = vst [vmem:[%s10599_s29 + $0x4a8] sm:$0xff] %v1516_v21  ;;  %v1518_v22 = vld [vmem:[%s10594_s28 + $0x960] sm:$0xff]  ;;  %v1520_v23 = vld [vmem:[%s10594_s28 + $0x970] sm:$0xff] }
  0x61   : > { %v1522_v24 = vld [vmem:[%s10594_s28 + $0x980] sm:$0xff]  ;;  %1519 = vst [vmem:[%s10599_s29 + $0x4b0] sm:$0xff] %v1518_v22  ;;  %1521 = vst [vmem:[%s10599_s29 + $0x4b8] sm:$0xff] %v1520_v23  ;;  %v1524_v25 = vld [vmem:[%s10594_s28 + $0x990] sm:$0xff] }
  0x62   : > { %1523 = vst [vmem:[%s10599_s29 + $0x4c0] sm:$0xff] %v1522_v24  ;;  %v1526_v26 = vld [vmem:[%s10594_s28 + $0x9a0] sm:$0xff]  ;;  %v1528_v27 = vld [vmem:[%s10594_s28 + $0x9b0] sm:$0xff]  ;;  %1525 = vst [vmem:[%s10599_s29 + $0x4c8] sm:$0xff] %v1524_v25 }
  0x63   : > { %1527 = vst [vmem:[%s10599_s29 + $0x4d0] sm:$0xff] %v1526_v26  ;;  %1529 = vst [vmem:[%s10599_s29 + $0x4d8] sm:$0xff] %v1528_v27  ;;  %v1530_v28 = vld [vmem:[%s10594_s28 + $0x9c0] sm:$0xff]  ;;  %v1532_v29 = vld [vmem:[%s10594_s28 + $0x9d0] sm:$0xff] }
  0x64   : > { %v1534_v30 = vld [vmem:[%s10594_s28 + $0x9e0] sm:$0xff]  ;;  %1531 = vst [vmem:[%s10599_s29 + $0x4e0] sm:$0xff] %v1530_v28  ;;  %1533 = vst [vmem:[%s10599_s29 + $0x4e8] sm:$0xff] %v1532_v29  ;;  %v1536_v31 = vld [vmem:[%s10594_s28 + $0x9f0] sm:$0xff] }
  0x65   : > { %1535 = vst [vmem:[%s10599_s29 + $0x4f0] sm:$0xff] %v1534_v30  ;;  %v1538_v32 = vld [vmem:[%s10594_s28 + $0xa00] sm:$0xff]  ;;  %v1540_v33 = vld [vmem:[%s10594_s28 + $0xa10] sm:$0xff]  ;;  %1537 = vst [vmem:[%s10599_s29 + $0x4f8] sm:$0xff] %v1536_v31 }
  0x66   : > { %1539 = vst [vmem:[%s10599_s29 + $0x500] sm:$0xff] %v1538_v32  ;;  %1541 = vst [vmem:[%s10599_s29 + $0x508] sm:$0xff] %v1540_v33  ;;  %v1542_v34 = vld [vmem:[%s10594_s28 + $0xa20] sm:$0xff]  ;;  %v1544_v35 = vld [vmem:[%s10594_s28 + $0xa30] sm:$0xff] }
  0x67   : > { %v1546_v36 = vld [vmem:[%s10594_s28 + $0xa40] sm:$0xff]  ;;  %1543 = vst [vmem:[%s10599_s29 + $0x510] sm:$0xff] %v1542_v34  ;;  %1545 = vst [vmem:[%s10599_s29 + $0x518] sm:$0xff] %v1544_v35  ;;  %v1548_v37 = vld [vmem:[%s10594_s28 + $0xa50] sm:$0xff] }
  0x68   : > { %1547 = vst [vmem:[%s10599_s29 + $0x520] sm:$0xff] %v1546_v36  ;;  %v1550_v38 = vld [vmem:[%s10594_s28 + $0xa60] sm:$0xff]  ;;  %v1552_v39 = vld [vmem:[%s10594_s28 + $0xa70] sm:$0xff]  ;;  %1549 = vst [vmem:[%s10599_s29 + $0x528] sm:$0xff] %v1548_v37 }
  0x69   : > { %1551 = vst [vmem:[%s10599_s29 + $0x530] sm:$0xff] %v1550_v38  ;;  %1553 = vst [vmem:[%s10599_s29 + $0x538] sm:$0xff] %v1552_v39  ;;  %v1554_v40 = vld [vmem:[%s10594_s28 + $0xa80] sm:$0xff]  ;;  %v1556_v41 = vld [vmem:[%s10594_s28 + $0xa90] sm:$0xff] }
  0x6a   : > { %v1558_v42 = vld [vmem:[%s10594_s28 + $0xaa0] sm:$0xff]  ;;  %1555 = vst [vmem:[%s10599_s29 + $0x540] sm:$0xff] %v1554_v40  ;;  %1557 = vst [vmem:[%s10599_s29 + $0x548] sm:$0xff] %v1556_v41  ;;  %v1560_v43 = vld [vmem:[%s10594_s28 + $0xab0] sm:$0xff] }
  0x6b   : > { %1559 = vst [vmem:[%s10599_s29 + $0x550] sm:$0xff] %v1558_v42  ;;  %v1562_v44 = vld [vmem:[%s10594_s28 + $0xac0] sm:$0xff]  ;;  %v1564_v45 = vld [vmem:[%s10594_s28 + $0xad0] sm:$0xff]  ;;  %1561 = vst [vmem:[%s10599_s29 + $0x558] sm:$0xff] %v1560_v43 }
  0x6c   : > { %1563 = vst [vmem:[%s10599_s29 + $0x560] sm:$0xff] %v1562_v44  ;;  %1565 = vst [vmem:[%s10599_s29 + $0x568] sm:$0xff] %v1564_v45  ;;  %v1566_v46 = vld [vmem:[%s10594_s28 + $0xae0] sm:$0xff]  ;;  %v1568_v47 = vld [vmem:[%s10594_s28 + $0xaf0] sm:$0xff] }
  0x6d   : > { %v1570_v48 = vld [vmem:[%s10594_s28 + $0xb00] sm:$0xff]  ;;  %1567 = vst [vmem:[%s10599_s29 + $0x570] sm:$0xff] %v1566_v46  ;;  %1569 = vst [vmem:[%s10599_s29 + $0x578] sm:$0xff] %v1568_v47  ;;  %v1572_v49 = vld [vmem:[%s10594_s28 + $0xb10] sm:$0xff] }
  0x6e   : > { %1571 = vst [vmem:[%s10599_s29 + $0x580] sm:$0xff] %v1570_v48  ;;  %v1574_v50 = vld [vmem:[%s10594_s28 + $0xb20] sm:$0xff]  ;;  %v1576_v51 = vld [vmem:[%s10594_s28 + $0xb30] sm:$0xff]  ;;  %1573 = vst [vmem:[%s10599_s29 + $0x588] sm:$0xff] %v1572_v49 }
  0x6f   : > { %1575 = vst [vmem:[%s10599_s29 + $0x590] sm:$0xff] %v1574_v50  ;;  %1577 = vst [vmem:[%s10599_s29 + $0x598] sm:$0xff] %v1576_v51  ;;  %v1578_v52 = vld [vmem:[%s10594_s28 + $0xb40] sm:$0xff]  ;;  %v1580_v53 = vld [vmem:[%s10594_s28 + $0xb50] sm:$0xff] }
  0x70   : > { %v1582_v54 = vld [vmem:[%s10594_s28 + $0xb60] sm:$0xff]  ;;  %1579 = vst [vmem:[%s10599_s29 + $0x5a0] sm:$0xff] %v1578_v52  ;;  %1581 = vst [vmem:[%s10599_s29 + $0x5a8] sm:$0xff] %v1580_v53  ;;  %v1584_v55 = vld [vmem:[%s10594_s28 + $0xb70] sm:$0xff] }
  0x71   : > { %1583 = vst [vmem:[%s10599_s29 + $0x5b0] sm:$0xff] %v1582_v54  ;;  %v1586_v56 = vld [vmem:[%s10594_s28 + $0xb80] sm:$0xff]  ;;  %v1588_v57 = vld [vmem:[%s10594_s28 + $0xb90] sm:$0xff]  ;;  %1585 = vst [vmem:[%s10599_s29 + $0x5b8] sm:$0xff] %v1584_v55 }
  0x72   : > { %1587 = vst [vmem:[%s10599_s29 + $0x5c0] sm:$0xff] %v1586_v56  ;;  %1589 = vst [vmem:[%s10599_s29 + $0x5c8] sm:$0xff] %v1588_v57  ;;  %v1590_v58 = vld [vmem:[%s10594_s28 + $0xba0] sm:$0xff]  ;;  %v1592_v59 = vld [vmem:[%s10594_s28 + $0xbb0] sm:$0xff] }
  0x73   : > { %v1594_v60 = vld [vmem:[%s10594_s28 + $0xbc0] sm:$0xff]  ;;  %1591 = vst [vmem:[%s10599_s29 + $0x5d0] sm:$0xff] %v1590_v58  ;;  %1593 = vst [vmem:[%s10599_s29 + $0x5d8] sm:$0xff] %v1592_v59  ;;  %v1596_v61 = vld [vmem:[%s10594_s28 + $0xbd0] sm:$0xff] }
  0x74   : > { %1595 = vst [vmem:[%s10599_s29 + $0x5e0] sm:$0xff] %v1594_v60  ;;  %v1598_v62 = vld [vmem:[%s10594_s28 + $0xbe0] sm:$0xff]  ;;  %v1600_v63 = vld [vmem:[%s10594_s28 + $0xbf0] sm:$0xff]  ;;  %1597 = vst [vmem:[%s10599_s29 + $0x5e8] sm:$0xff] %v1596_v61 }
  0x75   : > { %1599 = vst [vmem:[%s10599_s29 + $0x5f0] sm:$0xff] %v1598_v62  ;;  %1601 = vst [vmem:[%s10599_s29 + $0x5f8] sm:$0xff] %v1600_v63  ;;  %v1602_v0 = vld [vmem:[%s10594_s28 + $0xc00] sm:$0xff]  ;;  %v1604_v1 = vld [vmem:[%s10594_s28 + $0xc10] sm:$0xff] }
  0x76   : > { %v1606_v2 = vld [vmem:[%s10594_s28 + $0xc20] sm:$0xff]  ;;  %1603 = vst [vmem:[%s10599_s29 + $0x600] sm:$0xff] %v1602_v0  ;;  %1605 = vst [vmem:[%s10599_s29 + $0x608] sm:$0xff] %v1604_v1  ;;  %v1608_v3 = vld [vmem:[%s10594_s28 + $0xc30] sm:$0xff] }
  0x77   : > { %1607 = vst [vmem:[%s10599_s29 + $0x610] sm:$0xff] %v1606_v2  ;;  %v1610_v4 = vld [vmem:[%s10594_s28 + $0xc40] sm:$0xff]  ;;  %v1612_v5 = vld [vmem:[%s10594_s28 + $0xc50] sm:$0xff]  ;;  %1609 = vst [vmem:[%s10599_s29 + $0x618] sm:$0xff] %v1608_v3 }
  0x78   : > { %1611 = vst [vmem:[%s10599_s29 + $0x620] sm:$0xff] %v1610_v4  ;;  %1613 = vst [vmem:[%s10599_s29 + $0x628] sm:$0xff] %v1612_v5  ;;  %v1614_v6 = vld [vmem:[%s10594_s28 + $0xc60] sm:$0xff]  ;;  %v1616_v7 = vld [vmem:[%s10594_s28 + $0xc70] sm:$0xff] }
  0x79   : > { %v1618_v8 = vld [vmem:[%s10594_s28 + $0xc80] sm:$0xff]  ;;  %1615 = vst [vmem:[%s10599_s29 + $0x630] sm:$0xff] %v1614_v6  ;;  %1617 = vst [vmem:[%s10599_s29 + $0x638] sm:$0xff] %v1616_v7  ;;  %v1620_v9 = vld [vmem:[%s10594_s28 + $0xc90] sm:$0xff] }
  0x7a   : > { %1619 = vst [vmem:[%s10599_s29 + $0x640] sm:$0xff] %v1618_v8  ;;  %v1622_v10 = vld [vmem:[%s10594_s28 + $0xca0] sm:$0xff]  ;;  %v1624_v11 = vld [vmem:[%s10594_s28 + $0xcb0] sm:$0xff]  ;;  %1621 = vst [vmem:[%s10599_s29 + $0x648] sm:$0xff] %v1620_v9 }
  0x7b   : > { %1623 = vst [vmem:[%s10599_s29 + $0x650] sm:$0xff] %v1622_v10  ;;  %1625 = vst [vmem:[%s10599_s29 + $0x658] sm:$0xff] %v1624_v11  ;;  %v1626_v12 = vld [vmem:[%s10594_s28 + $0xcc0] sm:$0xff]  ;;  %v1628_v13 = vld [vmem:[%s10594_s28 + $0xcd0] sm:$0xff] }
  0x7c   : > { %v1630_v14 = vld [vmem:[%s10594_s28 + $0xce0] sm:$0xff]  ;;  %1627 = vst [vmem:[%s10599_s29 + $0x660] sm:$0xff] %v1626_v12  ;;  %1629 = vst [vmem:[%s10599_s29 + $0x668] sm:$0xff] %v1628_v13  ;;  %v1632_v15 = vld [vmem:[%s10594_s28 + $0xcf0] sm:$0xff] }
  0x7d   : > { %1631 = vst [vmem:[%s10599_s29 + $0x670] sm:$0xff] %v1630_v14  ;;  %v1634_v16 = vld [vmem:[%s10594_s28 + $0xd00] sm:$0xff]  ;;  %v1636_v17 = vld [vmem:[%s10594_s28 + $0xd10] sm:$0xff]  ;;  %1633 = vst [vmem:[%s10599_s29 + $0x678] sm:$0xff] %v1632_v15 }
  0x7e   : > { %1635 = vst [vmem:[%s10599_s29 + $0x680] sm:$0xff] %v1634_v16  ;;  %1637 = vst [vmem:[%s10599_s29 + $0x688] sm:$0xff] %v1636_v17  ;;  %v1638_v18 = vld [vmem:[%s10594_s28 + $0xd20] sm:$0xff]  ;;  %v1640_v19 = vld [vmem:[%s10594_s28 + $0xd30] sm:$0xff] }
  0x7f   : > { %v1642_v20 = vld [vmem:[%s10594_s28 + $0xd40] sm:$0xff]  ;;  %1639 = vst [vmem:[%s10599_s29 + $0x690] sm:$0xff] %v1638_v18  ;;  %1641 = vst [vmem:[%s10599_s29 + $0x698] sm:$0xff] %v1640_v19  ;;  %v1644_v21 = vld [vmem:[%s10594_s28 + $0xd50] sm:$0xff] }
  0x80   : > { %1643 = vst [vmem:[%s10599_s29 + $0x6a0] sm:$0xff] %v1642_v20  ;;  %v1646_v22 = vld [vmem:[%s10594_s28 + $0xd60] sm:$0xff]  ;;  %v1648_v23 = vld [vmem:[%s10594_s28 + $0xd70] sm:$0xff]  ;;  %1645 = vst [vmem:[%s10599_s29 + $0x6a8] sm:$0xff] %v1644_v21 }
  0x81   : > { %1647 = vst [vmem:[%s10599_s29 + $0x6b0] sm:$0xff] %v1646_v22  ;;  %1649 = vst [vmem:[%s10599_s29 + $0x6b8] sm:$0xff] %v1648_v23  ;;  %v1650_v24 = vld [vmem:[%s10594_s28 + $0xd80] sm:$0xff]  ;;  %v1652_v25 = vld [vmem:[%s10594_s28 + $0xd90] sm:$0xff] }
  0x82   : > { %v1654_v26 = vld [vmem:[%s10594_s28 + $0xda0] sm:$0xff]  ;;  %1651 = vst [vmem:[%s10599_s29 + $0x6c0] sm:$0xff] %v1650_v24  ;;  %1653 = vst [vmem:[%s10599_s29 + $0x6c8] sm:$0xff] %v1652_v25  ;;  %v1656_v27 = vld [vmem:[%s10594_s28 + $0xdb0] sm:$0xff] }
  0x83   : > { %1655 = vst [vmem:[%s10599_s29 + $0x6d0] sm:$0xff] %v1654_v26  ;;  %v1658_v28 = vld [vmem:[%s10594_s28 + $0xdc0] sm:$0xff]  ;;  %v1660_v29 = vld [vmem:[%s10594_s28 + $0xdd0] sm:$0xff]  ;;  %1657 = vst [vmem:[%s10599_s29 + $0x6d8] sm:$0xff] %v1656_v27 }
  0x84   : > { %1659 = vst [vmem:[%s10599_s29 + $0x6e0] sm:$0xff] %v1658_v28  ;;  %1661 = vst [vmem:[%s10599_s29 + $0x6e8] sm:$0xff] %v1660_v29  ;;  %v1662_v30 = vld [vmem:[%s10594_s28 + $0xde0] sm:$0xff]  ;;  %v1664_v31 = vld [vmem:[%s10594_s28 + $0xdf0] sm:$0xff] }
  0x85   : > { %v1666_v32 = vld [vmem:[%s10594_s28 + $0xe00] sm:$0xff]  ;;  %1663 = vst [vmem:[%s10599_s29 + $0x6f0] sm:$0xff] %v1662_v30  ;;  %1665 = vst [vmem:[%s10599_s29 + $0x6f8] sm:$0xff] %v1664_v31  ;;  %v1668_v33 = vld [vmem:[%s10594_s28 + $0xe10] sm:$0xff] }
  0x86   : > { %1667 = vst [vmem:[%s10599_s29 + $0x700] sm:$0xff] %v1666_v32  ;;  %v1670_v34 = vld [vmem:[%s10594_s28 + $0xe20] sm:$0xff]  ;;  %v1672_v35 = vld [vmem:[%s10594_s28 + $0xe30] sm:$0xff]  ;;  %1669 = vst [vmem:[%s10599_s29 + $0x708] sm:$0xff] %v1668_v33 }
  0x87   : > { %1671 = vst [vmem:[%s10599_s29 + $0x710] sm:$0xff] %v1670_v34  ;;  %1673 = vst [vmem:[%s10599_s29 + $0x718] sm:$0xff] %v1672_v35  ;;  %v1674_v36 = vld [vmem:[%s10594_s28 + $0xe40] sm:$0xff]  ;;  %v1676_v37 = vld [vmem:[%s10594_s28 + $0xe50] sm:$0xff] }
  0x88   : > { %v1678_v38 = vld [vmem:[%s10594_s28 + $0xe60] sm:$0xff]  ;;  %1675 = vst [vmem:[%s10599_s29 + $0x720] sm:$0xff] %v1674_v36  ;;  %1677 = vst [vmem:[%s10599_s29 + $0x728] sm:$0xff] %v1676_v37  ;;  %v1680_v39 = vld [vmem:[%s10594_s28 + $0xe70] sm:$0xff] }
  0x89   : > { %1679 = vst [vmem:[%s10599_s29 + $0x730] sm:$0xff] %v1678_v38  ;;  %v1682_v40 = vld [vmem:[%s10594_s28 + $0xe80] sm:$0xff]  ;;  %v1684_v41 = vld [vmem:[%s10594_s28 + $0xe90] sm:$0xff]  ;;  %1681 = vst [vmem:[%s10599_s29 + $0x738] sm:$0xff] %v1680_v39 }
  0x8a   : > { %1683 = vst [vmem:[%s10599_s29 + $0x740] sm:$0xff] %v1682_v40  ;;  %1685 = vst [vmem:[%s10599_s29 + $0x748] sm:$0xff] %v1684_v41  ;;  %v1686_v42 = vld [vmem:[%s10594_s28 + $0xea0] sm:$0xff]  ;;  %v1688_v43 = vld [vmem:[%s10594_s28 + $0xeb0] sm:$0xff] }
  0x8b   : > { %v1690_v44 = vld [vmem:[%s10594_s28 + $0xec0] sm:$0xff]  ;;  %1687 = vst [vmem:[%s10599_s29 + $0x750] sm:$0xff] %v1686_v42  ;;  %1689 = vst [vmem:[%s10599_s29 + $0x758] sm:$0xff] %v1688_v43  ;;  %v1692_v45 = vld [vmem:[%s10594_s28 + $0xed0] sm:$0xff] }
  0x8c   : > { %1691 = vst [vmem:[%s10599_s29 + $0x760] sm:$0xff] %v1690_v44  ;;  %v1694_v46 = vld [vmem:[%s10594_s28 + $0xee0] sm:$0xff]  ;;  %v1696_v47 = vld [vmem:[%s10594_s28 + $0xef0] sm:$0xff]  ;;  %1693 = vst [vmem:[%s10599_s29 + $0x768] sm:$0xff] %v1692_v45 }
  0x8d   : > { %1695 = vst [vmem:[%s10599_s29 + $0x770] sm:$0xff] %v1694_v46  ;;  %1697 = vst [vmem:[%s10599_s29 + $0x778] sm:$0xff] %v1696_v47  ;;  %v1698_v48 = vld [vmem:[%s10594_s28 + $0xf00] sm:$0xff]  ;;  %v1700_v49 = vld [vmem:[%s10594_s28 + $0xf10] sm:$0xff] }
  0x8e   : > { %v1702_v50 = vld [vmem:[%s10594_s28 + $0xf20] sm:$0xff]  ;;  %1699 = vst [vmem:[%s10599_s29 + $0x780] sm:$0xff] %v1698_v48  ;;  %1701 = vst [vmem:[%s10599_s29 + $0x788] sm:$0xff] %v1700_v49  ;;  %v1704_v51 = vld [vmem:[%s10594_s28 + $0xf30] sm:$0xff] }
  0x8f   : > { %1703 = vst [vmem:[%s10599_s29 + $0x790] sm:$0xff] %v1702_v50  ;;  %v1706_v52 = vld [vmem:[%s10594_s28 + $0xf40] sm:$0xff]  ;;  %v1708_v53 = vld [vmem:[%s10594_s28 + $0xf50] sm:$0xff]  ;;  %1705 = vst [vmem:[%s10599_s29 + $0x798] sm:$0xff] %v1704_v51 }
  0x90   : > { %1707 = vst [vmem:[%s10599_s29 + $0x7a0] sm:$0xff] %v1706_v52  ;;  %1709 = vst [vmem:[%s10599_s29 + $0x7a8] sm:$0xff] %v1708_v53  ;;  %v1710_v54 = vld [vmem:[%s10594_s28 + $0xf60] sm:$0xff]  ;;  %v1712_v55 = vld [vmem:[%s10594_s28 + $0xf70] sm:$0xff] }
  0x91   : > { %v1714_v56 = vld [vmem:[%s10594_s28 + $0xf80] sm:$0xff]  ;;  %1711 = vst [vmem:[%s10599_s29 + $0x7b0] sm:$0xff] %v1710_v54  ;;  %1713 = vst [vmem:[%s10599_s29 + $0x7b8] sm:$0xff] %v1712_v55  ;;  %v1716_v57 = vld [vmem:[%s10594_s28 + $0xf90] sm:$0xff] }
  0x92   : > { %1715 = vst [vmem:[%s10599_s29 + $0x7c0] sm:$0xff] %v1714_v56  ;;  %v1718_v58 = vld [vmem:[%s10594_s28 + $0xfa0] sm:$0xff]  ;;  %v1720_v59 = vld [vmem:[%s10594_s28 + $0xfb0] sm:$0xff]  ;;  %1717 = vst [vmem:[%s10599_s29 + $0x7c8] sm:$0xff] %v1716_v57 }
  0x93   : > { %1719 = vst [vmem:[%s10599_s29 + $0x7d0] sm:$0xff] %v1718_v58  ;;  %1721 = vst [vmem:[%s10599_s29 + $0x7d8] sm:$0xff] %v1720_v59  ;;  %v1722_v60 = vld [vmem:[%s10594_s28 + $0xfc0] sm:$0xff]  ;;  %v1724_v61 = vld [vmem:[%s10594_s28 + $0xfd0] sm:$0xff] }
  0x94   : > { %v1726_v62 = vld [vmem:[%s10594_s28 + $0xfe0] sm:$0xff]  ;;  %1723 = vst [vmem:[%s10599_s29 + $0x7e0] sm:$0xff] %v1722_v60  ;;  %1725 = vst [vmem:[%s10599_s29 + $0x7e8] sm:$0xff] %v1724_v61  ;;  %v1728_v63 = vld [vmem:[%s10594_s28 + $0xff0] sm:$0xff] }
  0x95   : > { %1727 = vst [vmem:[%s10599_s29 + $0x7f0] sm:$0xff] %v1726_v62  ;;  %v1730_v0 = vld [vmem:[%s10594_s28 + $0x1000] sm:$0xff]  ;;  %v1732_v1 = vld [vmem:[%s10594_s28 + $0x1010] sm:$0xff]  ;;  %1729 = vst [vmem:[%s10599_s29 + $0x7f8] sm:$0xff] %v1728_v63 }
  0x96   : > { %1731 = vst [vmem:[%s10599_s29 + $0x800] sm:$0xff] %v1730_v0  ;;  %1733 = vst [vmem:[%s10599_s29 + $0x808] sm:$0xff] %v1732_v1  ;;  %v1734_v2 = vld [vmem:[%s10594_s28 + $0x1020] sm:$0xff]  ;;  %v1736_v3 = vld [vmem:[%s10594_s28 + $0x1030] sm:$0xff] }
  0x97   : > { %v1738_v4 = vld [vmem:[%s10594_s28 + $0x1040] sm:$0xff]  ;;  %1735 = vst [vmem:[%s10599_s29 + $0x810] sm:$0xff] %v1734_v2  ;;  %1737 = vst [vmem:[%s10599_s29 + $0x818] sm:$0xff] %v1736_v3  ;;  %v1740_v5 = vld [vmem:[%s10594_s28 + $0x1050] sm:$0xff] }
  0x98   : > { %1739 = vst [vmem:[%s10599_s29 + $0x820] sm:$0xff] %v1738_v4  ;;  %v1742_v6 = vld [vmem:[%s10594_s28 + $0x1060] sm:$0xff]  ;;  %v1744_v7 = vld [vmem:[%s10594_s28 + $0x1070] sm:$0xff]  ;;  %1741 = vst [vmem:[%s10599_s29 + $0x828] sm:$0xff] %v1740_v5 }
  0x99   : > { %1743 = vst [vmem:[%s10599_s29 + $0x830] sm:$0xff] %v1742_v6  ;;  %1745 = vst [vmem:[%s10599_s29 + $0x838] sm:$0xff] %v1744_v7  ;;  %v1746_v8 = vld [vmem:[%s10594_s28 + $0x1080] sm:$0xff]  ;;  %v1748_v9 = vld [vmem:[%s10594_s28 + $0x1090] sm:$0xff] }
  0x9a   : > { %v1750_v10 = vld [vmem:[%s10594_s28 + $0x10a0] sm:$0xff]  ;;  %1747 = vst [vmem:[%s10599_s29 + $0x840] sm:$0xff] %v1746_v8  ;;  %1749 = vst [vmem:[%s10599_s29 + $0x848] sm:$0xff] %v1748_v9  ;;  %v1752_v11 = vld [vmem:[%s10594_s28 + $0x10b0] sm:$0xff] }
  0x9b   : > { %1751 = vst [vmem:[%s10599_s29 + $0x850] sm:$0xff] %v1750_v10  ;;  %v1754_v12 = vld [vmem:[%s10594_s28 + $0x10c0] sm:$0xff]  ;;  %v1756_v13 = vld [vmem:[%s10594_s28 + $0x10d0] sm:$0xff]  ;;  %1753 = vst [vmem:[%s10599_s29 + $0x858] sm:$0xff] %v1752_v11 }
  0x9c   : > { %1755 = vst [vmem:[%s10599_s29 + $0x860] sm:$0xff] %v1754_v12  ;;  %1757 = vst [vmem:[%s10599_s29 + $0x868] sm:$0xff] %v1756_v13  ;;  %v1758_v14 = vld [vmem:[%s10594_s28 + $0x10e0] sm:$0xff]  ;;  %v1760_v15 = vld [vmem:[%s10594_s28 + $0x10f0] sm:$0xff] }
  0x9d   : > { %v1762_v16 = vld [vmem:[%s10594_s28 + $0x1100] sm:$0xff]  ;;  %1759 = vst [vmem:[%s10599_s29 + $0x870] sm:$0xff] %v1758_v14  ;;  %1761 = vst [vmem:[%s10599_s29 + $0x878] sm:$0xff] %v1760_v15  ;;  %v1764_v17 = vld [vmem:[%s10594_s28 + $0x1110] sm:$0xff] }
  0x9e   : > { %1763 = vst [vmem:[%s10599_s29 + $0x880] sm:$0xff] %v1762_v16  ;;  %v1766_v18 = vld [vmem:[%s10594_s28 + $0x1120] sm:$0xff]  ;;  %v1768_v19 = vld [vmem:[%s10594_s28 + $0x1130] sm:$0xff]  ;;  %1765 = vst [vmem:[%s10599_s29 + $0x888] sm:$0xff] %v1764_v17 }
  0x9f   : > { %1767 = vst [vmem:[%s10599_s29 + $0x890] sm:$0xff] %v1766_v18  ;;  %1769 = vst [vmem:[%s10599_s29 + $0x898] sm:$0xff] %v1768_v19  ;;  %v1770_v20 = vld [vmem:[%s10594_s28 + $0x1140] sm:$0xff]  ;;  %v1772_v21 = vld [vmem:[%s10594_s28 + $0x1150] sm:$0xff] }
  0xa0   : > { %v1774_v22 = vld [vmem:[%s10594_s28 + $0x1160] sm:$0xff]  ;;  %1771 = vst [vmem:[%s10599_s29 + $0x8a0] sm:$0xff] %v1770_v20  ;;  %1773 = vst [vmem:[%s10599_s29 + $0x8a8] sm:$0xff] %v1772_v21  ;;  %v1776_v23 = vld [vmem:[%s10594_s28 + $0x1170] sm:$0xff] }
  0xa1   : > { %1775 = vst [vmem:[%s10599_s29 + $0x8b0] sm:$0xff] %v1774_v22  ;;  %v1778_v24 = vld [vmem:[%s10594_s28 + $0x1180] sm:$0xff]  ;;  %v1780_v25 = vld [vmem:[%s10594_s28 + $0x1190] sm:$0xff]  ;;  %1777 = vst [vmem:[%s10599_s29 + $0x8b8] sm:$0xff] %v1776_v23 }
  0xa2   : > { %1779 = vst [vmem:[%s10599_s29 + $0x8c0] sm:$0xff] %v1778_v24  ;;  %1781 = vst [vmem:[%s10599_s29 + $0x8c8] sm:$0xff] %v1780_v25  ;;  %v1782_v26 = vld [vmem:[%s10594_s28 + $0x11a0] sm:$0xff]  ;;  %v1784_v27 = vld [vmem:[%s10594_s28 + $0x11b0] sm:$0xff] }
  0xa3   : > { %v1786_v28 = vld [vmem:[%s10594_s28 + $0x11c0] sm:$0xff]  ;;  %1783 = vst [vmem:[%s10599_s29 + $0x8d0] sm:$0xff] %v1782_v26  ;;  %1785 = vst [vmem:[%s10599_s29 + $0x8d8] sm:$0xff] %v1784_v27  ;;  %v1788_v29 = vld [vmem:[%s10594_s28 + $0x11d0] sm:$0xff] }
  0xa4   : > { %1787 = vst [vmem:[%s10599_s29 + $0x8e0] sm:$0xff] %v1786_v28  ;;  %v1790_v30 = vld [vmem:[%s10594_s28 + $0x11e0] sm:$0xff]  ;;  %v1792_v31 = vld [vmem:[%s10594_s28 + $0x11f0] sm:$0xff]  ;;  %1789 = vst [vmem:[%s10599_s29 + $0x8e8] sm:$0xff] %v1788_v29 }
  0xa5   : > { %1791 = vst [vmem:[%s10599_s29 + $0x8f0] sm:$0xff] %v1790_v30  ;;  %1793 = vst [vmem:[%s10599_s29 + $0x8f8] sm:$0xff] %v1792_v31  ;;  %v1794_v32 = vld [vmem:[%s10594_s28 + $0x1200] sm:$0xff]  ;;  %v1796_v33 = vld [vmem:[%s10594_s28 + $0x1210] sm:$0xff] }
  0xa6   : > { %v1798_v34 = vld [vmem:[%s10594_s28 + $0x1220] sm:$0xff]  ;;  %1795 = vst [vmem:[%s10599_s29 + $0x900] sm:$0xff] %v1794_v32  ;;  %1797 = vst [vmem:[%s10599_s29 + $0x908] sm:$0xff] %v1796_v33  ;;  %v1800_v35 = vld [vmem:[%s10594_s28 + $0x1230] sm:$0xff] }
  0xa7   : > { %1799 = vst [vmem:[%s10599_s29 + $0x910] sm:$0xff] %v1798_v34  ;;  %v1802_v36 = vld [vmem:[%s10594_s28 + $0x1240] sm:$0xff]  ;;  %v1804_v37 = vld [vmem:[%s10594_s28 + $0x1250] sm:$0xff]  ;;  %1801 = vst [vmem:[%s10599_s29 + $0x918] sm:$0xff] %v1800_v35 }
  0xa8   : > { %1803 = vst [vmem:[%s10599_s29 + $0x920] sm:$0xff] %v1802_v36  ;;  %1805 = vst [vmem:[%s10599_s29 + $0x928] sm:$0xff] %v1804_v37  ;;  %v1806_v38 = vld [vmem:[%s10594_s28 + $0x1260] sm:$0xff]  ;;  %v1808_v39 = vld [vmem:[%s10594_s28 + $0x1270] sm:$0xff] }
  0xa9   : > { %v1810_v40 = vld [vmem:[%s10594_s28 + $0x1280] sm:$0xff]  ;;  %1807 = vst [vmem:[%s10599_s29 + $0x930] sm:$0xff] %v1806_v38  ;;  %1809 = vst [vmem:[%s10599_s29 + $0x938] sm:$0xff] %v1808_v39  ;;  %v1812_v41 = vld [vmem:[%s10594_s28 + $0x1290] sm:$0xff] }
  0xaa   : > { %1811 = vst [vmem:[%s10599_s29 + $0x940] sm:$0xff] %v1810_v40  ;;  %v1814_v42 = vld [vmem:[%s10594_s28 + $0x12a0] sm:$0xff]  ;;  %v1816_v43 = vld [vmem:[%s10594_s28 + $0x12b0] sm:$0xff]  ;;  %1813 = vst [vmem:[%s10599_s29 + $0x948] sm:$0xff] %v1812_v41 }
  0xab   : > { %1815 = vst [vmem:[%s10599_s29 + $0x950] sm:$0xff] %v1814_v42  ;;  %1817 = vst [vmem:[%s10599_s29 + $0x958] sm:$0xff] %v1816_v43  ;;  %v1818_v44 = vld [vmem:[%s10594_s28 + $0x12c0] sm:$0xff]  ;;  %v1820_v45 = vld [vmem:[%s10594_s28 + $0x12d0] sm:$0xff] }
  0xac   : > { %v1822_v46 = vld [vmem:[%s10594_s28 + $0x12e0] sm:$0xff]  ;;  %1819 = vst [vmem:[%s10599_s29 + $0x960] sm:$0xff] %v1818_v44  ;;  %1821 = vst [vmem:[%s10599_s29 + $0x968] sm:$0xff] %v1820_v45  ;;  %v1824_v47 = vld [vmem:[%s10594_s28 + $0x12f0] sm:$0xff] }
  0xad   : > { %1823 = vst [vmem:[%s10599_s29 + $0x970] sm:$0xff] %v1822_v46  ;;  %v1826_v48 = vld [vmem:[%s10594_s28 + $0x1300] sm:$0xff]  ;;  %v1828_v49 = vld [vmem:[%s10594_s28 + $0x1310] sm:$0xff]  ;;  %1825 = vst [vmem:[%s10599_s29 + $0x978] sm:$0xff] %v1824_v47 }
  0xae   : > { %1827 = vst [vmem:[%s10599_s29 + $0x980] sm:$0xff] %v1826_v48  ;;  %1829 = vst [vmem:[%s10599_s29 + $0x988] sm:$0xff] %v1828_v49  ;;  %v1830_v50 = vld [vmem:[%s10594_s28 + $0x1320] sm:$0xff]  ;;  %v1832_v51 = vld [vmem:[%s10594_s28 + $0x1330] sm:$0xff] }
  0xaf   : > { %v1834_v52 = vld [vmem:[%s10594_s28 + $0x1340] sm:$0xff]  ;;  %1831 = vst [vmem:[%s10599_s29 + $0x990] sm:$0xff] %v1830_v50  ;;  %1833 = vst [vmem:[%s10599_s29 + $0x998] sm:$0xff] %v1832_v51  ;;  %v1836_v53 = vld [vmem:[%s10594_s28 + $0x1350] sm:$0xff] }
  0xb0   : > { %1835 = vst [vmem:[%s10599_s29 + $0x9a0] sm:$0xff] %v1834_v52  ;;  %v1838_v54 = vld [vmem:[%s10594_s28 + $0x1360] sm:$0xff]  ;;  %v1840_v55 = vld [vmem:[%s10594_s28 + $0x1370] sm:$0xff]  ;;  %1837 = vst [vmem:[%s10599_s29 + $0x9a8] sm:$0xff] %v1836_v53 }
  0xb1   : > { %1839 = vst [vmem:[%s10599_s29 + $0x9b0] sm:$0xff] %v1838_v54  ;;  %1841 = vst [vmem:[%s10599_s29 + $0x9b8] sm:$0xff] %v1840_v55  ;;  %v1842_v56 = vld [vmem:[%s10594_s28 + $0x1380] sm:$0xff]  ;;  %v1844_v57 = vld [vmem:[%s10594_s28 + $0x1390] sm:$0xff] }
  0xb2   : > { %v1846_v58 = vld [vmem:[%s10594_s28 + $0x13a0] sm:$0xff]  ;;  %1843 = vst [vmem:[%s10599_s29 + $0x9c0] sm:$0xff] %v1842_v56  ;;  %1845 = vst [vmem:[%s10599_s29 + $0x9c8] sm:$0xff] %v1844_v57  ;;  %v1848_v59 = vld [vmem:[%s10594_s28 + $0x13b0] sm:$0xff] }
  0xb3   : > { %1847 = vst [vmem:[%s10599_s29 + $0x9d0] sm:$0xff] %v1846_v58  ;;  %v1850_v60 = vld [vmem:[%s10594_s28 + $0x13c0] sm:$0xff]  ;;  %v1852_v61 = vld [vmem:[%s10594_s28 + $0x13d0] sm:$0xff]  ;;  %1849 = vst [vmem:[%s10599_s29 + $0x9d8] sm:$0xff] %v1848_v59 }
  0xb4   : > { %1851 = vst [vmem:[%s10599_s29 + $0x9e0] sm:$0xff] %v1850_v60  ;;  %1853 = vst [vmem:[%s10599_s29 + $0x9e8] sm:$0xff] %v1852_v61  ;;  %v1854_v62 = vld [vmem:[%s10594_s28 + $0x13e0] sm:$0xff]  ;;  %v1856_v63 = vld [vmem:[%s10594_s28 + $0x13f0] sm:$0xff] }
  0xb5   : > { %v1858_v0 = vld [vmem:[%s10594_s28 + $0x1400] sm:$0xff]  ;;  %1855 = vst [vmem:[%s10599_s29 + $0x9f0] sm:$0xff] %v1854_v62  ;;  %1857 = vst [vmem:[%s10599_s29 + $0x9f8] sm:$0xff] %v1856_v63  ;;  %v1860_v1 = vld [vmem:[%s10594_s28 + $0x1410] sm:$0xff] }
  0xb6   : > { %1859 = vst [vmem:[%s10599_s29 + $0xa00] sm:$0xff] %v1858_v0  ;;  %v1862_v2 = vld [vmem:[%s10594_s28 + $0x1420] sm:$0xff]  ;;  %v1864_v3 = vld [vmem:[%s10594_s28 + $0x1430] sm:$0xff]  ;;  %1861 = vst [vmem:[%s10599_s29 + $0xa08] sm:$0xff] %v1860_v1 }
  0xb7   : > { %1863 = vst [vmem:[%s10599_s29 + $0xa10] sm:$0xff] %v1862_v2  ;;  %1865 = vst [vmem:[%s10599_s29 + $0xa18] sm:$0xff] %v1864_v3  ;;  %v1866_v4 = vld [vmem:[%s10594_s28 + $0x1440] sm:$0xff]  ;;  %v1868_v5 = vld [vmem:[%s10594_s28 + $0x1450] sm:$0xff] }
  0xb8   : > { %v1870_v6 = vld [vmem:[%s10594_s28 + $0x1460] sm:$0xff]  ;;  %1867 = vst [vmem:[%s10599_s29 + $0xa20] sm:$0xff] %v1866_v4  ;;  %1869 = vst [vmem:[%s10599_s29 + $0xa28] sm:$0xff] %v1868_v5  ;;  %v1872_v7 = vld [vmem:[%s10594_s28 + $0x1470] sm:$0xff] }
  0xb9   : > { %1871 = vst [vmem:[%s10599_s29 + $0xa30] sm:$0xff] %v1870_v6  ;;  %v1874_v8 = vld [vmem:[%s10594_s28 + $0x1480] sm:$0xff]  ;;  %v1876_v9 = vld [vmem:[%s10594_s28 + $0x1490] sm:$0xff]  ;;  %1873 = vst [vmem:[%s10599_s29 + $0xa38] sm:$0xff] %v1872_v7 }
  0xba   : > { %1875 = vst [vmem:[%s10599_s29 + $0xa40] sm:$0xff] %v1874_v8  ;;  %1877 = vst [vmem:[%s10599_s29 + $0xa48] sm:$0xff] %v1876_v9  ;;  %v1878_v10 = vld [vmem:[%s10594_s28 + $0x14a0] sm:$0xff]  ;;  %v1880_v11 = vld [vmem:[%s10594_s28 + $0x14b0] sm:$0xff] }
  0xbb   : > { %v1882_v12 = vld [vmem:[%s10594_s28 + $0x14c0] sm:$0xff]  ;;  %1879 = vst [vmem:[%s10599_s29 + $0xa50] sm:$0xff] %v1878_v10  ;;  %1881 = vst [vmem:[%s10599_s29 + $0xa58] sm:$0xff] %v1880_v11  ;;  %v1884_v13 = vld [vmem:[%s10594_s28 + $0x14d0] sm:$0xff] }
  0xbc   : > { %1883 = vst [vmem:[%s10599_s29 + $0xa60] sm:$0xff] %v1882_v12  ;;  %v1886_v14 = vld [vmem:[%s10594_s28 + $0x14e0] sm:$0xff]  ;;  %v1888_v15 = vld [vmem:[%s10594_s28 + $0x14f0] sm:$0xff]  ;;  %1885 = vst [vmem:[%s10599_s29 + $0xa68] sm:$0xff] %v1884_v13 }
  0xbd   : > { %1887 = vst [vmem:[%s10599_s29 + $0xa70] sm:$0xff] %v1886_v14  ;;  %1889 = vst [vmem:[%s10599_s29 + $0xa78] sm:$0xff] %v1888_v15  ;;  %v1890_v16 = vld [vmem:[%s10594_s28 + $0x1500] sm:$0xff]  ;;  %v1892_v17 = vld [vmem:[%s10594_s28 + $0x1510] sm:$0xff] }
  0xbe   : > { %v1894_v18 = vld [vmem:[%s10594_s28 + $0x1520] sm:$0xff]  ;;  %1891 = vst [vmem:[%s10599_s29 + $0xa80] sm:$0xff] %v1890_v16  ;;  %1893 = vst [vmem:[%s10599_s29 + $0xa88] sm:$0xff] %v1892_v17  ;;  %v1896_v19 = vld [vmem:[%s10594_s28 + $0x1530] sm:$0xff] }
  0xbf   : > { %1895 = vst [vmem:[%s10599_s29 + $0xa90] sm:$0xff] %v1894_v18  ;;  %v1898_v20 = vld [vmem:[%s10594_s28 + $0x1540] sm:$0xff]  ;;  %v1900_v21 = vld [vmem:[%s10594_s28 + $0x1550] sm:$0xff]  ;;  %1897 = vst [vmem:[%s10599_s29 + $0xa98] sm:$0xff] %v1896_v19 }
  0xc0   : > { %1899 = vst [vmem:[%s10599_s29 + $0xaa0] sm:$0xff] %v1898_v20  ;;  %1901 = vst [vmem:[%s10599_s29 + $0xaa8] sm:$0xff] %v1900_v21  ;;  %v1902_v22 = vld [vmem:[%s10594_s28 + $0x1560] sm:$0xff]  ;;  %v1904_v23 = vld [vmem:[%s10594_s28 + $0x1570] sm:$0xff] }
  0xc1   : > { %v1906_v24 = vld [vmem:[%s10594_s28 + $0x1580] sm:$0xff]  ;;  %1903 = vst [vmem:[%s10599_s29 + $0xab0] sm:$0xff] %v1902_v22  ;;  %1905 = vst [vmem:[%s10599_s29 + $0xab8] sm:$0xff] %v1904_v23  ;;  %v1908_v25 = vld [vmem:[%s10594_s28 + $0x1590] sm:$0xff] }
  0xc2   : > { %1907 = vst [vmem:[%s10599_s29 + $0xac0] sm:$0xff] %v1906_v24  ;;  %v1910_v26 = vld [vmem:[%s10594_s28 + $0x15a0] sm:$0xff]  ;;  %v1912_v27 = vld [vmem:[%s10594_s28 + $0x15b0] sm:$0xff]  ;;  %1909 = vst [vmem:[%s10599_s29 + $0xac8] sm:$0xff] %v1908_v25 }
  0xc3   : > { %1911 = vst [vmem:[%s10599_s29 + $0xad0] sm:$0xff] %v1910_v26  ;;  %1913 = vst [vmem:[%s10599_s29 + $0xad8] sm:$0xff] %v1912_v27  ;;  %v1914_v28 = vld [vmem:[%s10594_s28 + $0x15c0] sm:$0xff]  ;;  %v1916_v29 = vld [vmem:[%s10594_s28 + $0x15d0] sm:$0xff] }
  0xc4   : > { %v1918_v30 = vld [vmem:[%s10594_s28 + $0x15e0] sm:$0xff]  ;;  %1915 = vst [vmem:[%s10599_s29 + $0xae0] sm:$0xff] %v1914_v28  ;;  %1917 = vst [vmem:[%s10599_s29 + $0xae8] sm:$0xff] %v1916_v29  ;;  %v1920_v31 = vld [vmem:[%s10594_s28 + $0x15f0] sm:$0xff] }
  0xc5   : > { %1919 = vst [vmem:[%s10599_s29 + $0xaf0] sm:$0xff] %v1918_v30  ;;  %v1922_v32 = vld [vmem:[%s10594_s28 + $0x1600] sm:$0xff]  ;;  %v1924_v33 = vld [vmem:[%s10594_s28 + $0x1610] sm:$0xff]  ;;  %1921 = vst [vmem:[%s10599_s29 + $0xaf8] sm:$0xff] %v1920_v31 }
  0xc6   : > { %1923 = vst [vmem:[%s10599_s29 + $0xb00] sm:$0xff] %v1922_v32  ;;  %1925 = vst [vmem:[%s10599_s29 + $0xb08] sm:$0xff] %v1924_v33  ;;  %v1926_v34 = vld [vmem:[%s10594_s28 + $0x1620] sm:$0xff]  ;;  %v1928_v35 = vld [vmem:[%s10594_s28 + $0x1630] sm:$0xff] }
  0xc7   : > { %v1930_v36 = vld [vmem:[%s10594_s28 + $0x1640] sm:$0xff]  ;;  %1927 = vst [vmem:[%s10599_s29 + $0xb10] sm:$0xff] %v1926_v34  ;;  %1929 = vst [vmem:[%s10599_s29 + $0xb18] sm:$0xff] %v1928_v35  ;;  %v1932_v37 = vld [vmem:[%s10594_s28 + $0x1650] sm:$0xff] }
  0xc8   : > { %1931 = vst [vmem:[%s10599_s29 + $0xb20] sm:$0xff] %v1930_v36  ;;  %v1934_v38 = vld [vmem:[%s10594_s28 + $0x1660] sm:$0xff]  ;;  %v1936_v39 = vld [vmem:[%s10594_s28 + $0x1670] sm:$0xff]  ;;  %1933 = vst [vmem:[%s10599_s29 + $0xb28] sm:$0xff] %v1932_v37 }
  0xc9   : > { %1935 = vst [vmem:[%s10599_s29 + $0xb30] sm:$0xff] %v1934_v38  ;;  %1937 = vst [vmem:[%s10599_s29 + $0xb38] sm:$0xff] %v1936_v39  ;;  %v1938_v40 = vld [vmem:[%s10594_s28 + $0x1680] sm:$0xff]  ;;  %v1940_v41 = vld [vmem:[%s10594_s28 + $0x1690] sm:$0xff] }
  0xca   : > { %v1942_v42 = vld [vmem:[%s10594_s28 + $0x16a0] sm:$0xff]  ;;  %1939 = vst [vmem:[%s10599_s29 + $0xb40] sm:$0xff] %v1938_v40  ;;  %1941 = vst [vmem:[%s10599_s29 + $0xb48] sm:$0xff] %v1940_v41  ;;  %v1944_v43 = vld [vmem:[%s10594_s28 + $0x16b0] sm:$0xff] }
  0xcb   : > { %1943 = vst [vmem:[%s10599_s29 + $0xb50] sm:$0xff] %v1942_v42  ;;  %v1946_v44 = vld [vmem:[%s10594_s28 + $0x16c0] sm:$0xff]  ;;  %v1948_v45 = vld [vmem:[%s10594_s28 + $0x16d0] sm:$0xff]  ;;  %1945 = vst [vmem:[%s10599_s29 + $0xb58] sm:$0xff] %v1944_v43 }
  0xcc   : > { %1947 = vst [vmem:[%s10599_s29 + $0xb60] sm:$0xff] %v1946_v44  ;;  %1949 = vst [vmem:[%s10599_s29 + $0xb68] sm:$0xff] %v1948_v45  ;;  %v1950_v46 = vld [vmem:[%s10594_s28 + $0x16e0] sm:$0xff]  ;;  %v1952_v47 = vld [vmem:[%s10594_s28 + $0x16f0] sm:$0xff] }
  0xcd   : > { %v1954_v48 = vld [vmem:[%s10594_s28 + $0x1700] sm:$0xff]  ;;  %1951 = vst [vmem:[%s10599_s29 + $0xb70] sm:$0xff] %v1950_v46  ;;  %1953 = vst [vmem:[%s10599_s29 + $0xb78] sm:$0xff] %v1952_v47  ;;  %v1956_v49 = vld [vmem:[%s10594_s28 + $0x1710] sm:$0xff] }
  0xce   : > { %1955 = vst [vmem:[%s10599_s29 + $0xb80] sm:$0xff] %v1954_v48  ;;  %v1958_v50 = vld [vmem:[%s10594_s28 + $0x1720] sm:$0xff]  ;;  %v1960_v51 = vld [vmem:[%s10594_s28 + $0x1730] sm:$0xff]  ;;  %1957 = vst [vmem:[%s10599_s29 + $0xb88] sm:$0xff] %v1956_v49 }
  0xcf   : > { %1959 = vst [vmem:[%s10599_s29 + $0xb90] sm:$0xff] %v1958_v50  ;;  %1961 = vst [vmem:[%s10599_s29 + $0xb98] sm:$0xff] %v1960_v51  ;;  %v1962_v52 = vld [vmem:[%s10594_s28 + $0x1740] sm:$0xff]  ;;  %v1964_v53 = vld [vmem:[%s10594_s28 + $0x1750] sm:$0xff] }
  0xd0   : > { %v1966_v54 = vld [vmem:[%s10594_s28 + $0x1760] sm:$0xff]  ;;  %1963 = vst [vmem:[%s10599_s29 + $0xba0] sm:$0xff] %v1962_v52  ;;  %1965 = vst [vmem:[%s10599_s29 + $0xba8] sm:$0xff] %v1964_v53  ;;  %v1968_v55 = vld [vmem:[%s10594_s28 + $0x1770] sm:$0xff] }
  0xd1   : > { %1967 = vst [vmem:[%s10599_s29 + $0xbb0] sm:$0xff] %v1966_v54  ;;  %v1970_v56 = vld [vmem:[%s10594_s28 + $0x1780] sm:$0xff]  ;;  %v1972_v57 = vld [vmem:[%s10594_s28 + $0x1790] sm:$0xff]  ;;  %1969 = vst [vmem:[%s10599_s29 + $0xbb8] sm:$0xff] %v1968_v55 }
  0xd2   : > { %1971 = vst [vmem:[%s10599_s29 + $0xbc0] sm:$0xff] %v1970_v56  ;;  %1973 = vst [vmem:[%s10599_s29 + $0xbc8] sm:$0xff] %v1972_v57  ;;  %v1974_v58 = vld [vmem:[%s10594_s28 + $0x17a0] sm:$0xff]  ;;  %v1976_v59 = vld [vmem:[%s10594_s28 + $0x17b0] sm:$0xff] }
  0xd3   : > { %v1978_v60 = vld [vmem:[%s10594_s28 + $0x17c0] sm:$0xff]  ;;  %1975 = vst [vmem:[%s10599_s29 + $0xbd0] sm:$0xff] %v1974_v58  ;;  %1977 = vst [vmem:[%s10599_s29 + $0xbd8] sm:$0xff] %v1976_v59  ;;  %v1980_v61 = vld [vmem:[%s10594_s28 + $0x17d0] sm:$0xff] }
  0xd4   : > { %1979 = vst [vmem:[%s10599_s29 + $0xbe0] sm:$0xff] %v1978_v60  ;;  %v1982_v62 = vld [vmem:[%s10594_s28 + $0x17e0] sm:$0xff]  ;;  %v1984_v63 = vld [vmem:[%s10594_s28 + $0x17f0] sm:$0xff]  ;;  %1981 = vst [vmem:[%s10599_s29 + $0xbe8] sm:$0xff] %v1980_v61 }
  0xd5   : > { %1983 = vst [vmem:[%s10599_s29 + $0xbf0] sm:$0xff] %v1982_v62  ;;  %1985 = vst [vmem:[%s10599_s29 + $0xbf8] sm:$0xff] %v1984_v63  ;;  %v1986_v0 = vld [vmem:[%s10594_s28 + $0x1800] sm:$0xff]  ;;  %v1988_v1 = vld [vmem:[%s10594_s28 + $0x1810] sm:$0xff] }
  0xd6   : > { %v1990_v2 = vld [vmem:[%s10594_s28 + $0x1820] sm:$0xff]  ;;  %1987 = vst [vmem:[%s10599_s29 + $0xc00] sm:$0xff] %v1986_v0  ;;  %1989 = vst [vmem:[%s10599_s29 + $0xc08] sm:$0xff] %v1988_v1  ;;  %v1992_v3 = vld [vmem:[%s10594_s28 + $0x1830] sm:$0xff] }
  0xd7   : > { %1991 = vst [vmem:[%s10599_s29 + $0xc10] sm:$0xff] %v1990_v2  ;;  %v1994_v4 = vld [vmem:[%s10594_s28 + $0x1840] sm:$0xff]  ;;  %v1996_v5 = vld [vmem:[%s10594_s28 + $0x1850] sm:$0xff]  ;;  %1993 = vst [vmem:[%s10599_s29 + $0xc18] sm:$0xff] %v1992_v3 }
  0xd8   : > { %1995 = vst [vmem:[%s10599_s29 + $0xc20] sm:$0xff] %v1994_v4  ;;  %1997 = vst [vmem:[%s10599_s29 + $0xc28] sm:$0xff] %v1996_v5  ;;  %v1998_v6 = vld [vmem:[%s10594_s28 + $0x1860] sm:$0xff]  ;;  %v2000_v7 = vld [vmem:[%s10594_s28 + $0x1870] sm:$0xff] }
  0xd9   : > { %v2002_v8 = vld [vmem:[%s10594_s28 + $0x1880] sm:$0xff]  ;;  %1999 = vst [vmem:[%s10599_s29 + $0xc30] sm:$0xff] %v1998_v6  ;;  %2001 = vst [vmem:[%s10599_s29 + $0xc38] sm:$0xff] %v2000_v7  ;;  %v2004_v9 = vld [vmem:[%s10594_s28 + $0x1890] sm:$0xff] }
  0xda   : > { %2003 = vst [vmem:[%s10599_s29 + $0xc40] sm:$0xff] %v2002_v8  ;;  %v2006_v10 = vld [vmem:[%s10594_s28 + $0x18a0] sm:$0xff]  ;;  %v2008_v11 = vld [vmem:[%s10594_s28 + $0x18b0] sm:$0xff]  ;;  %2005 = vst [vmem:[%s10599_s29 + $0xc48] sm:$0xff] %v2004_v9 }
  0xdb   : > { %2007 = vst [vmem:[%s10599_s29 + $0xc50] sm:$0xff] %v2006_v10  ;;  %2009 = vst [vmem:[%s10599_s29 + $0xc58] sm:$0xff] %v2008_v11  ;;  %v2010_v12 = vld [vmem:[%s10594_s28 + $0x18c0] sm:$0xff]  ;;  %v2012_v13 = vld [vmem:[%s10594_s28 + $0x18d0] sm:$0xff] }
  0xdc   : > { %v2014_v14 = vld [vmem:[%s10594_s28 + $0x18e0] sm:$0xff]  ;;  %2011 = vst [vmem:[%s10599_s29 + $0xc60] sm:$0xff] %v2010_v12  ;;  %2013 = vst [vmem:[%s10599_s29 + $0xc68] sm:$0xff] %v2012_v13  ;;  %v2016_v15 = vld [vmem:[%s10594_s28 + $0x18f0] sm:$0xff] }
  0xdd   : > { %2015 = vst [vmem:[%s10599_s29 + $0xc70] sm:$0xff] %v2014_v14  ;;  %v2018_v16 = vld [vmem:[%s10594_s28 + $0x1900] sm:$0xff]  ;;  %v2020_v17 = vld [vmem:[%s10594_s28 + $0x1910] sm:$0xff]  ;;  %2017 = vst [vmem:[%s10599_s29 + $0xc78] sm:$0xff] %v2016_v15 }
  0xde   : > { %2019 = vst [vmem:[%s10599_s29 + $0xc80] sm:$0xff] %v2018_v16  ;;  %2021 = vst [vmem:[%s10599_s29 + $0xc88] sm:$0xff] %v2020_v17  ;;  %v2022_v18 = vld [vmem:[%s10594_s28 + $0x1920] sm:$0xff]  ;;  %v2024_v19 = vld [vmem:[%s10594_s28 + $0x1930] sm:$0xff] }
  0xdf   : > { %v2026_v20 = vld [vmem:[%s10594_s28 + $0x1940] sm:$0xff]  ;;  %2023 = vst [vmem:[%s10599_s29 + $0xc90] sm:$0xff] %v2022_v18  ;;  %2025 = vst [vmem:[%s10599_s29 + $0xc98] sm:$0xff] %v2024_v19  ;;  %v2028_v21 = vld [vmem:[%s10594_s28 + $0x1950] sm:$0xff] }
  0xe0   : > { %2027 = vst [vmem:[%s10599_s29 + $0xca0] sm:$0xff] %v2026_v20  ;;  %v2030_v22 = vld [vmem:[%s10594_s28 + $0x1960] sm:$0xff]  ;;  %v2032_v23 = vld [vmem:[%s10594_s28 + $0x1970] sm:$0xff]  ;;  %2029 = vst [vmem:[%s10599_s29 + $0xca8] sm:$0xff] %v2028_v21 }
  0xe1   : > { %2031 = vst [vmem:[%s10599_s29 + $0xcb0] sm:$0xff] %v2030_v22  ;;  %2033 = vst [vmem:[%s10599_s29 + $0xcb8] sm:$0xff] %v2032_v23  ;;  %v2034_v24 = vld [vmem:[%s10594_s28 + $0x1980] sm:$0xff]  ;;  %v2036_v25 = vld [vmem:[%s10594_s28 + $0x1990] sm:$0xff] }
  0xe2   : > { %v2038_v26 = vld [vmem:[%s10594_s28 + $0x19a0] sm:$0xff]  ;;  %2035 = vst [vmem:[%s10599_s29 + $0xcc0] sm:$0xff] %v2034_v24  ;;  %2037 = vst [vmem:[%s10599_s29 + $0xcc8] sm:$0xff] %v2036_v25  ;;  %v2040_v27 = vld [vmem:[%s10594_s28 + $0x19b0] sm:$0xff] }
  0xe3   : > { %2039 = vst [vmem:[%s10599_s29 + $0xcd0] sm:$0xff] %v2038_v26  ;;  %v2042_v28 = vld [vmem:[%s10594_s28 + $0x19c0] sm:$0xff]  ;;  %v2044_v29 = vld [vmem:[%s10594_s28 + $0x19d0] sm:$0xff]  ;;  %2041 = vst [vmem:[%s10599_s29 + $0xcd8] sm:$0xff] %v2040_v27 }
  0xe4   : > { %2043 = vst [vmem:[%s10599_s29 + $0xce0] sm:$0xff] %v2042_v28  ;;  %2045 = vst [vmem:[%s10599_s29 + $0xce8] sm:$0xff] %v2044_v29  ;;  %v2046_v30 = vld [vmem:[%s10594_s28 + $0x19e0] sm:$0xff]  ;;  %v2048_v31 = vld [vmem:[%s10594_s28 + $0x19f0] sm:$0xff] }
  0xe5   : > { %v2050_v32 = vld [vmem:[%s10594_s28 + $0x1a00] sm:$0xff]  ;;  %2047 = vst [vmem:[%s10599_s29 + $0xcf0] sm:$0xff] %v2046_v30  ;;  %2049 = vst [vmem:[%s10599_s29 + $0xcf8] sm:$0xff] %v2048_v31  ;;  %v2052_v33 = vld [vmem:[%s10594_s28 + $0x1a10] sm:$0xff] }
  0xe6   : > { %2051 = vst [vmem:[%s10599_s29 + $0xd00] sm:$0xff] %v2050_v32  ;;  %v2054_v34 = vld [vmem:[%s10594_s28 + $0x1a20] sm:$0xff]  ;;  %v2056_v35 = vld [vmem:[%s10594_s28 + $0x1a30] sm:$0xff]  ;;  %2053 = vst [vmem:[%s10599_s29 + $0xd08] sm:$0xff] %v2052_v33 }
  0xe7   : > { %2055 = vst [vmem:[%s10599_s29 + $0xd10] sm:$0xff] %v2054_v34  ;;  %2057 = vst [vmem:[%s10599_s29 + $0xd18] sm:$0xff] %v2056_v35  ;;  %v2058_v36 = vld [vmem:[%s10594_s28 + $0x1a40] sm:$0xff]  ;;  %v2060_v37 = vld [vmem:[%s10594_s28 + $0x1a50] sm:$0xff] }
  0xe8   : > { %v2062_v38 = vld [vmem:[%s10594_s28 + $0x1a60] sm:$0xff]  ;;  %2059 = vst [vmem:[%s10599_s29 + $0xd20] sm:$0xff] %v2058_v36  ;;  %2061 = vst [vmem:[%s10599_s29 + $0xd28] sm:$0xff] %v2060_v37  ;;  %v2064_v39 = vld [vmem:[%s10594_s28 + $0x1a70] sm:$0xff] }
  0xe9   : > { %2063 = vst [vmem:[%s10599_s29 + $0xd30] sm:$0xff] %v2062_v38  ;;  %v2066_v40 = vld [vmem:[%s10594_s28 + $0x1a80] sm:$0xff]  ;;  %v2068_v41 = vld [vmem:[%s10594_s28 + $0x1a90] sm:$0xff]  ;;  %2065 = vst [vmem:[%s10599_s29 + $0xd38] sm:$0xff] %v2064_v39 }
  0xea   : > { %2067 = vst [vmem:[%s10599_s29 + $0xd40] sm:$0xff] %v2066_v40  ;;  %2069 = vst [vmem:[%s10599_s29 + $0xd48] sm:$0xff] %v2068_v41  ;;  %v2070_v42 = vld [vmem:[%s10594_s28 + $0x1aa0] sm:$0xff]  ;;  %v2072_v43 = vld [vmem:[%s10594_s28 + $0x1ab0] sm:$0xff] }
  0xeb   : > { %v2074_v44 = vld [vmem:[%s10594_s28 + $0x1ac0] sm:$0xff]  ;;  %2071 = vst [vmem:[%s10599_s29 + $0xd50] sm:$0xff] %v2070_v42  ;;  %2073 = vst [vmem:[%s10599_s29 + $0xd58] sm:$0xff] %v2072_v43  ;;  %v2076_v45 = vld [vmem:[%s10594_s28 + $0x1ad0] sm:$0xff] }
  0xec   : > { %2075 = vst [vmem:[%s10599_s29 + $0xd60] sm:$0xff] %v2074_v44  ;;  %v2078_v46 = vld [vmem:[%s10594_s28 + $0x1ae0] sm:$0xff]  ;;  %v2080_v47 = vld [vmem:[%s10594_s28 + $0x1af0] sm:$0xff]  ;;  %2077 = vst [vmem:[%s10599_s29 + $0xd68] sm:$0xff] %v2076_v45 }
  0xed   : > { %2079 = vst [vmem:[%s10599_s29 + $0xd70] sm:$0xff] %v2078_v46  ;;  %2081 = vst [vmem:[%s10599_s29 + $0xd78] sm:$0xff] %v2080_v47  ;;  %v2082_v48 = vld [vmem:[%s10594_s28 + $0x1b00] sm:$0xff]  ;;  %v2084_v49 = vld [vmem:[%s10594_s28 + $0x1b10] sm:$0xff] }
  0xee   : > { %v2086_v50 = vld [vmem:[%s10594_s28 + $0x1b20] sm:$0xff]  ;;  %2083 = vst [vmem:[%s10599_s29 + $0xd80] sm:$0xff] %v2082_v48  ;;  %2085 = vst [vmem:[%s10599_s29 + $0xd88] sm:$0xff] %v2084_v49  ;;  %v2088_v51 = vld [vmem:[%s10594_s28 + $0x1b30] sm:$0xff] }
  0xef   : > { %2087 = vst [vmem:[%s10599_s29 + $0xd90] sm:$0xff] %v2086_v50  ;;  %v2090_v52 = vld [vmem:[%s10594_s28 + $0x1b40] sm:$0xff]  ;;  %v2092_v53 = vld [vmem:[%s10594_s28 + $0x1b50] sm:$0xff]  ;;  %2089 = vst [vmem:[%s10599_s29 + $0xd98] sm:$0xff] %v2088_v51 }
  0xf0   : > { %2091 = vst [vmem:[%s10599_s29 + $0xda0] sm:$0xff] %v2090_v52  ;;  %2093 = vst [vmem:[%s10599_s29 + $0xda8] sm:$0xff] %v2092_v53  ;;  %v2094_v54 = vld [vmem:[%s10594_s28 + $0x1b60] sm:$0xff]  ;;  %v2096_v55 = vld [vmem:[%s10594_s28 + $0x1b70] sm:$0xff] }
  0xf1   : > { %v2098_v56 = vld [vmem:[%s10594_s28 + $0x1b80] sm:$0xff]  ;;  %2095 = vst [vmem:[%s10599_s29 + $0xdb0] sm:$0xff] %v2094_v54  ;;  %2097 = vst [vmem:[%s10599_s29 + $0xdb8] sm:$0xff] %v2096_v55  ;;  %v2100_v57 = vld [vmem:[%s10594_s28 + $0x1b90] sm:$0xff] }
  0xf2   : > { %2099 = vst [vmem:[%s10599_s29 + $0xdc0] sm:$0xff] %v2098_v56  ;;  %v2102_v58 = vld [vmem:[%s10594_s28 + $0x1ba0] sm:$0xff]  ;;  %v2104_v59 = vld [vmem:[%s10594_s28 + $0x1bb0] sm:$0xff]  ;;  %2101 = vst [vmem:[%s10599_s29 + $0xdc8] sm:$0xff] %v2100_v57 }
  0xf3   : > { %2103 = vst [vmem:[%s10599_s29 + $0xdd0] sm:$0xff] %v2102_v58  ;;  %2105 = vst [vmem:[%s10599_s29 + $0xdd8] sm:$0xff] %v2104_v59  ;;  %v2106_v60 = vld [vmem:[%s10594_s28 + $0x1bc0] sm:$0xff]  ;;  %v2108_v61 = vld [vmem:[%s10594_s28 + $0x1bd0] sm:$0xff] }
  0xf4   : > { %v2110_v62 = vld [vmem:[%s10594_s28 + $0x1be0] sm:$0xff]  ;;  %2107 = vst [vmem:[%s10599_s29 + $0xde0] sm:$0xff] %v2106_v60  ;;  %2109 = vst [vmem:[%s10599_s29 + $0xde8] sm:$0xff] %v2108_v61  ;;  %v2112_v63 = vld [vmem:[%s10594_s28 + $0x1bf0] sm:$0xff] }
  0xf5   : > { %2111 = vst [vmem:[%s10599_s29 + $0xdf0] sm:$0xff] %v2110_v62  ;;  %v2114_v0 = vld [vmem:[%s10594_s28 + $0x1c00] sm:$0xff]  ;;  %v2116_v1 = vld [vmem:[%s10594_s28 + $0x1c10] sm:$0xff]  ;;  %2113 = vst [vmem:[%s10599_s29 + $0xdf8] sm:$0xff] %v2112_v63 }
  0xf6   : > { %2115 = vst [vmem:[%s10599_s29 + $0xe00] sm:$0xff] %v2114_v0  ;;  %2117 = vst [vmem:[%s10599_s29 + $0xe08] sm:$0xff] %v2116_v1  ;;  %v2118_v2 = vld [vmem:[%s10594_s28 + $0x1c20] sm:$0xff]  ;;  %v2120_v3 = vld [vmem:[%s10594_s28 + $0x1c30] sm:$0xff] }
  0xf7   : > { %v2122_v4 = vld [vmem:[%s10594_s28 + $0x1c40] sm:$0xff]  ;;  %2119 = vst [vmem:[%s10599_s29 + $0xe10] sm:$0xff] %v2118_v2  ;;  %2121 = vst [vmem:[%s10599_s29 + $0xe18] sm:$0xff] %v2120_v3  ;;  %v2124_v5 = vld [vmem:[%s10594_s28 + $0x1c50] sm:$0xff] }
  0xf8   : > { %2123 = vst [vmem:[%s10599_s29 + $0xe20] sm:$0xff] %v2122_v4  ;;  %v2126_v6 = vld [vmem:[%s10594_s28 + $0x1c60] sm:$0xff]  ;;  %v2128_v7 = vld [vmem:[%s10594_s28 + $0x1c70] sm:$0xff]  ;;  %2125 = vst [vmem:[%s10599_s29 + $0xe28] sm:$0xff] %v2124_v5 }
  0xf9   : > { %2127 = vst [vmem:[%s10599_s29 + $0xe30] sm:$0xff] %v2126_v6  ;;  %2129 = vst [vmem:[%s10599_s29 + $0xe38] sm:$0xff] %v2128_v7  ;;  %v2130_v8 = vld [vmem:[%s10594_s28 + $0x1c80] sm:$0xff]  ;;  %v2132_v9 = vld [vmem:[%s10594_s28 + $0x1c90] sm:$0xff] }
  0xfa   : > { %v2134_v10 = vld [vmem:[%s10594_s28 + $0x1ca0] sm:$0xff]  ;;  %2131 = vst [vmem:[%s10599_s29 + $0xe40] sm:$0xff] %v2130_v8  ;;  %2133 = vst [vmem:[%s10599_s29 + $0xe48] sm:$0xff] %v2132_v9  ;;  %v2136_v11 = vld [vmem:[%s10594_s28 + $0x1cb0] sm:$0xff] }
  0xfb   : > { %2135 = vst [vmem:[%s10599_s29 + $0xe50] sm:$0xff] %v2134_v10  ;;  %v2138_v12 = vld [vmem:[%s10594_s28 + $0x1cc0] sm:$0xff]  ;;  %v2140_v13 = vld [vmem:[%s10594_s28 + $0x1cd0] sm:$0xff]  ;;  %2137 = vst [vmem:[%s10599_s29 + $0xe58] sm:$0xff] %v2136_v11 }
  0xfc   : > { %2139 = vst [vmem:[%s10599_s29 + $0xe60] sm:$0xff] %v2138_v12  ;;  %2141 = vst [vmem:[%s10599_s29 + $0xe68] sm:$0xff] %v2140_v13  ;;  %v2142_v14 = vld [vmem:[%s10594_s28 + $0x1ce0] sm:$0xff]  ;;  %v2144_v15 = vld [vmem:[%s10594_s28 + $0x1cf0] sm:$0xff] }
  0xfd   : > { %v2146_v16 = vld [vmem:[%s10594_s28 + $0x1d00] sm:$0xff]  ;;  %2143 = vst [vmem:[%s10599_s29 + $0xe70] sm:$0xff] %v2142_v14  ;;  %2145 = vst [vmem:[%s10599_s29 + $0xe78] sm:$0xff] %v2144_v15  ;;  %v2148_v17 = vld [vmem:[%s10594_s28 + $0x1d10] sm:$0xff] }
  0xfe   : > { %2147 = vst [vmem:[%s10599_s29 + $0xe80] sm:$0xff] %v2146_v16  ;;  %v2150_v18 = vld [vmem:[%s10594_s28 + $0x1d20] sm:$0xff]  ;;  %v2152_v19 = vld [vmem:[%s10594_s28 + $0x1d30] sm:$0xff]  ;;  %2149 = vst [vmem:[%s10599_s29 + $0xe88] sm:$0xff] %v2148_v17 }
  0xff   : > { %2151 = vst [vmem:[%s10599_s29 + $0xe90] sm:$0xff] %v2150_v18  ;;  %2153 = vst [vmem:[%s10599_s29 + $0xe98] sm:$0xff] %v2152_v19  ;;  %v2154_v20 = vld [vmem:[%s10594_s28 + $0x1d40] sm:$0xff]  ;;  %v2156_v21 = vld [vmem:[%s10594_s28 + $0x1d50] sm:$0xff] }
 0x100   : > { %v2158_v22 = vld [vmem:[%s10594_s28 + $0x1d60] sm:$0xff]  ;;  %2155 = vst [vmem:[%s10599_s29 + $0xea0] sm:$0xff] %v2154_v20  ;;  %2157 = vst [vmem:[%s10599_s29 + $0xea8] sm:$0xff] %v2156_v21  ;;  %v2160_v23 = vld [vmem:[%s10594_s28 + $0x1d70] sm:$0xff] }
 0x101   : > { %2159 = vst [vmem:[%s10599_s29 + $0xeb0] sm:$0xff] %v2158_v22  ;;  %v2162_v24 = vld [vmem:[%s10594_s28 + $0x1d80] sm:$0xff]  ;;  %v2164_v25 = vld [vmem:[%s10594_s28 + $0x1d90] sm:$0xff]  ;;  %2161 = vst [vmem:[%s10599_s29 + $0xeb8] sm:$0xff] %v2160_v23 }
 0x102   : > { %2163 = vst [vmem:[%s10599_s29 + $0xec0] sm:$0xff] %v2162_v24  ;;  %2165 = vst [vmem:[%s10599_s29 + $0xec8] sm:$0xff] %v2164_v25  ;;  %v2166_v26 = vld [vmem:[%s10594_s28 + $0x1da0] sm:$0xff]  ;;  %v2168_v27 = vld [vmem:[%s10594_s28 + $0x1db0] sm:$0xff] }
 0x103   : > { %v2170_v28 = vld [vmem:[%s10594_s28 + $0x1dc0] sm:$0xff]  ;;  %2167 = vst [vmem:[%s10599_s29 + $0xed0] sm:$0xff] %v2166_v26  ;;  %2169 = vst [vmem:[%s10599_s29 + $0xed8] sm:$0xff] %v2168_v27  ;;  %v2172_v29 = vld [vmem:[%s10594_s28 + $0x1dd0] sm:$0xff] }
 0x104   : > { %2171 = vst [vmem:[%s10599_s29 + $0xee0] sm:$0xff] %v2170_v28  ;;  %v2174_v30 = vld [vmem:[%s10594_s28 + $0x1de0] sm:$0xff]  ;;  %v2176_v31 = vld [vmem:[%s10594_s28 + $0x1df0] sm:$0xff]  ;;  %2173 = vst [vmem:[%s10599_s29 + $0xee8] sm:$0xff] %v2172_v29 }
 0x105   : > { %2175 = vst [vmem:[%s10599_s29 + $0xef0] sm:$0xff] %v2174_v30  ;;  %2177 = vst [vmem:[%s10599_s29 + $0xef8] sm:$0xff] %v2176_v31  ;;  %v2178_v32 = vld [vmem:[%s10594_s28 + $0x1e00] sm:$0xff]  ;;  %v2180_v33 = vld [vmem:[%s10594_s28 + $0x1e10] sm:$0xff] }
 0x106   : > { %v2182_v34 = vld [vmem:[%s10594_s28 + $0x1e20] sm:$0xff]  ;;  %2179 = vst [vmem:[%s10599_s29 + $0xf00] sm:$0xff] %v2178_v32  ;;  %2181 = vst [vmem:[%s10599_s29 + $0xf08] sm:$0xff] %v2180_v33  ;;  %v2184_v35 = vld [vmem:[%s10594_s28 + $0x1e30] sm:$0xff] }
 0x107   : > { %2183 = vst [vmem:[%s10599_s29 + $0xf10] sm:$0xff] %v2182_v34  ;;  %v2186_v36 = vld [vmem:[%s10594_s28 + $0x1e40] sm:$0xff]  ;;  %v2188_v37 = vld [vmem:[%s10594_s28 + $0x1e50] sm:$0xff]  ;;  %2185 = vst [vmem:[%s10599_s29 + $0xf18] sm:$0xff] %v2184_v35 }
 0x108   : > { %2187 = vst [vmem:[%s10599_s29 + $0xf20] sm:$0xff] %v2186_v36  ;;  %2189 = vst [vmem:[%s10599_s29 + $0xf28] sm:$0xff] %v2188_v37  ;;  %v2190_v38 = vld [vmem:[%s10594_s28 + $0x1e60] sm:$0xff]  ;;  %v2192_v39 = vld [vmem:[%s10594_s28 + $0x1e70] sm:$0xff] }
 0x109   : > { %v2194_v40 = vld [vmem:[%s10594_s28 + $0x1e80] sm:$0xff]  ;;  %2191 = vst [vmem:[%s10599_s29 + $0xf30] sm:$0xff] %v2190_v38  ;;  %2193 = vst [vmem:[%s10599_s29 + $0xf38] sm:$0xff] %v2192_v39  ;;  %v2196_v41 = vld [vmem:[%s10594_s28 + $0x1e90] sm:$0xff] }
 0x10a   : > { %2195 = vst [vmem:[%s10599_s29 + $0xf40] sm:$0xff] %v2194_v40  ;;  %v2198_v42 = vld [vmem:[%s10594_s28 + $0x1ea0] sm:$0xff]  ;;  %v2200_v43 = vld [vmem:[%s10594_s28 + $0x1eb0] sm:$0xff]  ;;  %2197 = vst [vmem:[%s10599_s29 + $0xf48] sm:$0xff] %v2196_v41 }
 0x10b   : > { %2199 = vst [vmem:[%s10599_s29 + $0xf50] sm:$0xff] %v2198_v42  ;;  %2201 = vst [vmem:[%s10599_s29 + $0xf58] sm:$0xff] %v2200_v43  ;;  %v2202_v44 = vld [vmem:[%s10594_s28 + $0x1ec0] sm:$0xff]  ;;  %v2204_v45 = vld [vmem:[%s10594_s28 + $0x1ed0] sm:$0xff] }
 0x10c   : > { %v2206_v46 = vld [vmem:[%s10594_s28 + $0x1ee0] sm:$0xff]  ;;  %2203 = vst [vmem:[%s10599_s29 + $0xf60] sm:$0xff] %v2202_v44  ;;  %2205 = vst [vmem:[%s10599_s29 + $0xf68] sm:$0xff] %v2204_v45  ;;  %v2208_v47 = vld [vmem:[%s10594_s28 + $0x1ef0] sm:$0xff] }
 0x10d   : > { %2207 = vst [vmem:[%s10599_s29 + $0xf70] sm:$0xff] %v2206_v46  ;;  %v2210_v48 = vld [vmem:[%s10594_s28 + $0x1f00] sm:$0xff]  ;;  %v2212_v49 = vld [vmem:[%s10594_s28 + $0x1f10] sm:$0xff]  ;;  %2209 = vst [vmem:[%s10599_s29 + $0xf78] sm:$0xff] %v2208_v47 }
 0x10e   : > { %2211 = vst [vmem:[%s10599_s29 + $0xf80] sm:$0xff] %v2210_v48  ;;  %2213 = vst [vmem:[%s10599_s29 + $0xf88] sm:$0xff] %v2212_v49  ;;  %v2214_v50 = vld [vmem:[%s10594_s28 + $0x1f20] sm:$0xff]  ;;  %v2216_v51 = vld [vmem:[%s10594_s28 + $0x1f30] sm:$0xff] }
 0x10f   : > { %v2218_v52 = vld [vmem:[%s10594_s28 + $0x1f40] sm:$0xff]  ;;  %2215 = vst [vmem:[%s10599_s29 + $0xf90] sm:$0xff] %v2214_v50  ;;  %2217 = vst [vmem:[%s10599_s29 + $0xf98] sm:$0xff] %v2216_v51  ;;  %v2220_v53 = vld [vmem:[%s10594_s28 + $0x1f50] sm:$0xff] }
 0x110   : > { %2219 = vst [vmem:[%s10599_s29 + $0xfa0] sm:$0xff] %v2218_v52  ;;  %v2222_v54 = vld [vmem:[%s10594_s28 + $0x1f60] sm:$0xff]  ;;  %v2224_v55 = vld [vmem:[%s10594_s28 + $0x1f70] sm:$0xff]  ;;  %2221 = vst [vmem:[%s10599_s29 + $0xfa8] sm:$0xff] %v2220_v53 }
 0x111   : > { %2223 = vst [vmem:[%s10599_s29 + $0xfb0] sm:$0xff] %v2222_v54  ;;  %2225 = vst [vmem:[%s10599_s29 + $0xfb8] sm:$0xff] %v2224_v55  ;;  %v2226_v56 = vld [vmem:[%s10594_s28 + $0x1f80] sm:$0xff]  ;;  %v2228_v57 = vld [vmem:[%s10594_s28 + $0x1f90] sm:$0xff] }
 0x112   : > { %v2230_v58 = vld [vmem:[%s10594_s28 + $0x1fa0] sm:$0xff]  ;;  %2227 = vst [vmem:[%s10599_s29 + $0xfc0] sm:$0xff] %v2226_v56  ;;  %2229 = vst [vmem:[%s10599_s29 + $0xfc8] sm:$0xff] %v2228_v57  ;;  %v2232_v59 = vld [vmem:[%s10594_s28 + $0x1fb0] sm:$0xff] }
 0x113   : > { %2231 = vst [vmem:[%s10599_s29 + $0xfd0] sm:$0xff] %v2230_v58  ;;  %v2234_v60 = vld [vmem:[%s10594_s28 + $0x1fc0] sm:$0xff]  ;;  %v2236_v61 = vld [vmem:[%s10594_s28 + $0x1fd0] sm:$0xff]  ;;  %2233 = vst [vmem:[%s10599_s29 + $0xfd8] sm:$0xff] %v2232_v59 }
 0x114   : > { %2235 = vst [vmem:[%s10599_s29 + $0xfe0] sm:$0xff] %v2234_v60  ;;  %2237 = vst [vmem:[%s10599_s29 + $0xfe8] sm:$0xff] %v2236_v61  ;;  %v2238_v62 = vld [vmem:[%s10594_s28 + $0x1fe0] sm:$0xff]  ;;  %v2240_v63 = vld [vmem:[%s10594_s28 + $0x1ff0] sm:$0xff] }
 0x115   : > { %2239 = vst [vmem:[%s10599_s29 + $0xff0] sm:$0xff] %v2238_v62  ;;  %2241 = vst [vmem:[%s10599_s29 + $0xff8] sm:$0xff] %v2240_v63 }
 0x116 PF: > { %p8961_p8 = scmp.ge.s32.totalorder %s10524_s16, 1  ;;  %p4339_p9 = scmp.lt.s32.totalorder %s10524_s16, 3 }
 0x118   : > { %p4340_p10 = pnand %p8961_p8, %p4339_p9 }
 0x119   : > { %s4346_s30 = sand.u32 (!%p4340_p10), 1, %s10508_s12   ;;  %v11628_v0 = vld [vmem:[%s12504_s0] sm:$0xff] (!%p4340_p10) }
 0x11a   : > { %4343 = sbr.rel (%p4340_p10) target bundleno = 1042 (0x412), region = 80  ;;  %v11633_v1 = vld [vmem:[%s12504_s0 + $0x80] sm:$0xff] (!%p4340_p10)  ;;  %s8962_s10 = sshll.u32 (!%p4340_p10), %s4346_s30, 12 }
 0x11b   : > { %v11638_v2 = vld [vmem:[%s12504_s0 + $0x40] sm:$0xff] (!%p4340_p10)  ;;  %v8966_v3 = vcombine.low (!%p4340_p10), %v11628_v0, %v11633_v1  ;;  %v8967_v4 = vcombine.high (!%p4340_p10), %v11628_v0, %v11633_v1  ;;  %s11655_s19 = scalar_lea.vmem (!%p4340_p10), [#allocation2], %s8962_s10  ;;  %s8963_s27 = sshll.u32 (!%p4340_p10), %s4346_s30, 5 }
 0x11c   : > { %v11649_v5 = vld [vmem:[%s12504_s0 + $0xc0] sm:$0xff] (!%p4340_p10)  ;;  %v9724_v12 = vld [vmem:[%s11655_s19 + $0x14] ss:$8 sps:$4 sm:$0xff] (!%p4340_p10)   ;;  %v9728_v14 = vld [vmem:[%s11655_s19 + $0x10] ss:$8 sps:$4 sm:$0xff] (!%p4340_p10)   ;;  %s12473_s12 = scalar_lea.vmem (!%p4340_p10), [#allocation3], %s8963_s27 }
 0x11d   : > { %v8982_v6 = vcombine.low (!%p4340_p10), %v11638_v2, %v11649_v5  ;;  %v8983_v7 = vcombine.high (!%p4340_p10), %v11638_v2, %v11649_v5  ;;  %v9718_v8 = vld [vmem:[%s11655_s19 + $0x4] ss:$8 sps:$4 sm:$0xff] (!%p4340_p10)   ;;  %7883 = vmatprep.mubr.bf16.mxu1 (!%p4340_p10), %v8967_v4  ;;  %v9722_v10 = vld [vmem:[%s11655_s19] ss:$8 sps:$4 sm:$0xff] (!%p4340_p10)   ;;  %v9726_v13 = vld [vmem:[%s11655_s19 + $0x814] ss:$8 sps:$4 sm:$0xff] (!%p4340_p10)  }
 0x11e   : > { %v9720_v9 = vld [vmem:[%s11655_s19 + $0x804] ss:$8 sps:$4 sm:$0xff] (!%p4340_p10)   ;;  %7851 = vmatprep.subr.bf16.mxu1 (!%p4340_p10), %v9718_v8  ;;  %v9723_v11 = vld [vmem:[%s11655_s19 + $0x800] ss:$8 sps:$4 sm:$0xff] (!%p4340_p10)   ;;  %v9729_v15 = vld [vmem:[%s11655_s19 + $0x810] ss:$8 sps:$4 sm:$0xff] (!%p4340_p10)  }
 0x11f   : > { %8307 = vmatprep.mubr.bf16.mxu0 (!%p4340_p10), %v8983_v7  ;;  %8275 = vmatprep.subr.bf16.mxu0 (!%p4340_p10), %v9720_v9  ;;  %v9730_v16 = vld [vmem:[%s11655_s19 + $0x24] ss:$8 sps:$4 sm:$0xff] (!%p4340_p10)   ;;  %v9734_v18 = vld [vmem:[%s11655_s19 + $0x20] ss:$8 sps:$4 sm:$0xff] (!%p4340_p10)   ;;  %v9736_v20 = vld [vmem:[%s11655_s19 + $0x34] ss:$8 sps:$4 sm:$0xff] (!%p4340_p10)  }
 0x120   : > { %7852 = vmatpush1.bf16.msra.mxu1 (!%p4340_p10), %v9722_v10  ;;  %8276 = vmatpush1.bf16.msra.mxu0 (!%p4340_p10), %v9723_v11  ;;  %v9732_v17 = vld [vmem:[%s11655_s19 + $0x824] ss:$8 sps:$4 sm:$0xff] (!%p4340_p10)   ;;  %v9735_v19 = vld [vmem:[%s11655_s19 + $0x820] ss:$8 sps:$4 sm:$0xff] (!%p4340_p10)   ;;  %v9738_v21 = vld [vmem:[%s11655_s19 + $0x834] ss:$8 sps:$4 sm:$0xff] (!%p4340_p10)  }
 0x121   : > { %7853 = vmatprep.subr.bf16.mxu1 %v9724_v12  ;;  %8277 = vmatprep.subr.bf16.mxu0 %v9726_v13  ;;  %v9740_v22 = vld [vmem:[%s11655_s19 + $0x30] ss:$8 sps:$4 sm:$0xff]   ;;  %v9742_v24 = vld [vmem:[%s11655_s19 + $0x44] ss:$8 sps:$4 sm:$0xff]   ;;  %v9746_v26 = vld [vmem:[%s11655_s19 + $0x40] ss:$8 sps:$4 sm:$0xff]  }
 0x122   : > { %v9741_v23 = vld [vmem:[%s11655_s19 + $0x830] ss:$8 sps:$4 sm:$0xff]   ;;  %v9744_v25 = vld [vmem:[%s11655_s19 + $0x844] ss:$8 sps:$4 sm:$0xff]   ;;  %v9747_v27 = vld [vmem:[%s11655_s19 + $0x840] ss:$8 sps:$4 sm:$0xff]  }
 0x123   : > { %v9748_v28 = vld [vmem:[%s11655_s19 + $0x54] ss:$8 sps:$4 sm:$0xff]   ;;  %v9752_v30 = vld [vmem:[%s11655_s19 + $0x50] ss:$8 sps:$4 sm:$0xff]   ;;  %v9754_v32 = vld [vmem:[%s11655_s19 + $0x64] ss:$8 sps:$4 sm:$0xff]  }
 0x124   : > { %7854 = vmatpush1.bf16.msra.mxu1 %v9728_v14  ;;  %8278 = vmatpush1.bf16.msra.mxu0 %v9729_v15  ;;  %v9750_v29 = vld [vmem:[%s11655_s19 + $0x854] ss:$8 sps:$4 sm:$0xff]   ;;  %v9753_v31 = vld [vmem:[%s11655_s19 + $0x850] ss:$8 sps:$4 sm:$0xff]   ;;  %v9756_v33 = vld [vmem:[%s11655_s19 + $0x864] ss:$8 sps:$4 sm:$0xff]  }
 0x125   : > { %7855 = vmatprep.subr.bf16.mxu1 %v9730_v16  ;;  %8279 = vmatprep.subr.bf16.mxu0 %v9732_v17  ;;  %v9758_v34 = vld [vmem:[%s11655_s19 + $0x60] ss:$8 sps:$4 sm:$0xff]   ;;  %v9760_v36 = vld [vmem:[%s11655_s19 + $0x74] ss:$8 sps:$4 sm:$0xff]   ;;  %v9764_v38 = vld [vmem:[%s11655_s19 + $0x70] ss:$8 sps:$4 sm:$0xff]  }
 0x126   : > { %v9759_v35 = vld [vmem:[%s11655_s19 + $0x860] ss:$8 sps:$4 sm:$0xff]   ;;  %v9762_v37 = vld [vmem:[%s11655_s19 + $0x874] ss:$8 sps:$4 sm:$0xff]   ;;  %v9765_v39 = vld [vmem:[%s11655_s19 + $0x870] ss:$8 sps:$4 sm:$0xff]  }
 0x127   : > { %v9766_v40 = vld [vmem:[%s11655_s19 + $0x84] ss:$8 sps:$4 sm:$0xff]   ;;  %v9770_v42 = vld [vmem:[%s11655_s19 + $0x80] ss:$8 sps:$4 sm:$0xff]   ;;  %v9772_v44 = vld [vmem:[%s11655_s19 + $0x94] ss:$8 sps:$4 sm:$0xff]  }
 0x128   : > { %7856 = vmatpush1.bf16.msra.mxu1 %v9734_v18  ;;  %8280 = vmatpush1.bf16.msra.mxu0 %v9735_v19  ;;  %v9768_v41 = vld [vmem:[%s11655_s19 + $0x884] ss:$8 sps:$4 sm:$0xff]   ;;  %v9771_v43 = vld [vmem:[%s11655_s19 + $0x880] ss:$8 sps:$4 sm:$0xff]   ;;  %v9774_v45 = vld [vmem:[%s11655_s19 + $0x894] ss:$8 sps:$4 sm:$0xff]  }
 0x129   : > { %7857 = vmatprep.subr.bf16.mxu1 %v9736_v20  ;;  %8281 = vmatprep.subr.bf16.mxu0 %v9738_v21  ;;  %v9776_v46 = vld [vmem:[%s11655_s19 + $0x90] ss:$8 sps:$4 sm:$0xff]   ;;  %v9778_v48 = vld [vmem:[%s11655_s19 + $0xa4] ss:$8 sps:$4 sm:$0xff]   ;;  %v9782_v50 = vld [vmem:[%s11655_s19 + $0xa0] ss:$8 sps:$4 sm:$0xff]  }
 0x12a   : > { %v9777_v47 = vld [vmem:[%s11655_s19 + $0x890] ss:$8 sps:$4 sm:$0xff]   ;;  %v9780_v49 = vld [vmem:[%s11655_s19 + $0x8a4] ss:$8 sps:$4 sm:$0xff]   ;;  %v9783_v51 = vld [vmem:[%s11655_s19 + $0x8a0] ss:$8 sps:$4 sm:$0xff]  }
 0x12b   : > { %v9784_v52 = vld [vmem:[%s11655_s19 + $0xb4] ss:$8 sps:$4 sm:$0xff]   ;;  %v9788_v54 = vld [vmem:[%s11655_s19 + $0xb0] ss:$8 sps:$4 sm:$0xff]   ;;  %v9790_v56 = vld [vmem:[%s11655_s19 + $0xc4] ss:$8 sps:$4 sm:$0xff]  }
 0x12c   : > { %7858 = vmatpush1.bf16.msra.mxu1 %v9740_v22  ;;  %8282 = vmatpush1.bf16.msra.mxu0 %v9741_v23  ;;  %v9786_v53 = vld [vmem:[%s11655_s19 + $0x8b4] ss:$8 sps:$4 sm:$0xff]   ;;  %v9789_v55 = vld [vmem:[%s11655_s19 + $0x8b0] ss:$8 sps:$4 sm:$0xff]   ;;  %v9792_v57 = vld [vmem:[%s11655_s19 + $0x8c4] ss:$8 sps:$4 sm:$0xff]  }
 0x12d   : > { %7859 = vmatprep.subr.bf16.mxu1 %v9742_v24  ;;  %8283 = vmatprep.subr.bf16.mxu0 %v9744_v25  ;;  %v9794_v58 = vld [vmem:[%s11655_s19 + $0xc0] ss:$8 sps:$4 sm:$0xff]   ;;  %v9796_v60 = vld [vmem:[%s11655_s19 + $0xd4] ss:$8 sps:$4 sm:$0xff]   ;;  %v9800_v62 = vld [vmem:[%s11655_s19 + $0xd0] ss:$8 sps:$4 sm:$0xff]  }
 0x12e   : > { %v9795_v59 = vld [vmem:[%s11655_s19 + $0x8c0] ss:$8 sps:$4 sm:$0xff]   ;;  %v9798_v61 = vld [vmem:[%s11655_s19 + $0x8d4] ss:$8 sps:$4 sm:$0xff]   ;;  %v9801_v63 = vld [vmem:[%s11655_s19 + $0x8d0] ss:$8 sps:$4 sm:$0xff]  }
 0x12f   : > { %v9802_v4 = vld [vmem:[%s11655_s19 + $0xe4] ss:$8 sps:$4 sm:$0xff]   ;;  %v9806_v8 = vld [vmem:[%s11655_s19 + $0xe0] ss:$8 sps:$4 sm:$0xff]   ;;  %v9808_v10 = vld [vmem:[%s11655_s19 + $0xf4] ss:$8 sps:$4 sm:$0xff]  }
 0x130   : > { %7860 = vmatpush1.bf16.msra.mxu1 %v9746_v26  ;;  %8284 = vmatpush1.bf16.msra.mxu0 %v9747_v27  ;;  %v9804_v7 = vld [vmem:[%s11655_s19 + $0x8e4] ss:$8 sps:$4 sm:$0xff]   ;;  %v9807_v9 = vld [vmem:[%s11655_s19 + $0x8e0] ss:$8 sps:$4 sm:$0xff]   ;;  %v9810_v11 = vld [vmem:[%s11655_s19 + $0x8f4] ss:$8 sps:$4 sm:$0xff]  }
 0x131   : > { %7861 = vmatprep.subr.bf16.mxu1 %v9748_v28  ;;  %8285 = vmatprep.subr.bf16.mxu0 %v9750_v29  ;;  %v9812_v12 = vld [vmem:[%s11655_s19 + $0xf0] ss:$8 sps:$4 sm:$0xff]   ;;  %v9816_v14 = vld [vmem:[%s11655_s19 + $0x104] ss:$8 sps:$4 sm:$0xff]   ;;  %v9814_v20 = vld [vmem:[%s11655_s19 + $0x100] ss:$8 sps:$4 sm:$0xff]  }
 0x132   : > { %v9813_v13 = vld [vmem:[%s11655_s19 + $0x8f0] ss:$8 sps:$4 sm:$0xff]   ;;  %v9819_v15 = vld [vmem:[%s11655_s19 + $0x904] ss:$8 sps:$4 sm:$0xff]   ;;  %v9817_v21 = vld [vmem:[%s11655_s19 + $0x900] ss:$8 sps:$4 sm:$0xff]  }
 0x133   : > { %v4427_v16 = vld [vmem:[%s12504_s0 + $0x100] sm:$0xff]  ;;  %v9822_v22 = vld [vmem:[%s11655_s19 + $0x114] ss:$8 sps:$4 sm:$0xff]   ;;  %v9820_v26 = vld [vmem:[%s11655_s19 + $0x110] ss:$8 sps:$4 sm:$0xff]   ;;  %s9557_s30 = sshll.u32 (%p10581_p6), %s10516_s14, 3 }
 0x134   : > { %7862 = vmatpush1.bf16.msra.mxu1 %v9752_v30  ;;  %8286 = vmatpush1.bf16.msra.mxu0 %v9753_v31  ;;  %v4443_v17 = vld [vmem:[%s12504_s0 + $0x180] sm:$0xff]  ;;  %v9825_v23 = vld [vmem:[%s11655_s19 + $0x914] ss:$8 sps:$4 sm:$0xff]   ;;  %v9823_v27 = vld [vmem:[%s11655_s19 + $0x910] ss:$8 sps:$4 sm:$0xff]   ;;  %s8804_s4 = scalar_lea.vmem (%p10581_p6), %s12507_s3, %s9557_s30 }
 0x135   : > { %7863 = vmatprep.subr.bf16.mxu1 %v9754_v32  ;;  %8287 = vmatprep.subr.bf16.mxu0 %v9756_v33  ;;  %v4435_v18 = vld [vmem:[%s12504_s0 + $0x140] sm:$0xff]  ;;  %v8999_v24 = vcombine.high %v4427_v16, %v4443_v17  ;;  %v9834_v5 = vld [vmem:[%s11655_s19 + $0x134] ss:$8 sps:$4 sm:$0xff]   ;;  %v9832_v30 = vld [vmem:[%s11655_s19 + $0x130] ss:$8 sps:$4 sm:$0xff]  }
 0x136   : > { %v4451_v19 = vld [vmem:[%s12504_s0 + $0x1c0] sm:$0xff]  ;;  %v9835_v31 = vld [vmem:[%s11655_s19 + $0x930] ss:$8 sps:$4 sm:$0xff]  }
 0x137   : > { %v9015_v25 = vcombine.high %v4435_v18, %v4451_v19  ;;  %v9828_v28 = vld [vmem:[%s11655_s19 + $0x124] ss:$8 sps:$4 sm:$0xff]   ;;  %v9826_v0 = vld [vmem:[%s11655_s19 + $0x120] ss:$8 sps:$4 sm:$0xff]   ;;  %v9014_v2 = vcombine.low %v4435_v18, %v4451_v19  ;;  %v9892_v18 = vld [vmem:[%s11655_s19 + $0x1d0] ss:$8 sps:$4 sm:$0xff]  }
 0x138   : > { %7864 = vmatpush1.bf16.msra.mxu1 %v9758_v34  ;;  %8288 = vmatpush1.bf16.msra.mxu0 %v9759_v35  ;;  %v9831_v29 = vld [vmem:[%s11655_s19 + $0x924] ss:$8 sps:$4 sm:$0xff]   ;;  %v9829_v1 = vld [vmem:[%s11655_s19 + $0x920] ss:$8 sps:$4 sm:$0xff]   ;;  %v9895_v19 = vld [vmem:[%s11655_s19 + $0x9d0] ss:$8 sps:$4 sm:$0xff]  }
 0x139   : > { %7865 = vmatprep.subr.bf16.mxu1 %v9760_v36  ;;  %8289 = vmatprep.subr.bf16.mxu0 %v9762_v37  ;;  %v9840_v32 = vld [vmem:[%s11655_s19 + $0x144] ss:$8 sps:$4 sm:$0xff]   ;;  %v9838_v34 = vld [vmem:[%s11655_s19 + $0x140] ss:$8 sps:$4 sm:$0xff]   ;;  %v9846_v36 = vld [vmem:[%s11655_s19 + $0x154] ss:$8 sps:$4 sm:$0xff]  }
 0x13a   : > { %v9843_v33 = vld [vmem:[%s11655_s19 + $0x944] ss:$8 sps:$4 sm:$0xff]   ;;  %v9841_v35 = vld [vmem:[%s11655_s19 + $0x940] ss:$8 sps:$4 sm:$0xff]   ;;  %v9849_v37 = vld [vmem:[%s11655_s19 + $0x954] ss:$8 sps:$4 sm:$0xff]  }
 0x13c   : > { %7866 = vmatpush1.bf16.msra.mxu1 %v9764_v38  ;;  %8290 = vmatpush1.bf16.msra.mxu0 %v9765_v39  ;;  %v9844_v38 = vld [vmem:[%s11655_s19 + $0x150] ss:$8 sps:$4 sm:$0xff]  }
 0x13d   : > { %7867 = vmatprep.subr.bf16.mxu1 %v9766_v40  ;;  %8291 = vmatprep.subr.bf16.mxu0 %v9768_v41  ;;  %v9847_v39 = vld [vmem:[%s11655_s19 + $0x950] ss:$8 sps:$4 sm:$0xff]   ;;  %v9852_v40 = vld [vmem:[%s11655_s19 + $0x164] ss:$8 sps:$4 sm:$0xff]  }
 0x13e   : > { %v9855_v41 = vld [vmem:[%s11655_s19 + $0x964] ss:$8 sps:$4 sm:$0xff]  }
 0x140   : > { %7868 = vmatpush1.bf16.msra.mxu1 %v9770_v42  ;;  %8292 = vmatpush1.bf16.msra.mxu0 %v9771_v43  ;;  %v11768_v42 = vld [vmem:[%s12504_s0 + $0x8] sm:$0xff] }
 0x141   : > { %7869 = vmatprep.subr.bf16.mxu1 %v9772_v44  ;;  %8293 = vmatprep.subr.bf16.mxu0 %v9774_v45  ;;  %v11773_v43 = vld [vmem:[%s12504_s0 + $0x88] sm:$0xff] }
 0x142   : > { %v9850_v44 = vld [vmem:[%s11655_s19 + $0x160] ss:$8 sps:$4 sm:$0xff]   ;;  %v8969_v45 = vcombine.high %v11768_v42, %v11773_v43 }
 0x144   : > { %7870 = vmatpush1.bf16.msra.mxu1 %v9776_v46  ;;  %8294 = vmatpush1.bf16.msra.mxu0 %v9777_v47  ;;  %v9853_v46 = vld [vmem:[%s11655_s19 + $0x960] ss:$8 sps:$4 sm:$0xff]  }
 0x145   : > { %7871 = vmatprep.subr.bf16.mxu1 %v9778_v48  ;;  %8295 = vmatprep.subr.bf16.mxu0 %v9780_v49  ;;  %v11782_v47 = vld [vmem:[%s12504_s0 + $0x48] sm:$0xff]  ;;  %v9858_v49 = vld [vmem:[%s11655_s19 + $0x174] ss:$8 sps:$4 sm:$0xff]  }
 0x146   : > { %v11787_v48 = vld [vmem:[%s12504_s0 + $0xc8] sm:$0xff] }
 0x148   : > { %7872 = vmatpush1.bf16.msra.mxu1 %v9782_v50  ;;  %8296 = vmatpush1.bf16.msra.mxu0 %v9783_v51  ;;  %v8985_v50 = vcombine.high %v11782_v47, %v11787_v48  ;;  %v9861_v51 = vld [vmem:[%s11655_s19 + $0x974] ss:$8 sps:$4 sm:$0xff]  }
 0x149   : > { %7873 = vmatprep.subr.bf16.mxu1 %v9784_v52  ;;  %8297 = vmatprep.subr.bf16.mxu0 %v9786_v53  ;;  %v9856_v52 = vld [vmem:[%s11655_s19 + $0x170] ss:$8 sps:$4 sm:$0xff]  }
 0x14a   : > { %v9859_v53 = vld [vmem:[%s11655_s19 + $0x970] ss:$8 sps:$4 sm:$0xff]  }
 0x14c   : > { %7874 = vmatpush1.bf16.msra.mxu1 %v9788_v54  ;;  %8298 = vmatpush1.bf16.msra.mxu0 %v9789_v55  ;;  %v9864_v54 = vld [vmem:[%s11655_s19 + $0x184] ss:$8 sps:$4 sm:$0xff]  }
 0x14d   : > { %7875 = vmatprep.subr.bf16.mxu1 %v9790_v56  ;;  %8299 = vmatprep.subr.bf16.mxu0 %v9792_v57  ;;  %v9867_v55 = vld [vmem:[%s11655_s19 + $0x984] ss:$8 sps:$4 sm:$0xff]   ;;  %v9862_v56 = vld [vmem:[%s11655_s19 + $0x180] ss:$8 sps:$4 sm:$0xff]  }
 0x14e   : > { %v9865_v57 = vld [vmem:[%s11655_s19 + $0x980] ss:$8 sps:$4 sm:$0xff]  }
 0x150   : > { %7876 = vmatpush1.bf16.msra.mxu1 %v9794_v58  ;;  %8300 = vmatpush1.bf16.msra.mxu0 %v9795_v59  ;;  %v9870_v58 = vld [vmem:[%s11655_s19 + $0x194] ss:$8 sps:$4 sm:$0xff]  }
 0x151   : > { %7877 = vmatprep.subr.bf16.mxu1 %v9796_v60  ;;  %8301 = vmatprep.subr.bf16.mxu0 %v9798_v61  ;;  %v9873_v59 = vld [vmem:[%s11655_s19 + $0x994] ss:$8 sps:$4 sm:$0xff]   ;;  %v9868_v60 = vld [vmem:[%s11655_s19 + $0x190] ss:$8 sps:$4 sm:$0xff]  }
 0x152   : > { %v9871_v61 = vld [vmem:[%s11655_s19 + $0x990] ss:$8 sps:$4 sm:$0xff]  }
 0x154   : > { %7878 = vmatpush1.bf16.msra.mxu1 %v9800_v62  ;;  %8302 = vmatpush1.bf16.msra.mxu0 %v9801_v63  ;;  %v9876_v62 = vld [vmem:[%s11655_s19 + $0x1a4] ss:$8 sps:$4 sm:$0xff]  }
 0x155   : > { %7879 = vmatprep.subr.bf16.mxu1 %v9802_v4  ;;  %8303 = vmatprep.subr.bf16.mxu0 %v9804_v7  ;;  %v9879_v63 = vld [vmem:[%s11655_s19 + $0x9a4] ss:$8 sps:$4 sm:$0xff]   ;;  %v9874_v4 = vld [vmem:[%s11655_s19 + $0x1a0] ss:$8 sps:$4 sm:$0xff]  }
 0x156   : > { %v9877_v7 = vld [vmem:[%s11655_s19 + $0x9a0] ss:$8 sps:$4 sm:$0xff]  }
 0x158   : > { %7880 = vmatpush1.bf16.msra.mxu1 %v9806_v8  ;;  %8304 = vmatpush1.bf16.msra.mxu0 %v9807_v9  ;;  %v9882_v8 = vld [vmem:[%s11655_s19 + $0x1b4] ss:$8 sps:$4 sm:$0xff]  }
 0x159   : > { %7881 = vmatprep.subr.bf16.mxu1 %v9808_v10  ;;  %8305 = vmatprep.subr.bf16.mxu0 %v9810_v11  ;;  %v9885_v9 = vld [vmem:[%s11655_s19 + $0x9b4] ss:$8 sps:$4 sm:$0xff]   ;;  %v9880_v10 = vld [vmem:[%s11655_s19 + $0x1b0] ss:$8 sps:$4 sm:$0xff]  }
 0x15a   : > { %v9883_v11 = vld [vmem:[%s11655_s19 + $0x9b0] ss:$8 sps:$4 sm:$0xff]  }
 0x15c   : > { %7882 = vmatpush1.bf16.msra.mxu1 %v9812_v12  ;;  %8306 = vmatpush1.bf16.msra.mxu0 %v9813_v13  ;;  %v9888_v12 = vld [vmem:[%s11655_s19 + $0x1c4] ss:$8 sps:$4 sm:$0xff]  }
 0x15d   : > { %7904 = vmatprep.subr.bf16.mxu1 %v9816_v14  ;;  %8328 = vmatprep.subr.bf16.mxu0 %v9819_v15  ;;  %v9891_v13 = vld [vmem:[%s11655_s19 + $0x9c4] ss:$8 sps:$4 sm:$0xff]   ;;  %v9886_v14 = vld [vmem:[%s11655_s19 + $0x1c0] ss:$8 sps:$4 sm:$0xff]  }
 0x15e   : > { %v9889_v15 = vld [vmem:[%s11655_s19 + $0x9c0] ss:$8 sps:$4 sm:$0xff]  }
 0x15f   : > { %7884 = vmatmul.mubr.bf16.vlgmr.msra.gmra.mrb[0].mxu1 %v8966_v3  ;;  %8308 = vmatmul.mubr.bf16.vlgmr.msra.gmra.mrb[0].mxu0 %v8982_v6  ;;  %v8998_v3 = vcombine.low %v4427_v16, %v4443_v17  ;;  %v9837_v6 = vld [vmem:[%s11655_s19 + $0x934] ss:$8 sps:$4 sm:$0xff]  }
 0x160   : > { %7905 = vmatpush1.bf16.msra.mxu1 %v9814_v20  ;;  %8329 = vmatpush1.bf16.msra.mxu0 %v9817_v21  ;;  %v9894_v16 = vld [vmem:[%s11655_s19 + $0x1d4] ss:$8 sps:$4 sm:$0xff]   ;;  %v9900_v20 = vld [vmem:[%s11655_s19 + $0x1e4] ss:$8 sps:$4 sm:$0xff]  }
 0x161   : > { %7906 = vmatprep.subr.bf16.mxu1 %v9822_v22  ;;  %8330 = vmatprep.subr.bf16.mxu0 %v9825_v23  ;;  %v9897_v17 = vld [vmem:[%s11655_s19 + $0x9d4] ss:$8 sps:$4 sm:$0xff]   ;;  %v9903_v21 = vld [vmem:[%s11655_s19 + $0x9e4] ss:$8 sps:$4 sm:$0xff]   ;;  %v9898_v22 = vld [vmem:[%s11655_s19 + $0x1e0] ss:$8 sps:$4 sm:$0xff]  }
 0x162   : > { %7893 = vmatprep.mubr.bf16.mxu1 %v8999_v24  ;;  %8317 = vmatprep.mubr.bf16.mxu0 %v9015_v25  ;;  %v9901_v23 = vld [vmem:[%s11655_s19 + $0x9e0] ss:$8 sps:$4 sm:$0xff]   ;;  %v9906_v24 = vld [vmem:[%s11655_s19 + $0x1f4] ss:$8 sps:$4 sm:$0xff]  }
 0x163   : > { %v9909_v25 = vld [vmem:[%s11655_s19 + $0x9f4] ss:$8 sps:$4 sm:$0xff]  }
 0x164   : > { %7907 = vmatpush1.bf16.msra.mxu1 %v9820_v26  ;;  %8331 = vmatpush1.bf16.msra.mxu0 %v9823_v27  ;;  %v9904_v26 = vld [vmem:[%s11655_s19 + $0x1f0] ss:$8 sps:$4 sm:$0xff]  }
 0x165   : > { %7908 = vmatprep.subr.bf16.mxu1 %v9828_v28  ;;  %8332 = vmatprep.subr.bf16.mxu0 %v9831_v29  ;;  %v9907_v27 = vld [vmem:[%s11655_s19 + $0x9f0] ss:$8 sps:$4 sm:$0xff]   ;;  %v9912_v28 = vld [vmem:[%s11655_s19 + $0x204] ss:$8 sps:$4 sm:$0xff]  }
 0x166   : > { %v9915_v29 = vld [vmem:[%s11655_s19 + $0xa04] ss:$8 sps:$4 sm:$0xff]  }
 0x167   : > { %7894 = vmatmul.mubr.bf16.gmra.mrb[4].mxu1 %v8998_v3  ;;  %8318 = vmatmul.mubr.bf16.gmra.mrb[4].mxu0 %v9014_v2  ;;  %v4428_v3 = vld [vmem:[%s12504_s0 + $0x108] sm:$0xff] }
 0x168   : > { %7909 = vmatpush1.bf16.msra.mxu1 %v9826_v0  ;;  %8333 = vmatpush1.bf16.msra.mxu0 %v9829_v1  ;;  %v9910_v0 = vld [vmem:[%s11655_s19 + $0x200] ss:$8 sps:$4 sm:$0xff]  }
 0x169   : > { %7910 = vmatprep.subr.bf16.mxu1 %v9834_v5  ;;  %8334 = vmatprep.subr.bf16.mxu0 %v9837_v6  ;;  %v9913_v1 = vld [vmem:[%s11655_s19 + $0xa00] ss:$8 sps:$4 sm:$0xff]   ;;  %v8968_v5 = vcombine.low %v11768_v42, %v11773_v43  ;;  %v8984_v6 = vcombine.low %v11782_v47, %v11787_v48  ;;  %v11858_v42 = vld [vmem:[%s12504_s0 + $0x10] sm:$0xff] }
 0x16a   : > { %7936 = vmatprep.mubr.bf16.mxu1 %v8969_v45  ;;  %8360 = vmatprep.mubr.bf16.mxu0 %v8985_v50  ;;  %v4444_v2 = vld [vmem:[%s12504_s0 + $0x188] sm:$0xff]  ;;  %v11863_v43 = vld [vmem:[%s12504_s0 + $0x90] sm:$0xff] }
 0x16b   : > { %v11873_v47 = vld [vmem:[%s12504_s0 + $0xd0] sm:$0xff]  ;;  %v8971_v50 = vcombine.high %v11858_v42, %v11863_v43 }
 0x16c   : > { %7911 = vmatpush1.bf16.msra.mxu1 %v9832_v30  ;;  %8335 = vmatpush1.bf16.msra.mxu0 %v9835_v31  ;;  %v4436_v30 = vld [vmem:[%s12504_s0 + $0x148] sm:$0xff]  ;;  %v9930_v48 = vld [vmem:[%s11655_s19 + $0x234] ss:$8 sps:$4 sm:$0xff]  }
 0x16d   : > { %7912 = vmatprep.subr.bf16.mxu1 %v9840_v32  ;;  %8336 = vmatprep.subr.bf16.mxu0 %v9843_v33  ;;  %v4452_v31 = vld [vmem:[%s12504_s0 + $0x1c8] sm:$0xff]  ;;  %v9918_v32 = vld [vmem:[%s11655_s19 + $0x214] ss:$8 sps:$4 sm:$0xff]  }
 0x16e   : > { %v9921_v33 = vld [vmem:[%s11655_s19 + $0xa14] ss:$8 sps:$4 sm:$0xff]   ;;  %v9016_v45 = vcombine.low %v4436_v30, %v4452_v31 }
 0x170   : > { %7913 = vmatpush1.bf16.msra.mxu1 %v9838_v34  ;;  %8337 = vmatpush1.bf16.msra.mxu0 %v9841_v35  ;;  %v9001_v34 = vcombine.high %v4428_v3, %v4444_v2  ;;  %v9017_v35 = vcombine.high %v4436_v30, %v4452_v31  ;;  %v9996_v30 = vld [vmem:[%s11655_s19 + $0x2e4] ss:$8 sps:$4 sm:$0xff]  }
 0x171   : > { %7914 = vmatprep.subr.bf16.mxu1 %v9846_v36  ;;  %8338 = vmatprep.subr.bf16.mxu0 %v9849_v37  ;;  %v9916_v36 = vld [vmem:[%s11655_s19 + $0x210] ss:$8 sps:$4 sm:$0xff]   ;;  %v9999_v31 = vld [vmem:[%s11655_s19 + $0xae4] ss:$8 sps:$4 sm:$0xff]  }
 0x172   : > { %v9919_v37 = vld [vmem:[%s11655_s19 + $0xa10] ss:$8 sps:$4 sm:$0xff]  }
 0x174   : > { %7915 = vmatpush1.bf16.msra.mxu1 %v9844_v38  ;;  %8339 = vmatpush1.bf16.msra.mxu0 %v9847_v39  ;;  %v9924_v38 = vld [vmem:[%s11655_s19 + $0x224] ss:$8 sps:$4 sm:$0xff]  }
 0x175   : > { %7916 = vmatprep.subr.bf16.mxu1 %v9852_v40  ;;  %8340 = vmatprep.subr.bf16.mxu0 %v9855_v41  ;;  %v9927_v39 = vld [vmem:[%s11655_s19 + $0xa24] ss:$8 sps:$4 sm:$0xff]   ;;  %v9922_v40 = vld [vmem:[%s11655_s19 + $0x220] ss:$8 sps:$4 sm:$0xff]  }
 0x176   : > { %v9925_v41 = vld [vmem:[%s11655_s19 + $0xa20] ss:$8 sps:$4 sm:$0xff]  }
 0x178   : > { %7917 = vmatpush1.bf16.msra.mxu1 %v9850_v44  ;;  %8341 = vmatpush1.bf16.msra.mxu0 %v9853_v46  ;;  %v9000_v44 = vcombine.low %v4428_v3, %v4444_v2  ;;  %v11868_v46 = vld [vmem:[%s12504_s0 + $0x50] sm:$0xff] }
 0x179   : > { %7918 = vmatprep.subr.bf16.mxu1 %v9858_v49  ;;  %8342 = vmatprep.subr.bf16.mxu0 %v9861_v51  ;;  %v9933_v49 = vld [vmem:[%s11655_s19 + $0xa34] ss:$8 sps:$4 sm:$0xff]   ;;  %v8987_v51 = vcombine.high %v11868_v46, %v11873_v47 }
 0x17a   : > { %v9990_v3 = vld [vmem:[%s11655_s19 + $0x2d4] ss:$8 sps:$4 sm:$0xff]  }
 0x17b   : > { %v9993_v2 = vld [vmem:[%s11655_s19 + $0xad4] ss:$8 sps:$4 sm:$0xff]  }
 0x17c   : > { %7919 = vmatpush1.bf16.msra.mxu1 %v9856_v52  ;;  %8343 = vmatpush1.bf16.msra.mxu0 %v9859_v53  ;;  %v9928_v52 = vld [vmem:[%s11655_s19 + $0x230] ss:$8 sps:$4 sm:$0xff]  }
 0x17d   : > { %7920 = vmatprep.subr.bf16.mxu1 %v9864_v54  ;;  %8344 = vmatprep.subr.bf16.mxu0 %v9867_v55  ;;  %v9931_v53 = vld [vmem:[%s11655_s19 + $0xa30] ss:$8 sps:$4 sm:$0xff]   ;;  %v9936_v54 = vld [vmem:[%s11655_s19 + $0x244] ss:$8 sps:$4 sm:$0xff]  }
 0x17e   : > { %v9939_v55 = vld [vmem:[%s11655_s19 + $0xa44] ss:$8 sps:$4 sm:$0xff]  }
 0x180   : > { %7921 = vmatpush1.bf16.msra.mxu1 %v9862_v56  ;;  %8345 = vmatpush1.bf16.msra.mxu0 %v9865_v57  ;;  %v9934_v56 = vld [vmem:[%s11655_s19 + $0x240] ss:$8 sps:$4 sm:$0xff]  }
 0x181   : > { %7922 = vmatprep.subr.bf16.mxu1 %v9870_v58  ;;  %8346 = vmatprep.subr.bf16.mxu0 %v9873_v59  ;;  %v9937_v57 = vld [vmem:[%s11655_s19 + $0xa40] ss:$8 sps:$4 sm:$0xff]   ;;  %v9942_v58 = vld [vmem:[%s11655_s19 + $0x254] ss:$8 sps:$4 sm:$0xff]  }
 0x182   : > { %v9945_v59 = vld [vmem:[%s11655_s19 + $0xa54] ss:$8 sps:$4 sm:$0xff]  }
 0x184   : > { %7923 = vmatpush1.bf16.msra.mxu1 %v9868_v60  ;;  %8347 = vmatpush1.bf16.msra.mxu0 %v9871_v61  ;;  %v9940_v60 = vld [vmem:[%s11655_s19 + $0x250] ss:$8 sps:$4 sm:$0xff]  }
 0x185   : > { %7924 = vmatprep.subr.bf16.mxu1 %v9876_v62  ;;  %8348 = vmatprep.subr.bf16.mxu0 %v9879_v63  ;;  %v9943_v61 = vld [vmem:[%s11655_s19 + $0xa50] ss:$8 sps:$4 sm:$0xff]   ;;  %v9948_v62 = vld [vmem:[%s11655_s19 + $0x264] ss:$8 sps:$4 sm:$0xff]  }
 0x186   : > { %v9951_v63 = vld [vmem:[%s11655_s19 + $0xa64] ss:$8 sps:$4 sm:$0xff]  }
 0x188   : > { %7925 = vmatpush1.bf16.msra.mxu1 %v9874_v4  ;;  %8349 = vmatpush1.bf16.msra.mxu0 %v9877_v7  ;;  %v9946_v4 = vld [vmem:[%s11655_s19 + $0x260] ss:$8 sps:$4 sm:$0xff]  }
 0x189   : > { %7926 = vmatprep.subr.bf16.mxu1 %v9882_v8  ;;  %8350 = vmatprep.subr.bf16.mxu0 %v9885_v9  ;;  %v9949_v7 = vld [vmem:[%s11655_s19 + $0xa60] ss:$8 sps:$4 sm:$0xff]   ;;  %v9954_v8 = vld [vmem:[%s11655_s19 + $0x274] ss:$8 sps:$4 sm:$0xff]  }
 0x18a   : > { %v9957_v9 = vld [vmem:[%s11655_s19 + $0xa74] ss:$8 sps:$4 sm:$0xff]  }
 0x18c   : > { %7927 = vmatpush1.bf16.msra.mxu1 %v9880_v10  ;;  %8351 = vmatpush1.bf16.msra.mxu0 %v9883_v11  ;;  %v9952_v10 = vld [vmem:[%s11655_s19 + $0x270] ss:$8 sps:$4 sm:$0xff]  }
 0x18d   : > { %7928 = vmatprep.subr.bf16.mxu1 %v9888_v12  ;;  %8352 = vmatprep.subr.bf16.mxu0 %v9891_v13  ;;  %v9955_v11 = vld [vmem:[%s11655_s19 + $0xa70] ss:$8 sps:$4 sm:$0xff]   ;;  %v9960_v12 = vld [vmem:[%s11655_s19 + $0x284] ss:$8 sps:$4 sm:$0xff]  }
 0x18e   : > { %v9963_v13 = vld [vmem:[%s11655_s19 + $0xa84] ss:$8 sps:$4 sm:$0xff]  }
 0x190   : > { %7929 = vmatpush1.bf16.msra.mxu1 %v9886_v14  ;;  %8353 = vmatpush1.bf16.msra.mxu0 %v9889_v15  ;;  %v9958_v14 = vld [vmem:[%s11655_s19 + $0x280] ss:$8 sps:$4 sm:$0xff]  }
 0x191   : > { %7930 = vmatprep.subr.bf16.mxu1 %v9894_v16  ;;  %8354 = vmatprep.subr.bf16.mxu0 %v9897_v17  ;;  %v9961_v15 = vld [vmem:[%s11655_s19 + $0xa80] ss:$8 sps:$4 sm:$0xff]   ;;  %v9966_v16 = vld [vmem:[%s11655_s19 + $0x294] ss:$8 sps:$4 sm:$0xff]  }
 0x192   : > { %v9969_v17 = vld [vmem:[%s11655_s19 + $0xa94] ss:$8 sps:$4 sm:$0xff]  }
 0x194   : > { %7931 = vmatpush1.bf16.msra.mxu1 %v9892_v18  ;;  %8355 = vmatpush1.bf16.msra.mxu0 %v9895_v19  ;;  %v9964_v18 = vld [vmem:[%s11655_s19 + $0x290] ss:$8 sps:$4 sm:$0xff]  }
 0x195   : > { %7932 = vmatprep.subr.bf16.mxu1 %v9900_v20  ;;  %8356 = vmatprep.subr.bf16.mxu0 %v9903_v21  ;;  %v9967_v19 = vld [vmem:[%s11655_s19 + $0xa90] ss:$8 sps:$4 sm:$0xff]   ;;  %v9972_v20 = vld [vmem:[%s11655_s19 + $0x2a4] ss:$8 sps:$4 sm:$0xff]  }
 0x196   : > { %v9975_v21 = vld [vmem:[%s11655_s19 + $0xaa4] ss:$8 sps:$4 sm:$0xff]  }
 0x198   : > { %7933 = vmatpush1.bf16.msra.mxu1 %v9898_v22  ;;  %8357 = vmatpush1.bf16.msra.mxu0 %v9901_v23  ;;  %v9970_v22 = vld [vmem:[%s11655_s19 + $0x2a0] ss:$8 sps:$4 sm:$0xff]  }
 0x199   : > { %7934 = vmatprep.subr.bf16.mxu1 %v9906_v24  ;;  %8358 = vmatprep.subr.bf16.mxu0 %v9909_v25  ;;  %v9973_v23 = vld [vmem:[%s11655_s19 + $0xaa0] ss:$8 sps:$4 sm:$0xff]   ;;  %v9978_v24 = vld [vmem:[%s11655_s19 + $0x2b4] ss:$8 sps:$4 sm:$0xff]  }
 0x19a   : > { %v9981_v25 = vld [vmem:[%s11655_s19 + $0xab4] ss:$8 sps:$4 sm:$0xff]  }
 0x19c   : > { %7935 = vmatpush1.bf16.msra.mxu1 %v9904_v26  ;;  %8359 = vmatpush1.bf16.msra.mxu0 %v9907_v27  ;;  %v9976_v26 = vld [vmem:[%s11655_s19 + $0x2b0] ss:$8 sps:$4 sm:$0xff]  }
 0x19d   : > { %7957 = vmatprep.subr.bf16.mxu1 %v9912_v28  ;;  %8381 = vmatprep.subr.bf16.mxu0 %v9915_v29  ;;  %v9979_v27 = vld [vmem:[%s11655_s19 + $0xab0] ss:$8 sps:$4 sm:$0xff]   ;;  %v9984_v28 = vld [vmem:[%s11655_s19 + $0x2c4] ss:$8 sps:$4 sm:$0xff]  }
 0x19e   : > { %v9987_v29 = vld [vmem:[%s11655_s19 + $0xac4] ss:$8 sps:$4 sm:$0xff]  }
 0x19f   : > { %7937 = vmatmul.mubr.bf16.vlgmr.msra.gmra.mrb[0].mxu1 %v8968_v5  ;;  %8361 = vmatmul.mubr.bf16.vlgmr.msra.gmra.mrb[0].mxu0 %v8984_v6  ;;  %v9988_v5 = vld [vmem:[%s11655_s19 + $0x2d0] ss:$8 sps:$4 sm:$0xff]  }
 0x1a0   : > { %7958 = vmatpush1.bf16.msra.mxu1 %v9910_v0  ;;  %8382 = vmatpush1.bf16.msra.mxu0 %v9913_v1  ;;  %v9982_v0 = vld [vmem:[%s11655_s19 + $0x2c0] ss:$8 sps:$4 sm:$0xff]   ;;  %v9991_v6 = vld [vmem:[%s11655_s19 + $0xad0] ss:$8 sps:$4 sm:$0xff]  }
 0x1a1   : > { %7959 = vmatprep.subr.bf16.mxu1 %v9918_v32  ;;  %8383 = vmatprep.subr.bf16.mxu0 %v9921_v33  ;;  %v9985_v1 = vld [vmem:[%s11655_s19 + $0xac0] ss:$8 sps:$4 sm:$0xff]  }
 0x1a2   : > { %7946 = vmatprep.mubr.bf16.mxu1 %v9001_v34  ;;  %8370 = vmatprep.mubr.bf16.mxu0 %v9017_v35  ;;  %v9994_v32 = vld [vmem:[%s11655_s19 + $0x2e0] ss:$8 sps:$4 sm:$0xff]   ;;  %v10002_v34 = vld [vmem:[%s11655_s19 + $0x2f4] ss:$8 sps:$4 sm:$0xff]  }
 0x1a3   : > { %v9997_v33 = vld [vmem:[%s11655_s19 + $0xae0] ss:$8 sps:$4 sm:$0xff]   ;;  %v10005_v35 = vld [vmem:[%s11655_s19 + $0xaf4] ss:$8 sps:$4 sm:$0xff]  }
 0x1a4   : > { %7960 = vmatpush1.bf16.msra.mxu1 %v9916_v36  ;;  %8384 = vmatpush1.bf16.msra.mxu0 %v9919_v37  ;;  %v10000_v36 = vld [vmem:[%s11655_s19 + $0x2f0] ss:$8 sps:$4 sm:$0xff]  }
 0x1a5   : > { %7961 = vmatprep.subr.bf16.mxu1 %v9924_v38  ;;  %8385 = vmatprep.subr.bf16.mxu0 %v9927_v39  ;;  %v10003_v37 = vld [vmem:[%s11655_s19 + $0xaf0] ss:$8 sps:$4 sm:$0xff]   ;;  %v10008_v38 = vld [vmem:[%s11655_s19 + $0x304] ss:$8 sps:$4 sm:$0xff]  }
 0x1a6   : > { %v10011_v39 = vld [vmem:[%s11655_s19 + $0xb04] ss:$8 sps:$4 sm:$0xff]  }
 0x1a7   : > { %7947 = vmatmul.mubr.bf16.gmra.mrb[4].mxu1 %v9000_v44  ;;  %8371 = vmatmul.mubr.bf16.gmra.mrb[4].mxu0 %v9016_v45  ;;  %v4429_v44 = vld [vmem:[%s12504_s0 + $0x110] sm:$0xff] }
 0x1a8   : > { %7962 = vmatpush1.bf16.msra.mxu1 %v9922_v40  ;;  %8386 = vmatpush1.bf16.msra.mxu0 %v9925_v41  ;;  %v10006_v40 = vld [vmem:[%s11655_s19 + $0x300] ss:$8 sps:$4 sm:$0xff]   ;;  %v4445_v45 = vld [vmem:[%s12504_s0 + $0x190] sm:$0xff] }
 0x1a9   : > { %7963 = vmatprep.subr.bf16.mxu1 %v9930_v48  ;;  %8387 = vmatprep.subr.bf16.mxu0 %v9933_v49  ;;  %v10009_v41 = vld [vmem:[%s11655_s19 + $0xb00] ss:$8 sps:$4 sm:$0xff]   ;;  %v8970_v48 = vcombine.low %v11858_v42, %v11863_v43  ;;  %v8986_v49 = vcombine.low %v11868_v46, %v11873_v47  ;;  %v10017_v42 = vld [vmem:[%s11655_s19 + $0xb14] ss:$8 sps:$4 sm:$0xff]   ;;  %v9003_v43 = vcombine.high %v4429_v44, %v4445_v45  ;;  %v10012_v47 = vld [vmem:[%s11655_s19 + $0x310] ss:$8 sps:$4 sm:$0xff]  }
 0x1aa   : > { %7989 = vmatprep.mubr.bf16.mxu1 %v8971_v50  ;;  %8413 = vmatprep.mubr.bf16.mxu0 %v8987_v51  ;;  %v4437_v50 = vld [vmem:[%s12504_s0 + $0x150] sm:$0xff] }
 0x1ab   : > { %v4453_v51 = vld [vmem:[%s12504_s0 + $0x1d0] sm:$0xff] }
 0x1ac   : > { %7964 = vmatpush1.bf16.msra.mxu1 %v9928_v52  ;;  %8388 = vmatpush1.bf16.msra.mxu0 %v9931_v53  ;;  %v10014_v52 = vld [vmem:[%s11655_s19 + $0x314] ss:$8 sps:$4 sm:$0xff]   ;;  %v9019_v46 = vcombine.high %v4437_v50, %v4453_v51  ;;  %v10015_v53 = vld [vmem:[%s11655_s19 + $0xb10] ss:$8 sps:$4 sm:$0xff]  }
 0x1ad   : > { %7965 = vmatprep.subr.bf16.mxu1 %v9936_v54  ;;  %8389 = vmatprep.subr.bf16.mxu0 %v9939_v55  ;;  %v10020_v54 = vld [vmem:[%s11655_s19 + $0x324] ss:$8 sps:$4 sm:$0xff]  }
 0x1ae   : > { %v10023_v55 = vld [vmem:[%s11655_s19 + $0xb24] ss:$8 sps:$4 sm:$0xff]  }
 0x1b0   : > { %7966 = vmatpush1.bf16.msra.mxu1 %v9934_v56  ;;  %8390 = vmatpush1.bf16.msra.mxu0 %v9937_v57  ;;  %v10018_v56 = vld [vmem:[%s11655_s19 + $0x320] ss:$8 sps:$4 sm:$0xff]  }
 0x1b1   : > { %7967 = vmatprep.subr.bf16.mxu1 %v9942_v58  ;;  %8391 = vmatprep.subr.bf16.mxu0 %v9945_v59  ;;  %v10021_v57 = vld [vmem:[%s11655_s19 + $0xb20] ss:$8 sps:$4 sm:$0xff]   ;;  %v11962_v58 = vld [vmem:[%s12504_s0 + $0x18] sm:$0xff] }
 0x1b2   : > { %v11967_v59 = vld [vmem:[%s12504_s0 + $0x98] sm:$0xff] }
 0x1b4   : > { %7968 = vmatpush1.bf16.msra.mxu1 %v9940_v60  ;;  %8392 = vmatpush1.bf16.msra.mxu0 %v9943_v61  ;;  %v9002_v60 = vcombine.low %v4429_v44, %v4445_v45  ;;  %v9018_v61 = vcombine.low %v4437_v50, %v4453_v51  ;;  %v10086_v44 = vld [vmem:[%s11655_s19 + $0x3d4] ss:$8 sps:$4 sm:$0xff]   ;;  %v10092_v50 = vld [vmem:[%s11655_s19 + $0x3e4] ss:$8 sps:$4 sm:$0xff]  }
 0x1b5   : > { %7969 = vmatprep.subr.bf16.mxu1 %v9948_v62  ;;  %8393 = vmatprep.subr.bf16.mxu0 %v9951_v63  ;;  %v11972_v62 = vld [vmem:[%s12504_s0 + $0x58] sm:$0xff]  ;;  %v10095_v51 = vld [vmem:[%s11655_s19 + $0xbe4] ss:$8 sps:$4 sm:$0xff]  }
 0x1b6   : > { %v11977_v63 = vld [vmem:[%s12504_s0 + $0xd8] sm:$0xff] }
 0x1b7   : > { %v10089_v45 = vld [vmem:[%s11655_s19 + $0xbd4] ss:$8 sps:$4 sm:$0xff]  }
 0x1b8   : > { %7970 = vmatpush1.bf16.msra.mxu1 %v9946_v4  ;;  %8394 = vmatpush1.bf16.msra.mxu0 %v9949_v7  ;;  %v10026_v4 = vld [vmem:[%s11655_s19 + $0x334] ss:$8 sps:$4 sm:$0xff]  }
 0x1b9   : > { %7971 = vmatprep.subr.bf16.mxu1 %v9954_v8  ;;  %8395 = vmatprep.subr.bf16.mxu0 %v9957_v9  ;;  %v10029_v7 = vld [vmem:[%s11655_s19 + $0xb34] ss:$8 sps:$4 sm:$0xff]   ;;  %v8973_v8 = vcombine.high %v11962_v58, %v11967_v59  ;;  %v8989_v9 = vcombine.high %v11972_v62, %v11977_v63 }
 0x1bc   : > { %7972 = vmatpush1.bf16.msra.mxu1 %v9952_v10  ;;  %8396 = vmatpush1.bf16.msra.mxu0 %v9955_v11  ;;  %v10024_v10 = vld [vmem:[%s11655_s19 + $0x330] ss:$8 sps:$4 sm:$0xff]  }
 0x1bd   : > { %7973 = vmatprep.subr.bf16.mxu1 %v9960_v12  ;;  %8397 = vmatprep.subr.bf16.mxu0 %v9963_v13  ;;  %v10027_v11 = vld [vmem:[%s11655_s19 + $0xb30] ss:$8 sps:$4 sm:$0xff]   ;;  %v10032_v12 = vld [vmem:[%s11655_s19 + $0x344] ss:$8 sps:$4 sm:$0xff]  }
 0x1be   : > { %v10035_v13 = vld [vmem:[%s11655_s19 + $0xb44] ss:$8 sps:$4 sm:$0xff]  }
 0x1c0   : > { %7974 = vmatpush1.bf16.msra.mxu1 %v9958_v14  ;;  %8398 = vmatpush1.bf16.msra.mxu0 %v9961_v15  ;;  %v10030_v14 = vld [vmem:[%s11655_s19 + $0x340] ss:$8 sps:$4 sm:$0xff]  }
 0x1c1   : > { %7975 = vmatprep.subr.bf16.mxu1 %v9966_v16  ;;  %8399 = vmatprep.subr.bf16.mxu0 %v9969_v17  ;;  %v10033_v15 = vld [vmem:[%s11655_s19 + $0xb40] ss:$8 sps:$4 sm:$0xff]   ;;  %v10038_v16 = vld [vmem:[%s11655_s19 + $0x354] ss:$8 sps:$4 sm:$0xff]  }
 0x1c2   : > { %v10041_v17 = vld [vmem:[%s11655_s19 + $0xb54] ss:$8 sps:$4 sm:$0xff]  }
 0x1c4   : > { %7976 = vmatpush1.bf16.msra.mxu1 %v9964_v18  ;;  %8400 = vmatpush1.bf16.msra.mxu0 %v9967_v19  ;;  %v10036_v18 = vld [vmem:[%s11655_s19 + $0x350] ss:$8 sps:$4 sm:$0xff]  }
 0x1c5   : > { %7977 = vmatprep.subr.bf16.mxu1 %v9972_v20  ;;  %8401 = vmatprep.subr.bf16.mxu0 %v9975_v21  ;;  %v10039_v19 = vld [vmem:[%s11655_s19 + $0xb50] ss:$8 sps:$4 sm:$0xff]   ;;  %v10044_v20 = vld [vmem:[%s11655_s19 + $0x364] ss:$8 sps:$4 sm:$0xff]  }
 0x1c6   : > { %v10047_v21 = vld [vmem:[%s11655_s19 + $0xb64] ss:$8 sps:$4 sm:$0xff]  }
 0x1c8   : > { %7978 = vmatpush1.bf16.msra.mxu1 %v9970_v22  ;;  %8402 = vmatpush1.bf16.msra.mxu0 %v9973_v23  ;;  %v10042_v22 = vld [vmem:[%s11655_s19 + $0x360] ss:$8 sps:$4 sm:$0xff]  }
 0x1c9   : > { %7979 = vmatprep.subr.bf16.mxu1 %v9978_v24  ;;  %8403 = vmatprep.subr.bf16.mxu0 %v9981_v25  ;;  %v10045_v23 = vld [vmem:[%s11655_s19 + $0xb60] ss:$8 sps:$4 sm:$0xff]   ;;  %v10050_v24 = vld [vmem:[%s11655_s19 + $0x374] ss:$8 sps:$4 sm:$0xff]  }
 0x1ca   : > { %v10053_v25 = vld [vmem:[%s11655_s19 + $0xb74] ss:$8 sps:$4 sm:$0xff]  }
 0x1cc   : > { %7980 = vmatpush1.bf16.msra.mxu1 %v9976_v26  ;;  %8404 = vmatpush1.bf16.msra.mxu0 %v9979_v27  ;;  %v10048_v26 = vld [vmem:[%s11655_s19 + $0x370] ss:$8 sps:$4 sm:$0xff]  }
 0x1cd   : > { %7981 = vmatprep.subr.bf16.mxu1 %v9984_v28  ;;  %8405 = vmatprep.subr.bf16.mxu0 %v9987_v29  ;;  %v10051_v27 = vld [vmem:[%s11655_s19 + $0xb70] ss:$8 sps:$4 sm:$0xff]   ;;  %v10056_v28 = vld [vmem:[%s11655_s19 + $0x384] ss:$8 sps:$4 sm:$0xff]  }
 0x1ce   : > { %v10059_v29 = vld [vmem:[%s11655_s19 + $0xb84] ss:$8 sps:$4 sm:$0xff]  }
 0x1d0   : > { %7982 = vmatpush1.bf16.msra.mxu1 %v9982_v0  ;;  %8406 = vmatpush1.bf16.msra.mxu0 %v9985_v1  ;;  %v10054_v0 = vld [vmem:[%s11655_s19 + $0x380] ss:$8 sps:$4 sm:$0xff]  }
 0x1d1   : > { %7983 = vmatprep.subr.bf16.mxu1 %v9990_v3  ;;  %8407 = vmatprep.subr.bf16.mxu0 %v9993_v2  ;;  %v10057_v1 = vld [vmem:[%s11655_s19 + $0xb80] ss:$8 sps:$4 sm:$0xff]   ;;  %v10062_v3 = vld [vmem:[%s11655_s19 + $0x394] ss:$8 sps:$4 sm:$0xff]  }
 0x1d2   : > { %v10065_v2 = vld [vmem:[%s11655_s19 + $0xb94] ss:$8 sps:$4 sm:$0xff]  }
 0x1d4   : > { %7984 = vmatpush1.bf16.msra.mxu1 %v9988_v5  ;;  %8408 = vmatpush1.bf16.msra.mxu0 %v9991_v6  ;;  %v10060_v5 = vld [vmem:[%s11655_s19 + $0x390] ss:$8 sps:$4 sm:$0xff]  }
 0x1d5   : > { %7985 = vmatprep.subr.bf16.mxu1 %v9996_v30  ;;  %8409 = vmatprep.subr.bf16.mxu0 %v9999_v31  ;;  %v10063_v6 = vld [vmem:[%s11655_s19 + $0xb90] ss:$8 sps:$4 sm:$0xff]   ;;  %v10068_v30 = vld [vmem:[%s11655_s19 + $0x3a4] ss:$8 sps:$4 sm:$0xff]  }
 0x1d6   : > { %v10071_v31 = vld [vmem:[%s11655_s19 + $0xba4] ss:$8 sps:$4 sm:$0xff]  }
 0x1d8   : > { %7986 = vmatpush1.bf16.msra.mxu1 %v9994_v32  ;;  %8410 = vmatpush1.bf16.msra.mxu0 %v9997_v33  ;;  %v10066_v32 = vld [vmem:[%s11655_s19 + $0x3a0] ss:$8 sps:$4 sm:$0xff]  }
 0x1d9   : > { %7987 = vmatprep.subr.bf16.mxu1 %v10002_v34  ;;  %8411 = vmatprep.subr.bf16.mxu0 %v10005_v35  ;;  %v10069_v33 = vld [vmem:[%s11655_s19 + $0xba0] ss:$8 sps:$4 sm:$0xff]   ;;  %v10074_v34 = vld [vmem:[%s11655_s19 + $0x3b4] ss:$8 sps:$4 sm:$0xff]  }
 0x1da   : > { %v10077_v35 = vld [vmem:[%s11655_s19 + $0xbb4] ss:$8 sps:$4 sm:$0xff]  }
 0x1dc   : > { %7988 = vmatpush1.bf16.msra.mxu1 %v10000_v36  ;;  %8412 = vmatpush1.bf16.msra.mxu0 %v10003_v37  ;;  %v10072_v36 = vld [vmem:[%s11655_s19 + $0x3b0] ss:$8 sps:$4 sm:$0xff]  }
 0x1dd   : > { %8010 = vmatprep.subr.bf16.mxu1 %v10008_v38  ;;  %8434 = vmatprep.subr.bf16.mxu0 %v10011_v39  ;;  %v10075_v37 = vld [vmem:[%s11655_s19 + $0xbb0] ss:$8 sps:$4 sm:$0xff]   ;;  %v10080_v38 = vld [vmem:[%s11655_s19 + $0x3c4] ss:$8 sps:$4 sm:$0xff]  }
 0x1de   : > { %v10083_v39 = vld [vmem:[%s11655_s19 + $0xbc4] ss:$8 sps:$4 sm:$0xff]  }
 0x1df   : > { %7990 = vmatmul.mubr.bf16.vlgmr.msra.gmra.mrb[0].mxu1 %v8970_v48  ;;  %8414 = vmatmul.mubr.bf16.vlgmr.msra.gmra.mrb[0].mxu0 %v8986_v49  ;;  %v10084_v48 = vld [vmem:[%s11655_s19 + $0x3d0] ss:$8 sps:$4 sm:$0xff]  }
 0x1e0   : > { %8011 = vmatpush1.bf16.msra.mxu1 %v10006_v40  ;;  %8435 = vmatpush1.bf16.msra.mxu0 %v10009_v41  ;;  %v10078_v40 = vld [vmem:[%s11655_s19 + $0x3c0] ss:$8 sps:$4 sm:$0xff]   ;;  %v10087_v49 = vld [vmem:[%s11655_s19 + $0xbd0] ss:$8 sps:$4 sm:$0xff]  }
 0x1e1   : > { %8012 = vmatprep.subr.bf16.mxu1 %v10014_v52  ;;  %8436 = vmatprep.subr.bf16.mxu0 %v10017_v42  ;;  %v10081_v41 = vld [vmem:[%s11655_s19 + $0xbc0] ss:$8 sps:$4 sm:$0xff]  }
 0x1e2   : > { %7999 = vmatprep.mubr.bf16.mxu1 %v9003_v43  ;;  %8423 = vmatprep.mubr.bf16.mxu0 %v9019_v46  ;;  %v10090_v52 = vld [vmem:[%s11655_s19 + $0x3e0] ss:$8 sps:$4 sm:$0xff]   ;;  %v10098_v43 = vld [vmem:[%s11655_s19 + $0x3f4] ss:$8 sps:$4 sm:$0xff]  }
 0x1e3   : > { %v10093_v42 = vld [vmem:[%s11655_s19 + $0xbe0] ss:$8 sps:$4 sm:$0xff]   ;;  %v10101_v46 = vld [vmem:[%s11655_s19 + $0xbf4] ss:$8 sps:$4 sm:$0xff]  }
 0x1e4   : > { %8013 = vmatpush1.bf16.msra.mxu1 %v10012_v47  ;;  %8437 = vmatpush1.bf16.msra.mxu0 %v10015_v53  ;;  %v10096_v47 = vld [vmem:[%s11655_s19 + $0x3f0] ss:$8 sps:$4 sm:$0xff]  }
 0x1e5   : > { %8014 = vmatprep.subr.bf16.mxu1 %v10020_v54  ;;  %8438 = vmatprep.subr.bf16.mxu0 %v10023_v55  ;;  %v10099_v53 = vld [vmem:[%s11655_s19 + $0xbf0] ss:$8 sps:$4 sm:$0xff]   ;;  %v10104_v54 = vld [vmem:[%s11655_s19 + $0x404] ss:$8 sps:$4 sm:$0xff]  }
 0x1e6   : > { %v10107_v55 = vld [vmem:[%s11655_s19 + $0xc04] ss:$8 sps:$4 sm:$0xff]  }
 0x1e7   : > { %8000 = vmatmul.mubr.bf16.gmra.mrb[4].mxu1 %v9002_v60  ;;  %8424 = vmatmul.mubr.bf16.gmra.mrb[4].mxu0 %v9018_v61  ;;  %v4430_v60 = vld [vmem:[%s12504_s0 + $0x118] sm:$0xff] }
 0x1e8   : > { %8015 = vmatpush1.bf16.msra.mxu1 %v10018_v56  ;;  %8439 = vmatpush1.bf16.msra.mxu0 %v10021_v57  ;;  %v10102_v56 = vld [vmem:[%s11655_s19 + $0x400] ss:$8 sps:$4 sm:$0xff]   ;;  %v4446_v61 = vld [vmem:[%s12504_s0 + $0x198] sm:$0xff] }
 0x1e9   : > { %8016 = vmatprep.subr.bf16.mxu1 %v10026_v4  ;;  %8440 = vmatprep.subr.bf16.mxu0 %v10029_v7  ;;  %v10105_v57 = vld [vmem:[%s11655_s19 + $0xc00] ss:$8 sps:$4 sm:$0xff]   ;;  %v8972_v4 = vcombine.low %v11962_v58, %v11967_v59  ;;  %v8988_v7 = vcombine.low %v11972_v62, %v11977_v63  ;;  %v10113_v58 = vld [vmem:[%s11655_s19 + $0xc14] ss:$8 sps:$4 sm:$0xff]   ;;  %v9005_v59 = vcombine.high %v4430_v60, %v4446_v61  ;;  %v10108_v63 = vld [vmem:[%s11655_s19 + $0x410] ss:$8 sps:$4 sm:$0xff]  }
 0x1ea   : > { %8042 = vmatprep.mubr.bf16.mxu1 %v8973_v8  ;;  %8466 = vmatprep.mubr.bf16.mxu0 %v8989_v9  ;;  %v4438_v8 = vld [vmem:[%s12504_s0 + $0x158] sm:$0xff] }
 0x1eb   : > { %v4454_v9 = vld [vmem:[%s12504_s0 + $0x1d8] sm:$0xff] }
 0x1ec   : > { %8017 = vmatpush1.bf16.msra.mxu1 %v10024_v10  ;;  %8441 = vmatpush1.bf16.msra.mxu0 %v10027_v11  ;;  %v10110_v10 = vld [vmem:[%s11655_s19 + $0x414] ss:$8 sps:$4 sm:$0xff]   ;;  %v9021_v62 = vcombine.high %v4438_v8, %v4454_v9  ;;  %v10111_v11 = vld [vmem:[%s11655_s19 + $0xc10] ss:$8 sps:$4 sm:$0xff]  }
 0x1ed   : > { %8018 = vmatprep.subr.bf16.mxu1 %v10032_v12  ;;  %8442 = vmatprep.subr.bf16.mxu0 %v10035_v13  ;;  %v10116_v12 = vld [vmem:[%s11655_s19 + $0x424] ss:$8 sps:$4 sm:$0xff]  }
 0x1ee   : > { %v10119_v13 = vld [vmem:[%s11655_s19 + $0xc24] ss:$8 sps:$4 sm:$0xff]  }
 0x1f0   : > { %8019 = vmatpush1.bf16.msra.mxu1 %v10030_v14  ;;  %8443 = vmatpush1.bf16.msra.mxu0 %v10033_v15  ;;  %v10114_v14 = vld [vmem:[%s11655_s19 + $0x420] ss:$8 sps:$4 sm:$0xff]  }
 0x1f1   : > { %8020 = vmatprep.subr.bf16.mxu1 %v10038_v16  ;;  %8444 = vmatprep.subr.bf16.mxu0 %v10041_v17  ;;  %v10117_v15 = vld [vmem:[%s11655_s19 + $0xc20] ss:$8 sps:$4 sm:$0xff]  }
 0x1f2   : > { %v12066_v16 = vld [vmem:[%s12504_s0 + $0x20] sm:$0xff] }
 0x1f3   : > { %v12071_v17 = vld [vmem:[%s12504_s0 + $0xa0] sm:$0xff] }
 0x1f4   : > { %8021 = vmatpush1.bf16.msra.mxu1 %v10036_v18  ;;  %8445 = vmatpush1.bf16.msra.mxu0 %v10039_v19  ;;  %v9004_v18 = vcombine.low %v4430_v60, %v4446_v61  ;;  %v9020_v19 = vcombine.low %v4438_v8, %v4454_v9  ;;  %v10182_v60 = vld [vmem:[%s11655_s19 + $0x4d4] ss:$8 sps:$4 sm:$0xff]   ;;  %v10188_v8 = vld [vmem:[%s11655_s19 + $0x4e4] ss:$8 sps:$4 sm:$0xff]  }
 0x1f5   : > { %8022 = vmatprep.subr.bf16.mxu1 %v10044_v20  ;;  %8446 = vmatprep.subr.bf16.mxu0 %v10047_v21  ;;  %v12076_v20 = vld [vmem:[%s12504_s0 + $0x60] sm:$0xff]  ;;  %v10185_v61 = vld [vmem:[%s11655_s19 + $0xcd4] ss:$8 sps:$4 sm:$0xff]  }
 0x1f6   : > { %v12081_v21 = vld [vmem:[%s12504_s0 + $0xe0] sm:$0xff] }
 0x1f7   : > { %v10191_v9 = vld [vmem:[%s11655_s19 + $0xce4] ss:$8 sps:$4 sm:$0xff]  }
 0x1f8   : > { %8023 = vmatpush1.bf16.msra.mxu1 %v10042_v22  ;;  %8447 = vmatpush1.bf16.msra.mxu0 %v10045_v23  ;;  %v10122_v22 = vld [vmem:[%s11655_s19 + $0x434] ss:$8 sps:$4 sm:$0xff]  }
 0x1f9   : > { %8024 = vmatprep.subr.bf16.mxu1 %v10050_v24  ;;  %8448 = vmatprep.subr.bf16.mxu0 %v10053_v25  ;;  %v10125_v23 = vld [vmem:[%s11655_s19 + $0xc34] ss:$8 sps:$4 sm:$0xff]   ;;  %v8975_v24 = vcombine.high %v12066_v16, %v12071_v17  ;;  %v8991_v25 = vcombine.high %v12076_v20, %v12081_v21 }
 0x1fc   : > { %8025 = vmatpush1.bf16.msra.mxu1 %v10048_v26  ;;  %8449 = vmatpush1.bf16.msra.mxu0 %v10051_v27  ;;  %v10120_v26 = vld [vmem:[%s11655_s19 + $0x430] ss:$8 sps:$4 sm:$0xff]  }
 0x1fd   : > { %8026 = vmatprep.subr.bf16.mxu1 %v10056_v28  ;;  %8450 = vmatprep.subr.bf16.mxu0 %v10059_v29  ;;  %v10123_v27 = vld [vmem:[%s11655_s19 + $0xc30] ss:$8 sps:$4 sm:$0xff]   ;;  %v10128_v28 = vld [vmem:[%s11655_s19 + $0x444] ss:$8 sps:$4 sm:$0xff]  }
 0x1fe   : > { %v10131_v29 = vld [vmem:[%s11655_s19 + $0xc44] ss:$8 sps:$4 sm:$0xff]  }
 0x200   : > { %8027 = vmatpush1.bf16.msra.mxu1 %v10054_v0  ;;  %8451 = vmatpush1.bf16.msra.mxu0 %v10057_v1  ;;  %v10126_v0 = vld [vmem:[%s11655_s19 + $0x440] ss:$8 sps:$4 sm:$0xff]  }
 0x201   : > { %8028 = vmatprep.subr.bf16.mxu1 %v10062_v3  ;;  %8452 = vmatprep.subr.bf16.mxu0 %v10065_v2  ;;  %v10129_v1 = vld [vmem:[%s11655_s19 + $0xc40] ss:$8 sps:$4 sm:$0xff]   ;;  %v10134_v3 = vld [vmem:[%s11655_s19 + $0x454] ss:$8 sps:$4 sm:$0xff]  }
 0x202   : > { %v10137_v2 = vld [vmem:[%s11655_s19 + $0xc54] ss:$8 sps:$4 sm:$0xff]  }
 0x204   : > { %8029 = vmatpush1.bf16.msra.mxu1 %v10060_v5  ;;  %8453 = vmatpush1.bf16.msra.mxu0 %v10063_v6  ;;  %v10132_v5 = vld [vmem:[%s11655_s19 + $0x450] ss:$8 sps:$4 sm:$0xff]  }
 0x205   : > { %8030 = vmatprep.subr.bf16.mxu1 %v10068_v30  ;;  %8454 = vmatprep.subr.bf16.mxu0 %v10071_v31  ;;  %v10135_v6 = vld [vmem:[%s11655_s19 + $0xc50] ss:$8 sps:$4 sm:$0xff]   ;;  %v10140_v30 = vld [vmem:[%s11655_s19 + $0x464] ss:$8 sps:$4 sm:$0xff]  }
 0x206   : > { %v10143_v31 = vld [vmem:[%s11655_s19 + $0xc64] ss:$8 sps:$4 sm:$0xff]  }
 0x208   : > { %8031 = vmatpush1.bf16.msra.mxu1 %v10066_v32  ;;  %8455 = vmatpush1.bf16.msra.mxu0 %v10069_v33  ;;  %v10138_v32 = vld [vmem:[%s11655_s19 + $0x460] ss:$8 sps:$4 sm:$0xff]  }
 0x209   : > { %8032 = vmatprep.subr.bf16.mxu1 %v10074_v34  ;;  %8456 = vmatprep.subr.bf16.mxu0 %v10077_v35  ;;  %v10141_v33 = vld [vmem:[%s11655_s19 + $0xc60] ss:$8 sps:$4 sm:$0xff]   ;;  %v10146_v34 = vld [vmem:[%s11655_s19 + $0x474] ss:$8 sps:$4 sm:$0xff]  }
 0x20a   : > { %v10149_v35 = vld [vmem:[%s11655_s19 + $0xc74] ss:$8 sps:$4 sm:$0xff]  }
 0x20c   : > { %8033 = vmatpush1.bf16.msra.mxu1 %v10072_v36  ;;  %8457 = vmatpush1.bf16.msra.mxu0 %v10075_v37  ;;  %v10144_v36 = vld [vmem:[%s11655_s19 + $0x470] ss:$8 sps:$4 sm:$0xff]  }
 0x20d   : > { %8034 = vmatprep.subr.bf16.mxu1 %v10080_v38  ;;  %8458 = vmatprep.subr.bf16.mxu0 %v10083_v39  ;;  %v10147_v37 = vld [vmem:[%s11655_s19 + $0xc70] ss:$8 sps:$4 sm:$0xff]   ;;  %v10152_v38 = vld [vmem:[%s11655_s19 + $0x484] ss:$8 sps:$4 sm:$0xff]  }
 0x20e   : > { %v10155_v39 = vld [vmem:[%s11655_s19 + $0xc84] ss:$8 sps:$4 sm:$0xff]  }
 0x210   : > { %8035 = vmatpush1.bf16.msra.mxu1 %v10078_v40  ;;  %8459 = vmatpush1.bf16.msra.mxu0 %v10081_v41  ;;  %v10150_v40 = vld [vmem:[%s11655_s19 + $0x480] ss:$8 sps:$4 sm:$0xff]  }
 0x211   : > { %8036 = vmatprep.subr.bf16.mxu1 %v10086_v44  ;;  %8460 = vmatprep.subr.bf16.mxu0 %v10089_v45  ;;  %v10153_v41 = vld [vmem:[%s11655_s19 + $0xc80] ss:$8 sps:$4 sm:$0xff]   ;;  %v10158_v44 = vld [vmem:[%s11655_s19 + $0x494] ss:$8 sps:$4 sm:$0xff]  }
 0x212   : > { %v10161_v45 = vld [vmem:[%s11655_s19 + $0xc94] ss:$8 sps:$4 sm:$0xff]  }
 0x214   : > { %8037 = vmatpush1.bf16.msra.mxu1 %v10084_v48  ;;  %8461 = vmatpush1.bf16.msra.mxu0 %v10087_v49  ;;  %v10156_v48 = vld [vmem:[%s11655_s19 + $0x490] ss:$8 sps:$4 sm:$0xff]  }
 0x215   : > { %8038 = vmatprep.subr.bf16.mxu1 %v10092_v50  ;;  %8462 = vmatprep.subr.bf16.mxu0 %v10095_v51  ;;  %v10159_v49 = vld [vmem:[%s11655_s19 + $0xc90] ss:$8 sps:$4 sm:$0xff]   ;;  %v10164_v50 = vld [vmem:[%s11655_s19 + $0x4a4] ss:$8 sps:$4 sm:$0xff]  }
 0x216   : > { %v10167_v51 = vld [vmem:[%s11655_s19 + $0xca4] ss:$8 sps:$4 sm:$0xff]  }
 0x218   : > { %8039 = vmatpush1.bf16.msra.mxu1 %v10090_v52  ;;  %8463 = vmatpush1.bf16.msra.mxu0 %v10093_v42  ;;  %v10162_v52 = vld [vmem:[%s11655_s19 + $0x4a0] ss:$8 sps:$4 sm:$0xff]  }
 0x219   : > { %8040 = vmatprep.subr.bf16.mxu1 %v10098_v43  ;;  %8464 = vmatprep.subr.bf16.mxu0 %v10101_v46  ;;  %v10165_v42 = vld [vmem:[%s11655_s19 + $0xca0] ss:$8 sps:$4 sm:$0xff]   ;;  %v10170_v43 = vld [vmem:[%s11655_s19 + $0x4b4] ss:$8 sps:$4 sm:$0xff]  }
 0x21a   : > { %v10173_v46 = vld [vmem:[%s11655_s19 + $0xcb4] ss:$8 sps:$4 sm:$0xff]  }
 0x21c   : > { %8041 = vmatpush1.bf16.msra.mxu1 %v10096_v47  ;;  %8465 = vmatpush1.bf16.msra.mxu0 %v10099_v53  ;;  %v10168_v47 = vld [vmem:[%s11655_s19 + $0x4b0] ss:$8 sps:$4 sm:$0xff]  }
 0x21d   : > { %8063 = vmatprep.subr.bf16.mxu1 %v10104_v54  ;;  %8487 = vmatprep.subr.bf16.mxu0 %v10107_v55  ;;  %v10171_v53 = vld [vmem:[%s11655_s19 + $0xcb0] ss:$8 sps:$4 sm:$0xff]   ;;  %v10176_v54 = vld [vmem:[%s11655_s19 + $0x4c4] ss:$8 sps:$4 sm:$0xff]  }
 0x21e   : > { %v10179_v55 = vld [vmem:[%s11655_s19 + $0xcc4] ss:$8 sps:$4 sm:$0xff]  }
 0x21f   : > { %8043 = vmatmul.mubr.bf16.vlgmr.msra.gmra.mrb[0].mxu1 %v8972_v4  ;;  %8467 = vmatmul.mubr.bf16.vlgmr.msra.gmra.mrb[0].mxu0 %v8988_v7  ;;  %v10180_v4 = vld [vmem:[%s11655_s19 + $0x4d0] ss:$8 sps:$4 sm:$0xff]  }
 0x220   : > { %8064 = vmatpush1.bf16.msra.mxu1 %v10102_v56  ;;  %8488 = vmatpush1.bf16.msra.mxu0 %v10105_v57  ;;  %v10174_v56 = vld [vmem:[%s11655_s19 + $0x4c0] ss:$8 sps:$4 sm:$0xff]   ;;  %v10183_v7 = vld [vmem:[%s11655_s19 + $0xcd0] ss:$8 sps:$4 sm:$0xff]  }
 0x221   : > { %8065 = vmatprep.subr.bf16.mxu1 %v10110_v10  ;;  %8489 = vmatprep.subr.bf16.mxu0 %v10113_v58  ;;  %v10177_v57 = vld [vmem:[%s11655_s19 + $0xcc0] ss:$8 sps:$4 sm:$0xff]  }
 0x222   : > { %8052 = vmatprep.mubr.bf16.mxu1 %v9005_v59  ;;  %8476 = vmatprep.mubr.bf16.mxu0 %v9021_v62  ;;  %v10186_v10 = vld [vmem:[%s11655_s19 + $0x4e0] ss:$8 sps:$4 sm:$0xff]   ;;  %v10194_v59 = vld [vmem:[%s11655_s19 + $0x4f4] ss:$8 sps:$4 sm:$0xff]  }
 0x223   : > { %v10189_v58 = vld [vmem:[%s11655_s19 + $0xce0] ss:$8 sps:$4 sm:$0xff]   ;;  %v10197_v62 = vld [vmem:[%s11655_s19 + $0xcf4] ss:$8 sps:$4 sm:$0xff]  }
 0x224   : > { %8066 = vmatpush1.bf16.msra.mxu1 %v10108_v63  ;;  %8490 = vmatpush1.bf16.msra.mxu0 %v10111_v11  ;;  %v10192_v63 = vld [vmem:[%s11655_s19 + $0x4f0] ss:$8 sps:$4 sm:$0xff]  }
 0x225   : > { %8067 = vmatprep.subr.bf16.mxu1 %v10116_v12  ;;  %8491 = vmatprep.subr.bf16.mxu0 %v10119_v13  ;;  %v10195_v11 = vld [vmem:[%s11655_s19 + $0xcf0] ss:$8 sps:$4 sm:$0xff]   ;;  %v10200_v12 = vld [vmem:[%s11655_s19 + $0x504] ss:$8 sps:$4 sm:$0xff]  }
 0x226   : > { %v10203_v13 = vld [vmem:[%s11655_s19 + $0xd04] ss:$8 sps:$4 sm:$0xff]  }
 0x227   : > { %8053 = vmatmul.mubr.bf16.gmra.mrb[4].mxu1 %v9004_v18  ;;  %8477 = vmatmul.mubr.bf16.gmra.mrb[4].mxu0 %v9020_v19  ;;  %v4439_v18 = vld [vmem:[%s12504_s0 + $0x160] sm:$0xff] }
 0x228   : > { %8068 = vmatpush1.bf16.msra.mxu1 %v10114_v14  ;;  %8492 = vmatpush1.bf16.msra.mxu0 %v10117_v15  ;;  %v4431_v14 = vld [vmem:[%s12504_s0 + $0x120] sm:$0xff] }
 0x229   : > { %8069 = vmatprep.subr.bf16.mxu1 %v10122_v22  ;;  %8493 = vmatprep.subr.bf16.mxu0 %v10125_v23  ;;  %v4447_v15 = vld [vmem:[%s12504_s0 + $0x1a0] sm:$0xff]  ;;  %v8974_v22 = vcombine.low %v12066_v16, %v12071_v17  ;;  %v8990_v23 = vcombine.low %v12076_v20, %v12081_v21  ;;  %v12168_v20 = vld [vmem:[%s12504_s0 + $0x28] sm:$0xff] }
 0x22a   : > { %8095 = vmatprep.mubr.bf16.mxu1 %v8975_v24  ;;  %8519 = vmatprep.mubr.bf16.mxu0 %v8991_v25  ;;  %v4455_v19 = vld [vmem:[%s12504_s0 + $0x1e0] sm:$0xff]  ;;  %v12173_v21 = vld [vmem:[%s12504_s0 + $0xa8] sm:$0xff] }
 0x22b   : > { %v10198_v24 = vld [vmem:[%s11655_s19 + $0x500] ss:$8 sps:$4 sm:$0xff]   ;;  %v10212_v16 = vld [vmem:[%s11655_s19 + $0x524] ss:$8 sps:$4 sm:$0xff]  }
 0x22c   : > { %8070 = vmatpush1.bf16.msra.mxu1 %v10120_v26  ;;  %8494 = vmatpush1.bf16.msra.mxu0 %v10123_v27  ;;  %v10201_v25 = vld [vmem:[%s11655_s19 + $0xd00] ss:$8 sps:$4 sm:$0xff]   ;;  %v10206_v26 = vld [vmem:[%s11655_s19 + $0x514] ss:$8 sps:$4 sm:$0xff]   ;;  %v10215_v17 = vld [vmem:[%s11655_s19 + $0xd24] ss:$8 sps:$4 sm:$0xff]  }
 0x22d   : > { %8071 = vmatprep.subr.bf16.mxu1 %v10128_v28  ;;  %8495 = vmatprep.subr.bf16.mxu0 %v10131_v29  ;;  %v10209_v27 = vld [vmem:[%s11655_s19 + $0xd14] ss:$8 sps:$4 sm:$0xff]   ;;  %v10204_v28 = vld [vmem:[%s11655_s19 + $0x510] ss:$8 sps:$4 sm:$0xff]  }
 0x22e   : > { %v10207_v29 = vld [vmem:[%s11655_s19 + $0xd10] ss:$8 sps:$4 sm:$0xff]  }
 0x230   : > { %8072 = vmatpush1.bf16.msra.mxu1 %v10126_v0  ;;  %8496 = vmatpush1.bf16.msra.mxu0 %v10129_v1  ;;  %v9007_v0 = vcombine.high %v4431_v14, %v4447_v15  ;;  %v9023_v1 = vcombine.high %v4439_v18, %v4455_v19 }
 0x231   : > { %8073 = vmatprep.subr.bf16.mxu1 %v10134_v3  ;;  %8497 = vmatprep.subr.bf16.mxu0 %v10137_v2  ;;  %v12178_v3 = vld [vmem:[%s12504_s0 + $0x68] sm:$0xff] }
 0x232   : > { %v12183_v2 = vld [vmem:[%s12504_s0 + $0xe8] sm:$0xff] }
 0x234   : > { %8074 = vmatpush1.bf16.msra.mxu1 %v10132_v5  ;;  %8498 = vmatpush1.bf16.msra.mxu0 %v10135_v6  ;;  %v9006_v5 = vcombine.low %v4431_v14, %v4447_v15  ;;  %v9022_v6 = vcombine.low %v4439_v18, %v4455_v19  ;;  %v10270_v14 = vld [vmem:[%s11655_s19 + $0x5c0] ss:$8 sps:$4 sm:$0xff]   ;;  %v10278_v18 = vld [vmem:[%s11655_s19 + $0x5d4] ss:$8 sps:$4 sm:$0xff]  }
 0x235   : > { %8075 = vmatprep.subr.bf16.mxu1 %v10140_v30  ;;  %8499 = vmatprep.subr.bf16.mxu0 %v10143_v31  ;;  %v10210_v30 = vld [vmem:[%s11655_s19 + $0x520] ss:$8 sps:$4 sm:$0xff]   ;;  %v10281_v19 = vld [vmem:[%s11655_s19 + $0xdd4] ss:$8 sps:$4 sm:$0xff]  }
 0x236   : > { %v10213_v31 = vld [vmem:[%s11655_s19 + $0xd20] ss:$8 sps:$4 sm:$0xff]  }
 0x237   : > { %v10273_v15 = vld [vmem:[%s11655_s19 + $0xdc0] ss:$8 sps:$4 sm:$0xff]  }
 0x238   : > { %8076 = vmatpush1.bf16.msra.mxu1 %v10138_v32  ;;  %8500 = vmatpush1.bf16.msra.mxu0 %v10141_v33  ;;  %v10218_v32 = vld [vmem:[%s11655_s19 + $0x534] ss:$8 sps:$4 sm:$0xff]  }
 0x239   : > { %8077 = vmatprep.subr.bf16.mxu1 %v10146_v34  ;;  %8501 = vmatprep.subr.bf16.mxu0 %v10149_v35  ;;  %v10221_v33 = vld [vmem:[%s11655_s19 + $0xd34] ss:$8 sps:$4 sm:$0xff]   ;;  %v8977_v34 = vcombine.high %v12168_v20, %v12173_v21  ;;  %v8993_v35 = vcombine.high %v12178_v3, %v12183_v2 }
 0x23c   : > { %8078 = vmatpush1.bf16.msra.mxu1 %v10144_v36  ;;  %8502 = vmatpush1.bf16.msra.mxu0 %v10147_v37  ;;  %v10216_v36 = vld [vmem:[%s11655_s19 + $0x530] ss:$8 sps:$4 sm:$0xff]  }
 0x23d   : > { %8079 = vmatprep.subr.bf16.mxu1 %v10152_v38  ;;  %8503 = vmatprep.subr.bf16.mxu0 %v10155_v39  ;;  %v10219_v37 = vld [vmem:[%s11655_s19 + $0xd30] ss:$8 sps:$4 sm:$0xff]   ;;  %v10224_v38 = vld [vmem:[%s11655_s19 + $0x544] ss:$8 sps:$4 sm:$0xff]  }
 0x23e   : > { %v10227_v39 = vld [vmem:[%s11655_s19 + $0xd44] ss:$8 sps:$4 sm:$0xff]  }
 0x240   : > { %8080 = vmatpush1.bf16.msra.mxu1 %v10150_v40  ;;  %8504 = vmatpush1.bf16.msra.mxu0 %v10153_v41  ;;  %v10222_v40 = vld [vmem:[%s11655_s19 + $0x540] ss:$8 sps:$4 sm:$0xff]  }
 0x241   : > { %8081 = vmatprep.subr.bf16.mxu1 %v10158_v44  ;;  %8505 = vmatprep.subr.bf16.mxu0 %v10161_v45  ;;  %v10225_v41 = vld [vmem:[%s11655_s19 + $0xd40] ss:$8 sps:$4 sm:$0xff]   ;;  %v10230_v44 = vld [vmem:[%s11655_s19 + $0x554] ss:$8 sps:$4 sm:$0xff]  }
 0x242   : > { %v10233_v45 = vld [vmem:[%s11655_s19 + $0xd54] ss:$8 sps:$4 sm:$0xff]  }
 0x244   : > { %8082 = vmatpush1.bf16.msra.mxu1 %v10156_v48  ;;  %8506 = vmatpush1.bf16.msra.mxu0 %v10159_v49  ;;  %v10228_v48 = vld [vmem:[%s11655_s19 + $0x550] ss:$8 sps:$4 sm:$0xff]  }
 0x245   : > { %8083 = vmatprep.subr.bf16.mxu1 %v10164_v50  ;;  %8507 = vmatprep.subr.bf16.mxu0 %v10167_v51  ;;  %v10231_v49 = vld [vmem:[%s11655_s19 + $0xd50] ss:$8 sps:$4 sm:$0xff]   ;;  %v10236_v50 = vld [vmem:[%s11655_s19 + $0x564] ss:$8 sps:$4 sm:$0xff]  }
 0x246   : > { %v10239_v51 = vld [vmem:[%s11655_s19 + $0xd64] ss:$8 sps:$4 sm:$0xff]  }
 0x248   : > { %8084 = vmatpush1.bf16.msra.mxu1 %v10162_v52  ;;  %8508 = vmatpush1.bf16.msra.mxu0 %v10165_v42  ;;  %v10234_v52 = vld [vmem:[%s11655_s19 + $0x560] ss:$8 sps:$4 sm:$0xff]  }
 0x249   : > { %8085 = vmatprep.subr.bf16.mxu1 %v10170_v43  ;;  %8509 = vmatprep.subr.bf16.mxu0 %v10173_v46  ;;  %v10237_v42 = vld [vmem:[%s11655_s19 + $0xd60] ss:$8 sps:$4 sm:$0xff]   ;;  %v10242_v43 = vld [vmem:[%s11655_s19 + $0x574] ss:$8 sps:$4 sm:$0xff]  }
 0x24a   : > { %v10245_v46 = vld [vmem:[%s11655_s19 + $0xd74] ss:$8 sps:$4 sm:$0xff]  }
 0x24c   : > { %8086 = vmatpush1.bf16.msra.mxu1 %v10168_v47  ;;  %8510 = vmatpush1.bf16.msra.mxu0 %v10171_v53  ;;  %v10240_v47 = vld [vmem:[%s11655_s19 + $0x570] ss:$8 sps:$4 sm:$0xff]  }
 0x24d   : > { %8087 = vmatprep.subr.bf16.mxu1 %v10176_v54  ;;  %8511 = vmatprep.subr.bf16.mxu0 %v10179_v55  ;;  %v10243_v53 = vld [vmem:[%s11655_s19 + $0xd70] ss:$8 sps:$4 sm:$0xff]   ;;  %v10248_v54 = vld [vmem:[%s11655_s19 + $0x584] ss:$8 sps:$4 sm:$0xff]  }
 0x24e   : > { %v10251_v55 = vld [vmem:[%s11655_s19 + $0xd84] ss:$8 sps:$4 sm:$0xff]  }
 0x250   : > { %8088 = vmatpush1.bf16.msra.mxu1 %v10174_v56  ;;  %8512 = vmatpush1.bf16.msra.mxu0 %v10177_v57  ;;  %v10246_v56 = vld [vmem:[%s11655_s19 + $0x580] ss:$8 sps:$4 sm:$0xff]  }
 0x251   : > { %8089 = vmatprep.subr.bf16.mxu1 %v10182_v60  ;;  %8513 = vmatprep.subr.bf16.mxu0 %v10185_v61  ;;  %v10249_v57 = vld [vmem:[%s11655_s19 + $0xd80] ss:$8 sps:$4 sm:$0xff]   ;;  %v10254_v60 = vld [vmem:[%s11655_s19 + $0x594] ss:$8 sps:$4 sm:$0xff]  }
 0x252   : > { %v10257_v61 = vld [vmem:[%s11655_s19 + $0xd94] ss:$8 sps:$4 sm:$0xff]  }
 0x254   : > { %8090 = vmatpush1.bf16.msra.mxu1 %v10180_v4  ;;  %8514 = vmatpush1.bf16.msra.mxu0 %v10183_v7  ;;  %v10252_v4 = vld [vmem:[%s11655_s19 + $0x590] ss:$8 sps:$4 sm:$0xff]  }
 0x255   : > { %8091 = vmatprep.subr.bf16.mxu1 %v10188_v8  ;;  %8515 = vmatprep.subr.bf16.mxu0 %v10191_v9  ;;  %v10255_v7 = vld [vmem:[%s11655_s19 + $0xd90] ss:$8 sps:$4 sm:$0xff]   ;;  %v10260_v8 = vld [vmem:[%s11655_s19 + $0x5a4] ss:$8 sps:$4 sm:$0xff]  }
 0x256   : > { %v10263_v9 = vld [vmem:[%s11655_s19 + $0xda4] ss:$8 sps:$4 sm:$0xff]  }
 0x258   : > { %8092 = vmatpush1.bf16.msra.mxu1 %v10186_v10  ;;  %8516 = vmatpush1.bf16.msra.mxu0 %v10189_v58  ;;  %v10258_v10 = vld [vmem:[%s11655_s19 + $0x5a0] ss:$8 sps:$4 sm:$0xff]  }
 0x259   : > { %8093 = vmatprep.subr.bf16.mxu1 %v10194_v59  ;;  %8517 = vmatprep.subr.bf16.mxu0 %v10197_v62  ;;  %v10261_v58 = vld [vmem:[%s11655_s19 + $0xda0] ss:$8 sps:$4 sm:$0xff]   ;;  %v10266_v59 = vld [vmem:[%s11655_s19 + $0x5b4] ss:$8 sps:$4 sm:$0xff]  }
 0x25a   : > { %v10269_v62 = vld [vmem:[%s11655_s19 + $0xdb4] ss:$8 sps:$4 sm:$0xff]  }
 0x25c   : > { %8094 = vmatpush1.bf16.msra.mxu1 %v10192_v63  ;;  %8518 = vmatpush1.bf16.msra.mxu0 %v10195_v11  ;;  %v10264_v63 = vld [vmem:[%s11655_s19 + $0x5b0] ss:$8 sps:$4 sm:$0xff]  }
 0x25d   : > { %8116 = vmatprep.subr.bf16.mxu1 %v10200_v12  ;;  %8540 = vmatprep.subr.bf16.mxu0 %v10203_v13  ;;  %v10267_v11 = vld [vmem:[%s11655_s19 + $0xdb0] ss:$8 sps:$4 sm:$0xff]   ;;  %v10272_v12 = vld [vmem:[%s11655_s19 + $0x5c4] ss:$8 sps:$4 sm:$0xff]  }
 0x25e   : > { %v10275_v13 = vld [vmem:[%s11655_s19 + $0xdc4] ss:$8 sps:$4 sm:$0xff]  }
 0x25f   : > { %8096 = vmatmul.mubr.bf16.vlgmr.msra.gmra.mrb[0].mxu1 %v8974_v22  ;;  %8520 = vmatmul.mubr.bf16.vlgmr.msra.gmra.mrb[0].mxu0 %v8990_v23  ;;  %v10276_v22 = vld [vmem:[%s11655_s19 + $0x5d0] ss:$8 sps:$4 sm:$0xff]  }
 0x260   : > { %8117 = vmatpush1.bf16.msra.mxu1 %v10198_v24  ;;  %8541 = vmatpush1.bf16.msra.mxu0 %v10201_v25  ;;  %v10279_v23 = vld [vmem:[%s11655_s19 + $0xdd0] ss:$8 sps:$4 sm:$0xff]   ;;  %v10284_v24 = vld [vmem:[%s11655_s19 + $0x5e4] ss:$8 sps:$4 sm:$0xff]  }
 0x261   : > { %8118 = vmatprep.subr.bf16.mxu1 %v10206_v26  ;;  %8542 = vmatprep.subr.bf16.mxu0 %v10209_v27  ;;  %v10287_v25 = vld [vmem:[%s11655_s19 + $0xde4] ss:$8 sps:$4 sm:$0xff]   ;;  %v10282_v26 = vld [vmem:[%s11655_s19 + $0x5e0] ss:$8 sps:$4 sm:$0xff]  }
 0x262   : > { %8105 = vmatprep.mubr.bf16.mxu1 %v9007_v0  ;;  %8529 = vmatprep.mubr.bf16.mxu0 %v9023_v1  ;;  %v10285_v27 = vld [vmem:[%s11655_s19 + $0xde0] ss:$8 sps:$4 sm:$0xff]   ;;  %v10288_v0 = vld [vmem:[%s11655_s19 + $0x5f0] ss:$8 sps:$4 sm:$0xff]  }
 0x263   : > { %v10291_v1 = vld [vmem:[%s11655_s19 + $0xdf0] ss:$8 sps:$4 sm:$0xff]  }
 0x264   : > { %8119 = vmatpush1.bf16.msra.mxu1 %v10204_v28  ;;  %8543 = vmatpush1.bf16.msra.mxu0 %v10207_v29  ;;  %v10290_v28 = vld [vmem:[%s11655_s19 + $0x5f4] ss:$8 sps:$4 sm:$0xff]  }
 0x265   : > { %8120 = vmatprep.subr.bf16.mxu1 %v10212_v16  ;;  %8544 = vmatprep.subr.bf16.mxu0 %v10215_v17  ;;  %v10293_v29 = vld [vmem:[%s11655_s19 + $0xdf4] ss:$8 sps:$4 sm:$0xff]   ;;  %v10296_v16 = vld [vmem:[%s11655_s19 + $0x604] ss:$8 sps:$4 sm:$0xff]  }
 0x266   : > { %v10299_v17 = vld [vmem:[%s11655_s19 + $0xe04] ss:$8 sps:$4 sm:$0xff]  }
 0x267   : > { %8106 = vmatmul.mubr.bf16.gmra.mrb[4].mxu1 %v9006_v5  ;;  %8530 = vmatmul.mubr.bf16.gmra.mrb[4].mxu0 %v9022_v6  ;;  %v4432_v5 = vld [vmem:[%s12504_s0 + $0x128] sm:$0xff]  ;;  %v8976_v6 = vcombine.low %v12168_v20, %v12173_v21 }
 0x268   : > { %8121 = vmatpush1.bf16.msra.mxu1 %v10210_v30  ;;  %8545 = vmatpush1.bf16.msra.mxu0 %v10213_v31  ;;  %v8992_v30 = vcombine.low %v12178_v3, %v12183_v2  ;;  %v4448_v31 = vld [vmem:[%s12504_s0 + $0x1a8] sm:$0xff]  ;;  %v10302_v3 = vld [vmem:[%s11655_s19 + $0x614] ss:$8 sps:$4 sm:$0xff]  }
 0x269   : > { %8122 = vmatprep.subr.bf16.mxu1 %v10218_v32  ;;  %8546 = vmatprep.subr.bf16.mxu0 %v10221_v33  ;;  %v4440_v32 = vld [vmem:[%s12504_s0 + $0x168] sm:$0xff]  ;;  %v10305_v2 = vld [vmem:[%s11655_s19 + $0xe14] ss:$8 sps:$4 sm:$0xff]  }
 0x26a   : > { %8148 = vmatprep.mubr.bf16.mxu1 %v8977_v34  ;;  %8572 = vmatprep.mubr.bf16.mxu0 %v8993_v35  ;;  %v4456_v33 = vld [vmem:[%s12504_s0 + $0x1e8] sm:$0xff]  ;;  %v9009_v34 = vcombine.high %v4432_v5, %v4448_v31 }
 0x26b   : > { %v10294_v20 = vld [vmem:[%s11655_s19 + $0x600] ss:$8 sps:$4 sm:$0xff]   ;;  %v9025_v35 = vcombine.high %v4440_v32, %v4456_v33 }
 0x26c   : > { %8123 = vmatpush1.bf16.msra.mxu1 %v10216_v36  ;;  %8547 = vmatpush1.bf16.msra.mxu0 %v10219_v37  ;;  %v10297_v21 = vld [vmem:[%s11655_s19 + $0xe00] ss:$8 sps:$4 sm:$0xff]   ;;  %v10300_v36 = vld [vmem:[%s11655_s19 + $0x610] ss:$8 sps:$4 sm:$0xff]  }
 0x26d   : > { %8124 = vmatprep.subr.bf16.mxu1 %v10224_v38  ;;  %8548 = vmatprep.subr.bf16.mxu0 %v10227_v39  ;;  %v10303_v37 = vld [vmem:[%s11655_s19 + $0xe10] ss:$8 sps:$4 sm:$0xff]   ;;  %v10308_v38 = vld [vmem:[%s11655_s19 + $0x624] ss:$8 sps:$4 sm:$0xff]  }
 0x26e   : > { %v10311_v39 = vld [vmem:[%s11655_s19 + $0xe24] ss:$8 sps:$4 sm:$0xff]  }
 0x270   : > { %8125 = vmatpush1.bf16.msra.mxu1 %v10222_v40  ;;  %8549 = vmatpush1.bf16.msra.mxu0 %v10225_v41  ;;  %v12272_v40 = vld [vmem:[%s12504_s0 + $0x30] sm:$0xff]  ;;  %v9008_v41 = vcombine.low %v4432_v5, %v4448_v31  ;;  %v10366_v5 = vld [vmem:[%s11655_s19 + $0x6c0] ss:$8 sps:$4 sm:$0xff]  }
 0x271   : > { %8126 = vmatprep.subr.bf16.mxu1 %v10230_v44  ;;  %8550 = vmatprep.subr.bf16.mxu0 %v10233_v45  ;;  %v9024_v44 = vcombine.low %v4440_v32, %v4456_v33  ;;  %v12277_v45 = vld [vmem:[%s12504_s0 + $0xb0] sm:$0xff] }
 0x272   : > { %v10377_v31 = vld [vmem:[%s11655_s19 + $0xed4] ss:$8 sps:$4 sm:$0xff]   ;;  %v10372_v32 = vld [vmem:[%s11655_s19 + $0x6d0] ss:$8 sps:$4 sm:$0xff]  }
 0x273   : > { %v10375_v33 = vld [vmem:[%s11655_s19 + $0xed0] ss:$8 sps:$4 sm:$0xff]  }
 0x274   : > { %8127 = vmatpush1.bf16.msra.mxu1 %v10228_v48  ;;  %8551 = vmatpush1.bf16.msra.mxu0 %v10231_v49  ;;  %v12282_v48 = vld [vmem:[%s12504_s0 + $0x70] sm:$0xff] }
 0x275   : > { %8128 = vmatprep.subr.bf16.mxu1 %v10236_v50  ;;  %8552 = vmatprep.subr.bf16.mxu0 %v10239_v51  ;;  %v12287_v49 = vld [vmem:[%s12504_s0 + $0xf0] sm:$0xff]  ;;  %v10306_v50 = vld [vmem:[%s11655_s19 + $0x620] ss:$8 sps:$4 sm:$0xff]  }
 0x276   : > { %v10309_v51 = vld [vmem:[%s11655_s19 + $0xe20] ss:$8 sps:$4 sm:$0xff]  }
 0x278   : > { %8129 = vmatpush1.bf16.msra.mxu1 %v10234_v52  ;;  %8553 = vmatpush1.bf16.msra.mxu0 %v10237_v42  ;;  %v10314_v52 = vld [vmem:[%s11655_s19 + $0x634] ss:$8 sps:$4 sm:$0xff]  }
 0x279   : > { %8130 = vmatprep.subr.bf16.mxu1 %v10242_v43  ;;  %8554 = vmatprep.subr.bf16.mxu0 %v10245_v46  ;;  %v10317_v42 = vld [vmem:[%s11655_s19 + $0xe34] ss:$8 sps:$4 sm:$0xff]   ;;  %v8979_v43 = vcombine.high %v12272_v40, %v12277_v45  ;;  %v8995_v46 = vcombine.high %v12282_v48, %v12287_v49 }
 0x27c   : > { %8131 = vmatpush1.bf16.msra.mxu1 %v10240_v47  ;;  %8555 = vmatpush1.bf16.msra.mxu0 %v10243_v53  ;;  %v10312_v47 = vld [vmem:[%s11655_s19 + $0x630] ss:$8 sps:$4 sm:$0xff]  }
 0x27d   : > { %8132 = vmatprep.subr.bf16.mxu1 %v10248_v54  ;;  %8556 = vmatprep.subr.bf16.mxu0 %v10251_v55  ;;  %v10315_v53 = vld [vmem:[%s11655_s19 + $0xe30] ss:$8 sps:$4 sm:$0xff]   ;;  %v10320_v54 = vld [vmem:[%s11655_s19 + $0x644] ss:$8 sps:$4 sm:$0xff]  }
 0x27e   : > { %v10323_v55 = vld [vmem:[%s11655_s19 + $0xe44] ss:$8 sps:$4 sm:$0xff]  }
 0x280   : > { %8133 = vmatpush1.bf16.msra.mxu1 %v10246_v56  ;;  %8557 = vmatpush1.bf16.msra.mxu0 %v10249_v57  ;;  %v10318_v56 = vld [vmem:[%s11655_s19 + $0x640] ss:$8 sps:$4 sm:$0xff]  }
 0x281   : > { %8134 = vmatprep.subr.bf16.mxu1 %v10254_v60  ;;  %8558 = vmatprep.subr.bf16.mxu0 %v10257_v61  ;;  %v10321_v57 = vld [vmem:[%s11655_s19 + $0xe40] ss:$8 sps:$4 sm:$0xff]   ;;  %v10326_v60 = vld [vmem:[%s11655_s19 + $0x654] ss:$8 sps:$4 sm:$0xff]  }
 0x282   : > { %v10329_v61 = vld [vmem:[%s11655_s19 + $0xe54] ss:$8 sps:$4 sm:$0xff]  }
 0x284   : > { %8135 = vmatpush1.bf16.msra.mxu1 %v10252_v4  ;;  %8559 = vmatpush1.bf16.msra.mxu0 %v10255_v7  ;;  %v10324_v4 = vld [vmem:[%s11655_s19 + $0x650] ss:$8 sps:$4 sm:$0xff]  }
 0x285   : > { %8136 = vmatprep.subr.bf16.mxu1 %v10260_v8  ;;  %8560 = vmatprep.subr.bf16.mxu0 %v10263_v9  ;;  %v10327_v7 = vld [vmem:[%s11655_s19 + $0xe50] ss:$8 sps:$4 sm:$0xff]   ;;  %v10332_v8 = vld [vmem:[%s11655_s19 + $0x664] ss:$8 sps:$4 sm:$0xff]  }
 0x286   : > { %v10335_v9 = vld [vmem:[%s11655_s19 + $0xe64] ss:$8 sps:$4 sm:$0xff]  }
 0x288   : > { %8137 = vmatpush1.bf16.msra.mxu1 %v10258_v10  ;;  %8561 = vmatpush1.bf16.msra.mxu0 %v10261_v58  ;;  %v10330_v10 = vld [vmem:[%s11655_s19 + $0x660] ss:$8 sps:$4 sm:$0xff]  }
 0x289   : > { %8138 = vmatprep.subr.bf16.mxu1 %v10266_v59  ;;  %8562 = vmatprep.subr.bf16.mxu0 %v10269_v62  ;;  %v10333_v58 = vld [vmem:[%s11655_s19 + $0xe60] ss:$8 sps:$4 sm:$0xff]   ;;  %v10338_v59 = vld [vmem:[%s11655_s19 + $0x674] ss:$8 sps:$4 sm:$0xff]  }
 0x28a   : > { %v10341_v62 = vld [vmem:[%s11655_s19 + $0xe74] ss:$8 sps:$4 sm:$0xff]  }
 0x28c   : > { %8139 = vmatpush1.bf16.msra.mxu1 %v10264_v63  ;;  %8563 = vmatpush1.bf16.msra.mxu0 %v10267_v11  ;;  %v10336_v63 = vld [vmem:[%s11655_s19 + $0x670] ss:$8 sps:$4 sm:$0xff]  }
 0x28d   : > { %8140 = vmatprep.subr.bf16.mxu1 %v10272_v12  ;;  %8564 = vmatprep.subr.bf16.mxu0 %v10275_v13  ;;  %v10339_v11 = vld [vmem:[%s11655_s19 + $0xe70] ss:$8 sps:$4 sm:$0xff]   ;;  %v10344_v12 = vld [vmem:[%s11655_s19 + $0x684] ss:$8 sps:$4 sm:$0xff]  }
 0x28e   : > { %v10347_v13 = vld [vmem:[%s11655_s19 + $0xe84] ss:$8 sps:$4 sm:$0xff]  }
 0x290   : > { %8141 = vmatpush1.bf16.msra.mxu1 %v10270_v14  ;;  %8565 = vmatpush1.bf16.msra.mxu0 %v10273_v15  ;;  %v10342_v14 = vld [vmem:[%s11655_s19 + $0x680] ss:$8 sps:$4 sm:$0xff]  }
 0x291   : > { %8142 = vmatprep.subr.bf16.mxu1 %v10278_v18  ;;  %8566 = vmatprep.subr.bf16.mxu0 %v10281_v19  ;;  %v10345_v15 = vld [vmem:[%s11655_s19 + $0xe80] ss:$8 sps:$4 sm:$0xff]   ;;  %v10350_v18 = vld [vmem:[%s11655_s19 + $0x694] ss:$8 sps:$4 sm:$0xff]  }
 0x292   : > { %v10353_v19 = vld [vmem:[%s11655_s19 + $0xe94] ss:$8 sps:$4 sm:$0xff]  }
 0x294   : > { %8143 = vmatpush1.bf16.msra.mxu1 %v10276_v22  ;;  %8567 = vmatpush1.bf16.msra.mxu0 %v10279_v23  ;;  %v10348_v22 = vld [vmem:[%s11655_s19 + $0x690] ss:$8 sps:$4 sm:$0xff]  }
 0x295   : > { %8144 = vmatprep.subr.bf16.mxu1 %v10284_v24  ;;  %8568 = vmatprep.subr.bf16.mxu0 %v10287_v25  ;;  %v10351_v23 = vld [vmem:[%s11655_s19 + $0xe90] ss:$8 sps:$4 sm:$0xff]   ;;  %v10356_v24 = vld [vmem:[%s11655_s19 + $0x6a4] ss:$8 sps:$4 sm:$0xff]  }
 0x296   : > { %v10359_v25 = vld [vmem:[%s11655_s19 + $0xea4] ss:$8 sps:$4 sm:$0xff]  }
 0x298   : > { %8145 = vmatpush1.bf16.msra.mxu1 %v10282_v26  ;;  %8569 = vmatpush1.bf16.msra.mxu0 %v10285_v27  ;;  %v10354_v26 = vld [vmem:[%s11655_s19 + $0x6a0] ss:$8 sps:$4 sm:$0xff]  }
 0x299   : > { %8146 = vmatprep.subr.bf16.mxu1 %v10290_v28  ;;  %8570 = vmatprep.subr.bf16.mxu0 %v10293_v29  ;;  %v10357_v27 = vld [vmem:[%s11655_s19 + $0xea0] ss:$8 sps:$4 sm:$0xff]   ;;  %v10362_v28 = vld [vmem:[%s11655_s19 + $0x6b4] ss:$8 sps:$4 sm:$0xff]  }
 0x29a   : > { %v10365_v29 = vld [vmem:[%s11655_s19 + $0xeb4] ss:$8 sps:$4 sm:$0xff]  }
 0x29c   : > { %8147 = vmatpush1.bf16.msra.mxu1 %v10288_v0  ;;  %8571 = vmatpush1.bf16.msra.mxu0 %v10291_v1  ;;  %v10360_v0 = vld [vmem:[%s11655_s19 + $0x6b0] ss:$8 sps:$4 sm:$0xff]  }
 0x29d   : > { %8169 = vmatprep.subr.bf16.mxu1 %v10296_v16  ;;  %8593 = vmatprep.subr.bf16.mxu0 %v10299_v17  ;;  %v10363_v1 = vld [vmem:[%s11655_s19 + $0xeb0] ss:$8 sps:$4 sm:$0xff]   ;;  %v10368_v16 = vld [vmem:[%s11655_s19 + $0x6c4] ss:$8 sps:$4 sm:$0xff]  }
 0x29e   : > { %v10371_v17 = vld [vmem:[%s11655_s19 + $0xec4] ss:$8 sps:$4 sm:$0xff]  }
 0x29f   : > { %8149 = vmatmul.mubr.bf16.vlgmr.msra.gmra.mrb[0].mxu1 %v8976_v6  ;;  %8573 = vmatmul.mubr.bf16.vlgmr.msra.gmra.mrb[0].mxu0 %v8992_v30  ;;  %v10369_v6 = vld [vmem:[%s11655_s19 + $0xec0] ss:$8 sps:$4 sm:$0xff]   ;;  %v10374_v30 = vld [vmem:[%s11655_s19 + $0x6d4] ss:$8 sps:$4 sm:$0xff]  }
 0x2a0   : > { %8170 = vmatpush1.bf16.msra.mxu1 %v10294_v20  ;;  %8594 = vmatpush1.bf16.msra.mxu0 %v10297_v21  ;;  %v10380_v20 = vld [vmem:[%s11655_s19 + $0x6e4] ss:$8 sps:$4 sm:$0xff]  }
 0x2a1   : > { %8171 = vmatprep.subr.bf16.mxu1 %v10302_v3  ;;  %8595 = vmatprep.subr.bf16.mxu0 %v10305_v2  ;;  %v10383_v21 = vld [vmem:[%s11655_s19 + $0xee4] ss:$8 sps:$4 sm:$0xff]   ;;  %v10378_v3 = vld [vmem:[%s11655_s19 + $0x6e0] ss:$8 sps:$4 sm:$0xff]  }
 0x2a2   : > { %8158 = vmatprep.mubr.bf16.mxu1 %v9009_v34  ;;  %8582 = vmatprep.mubr.bf16.mxu0 %v9025_v35  ;;  %v10381_v2 = vld [vmem:[%s11655_s19 + $0xee0] ss:$8 sps:$4 sm:$0xff]   ;;  %v10386_v34 = vld [vmem:[%s11655_s19 + $0x6f4] ss:$8 sps:$4 sm:$0xff]  }
 0x2a3   : > { %v10389_v35 = vld [vmem:[%s11655_s19 + $0xef4] ss:$8 sps:$4 sm:$0xff]  }
 0x2a4   : > { %8172 = vmatpush1.bf16.msra.mxu1 %v10300_v36  ;;  %8596 = vmatpush1.bf16.msra.mxu0 %v10303_v37  ;;  %v10384_v36 = vld [vmem:[%s11655_s19 + $0x6f0] ss:$8 sps:$4 sm:$0xff]  }
 0x2a5   : > { %8173 = vmatprep.subr.bf16.mxu1 %v10308_v38  ;;  %8597 = vmatprep.subr.bf16.mxu0 %v10311_v39  ;;  %v10387_v37 = vld [vmem:[%s11655_s19 + $0xef0] ss:$8 sps:$4 sm:$0xff]   ;;  %v10392_v38 = vld [vmem:[%s11655_s19 + $0x704] ss:$8 sps:$4 sm:$0xff]  }
 0x2a6   : > { %v10395_v39 = vld [vmem:[%s11655_s19 + $0xf04] ss:$8 sps:$4 sm:$0xff]  }
 0x2a7   : > { %8159 = vmatmul.mubr.bf16.gmra.mrb[4].mxu1 %v9008_v41  ;;  %8583 = vmatmul.mubr.bf16.gmra.mrb[4].mxu0 %v9024_v44  ;;  %v4433_v41 = vld [vmem:[%s12504_s0 + $0x130] sm:$0xff]  ;;  %v8978_v44 = vcombine.low %v12272_v40, %v12277_v45  ;;  %v10390_v40 = vld [vmem:[%s11655_s19 + $0x700] ss:$8 sps:$4 sm:$0xff]  }
 0x2a8   : > { %8174 = vmatpush1.bf16.msra.mxu1 %v10306_v50  ;;  %8598 = vmatpush1.bf16.msra.mxu0 %v10309_v51  ;;  %v8994_v50 = vcombine.low %v12282_v48, %v12287_v49  ;;  %v4449_v51 = vld [vmem:[%s12504_s0 + $0x1b0] sm:$0xff]  ;;  %v10393_v45 = vld [vmem:[%s11655_s19 + $0xf00] ss:$8 sps:$4 sm:$0xff]  }
 0x2a9   : > { %8175 = vmatprep.subr.bf16.mxu1 %v10314_v52  ;;  %8599 = vmatprep.subr.bf16.mxu0 %v10317_v42  ;;  %v4441_v52 = vld [vmem:[%s12504_s0 + $0x170] sm:$0xff] }
 0x2aa   : > { %8201 = vmatprep.mubr.bf16.mxu1 %v8979_v43  ;;  %8625 = vmatprep.mubr.bf16.mxu0 %v8995_v46  ;;  %v4457_v42 = vld [vmem:[%s12504_s0 + $0x1f0] sm:$0xff]  ;;  %v9011_v43 = vcombine.high %v4433_v41, %v4449_v51 }
 0x2ab   : > { %v10398_v48 = vld [vmem:[%s11655_s19 + $0x714] ss:$8 sps:$4 sm:$0xff]   ;;  %v9027_v46 = vcombine.high %v4441_v52, %v4457_v42 }
 0x2ac   : > { %8176 = vmatpush1.bf16.msra.mxu1 %v10312_v47  ;;  %8600 = vmatpush1.bf16.msra.mxu0 %v10315_v53  ;;  %v10401_v49 = vld [vmem:[%s11655_s19 + $0xf14] ss:$8 sps:$4 sm:$0xff]   ;;  %v10396_v47 = vld [vmem:[%s11655_s19 + $0x710] ss:$8 sps:$4 sm:$0xff]  }
 0x2ad   : > { %8177 = vmatprep.subr.bf16.mxu1 %v10320_v54  ;;  %8601 = vmatprep.subr.bf16.mxu0 %v10323_v55  ;;  %v10399_v53 = vld [vmem:[%s11655_s19 + $0xf10] ss:$8 sps:$4 sm:$0xff]   ;;  %v10404_v54 = vld [vmem:[%s11655_s19 + $0x724] ss:$8 sps:$4 sm:$0xff]  }
 0x2ae   : > { %v10407_v55 = vld [vmem:[%s11655_s19 + $0xf24] ss:$8 sps:$4 sm:$0xff]  }
 0x2b0   : > { %8178 = vmatpush1.bf16.msra.mxu1 %v10318_v56  ;;  %8602 = vmatpush1.bf16.msra.mxu0 %v10321_v57  ;;  %v12376_v56 = vld [vmem:[%s12504_s0 + $0x38] sm:$0xff]  ;;  %v9010_v57 = vcombine.low %v4433_v41, %v4449_v51  ;;  %v10462_v41 = vld [vmem:[%s11655_s19 + $0x7c0] ss:$8 sps:$4 sm:$0xff]  }
 0x2b1   : > { %8179 = vmatprep.subr.bf16.mxu1 %v10326_v60  ;;  %8603 = vmatprep.subr.bf16.mxu0 %v10329_v61  ;;  %v9026_v60 = vcombine.low %v4441_v52, %v4457_v42  ;;  %v12381_v61 = vld [vmem:[%s12504_s0 + $0xb8] sm:$0xff] }
 0x2b2   : > { %v10473_v51 = vld [vmem:[%s11655_s19 + $0xfd4] ss:$8 sps:$4 sm:$0xff]   ;;  %v10468_v52 = vld [vmem:[%s11655_s19 + $0x7d0] ss:$8 sps:$4 sm:$0xff]  }
 0x2b3   : > { %v10471_v42 = vld [vmem:[%s11655_s19 + $0xfd0] ss:$8 sps:$4 sm:$0xff]  }
 0x2b4   : > { %8180 = vmatpush1.bf16.msra.mxu1 %v10324_v4  ;;  %8604 = vmatpush1.bf16.msra.mxu0 %v10327_v7  ;;  %v12386_v4 = vld [vmem:[%s12504_s0 + $0x78] sm:$0xff] }
 0x2b5   : > { %8181 = vmatprep.subr.bf16.mxu1 %v10332_v8  ;;  %8605 = vmatprep.subr.bf16.mxu0 %v10335_v9  ;;  %v12391_v7 = vld [vmem:[%s12504_s0 + $0xf8] sm:$0xff]  ;;  %v10402_v8 = vld [vmem:[%s11655_s19 + $0x720] ss:$8 sps:$4 sm:$0xff]  }
 0x2b6   : > { %v10405_v9 = vld [vmem:[%s11655_s19 + $0xf20] ss:$8 sps:$4 sm:$0xff]  }
 0x2b8   : > { %8182 = vmatpush1.bf16.msra.mxu1 %v10330_v10  ;;  %8606 = vmatpush1.bf16.msra.mxu0 %v10333_v58  ;;  %v10410_v10 = vld [vmem:[%s11655_s19 + $0x734] ss:$8 sps:$4 sm:$0xff]  }
 0x2b9   : > { %8183 = vmatprep.subr.bf16.mxu1 %v10338_v59  ;;  %8607 = vmatprep.subr.bf16.mxu0 %v10341_v62  ;;  %v10413_v58 = vld [vmem:[%s11655_s19 + $0xf34] ss:$8 sps:$4 sm:$0xff]   ;;  %v8981_v59 = vcombine.high %v12376_v56, %v12381_v61  ;;  %v8997_v62 = vcombine.high %v12386_v4, %v12391_v7 }
 0x2bc   : > { %8184 = vmatpush1.bf16.msra.mxu1 %v10336_v63  ;;  %8608 = vmatpush1.bf16.msra.mxu0 %v10339_v11  ;;  %v10408_v63 = vld [vmem:[%s11655_s19 + $0x730] ss:$8 sps:$4 sm:$0xff]  }
 0x2bd   : > { %8185 = vmatprep.subr.bf16.mxu1 %v10344_v12  ;;  %8609 = vmatprep.subr.bf16.mxu0 %v10347_v13  ;;  %v10411_v11 = vld [vmem:[%s11655_s19 + $0xf30] ss:$8 sps:$4 sm:$0xff]   ;;  %v10416_v12 = vld [vmem:[%s11655_s19 + $0x744] ss:$8 sps:$4 sm:$0xff]  }
 0x2be   : > { %v10419_v13 = vld [vmem:[%s11655_s19 + $0xf44] ss:$8 sps:$4 sm:$0xff]  }
 0x2c0   : > { %8186 = vmatpush1.bf16.msra.mxu1 %v10342_v14  ;;  %8610 = vmatpush1.bf16.msra.mxu0 %v10345_v15  ;;  %v10414_v14 = vld [vmem:[%s11655_s19 + $0x740] ss:$8 sps:$4 sm:$0xff]  }
 0x2c1   : > { %8187 = vmatprep.subr.bf16.mxu1 %v10350_v18  ;;  %8611 = vmatprep.subr.bf16.mxu0 %v10353_v19  ;;  %v10417_v15 = vld [vmem:[%s11655_s19 + $0xf40] ss:$8 sps:$4 sm:$0xff]   ;;  %v10422_v18 = vld [vmem:[%s11655_s19 + $0x754] ss:$8 sps:$4 sm:$0xff]  }
 0x2c2   : > { %v10425_v19 = vld [vmem:[%s11655_s19 + $0xf54] ss:$8 sps:$4 sm:$0xff]  }
 0x2c4   : > { %8188 = vmatpush1.bf16.msra.mxu1 %v10348_v22  ;;  %8612 = vmatpush1.bf16.msra.mxu0 %v10351_v23  ;;  %v10420_v22 = vld [vmem:[%s11655_s19 + $0x750] ss:$8 sps:$4 sm:$0xff]  }
 0x2c5   : > { %8189 = vmatprep.subr.bf16.mxu1 %v10356_v24  ;;  %8613 = vmatprep.subr.bf16.mxu0 %v10359_v25  ;;  %v10423_v23 = vld [vmem:[%s11655_s19 + $0xf50] ss:$8 sps:$4 sm:$0xff]   ;;  %v10428_v24 = vld [vmem:[%s11655_s19 + $0x764] ss:$8 sps:$4 sm:$0xff]  }
 0x2c6   : > { %v10431_v25 = vld [vmem:[%s11655_s19 + $0xf64] ss:$8 sps:$4 sm:$0xff]  }
 0x2c8   : > { %8190 = vmatpush1.bf16.msra.mxu1 %v10354_v26  ;;  %8614 = vmatpush1.bf16.msra.mxu0 %v10357_v27  ;;  %v10426_v26 = vld [vmem:[%s11655_s19 + $0x760] ss:$8 sps:$4 sm:$0xff]  }
 0x2c9   : > { %8191 = vmatprep.subr.bf16.mxu1 %v10362_v28  ;;  %8615 = vmatprep.subr.bf16.mxu0 %v10365_v29  ;;  %v10429_v27 = vld [vmem:[%s11655_s19 + $0xf60] ss:$8 sps:$4 sm:$0xff]   ;;  %v10434_v28 = vld [vmem:[%s11655_s19 + $0x774] ss:$8 sps:$4 sm:$0xff]  }
 0x2ca   : > { %v10437_v29 = vld [vmem:[%s11655_s19 + $0xf74] ss:$8 sps:$4 sm:$0xff]  }
 0x2cc   : > { %8192 = vmatpush1.bf16.msra.mxu1 %v10360_v0  ;;  %8616 = vmatpush1.bf16.msra.mxu0 %v10363_v1  ;;  %v10432_v0 = vld [vmem:[%s11655_s19 + $0x770] ss:$8 sps:$4 sm:$0xff]  }
 0x2cd   : > { %8193 = vmatprep.subr.bf16.mxu1 %v10368_v16  ;;  %8617 = vmatprep.subr.bf16.mxu0 %v10371_v17  ;;  %v10435_v1 = vld [vmem:[%s11655_s19 + $0xf70] ss:$8 sps:$4 sm:$0xff]   ;;  %v10440_v16 = vld [vmem:[%s11655_s19 + $0x784] ss:$8 sps:$4 sm:$0xff]  }
 0x2ce   : > { %v10443_v17 = vld [vmem:[%s11655_s19 + $0xf84] ss:$8 sps:$4 sm:$0xff]  }
 0x2d0   : > { %8194 = vmatpush1.bf16.msra.mxu1 %v10366_v5  ;;  %8618 = vmatpush1.bf16.msra.mxu0 %v10369_v6  ;;  %v10438_v5 = vld [vmem:[%s11655_s19 + $0x780] ss:$8 sps:$4 sm:$0xff]  }
 0x2d1   : > { %8195 = vmatprep.subr.bf16.mxu1 %v10374_v30  ;;  %8619 = vmatprep.subr.bf16.mxu0 %v10377_v31  ;;  %v10441_v6 = vld [vmem:[%s11655_s19 + $0xf80] ss:$8 sps:$4 sm:$0xff]   ;;  %v10446_v30 = vld [vmem:[%s11655_s19 + $0x794] ss:$8 sps:$4 sm:$0xff]  }
 0x2d2   : > { %v10449_v31 = vld [vmem:[%s11655_s19 + $0xf94] ss:$8 sps:$4 sm:$0xff]  }
 0x2d4   : > { %8196 = vmatpush1.bf16.msra.mxu1 %v10372_v32  ;;  %8620 = vmatpush1.bf16.msra.mxu0 %v10375_v33  ;;  %v10444_v32 = vld [vmem:[%s11655_s19 + $0x790] ss:$8 sps:$4 sm:$0xff]  }
 0x2d5   : > { %8197 = vmatprep.subr.bf16.mxu1 %v10380_v20  ;;  %8621 = vmatprep.subr.bf16.mxu0 %v10383_v21  ;;  %v10447_v33 = vld [vmem:[%s11655_s19 + $0xf90] ss:$8 sps:$4 sm:$0xff]   ;;  %v10452_v20 = vld [vmem:[%s11655_s19 + $0x7a4] ss:$8 sps:$4 sm:$0xff]  }
 0x2d6   : > { %v10455_v21 = vld [vmem:[%s11655_s19 + $0xfa4] ss:$8 sps:$4 sm:$0xff]  }
 0x2d8   : > { %8198 = vmatpush1.bf16.msra.mxu1 %v10378_v3  ;;  %8622 = vmatpush1.bf16.msra.mxu0 %v10381_v2  ;;  %v10450_v3 = vld [vmem:[%s11655_s19 + $0x7a0] ss:$8 sps:$4 sm:$0xff]  }
 0x2d9   : > { %8199 = vmatprep.subr.bf16.mxu1 %v10386_v34  ;;  %8623 = vmatprep.subr.bf16.mxu0 %v10389_v35  ;;  %v10453_v2 = vld [vmem:[%s11655_s19 + $0xfa0] ss:$8 sps:$4 sm:$0xff]   ;;  %v10458_v34 = vld [vmem:[%s11655_s19 + $0x7b4] ss:$8 sps:$4 sm:$0xff]  }
 0x2da   : > { %v10461_v35 = vld [vmem:[%s11655_s19 + $0xfb4] ss:$8 sps:$4 sm:$0xff]  }
 0x2dc   : > { %8200 = vmatpush1.bf16.msra.mxu1 %v10384_v36  ;;  %8624 = vmatpush1.bf16.msra.mxu0 %v10387_v37  ;;  %v10456_v36 = vld [vmem:[%s11655_s19 + $0x7b0] ss:$8 sps:$4 sm:$0xff]  }
 0x2dd   : > { %8222 = vmatprep.subr.bf16.mxu1 %v10392_v38  ;;  %8646 = vmatprep.subr.bf16.mxu0 %v10395_v39  ;;  %v10459_v37 = vld [vmem:[%s11655_s19 + $0xfb0] ss:$8 sps:$4 sm:$0xff]   ;;  %v10464_v38 = vld [vmem:[%s11655_s19 + $0x7c4] ss:$8 sps:$4 sm:$0xff]  }
 0x2de   : > { %v10467_v39 = vld [vmem:[%s11655_s19 + $0xfc4] ss:$8 sps:$4 sm:$0xff]  }
 0x2df   : > { %8202 = vmatmul.mubr.bf16.vlgmr.msra.gmra.mrb[0].mxu1 %v8978_v44  ;;  %8626 = vmatmul.mubr.bf16.vlgmr.msra.gmra.mrb[0].mxu0 %v8994_v50  ;;  %v10465_v44 = vld [vmem:[%s11655_s19 + $0xfc0] ss:$8 sps:$4 sm:$0xff]   ;;  %v10470_v50 = vld [vmem:[%s11655_s19 + $0x7d4] ss:$8 sps:$4 sm:$0xff]  }
 0x2e0   : > { %8223 = vmatpush1.bf16.msra.mxu1 %v10390_v40  ;;  %8647 = vmatpush1.bf16.msra.mxu0 %v10393_v45  ;;  %v10476_v40 = vld [vmem:[%s11655_s19 + $0x7e4] ss:$8 sps:$4 sm:$0xff]  }
 0x2e1   : > { %8224 = vmatprep.subr.bf16.mxu1 %v10398_v48  ;;  %8648 = vmatprep.subr.bf16.mxu0 %v10401_v49  ;;  %v10479_v45 = vld [vmem:[%s11655_s19 + $0xfe4] ss:$8 sps:$4 sm:$0xff]   ;;  %v10474_v48 = vld [vmem:[%s11655_s19 + $0x7e0] ss:$8 sps:$4 sm:$0xff]  }
 0x2e2   : > { %8211 = vmatprep.mubr.bf16.mxu1 %v9011_v43  ;;  %8635 = vmatprep.mubr.bf16.mxu0 %v9027_v46  ;;  %v10477_v49 = vld [vmem:[%s11655_s19 + $0xfe0] ss:$8 sps:$4 sm:$0xff]   ;;  %v10482_v43 = vld [vmem:[%s11655_s19 + $0x7f4] ss:$8 sps:$4 sm:$0xff]  }
 0x2e3   : > { %v10485_v46 = vld [vmem:[%s11655_s19 + $0xff4] ss:$8 sps:$4 sm:$0xff]  }
 0x2e4   : > { %8225 = vmatpush1.bf16.msra.mxu1 %v10396_v47  ;;  %8649 = vmatpush1.bf16.msra.mxu0 %v10399_v53  ;;  %v10480_v47 = vld [vmem:[%s11655_s19 + $0x7f0] ss:$8 sps:$4 sm:$0xff]  }
 0x2e5   : > { %8226 = vmatprep.subr.bf16.mxu1 %v10404_v54  ;;  %8650 = vmatprep.subr.bf16.mxu0 %v10407_v55  ;;  %v10483_v53 = vld [vmem:[%s11655_s19 + $0xff0] ss:$8 sps:$4 sm:$0xff]   ;;  %s8964_s19 = sshll.u32 %s10516_s14, 1 }
 0x2e6   : > { %v4434_v54 = vld [vmem:[%s12504_s0 + $0x138] sm:$0xff]  ;;  %p4388_p11 = scmp.lt.s32.totalorder %s8964_s19, 3 }
 0x2e7   : > { %8212 = vmatmul.mubr.bf16.gmra.mrb[4].mxu1 %v9010_v57  ;;  %8636 = vmatmul.mubr.bf16.gmra.mrb[4].mxu0 %v9026_v60  ;;  %v4450_v55 = vld [vmem:[%s12504_s0 + $0x1b8] sm:$0xff] }
 0x2e8   : > { %8227 = vmatpush1.bf16.msra.mxu1 %v10402_v8  ;;  %8651 = vmatpush1.bf16.msra.mxu0 %v10405_v9  ;;  %v4442_v57 = vld [vmem:[%s12504_s0 + $0x178] sm:$0xff]  ;;  %v8980_v8 = vcombine.low %v12376_v56, %v12381_v61  ;;  %v8996_v9 = vcombine.low %v12386_v4, %v12391_v7  ;;  %s12516_s19 = smov (!%p4388_p11, %s8964_s19), 3 }
 0x2e9   : > { %8228 = vmatprep.subr.bf16.mxu1 %v10410_v10  ;;  %8652 = vmatprep.subr.bf16.mxu0 %v10413_v58  ;;  %v4458_v60 = vld [vmem:[%s12504_s0 + $0x1f8] sm:$0xff]  ;;  %v9013_v10 = vcombine.high %v4434_v54, %v4450_v55  ;;  %s8965_s23 = sshll.u32 %s12516_s19, 1 }
 0x2ea   : > { %8254 = vmatprep.mubr.bf16.mxu1 %v8981_v59  ;;  %8678 = vmatprep.mubr.bf16.mxu0 %v8997_v62  ;;  %v9029_v58 = vcombine.high %v4442_v57, %v4458_v60  ;;  %v9012_v59 = vcombine.low %v4434_v54, %v4450_v55  ;;  %v9028_v62 = vcombine.low %v4442_v57, %v4458_v60  ;;  %s4391_s26 = scalar_lea.vmem %s12506_s2, %s8965_s23 }
 0x2eb   : > { %v8699_v4 = vld [vmem:[%s4391_s26] ss:$2 sm:$0x3] }
 0x2ec   : > { %8229 = vmatpush1.bf16.msra.mxu1 %v10408_v63  ;;  %8653 = vmatpush1.bf16.msra.mxu0 %v10411_v11  ;;  %v8701_v63 = vlaneseq  ;;  %v9542_v11 = vld [vmem:[%s4391_s26 + $0x1] ss:$2 sm:$0x3] }
 0x2ed   : > { %8230 = vmatprep.subr.bf16.mxu1 %v10416_v12  ;;  %8654 = vmatprep.subr.bf16.mxu0 %v10419_v13 }
 0x2ee   : > { %v8702_v56 = vshrl.u32 %v8701_v63, 7 }
 0x2f0   : > { %8231 = vmatpush1.bf16.msra.mxu1 %v10414_v14  ;;  %8655 = vmatpush1.bf16.msra.mxu0 %v10417_v15  ;;  %v8703_v61 = vsub.s32 0, %v8702_v56  ;;  %v8707_v7 = vsub.s32 1, %v8702_v56 }
 0x2f1   : > { %8232 = vmatprep.subr.bf16.mxu1 %v10422_v18  ;;  %8656 = vmatprep.subr.bf16.mxu0 %v10425_v19 }
 0x2f2   : > { %v8704_v12 = vrot.slane %v8699_v4, %v8703_v61  ;;  %v8708_v15 = vrot.slane %v8699_v4, %v8707_v7  ;;  %v8725_v19 = vrot.slane %v9542_v11, %v8703_v61 }
 0x2f4   : > { %8233 = vmatpush1.bf16.msra.mxu1 %v10420_v22  ;;  %8657 = vmatpush1.bf16.msra.mxu0 %v10423_v23 }
 0x2f5   : > { %8234 = vmatprep.subr.bf16.mxu1 %v10428_v24  ;;  %8658 = vmatprep.subr.bf16.mxu0 %v10431_v25  ;;  %v8729_v25 = vrot.slane %v9542_v11, %v8707_v7 }
 0x2f8   : > { %8235 = vmatpush1.bf16.msra.mxu1 %v10426_v26  ;;  %8659 = vmatpush1.bf16.msra.mxu0 %v10429_v27 }
 0x2f9   : > { %8236 = vmatprep.subr.bf16.mxu1 %v10434_v28  ;;  %8660 = vmatprep.subr.bf16.mxu0 %v10437_v29 }
 0x2fc   : > { %8237 = vmatpush1.bf16.msra.mxu1 %v10432_v0  ;;  %8661 = vmatpush1.bf16.msra.mxu0 %v10435_v1 }
 0x2fd   : > { %8238 = vmatprep.subr.bf16.mxu1 %v10440_v16  ;;  %8662 = vmatprep.subr.bf16.mxu0 %v10443_v17 }
 0x300   : > { %8239 = vmatpush1.bf16.msra.mxu1 %v10438_v5  ;;  %8663 = vmatpush1.bf16.msra.mxu0 %v10441_v6 }
 0x301   : > { %8240 = vmatprep.subr.bf16.mxu1 %v10446_v30  ;;  %8664 = vmatprep.subr.bf16.mxu0 %v10449_v31 }
 0x304   : > { %8241 = vmatpush1.bf16.msra.mxu1 %v10444_v32  ;;  %8665 = vmatpush1.bf16.msra.mxu0 %v10447_v33 }
 0x305   : > { %8242 = vmatprep.subr.bf16.mxu1 %v10452_v20  ;;  %8666 = vmatprep.subr.bf16.mxu0 %v10455_v21 }
 0x308   : > { %8243 = vmatpush1.bf16.msra.mxu1 %v10450_v3  ;;  %8667 = vmatpush1.bf16.msra.mxu0 %v10453_v2 }
 0x309   : > { %8244 = vmatprep.subr.bf16.mxu1 %v10458_v34  ;;  %8668 = vmatprep.subr.bf16.mxu0 %v10461_v35 }
 0x30c   : > { %8245 = vmatpush1.bf16.msra.mxu1 %v10456_v36  ;;  %8669 = vmatpush1.bf16.msra.mxu0 %v10459_v37 }
 0x30d   : > { %8246 = vmatprep.subr.bf16.mxu1 %v10464_v38  ;;  %8670 = vmatprep.subr.bf16.mxu0 %v10467_v39 }
 0x310   : > { %8247 = vmatpush1.bf16.msra.mxu1 %v10462_v41  ;;  %8671 = vmatpush1.bf16.msra.mxu0 %v10465_v44 }
 0x311   : > { %8248 = vmatprep.subr.bf16.mxu1 %v10470_v50  ;;  %8672 = vmatprep.subr.bf16.mxu0 %v10473_v51 }
 0x314   : > { %8249 = vmatpush1.bf16.msra.mxu1 %v10468_v52  ;;  %8673 = vmatpush1.bf16.msra.mxu0 %v10471_v42 }
 0x315   : > { %8250 = vmatprep.subr.bf16.mxu1 %v10476_v40  ;;  %8674 = vmatprep.subr.bf16.mxu0 %v10479_v45 }
 0x318   : > { %8251 = vmatpush1.bf16.msra.mxu1 %v10474_v48  ;;  %8675 = vmatpush1.bf16.msra.mxu0 %v10477_v49 }
 0x319   : > { %8252 = vmatprep.subr.bf16.mxu1 %v10482_v43  ;;  %8676 = vmatprep.subr.bf16.mxu0 %v10485_v46 }
 0x31c   : > { %8253 = vmatpush1.bf16.msra.mxu1 %v10480_v47  ;;  %8677 = vmatpush1.bf16.msra.mxu0 %v10483_v53 }
 0x31f   : > { %8255 = vmatmul.mubr.bf16.vlgmr.msra.gmra.mrb[0].mxu1 %v8980_v8  ;;  %8679 = vmatmul.mubr.bf16.vlgmr.msra.gmra.mrb[0].mxu0 %v8996_v9 }
 0x320   : > { %8264 = vmatprep.mubr.bf16.mxu1 %v9013_v10  ;;  %8688 = vmatprep.mubr.bf16.mxu0 %v9029_v58 }
 0x327   : > { %8265 = vmatmul.mubr.bf16.gmra.mrb[4].mxu1 %v9012_v59  ;;  %8689 = vmatmul.mubr.bf16.gmra.mrb[4].mxu0 %v9028_v62 }
 0x3f2   : > { %v8256_v13 = vpop.f32.mrb[0].mxu1  ;;  %v8680_v14 = vpop.f32.mrb[0].mxu0 }
 0x3f3   : > { %v9558_v18 = vadd.f32 %v8680_v14, %v8256_v13  ;;  %v8258_v22 = vpop.f32.mrb[1].mxu1  ;;  %v8682_v23 = vpop.f32.mrb[1].mxu0 }
 0x3f4   : > { %v9559_v24 = vadd.f32 %v8682_v23, %v8258_v22  ;;  %v8260_v26 = vpop.f32.mrb[2].mxu1  ;;  %v8684_v27 = vpop.f32.mrb[2].mxu0 }
 0x3f5   : > { %v8711_v28 = vmul.f32 %v9558_v18, %v8704_v12  ;;  %v9560_v29 = vadd.f32 %v8684_v27, %v8260_v26  ;;  %v8262_v0 = vpop.f32.mrb[3].mxu1  ;;  %v8686_v1 = vpop.f32.mrb[3].mxu0 }
 0x3f6   : > { %v8712_v16 = vmul.f32 %v9559_v24, %v8708_v15  ;;  %v9561_v17 = vadd.f32 %v8686_v1, %v8262_v0 }
 0x3f7   : > { %v8732_v5 = vadd.f32 %v8725_v19, %v8711_v28  ;;  %v8713_v6 = vmul.f32 %v9560_v29, %v8704_v12 }
 0x3f8   : > { %v8733_v30 = vadd.f32 %v8729_v25, %v8712_v16  ;;  %v8714_v31 = vmul.f32 %v9561_v17, %v8708_v15 }
 0x3f9   : > { %vm8740_vm0 = vcmp.ge.f32.partialorder %v8732_v5, 0.0  ;;  %v8748_v32 = vmul.f32 0.2, %v8732_v5  ;;  %v8734_v33 = vadd.f32 %v8725_v19, %v8713_v6 }
 0x3fa   : > { %vm8741_vm1 = vcmp.ge.f32.partialorder %v8733_v30, 0.0  ;;  %v8749_v20 = vmul.f32 0.2, %v8733_v30  ;;  %v8735_v21 = vadd.f32 %v8729_v25, %v8714_v31  ;;  %v8266_v3 = vpop.f32.mrb[4].mxu1  ;;  %v8690_v2 = vpop.f32.mrb[4].mxu0 }
 0x3fb   : > { %v8756_v34 = vsel %vm8740_vm0, %v8732_v5, %v8748_v32  ;;  %vm8742_vm2 = vcmp.ge.f32.partialorder %v8734_v33, 0.0  ;;  %v8750_v35 = vmul.f32 0.2, %v8734_v33  ;;  %v9562_v36 = vadd.f32 %v8690_v2, %v8266_v3  ;;  %v8268_v37 = vpop.f32.mrb[5].mxu1  ;;  %v8692_v38 = vpop.f32.mrb[5].mxu0 }
 0x3fc   : > { %v8757_v39 = vsel %vm8741_vm1, %v8733_v30, %v8749_v20  ;;  %vm8743_vm3 = vcmp.ge.f32.partialorder %v8735_v21, 0.0  ;;  %v8751_v41 = vmul.f32 0.2, %v8735_v21  ;;  %v9563_v44 = vadd.f32 %v8692_v38, %v8268_v37  ;;  %v8270_v50 = vpop.f32.mrb[6].mxu1  ;;  %v8694_v51 = vpop.f32.mrb[6].mxu0 }
 0x3fd   : > { %v9553_v52 = vpack.c.bf16 %v8757_v39, %v8756_v34  ;;  %v8758_v42 = vsel %vm8742_vm2, %v8734_v33, %v8750_v35  ;;  %v8715_v40 = vmul.f32 %v9562_v36, %v8704_v12  ;;  %v9564_v45 = vadd.f32 %v8694_v51, %v8270_v50  ;;  %v8272_v48 = vpop.f32.mrb[7].mxu1  ;;  %v8696_v49 = vpop.f32.mrb[7].mxu0 }
 0x3fe   : > { %v8759_v43 = vsel %vm8743_vm3, %v8735_v21, %v8751_v41  ;;  %v8716_v46 = vmul.f32 %v9563_v44, %v8708_v15  ;;  %v9565_v47 = vadd.f32 %v8696_v49, %v8272_v48 }
 0x3ff   : > { %8788 = vst [vmem:[%s12473_s12] sm:$0xff] %v9553_v52  ;;  %v9554_v53 = vpack.c.bf16 %v8759_v43, %v8758_v42  ;;  %v8736_v54 = vadd.f32 %v8725_v19, %v8715_v40  ;;  %v8717_v55 = vmul.f32 %v9564_v45, %v8704_v12 }
 0x400   : > { %v8737_v57 = vadd.f32 %v8729_v25, %v8716_v46  ;;  %v8718_v60 = vmul.f32 %v9565_v47, %v8708_v15 }
 0x401   : > { %8789 = vst [vmem:[%s12473_s12 + $0x8] sm:$0xff] %v9554_v53  ;;  %vm8744_vm4 = vcmp.ge.f32.partialorder %v8736_v54, 0.0  ;;  %v8752_v8 = vmul.f32 0.2, %v8736_v54  ;;  %v8738_v9 = vadd.f32 %v8725_v19, %v8717_v55 }
 0x402   : > { %vm8745_vm5 = vcmp.ge.f32.partialorder %v8737_v57, 0.0  ;;  %v8753_v10 = vmul.f32 0.2, %v8737_v57  ;;  %v8739_v58 = vadd.f32 %v8729_v25, %v8718_v60 }
 0x403   : > { %v8760_v59 = vsel %vm8744_vm4, %v8736_v54, %v8752_v8  ;;  %vm8746_vm6 = vcmp.ge.f32.partialorder %v8738_v9, 0.0  ;;  %v8754_v62 = vmul.f32 0.2, %v8738_v9  ;;  %8798 = sbr.rel (!%p10581_p6) target bundleno = 1042 (0x412), region = 88 }
 0x404   : > { %v8761_v63 = vsel %vm8745_vm5, %v8737_v57, %v8753_v10  ;;  %vm8747_vm7 = vcmp.ge.f32.partialorder %v8739_v58, 0.0  ;;  %v8755_v56 = vmul.f32 0.2, %v8739_v58 }
 0x405   : > { %v9555_v61 = vpack.c.bf16 %v8761_v63, %v8760_v59  ;;  %v8762_v4 = vsel %vm8746_vm6, %v8738_v9, %v8754_v62 }
 0x406   : > { %v8763_v7 = vsel %vm8747_vm7, %v8739_v58, %v8755_v56  ;;  %v8838_v12 = vld [vmem:[%s12473_s12] sm:$0xff] (%p10581_p6) }
 0x407   : > { %8790 = vst [vmem:[%s12473_s12 + $0x10] sm:$0xff] %v9555_v61  ;;  %v9556_v11 = vpack.c.bf16 %v8763_v7, %v8762_v4  ;;  %8839 = vst [vmem:[%s8804_s4] sm:$0xff] (%p10581_p6), %v8838_v12 }
 0x408   : > { %v8840_v13 = vld [vmem:[%s12473_s12 + $0x8] sm:$0xff] (%p10581_p6) }
 0x409   : > { %8791 = vst [vmem:[%s12473_s12 + $0x18] sm:$0xff] %v9556_v11  ;;  %8841 = vst [vmem:[%s8804_s4 + $0x10] sm:$0xff] (%p10581_p6), %v8840_v13 }
 0x40e   : > { %v8842_v14 = vld [vmem:[%s12473_s12 + $0x10] sm:$0xff] }
 0x40f   : > { %8843 = vst [vmem:[%s8804_s4 + $0x20] sm:$0xff] %v8842_v14 }
 0x410   : > { %v8844_v15 = vld [vmem:[%s12473_s12 + $0x18] sm:$0xff] }
 0x411   : > { %8845 = vst [vmem:[%s8804_s4 + $0x30] sm:$0xff] %v8844_v15 }
 0x412 PF: > { %s13_s16 = sadd.s32 1, %s10524_s16   ;;  %s12509_s12 = smov %s10512_s13 }
 0x413   : > { %p10_p12 = scmp.ge.s32.totalorder %s13_s16, 4   ;;  %s12510_s13 = smov %s10586_s22 }
 0x414   : > { %s12511_s14 = smov %s10520_s15  ;;  %s12512_s15 = smov %s12514_s17 }
 0x415   :  { %12 = sbr.rel (!%p10_p12) target bundleno = 3 (0x3), region = 170 }

// kernel: discriminator_forward.9
= control target key start
LH: loop header
LB: loop body
LE: loop exit
PB: predicated region body
PF: predicated region fallthrough
CT: control target
= control target key end

     0   :  { %s9441_s1 = inlined_call_operand.vmem [shape: bf16[8192,128], index: 1, kind: input, shape index: {}]   ;;  %s9442_s0 = inlined_call_operand.vmem [shape: bf16[16,8192], index: 0, kind: input, shape index: {}]   ;;  %s9443_s2 = inlined_call_operand.vmem [shape: f32[2,128], index: 2, kind: input, shape index: {}]   ;;  %s9444_s3 = inlined_call_operand.vmem [shape: f32[16,128], index: 3, kind: output, shape index: {}]  }
   0x1   :  { %v7117_v0 = vld [vmem:[%s9441_s1 + $0x40] sm:$0xff]   ;;  %v7121_v4 = vld [vmem:[%s9441_s1 + $0x48] sm:$0xff]   ;;  %v7125_v8 = vld [vmem:[%s9441_s1 + $0x50] sm:$0xff]  }
   0x2   :  { %v7118_v1 = vld [vmem:[%s9441_s1 + $0xc0] sm:$0xff]   ;;  %6413 = vmatprep.subr.bf16.mxu0 %v7117_v0  ;;  %v7122_v5 = vld [vmem:[%s9441_s1 + $0xc8] sm:$0xff]   ;;  %v7126_v9 = vld [vmem:[%s9441_s1 + $0xd0] sm:$0xff]  }
   0x3   :  { %v7119_v2 = vld [vmem:[%s9441_s1] sm:$0xff]   ;;  %6435 = vmatprep.subr.bf16.mxu1 %v7118_v1  ;;  %v7123_v6 = vld [vmem:[%s9441_s1 + $0x8] sm:$0xff]   ;;  %v7127_v10 = vld [vmem:[%s9441_s1 + $0x10] sm:$0xff]  }
   0x4   :  { %v7120_v3 = vld [vmem:[%s9441_s1 + $0x80] sm:$0xff]   ;;  %6414 = vmatpush3.bf16.msra.mxu0 %v7119_v2  ;;  %v7124_v7 = vld [vmem:[%s9441_s1 + $0x88] sm:$0xff]   ;;  %v7128_v11 = vld [vmem:[%s9441_s1 + $0x90] sm:$0xff]  }
   0x5   :  { %6436 = vmatpush3.bf16.msra.mxu1 %v7120_v3  ;;  %6415 = vmatprep.subr.bf16.mxu0 %v7121_v4  ;;  %v7129_v12 = vld [vmem:[%s9441_s1 + $0x58] sm:$0xff]   ;;  %v7133_v16 = vld [vmem:[%s9441_s1 + $0x60] sm:$0xff]   ;;  %v7137_v20 = vld [vmem:[%s9441_s1 + $0x68] sm:$0xff]  }
   0x6   :  { %6437 = vmatprep.subr.bf16.mxu1 %v7122_v5  ;;  %v7130_v13 = vld [vmem:[%s9441_s1 + $0xd8] sm:$0xff]   ;;  %v7134_v17 = vld [vmem:[%s9441_s1 + $0xe0] sm:$0xff]   ;;  %v7138_v21 = vld [vmem:[%s9441_s1 + $0xe8] sm:$0xff]  }
   0x7   :  { %v7131_v14 = vld [vmem:[%s9441_s1 + $0x18] sm:$0xff]   ;;  %v7135_v18 = vld [vmem:[%s9441_s1 + $0x20] sm:$0xff]   ;;  %v7139_v22 = vld [vmem:[%s9441_s1 + $0x28] sm:$0xff]  }
   0x8   :  { %6416 = vmatpush3.bf16.msra.mxu0 %v7123_v6  ;;  %v7132_v15 = vld [vmem:[%s9441_s1 + $0x98] sm:$0xff]   ;;  %v7136_v19 = vld [vmem:[%s9441_s1 + $0xa0] sm:$0xff]   ;;  %v7140_v23 = vld [vmem:[%s9441_s1 + $0xa8] sm:$0xff]  }
   0x9   :  { %6438 = vmatpush3.bf16.msra.mxu1 %v7124_v7  ;;  %6417 = vmatprep.subr.bf16.mxu0 %v7125_v8  ;;  %v7141_v24 = vld [vmem:[%s9441_s1 + $0x70] sm:$0xff]   ;;  %v7145_v28 = vld [vmem:[%s9441_s1 + $0x78] sm:$0xff]   ;;  %v15_v32 = vld [vmem:[%s9442_s0] sm:$0xff] }
   0xa   :  { %6439 = vmatprep.subr.bf16.mxu1 %v7126_v9  ;;  %v7142_v25 = vld [vmem:[%s9441_s1 + $0xf0] sm:$0xff]   ;;  %v7146_v29 = vld [vmem:[%s9441_s1 + $0xf8] sm:$0xff]   ;;  %v47_v33 = vld [vmem:[%s9442_s0 + $0x100] sm:$0xff] }
   0xb   :  { %v7143_v26 = vld [vmem:[%s9441_s1 + $0x30] sm:$0xff]   ;;  %v7147_v30 = vld [vmem:[%s9441_s1 + $0x38] sm:$0xff]   ;;  %v16_v34 = vld [vmem:[%s9442_s0 + $0x8] sm:$0xff]  ;;  %v5835_v35 = vcombine.low %v15_v32, %v47_v33  ;;  %v5836_v36 = vcombine.high %v15_v32, %v47_v33 }
   0xc   :  { %6418 = vmatpush3.bf16.msra.mxu0 %v7127_v10  ;;  %v7144_v27 = vld [vmem:[%s9441_s1 + $0xb0] sm:$0xff]   ;;  %v7148_v31 = vld [vmem:[%s9441_s1 + $0xb8] sm:$0xff]   ;;  %v48_v37 = vld [vmem:[%s9442_s0 + $0x108] sm:$0xff] }
   0xd   :  { %6440 = vmatpush3.bf16.msra.mxu1 %v7128_v11  ;;  %6419 = vmatprep.subr.bf16.mxu0 %v7129_v12  ;;  %v5837_v38 = vcombine.low %v16_v34, %v48_v37  ;;  %v5838_v39 = vcombine.high %v16_v34, %v48_v37  ;;  %v7149_v40 = vld [vmem:[%s9441_s1 + $0x140] sm:$0xff]   ;;  %v7153_v44 = vld [vmem:[%s9441_s1 + $0x148] sm:$0xff]   ;;  %v7157_v48 = vld [vmem:[%s9441_s1 + $0x150] sm:$0xff]  }
   0xe   :  { %6441 = vmatprep.subr.bf16.mxu1 %v7130_v13  ;;  %4527 = vmatprep.mubr.bf16.mxu0 %v5836_v36  ;;  %v7150_v41 = vld [vmem:[%s9441_s1 + $0x1c0] sm:$0xff]   ;;  %v7154_v45 = vld [vmem:[%s9441_s1 + $0x1c8] sm:$0xff]   ;;  %v7158_v49 = vld [vmem:[%s9441_s1 + $0x1d0] sm:$0xff]  }
   0xf   :  { %4568 = vmatprep.mubr.bf16.mxu1 %v5838_v39  ;;  %v7151_v42 = vld [vmem:[%s9441_s1 + $0x100] sm:$0xff]   ;;  %v7155_v46 = vld [vmem:[%s9441_s1 + $0x108] sm:$0xff]   ;;  %v7159_v50 = vld [vmem:[%s9441_s1 + $0x110] sm:$0xff]  }
  0x10   :  { %6420 = vmatpush3.bf16.msra.mxu0 %v7131_v14  ;;  %v7152_v43 = vld [vmem:[%s9441_s1 + $0x180] sm:$0xff]   ;;  %v7156_v47 = vld [vmem:[%s9441_s1 + $0x188] sm:$0xff]   ;;  %v7160_v51 = vld [vmem:[%s9441_s1 + $0x190] sm:$0xff]  }
  0x11   :  { %6442 = vmatpush3.bf16.msra.mxu1 %v7132_v15  ;;  %6421 = vmatprep.subr.bf16.mxu0 %v7133_v16  ;;  %v7161_v52 = vld [vmem:[%s9441_s1 + $0x158] sm:$0xff]   ;;  %v7165_v56 = vld [vmem:[%s9441_s1 + $0x160] sm:$0xff]   ;;  %v7169_v60 = vld [vmem:[%s9441_s1 + $0x168] sm:$0xff]  }
  0x12   :  { %6443 = vmatprep.subr.bf16.mxu1 %v7134_v17  ;;  %v7162_v53 = vld [vmem:[%s9441_s1 + $0x1d8] sm:$0xff]   ;;  %v7166_v57 = vld [vmem:[%s9441_s1 + $0x1e0] sm:$0xff]   ;;  %v7170_v61 = vld [vmem:[%s9441_s1 + $0x1e8] sm:$0xff]  }
  0x13   :  { %v7163_v54 = vld [vmem:[%s9441_s1 + $0x118] sm:$0xff]   ;;  %v7167_v58 = vld [vmem:[%s9441_s1 + $0x120] sm:$0xff]   ;;  %v7171_v62 = vld [vmem:[%s9441_s1 + $0x128] sm:$0xff]  }
  0x14   :  { %6422 = vmatpush3.bf16.msra.mxu0 %v7135_v18  ;;  %v7164_v55 = vld [vmem:[%s9441_s1 + $0x198] sm:$0xff]   ;;  %v7168_v59 = vld [vmem:[%s9441_s1 + $0x1a0] sm:$0xff]   ;;  %v7172_v63 = vld [vmem:[%s9441_s1 + $0x1a8] sm:$0xff]  }
  0x15   :  { %6444 = vmatpush3.bf16.msra.mxu1 %v7136_v19  ;;  %6423 = vmatprep.subr.bf16.mxu0 %v7137_v20  ;;  %v7173_v0 = vld [vmem:[%s9441_s1 + $0x170] sm:$0xff]   ;;  %v7177_v4 = vld [vmem:[%s9441_s1 + $0x178] sm:$0xff]   ;;  %v7181_v16 = vld [vmem:[%s9441_s1 + $0x240] sm:$0xff]  }
  0x16   :  { %6445 = vmatprep.subr.bf16.mxu1 %v7138_v21  ;;  %v7174_v1 = vld [vmem:[%s9441_s1 + $0x1f0] sm:$0xff]   ;;  %v7178_v5 = vld [vmem:[%s9441_s1 + $0x1f8] sm:$0xff]   ;;  %v7182_v17 = vld [vmem:[%s9441_s1 + $0x2c0] sm:$0xff]  }
  0x17   :  { %v7175_v2 = vld [vmem:[%s9441_s1 + $0x130] sm:$0xff]   ;;  %v7179_v6 = vld [vmem:[%s9441_s1 + $0x138] sm:$0xff]   ;;  %v7183_v18 = vld [vmem:[%s9441_s1 + $0x200] sm:$0xff]  }
  0x18   :  { %6424 = vmatpush3.bf16.msra.mxu0 %v7139_v22  ;;  %v7176_v3 = vld [vmem:[%s9441_s1 + $0x1b0] sm:$0xff]   ;;  %v7180_v7 = vld [vmem:[%s9441_s1 + $0x1b8] sm:$0xff]   ;;  %v7184_v19 = vld [vmem:[%s9441_s1 + $0x280] sm:$0xff]  }
  0x19   :  { %6446 = vmatpush3.bf16.msra.mxu1 %v7140_v23  ;;  %6425 = vmatprep.subr.bf16.mxu0 %v7141_v24  ;;  %v17_v8 = vld [vmem:[%s9442_s0 + $0x10] sm:$0xff]  ;;  %v18_v12 = vld [vmem:[%s9442_s0 + $0x18] sm:$0xff]  ;;  %v7185_v20 = vld [vmem:[%s9441_s1 + $0x248] sm:$0xff]  }
  0x1a   :  { %6447 = vmatprep.subr.bf16.mxu1 %v7142_v25  ;;  %v49_v9 = vld [vmem:[%s9442_s0 + $0x110] sm:$0xff]  ;;  %v50_v13 = vld [vmem:[%s9442_s0 + $0x118] sm:$0xff]  ;;  %v7186_v21 = vld [vmem:[%s9441_s1 + $0x2c8] sm:$0xff]  }
  0x1b   :  { %v5839_v10 = vcombine.low %v17_v8, %v49_v9  ;;  %v5840_v11 = vcombine.high %v17_v8, %v49_v9  ;;  %v5841_v14 = vcombine.low %v18_v12, %v50_v13  ;;  %v5842_v15 = vcombine.high %v18_v12, %v50_v13  ;;  %v7187_v22 = vld [vmem:[%s9441_s1 + $0x208] sm:$0xff]   ;;  %v7189_v24 = vld [vmem:[%s9441_s1 + $0x250] sm:$0xff]   ;;  %v7197_v32 = vld [vmem:[%s9441_s1 + $0x260] sm:$0xff]  }
  0x1c   :  { %6426 = vmatpush3.bf16.msra.mxu0 %v7143_v26  ;;  %v7188_v23 = vld [vmem:[%s9441_s1 + $0x288] sm:$0xff]   ;;  %v7190_v25 = vld [vmem:[%s9441_s1 + $0x2d0] sm:$0xff]   ;;  %v7198_v33 = vld [vmem:[%s9441_s1 + $0x2e0] sm:$0xff]  }
  0x1d   :  { %6448 = vmatpush3.bf16.msra.mxu1 %v7144_v27  ;;  %6427 = vmatprep.subr.bf16.mxu0 %v7145_v28  ;;  %v7191_v26 = vld [vmem:[%s9441_s1 + $0x210] sm:$0xff]   ;;  %v7193_v28 = vld [vmem:[%s9441_s1 + $0x258] sm:$0xff]   ;;  %v7199_v34 = vld [vmem:[%s9441_s1 + $0x220] sm:$0xff]  }
  0x1e   :  { %6449 = vmatprep.subr.bf16.mxu1 %v7146_v29  ;;  %v7192_v27 = vld [vmem:[%s9441_s1 + $0x290] sm:$0xff]   ;;  %v7194_v29 = vld [vmem:[%s9441_s1 + $0x2d8] sm:$0xff]   ;;  %v7201_v36 = vld [vmem:[%s9441_s1 + $0x268] sm:$0xff]  }
  0x1f   :  { %v7202_v37 = vld [vmem:[%s9441_s1 + $0x2e8] sm:$0xff]   ;;  %v7229_v8 = vld [vmem:[%s9441_s1 + $0x360] sm:$0xff]  }
  0x20   :  { %6428 = vmatpush3.bf16.msra.mxu0 %v7147_v30  ;;  %v7195_v30 = vld [vmem:[%s9441_s1 + $0x218] sm:$0xff]   ;;  %v7204_v39 = vld [vmem:[%s9441_s1 + $0x2a8] sm:$0xff]   ;;  %v7230_v9 = vld [vmem:[%s9441_s1 + $0x3e0] sm:$0xff]  }
  0x21   :  { %6450 = vmatpush3.bf16.msra.mxu1 %v7148_v31  ;;  %6457 = vmatprep.subr.bf16.mxu0 %v7149_v40  ;;  %v7196_v31 = vld [vmem:[%s9441_s1 + $0x298] sm:$0xff]   ;;  %v7205_v40 = vld [vmem:[%s9441_s1 + $0x270] sm:$0xff]   ;;  %v7233_v12 = vld [vmem:[%s9441_s1 + $0x368] sm:$0xff]  }
  0x22   :  { %6479 = vmatprep.subr.bf16.mxu1 %v7150_v41  ;;  %v7206_v41 = vld [vmem:[%s9441_s1 + $0x2f0] sm:$0xff]   ;;  %v7234_v13 = vld [vmem:[%s9441_s1 + $0x3e8] sm:$0xff]  }
  0x23   :  { %4528 = vmatmul.mubr.bf16.vlgmr.msra.gmra.mrb[0].mxu0 %v5835_v35  ;;  %v7200_v35 = vld [vmem:[%s9441_s1 + $0x2a0] sm:$0xff]  }
  0x24   :  { %4569 = vmatmul.mubr.bf16.vlgmr.msra.gmra.mrb[0].mxu1 %v5837_v38  ;;  %6458 = vmatpush3.bf16.msra.mxu0 %v7151_v42  ;;  %v7203_v38 = vld [vmem:[%s9441_s1 + $0x228] sm:$0xff]   ;;  %v7207_v42 = vld [vmem:[%s9441_s1 + $0x230] sm:$0xff]  }
  0x25   :  { %6480 = vmatpush3.bf16.msra.mxu1 %v7152_v43  ;;  %6459 = vmatprep.subr.bf16.mxu0 %v7153_v44  ;;  %v7208_v43 = vld [vmem:[%s9441_s1 + $0x2b0] sm:$0xff]   ;;  %v7209_v44 = vld [vmem:[%s9441_s1 + $0x278] sm:$0xff]  }
  0x26   :  { %6481 = vmatprep.subr.bf16.mxu1 %v7154_v45  ;;  %4609 = vmatprep.mubr.bf16.mxu0 %v5840_v11  ;;  %v7210_v45 = vld [vmem:[%s9441_s1 + $0x2f8] sm:$0xff]   ;;  %v7232_v11 = vld [vmem:[%s9441_s1 + $0x3a0] sm:$0xff]  }
  0x27   :  { %4650 = vmatprep.mubr.bf16.mxu1 %v5842_v15  ;;  %v7236_v15 = vld [vmem:[%s9441_s1 + $0x3a8] sm:$0xff]  }
  0x28   :  { %6460 = vmatpush3.bf16.msra.mxu0 %v7155_v46  ;;  %v7211_v46 = vld [vmem:[%s9441_s1 + $0x238] sm:$0xff]  }
  0x29   :  { %6482 = vmatpush3.bf16.msra.mxu1 %v7156_v47  ;;  %6461 = vmatprep.subr.bf16.mxu0 %v7157_v48  ;;  %v7212_v47 = vld [vmem:[%s9441_s1 + $0x2b8] sm:$0xff]   ;;  %v19_v48 = vld [vmem:[%s9442_s0 + $0x20] sm:$0xff] }
  0x2a   :  { %6483 = vmatprep.subr.bf16.mxu1 %v7158_v49  ;;  %v51_v49 = vld [vmem:[%s9442_s0 + $0x120] sm:$0xff] }
  0x2c   :  { %6462 = vmatpush3.bf16.msra.mxu0 %v7159_v50  ;;  %v20_v50 = vld [vmem:[%s9442_s0 + $0x28] sm:$0xff] }
  0x2d   :  { %6484 = vmatpush3.bf16.msra.mxu1 %v7160_v51  ;;  %6463 = vmatprep.subr.bf16.mxu0 %v7161_v52  ;;  %v52_v51 = vld [vmem:[%s9442_s0 + $0x128] sm:$0xff]  ;;  %v5843_v52 = vcombine.low %v19_v48, %v51_v49 }
  0x2e   :  { %6485 = vmatprep.subr.bf16.mxu1 %v7162_v53  ;;  %v5844_v53 = vcombine.high %v19_v48, %v51_v49  ;;  %v7261_v48 = vld [vmem:[%s9441_s1 + $0x460] sm:$0xff]  }
  0x2f   :  { %v7262_v49 = vld [vmem:[%s9441_s1 + $0x4e0] sm:$0xff]  }
  0x30   :  { %6464 = vmatpush3.bf16.msra.mxu0 %v7163_v54  ;;  %v5845_v54 = vcombine.low %v20_v50, %v52_v51 }
  0x31   :  { %6486 = vmatpush3.bf16.msra.mxu1 %v7164_v55  ;;  %6465 = vmatprep.subr.bf16.mxu0 %v7165_v56  ;;  %v5846_v55 = vcombine.high %v20_v50, %v52_v51  ;;  %v7213_v56 = vld [vmem:[%s9441_s1 + $0x340] sm:$0xff]  }
  0x32   :  { %6487 = vmatprep.subr.bf16.mxu1 %v7166_v57  ;;  %v7214_v57 = vld [vmem:[%s9441_s1 + $0x3c0] sm:$0xff]  }
  0x33   :  { %v7263_v50 = vld [vmem:[%s9441_s1 + $0x420] sm:$0xff]  }
  0x34   :  { %6466 = vmatpush3.bf16.msra.mxu0 %v7167_v58  ;;  %v7215_v58 = vld [vmem:[%s9441_s1 + $0x300] sm:$0xff]  }
  0x35   :  { %6488 = vmatpush3.bf16.msra.mxu1 %v7168_v59  ;;  %6467 = vmatprep.subr.bf16.mxu0 %v7169_v60  ;;  %v7216_v59 = vld [vmem:[%s9441_s1 + $0x380] sm:$0xff]   ;;  %v7217_v60 = vld [vmem:[%s9441_s1 + $0x348] sm:$0xff]  }
  0x36   :  { %6489 = vmatprep.subr.bf16.mxu1 %v7170_v61  ;;  %v7218_v61 = vld [vmem:[%s9441_s1 + $0x3c8] sm:$0xff]   ;;  %v7264_v51 = vld [vmem:[%s9441_s1 + $0x4a0] sm:$0xff]  }
  0x38   :  { %6468 = vmatpush3.bf16.msra.mxu0 %v7171_v62  ;;  %v7219_v62 = vld [vmem:[%s9441_s1 + $0x308] sm:$0xff]  }
  0x39   :  { %6490 = vmatpush3.bf16.msra.mxu1 %v7172_v63  ;;  %6469 = vmatprep.subr.bf16.mxu0 %v7173_v0  ;;  %v7220_v63 = vld [vmem:[%s9441_s1 + $0x388] sm:$0xff]   ;;  %v7221_v0 = vld [vmem:[%s9441_s1 + $0x350] sm:$0xff]  }
  0x3a   :  { %6491 = vmatprep.subr.bf16.mxu1 %v7174_v1  ;;  %v7222_v1 = vld [vmem:[%s9441_s1 + $0x3d0] sm:$0xff]  }
  0x3c   :  { %6470 = vmatpush3.bf16.msra.mxu0 %v7175_v2  ;;  %v7223_v2 = vld [vmem:[%s9441_s1 + $0x310] sm:$0xff]  }
  0x3d   :  { %6492 = vmatpush3.bf16.msra.mxu1 %v7176_v3  ;;  %6471 = vmatprep.subr.bf16.mxu0 %v7177_v4  ;;  %v7224_v3 = vld [vmem:[%s9441_s1 + $0x390] sm:$0xff]   ;;  %v7225_v4 = vld [vmem:[%s9441_s1 + $0x358] sm:$0xff]  }
  0x3e   :  { %6493 = vmatprep.subr.bf16.mxu1 %v7178_v5  ;;  %v7226_v5 = vld [vmem:[%s9441_s1 + $0x3d8] sm:$0xff]  }
  0x40   :  { %6472 = vmatpush3.bf16.msra.mxu0 %v7179_v6  ;;  %v7227_v6 = vld [vmem:[%s9441_s1 + $0x318] sm:$0xff]  }
  0x41   :  { %6494 = vmatpush3.bf16.msra.mxu1 %v7180_v7  ;;  %6501 = vmatprep.subr.bf16.mxu0 %v7181_v16  ;;  %v7228_v7 = vld [vmem:[%s9441_s1 + $0x398] sm:$0xff]   ;;  %v7237_v16 = vld [vmem:[%s9441_s1 + $0x370] sm:$0xff]  }
  0x42   :  { %6523 = vmatprep.subr.bf16.mxu1 %v7182_v17  ;;  %v7238_v17 = vld [vmem:[%s9441_s1 + $0x3f0] sm:$0xff]  }
  0x43   :  { %4610 = vmatmul.mubr.bf16.vlgmr.msra.gmra.mrb[4].mxu0 %v5839_v10  ;;  %v7231_v10 = vld [vmem:[%s9441_s1 + $0x320] sm:$0xff]  }
  0x44   :  { %4651 = vmatmul.mubr.bf16.vlgmr.msra.gmra.mrb[4].mxu1 %v5841_v14  ;;  %6502 = vmatpush3.bf16.msra.mxu0 %v7183_v18  ;;  %v7235_v14 = vld [vmem:[%s9441_s1 + $0x328] sm:$0xff]   ;;  %v7239_v18 = vld [vmem:[%s9441_s1 + $0x330] sm:$0xff]  }
  0x45   :  { %6524 = vmatpush3.bf16.msra.mxu1 %v7184_v19  ;;  %6503 = vmatprep.subr.bf16.mxu0 %v7185_v20  ;;  %v7240_v19 = vld [vmem:[%s9441_s1 + $0x3b0] sm:$0xff]   ;;  %v7241_v20 = vld [vmem:[%s9441_s1 + $0x378] sm:$0xff]  }
  0x46   :  { %6525 = vmatprep.subr.bf16.mxu1 %v7186_v21  ;;  %4691 = vmatprep.mubr.bf16.mxu0 %v5844_v53  ;;  %v7242_v21 = vld [vmem:[%s9441_s1 + $0x3f8] sm:$0xff]   ;;  %v7266_v53 = vld [vmem:[%s9441_s1 + $0x4e8] sm:$0xff]  }
  0x47   :  { %4732 = vmatprep.mubr.bf16.mxu1 %v5846_v55  ;;  %v7268_v55 = vld [vmem:[%s9441_s1 + $0x4a8] sm:$0xff]  }
  0x48   :  { %6504 = vmatpush3.bf16.msra.mxu0 %v7187_v22  ;;  %v7243_v22 = vld [vmem:[%s9441_s1 + $0x338] sm:$0xff]  }
  0x49   :  { %6526 = vmatpush3.bf16.msra.mxu1 %v7188_v23  ;;  %6505 = vmatprep.subr.bf16.mxu0 %v7189_v24  ;;  %v7244_v23 = vld [vmem:[%s9441_s1 + $0x3b8] sm:$0xff]   ;;  %v21_v24 = vld [vmem:[%s9442_s0 + $0x30] sm:$0xff] }
  0x4a   :  { %6527 = vmatprep.subr.bf16.mxu1 %v7190_v25  ;;  %v53_v25 = vld [vmem:[%s9442_s0 + $0x130] sm:$0xff] }
  0x4c   :  { %6506 = vmatpush3.bf16.msra.mxu0 %v7191_v26  ;;  %v22_v26 = vld [vmem:[%s9442_s0 + $0x38] sm:$0xff] }
  0x4d   :  { %6528 = vmatpush3.bf16.msra.mxu1 %v7192_v27  ;;  %6507 = vmatprep.subr.bf16.mxu0 %v7193_v28  ;;  %v5847_v27 = vcombine.low %v21_v24, %v53_v25  ;;  %v5848_v28 = vcombine.high %v21_v24, %v53_v25  ;;  %v7293_v24 = vld [vmem:[%s9441_s1 + $0x560] sm:$0xff]  }
  0x4e   :  { %6529 = vmatprep.subr.bf16.mxu1 %v7194_v29  ;;  %v54_v29 = vld [vmem:[%s9442_s0 + $0x138] sm:$0xff]  ;;  %v7294_v25 = vld [vmem:[%s9441_s1 + $0x5e0] sm:$0xff]  }
  0x50   :  { %6508 = vmatpush3.bf16.msra.mxu0 %v7195_v30  ;;  %v5849_v30 = vcombine.low %v22_v26, %v54_v29 }
  0x51   :  { %6530 = vmatpush3.bf16.msra.mxu1 %v7196_v31  ;;  %6509 = vmatprep.subr.bf16.mxu0 %v7197_v32  ;;  %v5850_v31 = vcombine.high %v22_v26, %v54_v29  ;;  %v7245_v32 = vld [vmem:[%s9441_s1 + $0x440] sm:$0xff]   ;;  %v7298_v29 = vld [vmem:[%s9441_s1 + $0x5e8] sm:$0xff]  }
  0x52   :  { %6531 = vmatprep.subr.bf16.mxu1 %v7198_v33  ;;  %v7246_v33 = vld [vmem:[%s9441_s1 + $0x4c0] sm:$0xff]  }
  0x53   :  { %v7295_v26 = vld [vmem:[%s9441_s1 + $0x520] sm:$0xff]  }
  0x54   :  { %6510 = vmatpush3.bf16.msra.mxu0 %v7199_v34  ;;  %v7247_v34 = vld [vmem:[%s9441_s1 + $0x400] sm:$0xff]  }
  0x55   :  { %6532 = vmatpush3.bf16.msra.mxu1 %v7200_v35  ;;  %6511 = vmatprep.subr.bf16.mxu0 %v7201_v36  ;;  %v7248_v35 = vld [vmem:[%s9441_s1 + $0x480] sm:$0xff]   ;;  %v7249_v36 = vld [vmem:[%s9441_s1 + $0x448] sm:$0xff]  }
  0x56   :  { %6533 = vmatprep.subr.bf16.mxu1 %v7202_v37  ;;  %v7250_v37 = vld [vmem:[%s9441_s1 + $0x4c8] sm:$0xff]  }
  0x58   :  { %6512 = vmatpush3.bf16.msra.mxu0 %v7203_v38  ;;  %v7251_v38 = vld [vmem:[%s9441_s1 + $0x408] sm:$0xff]  }
  0x59   :  { %6534 = vmatpush3.bf16.msra.mxu1 %v7204_v39  ;;  %6513 = vmatprep.subr.bf16.mxu0 %v7205_v40  ;;  %v7252_v39 = vld [vmem:[%s9441_s1 + $0x488] sm:$0xff]   ;;  %v7253_v40 = vld [vmem:[%s9441_s1 + $0x450] sm:$0xff]  }
  0x5a   :  { %6535 = vmatprep.subr.bf16.mxu1 %v7206_v41  ;;  %v7254_v41 = vld [vmem:[%s9441_s1 + $0x4d0] sm:$0xff]  }
  0x5c   :  { %6514 = vmatpush3.bf16.msra.mxu0 %v7207_v42  ;;  %v7255_v42 = vld [vmem:[%s9441_s1 + $0x410] sm:$0xff]  }
  0x5d   :  { %6536 = vmatpush3.bf16.msra.mxu1 %v7208_v43  ;;  %6515 = vmatprep.subr.bf16.mxu0 %v7209_v44  ;;  %v7256_v43 = vld [vmem:[%s9441_s1 + $0x490] sm:$0xff]   ;;  %v7257_v44 = vld [vmem:[%s9441_s1 + $0x458] sm:$0xff]  }
  0x5e   :  { %6537 = vmatprep.subr.bf16.mxu1 %v7210_v45  ;;  %v7258_v45 = vld [vmem:[%s9441_s1 + $0x4d8] sm:$0xff]  }
  0x60   :  { %6516 = vmatpush3.bf16.msra.mxu0 %v7211_v46  ;;  %v7259_v46 = vld [vmem:[%s9441_s1 + $0x418] sm:$0xff]  }
  0x61   :  { %6538 = vmatpush3.bf16.msra.mxu1 %v7212_v47  ;;  %6545 = vmatprep.subr.bf16.mxu0 %v7213_v56  ;;  %v7260_v47 = vld [vmem:[%s9441_s1 + $0x498] sm:$0xff]   ;;  %v7269_v56 = vld [vmem:[%s9441_s1 + $0x470] sm:$0xff]  }
  0x62   :  { %6567 = vmatprep.subr.bf16.mxu1 %v7214_v57  ;;  %v7270_v57 = vld [vmem:[%s9441_s1 + $0x4f0] sm:$0xff]  }
  0x63   :  { %4692 = vmatmul.mubr.bf16.vlgmr.msra.gmra.mrb[8].mxu0 %v5843_v52  ;;  %v7265_v52 = vld [vmem:[%s9441_s1 + $0x468] sm:$0xff]  }
  0x64   :  { %4733 = vmatmul.mubr.bf16.vlgmr.msra.gmra.mrb[8].mxu1 %v5845_v54  ;;  %6546 = vmatpush3.bf16.msra.mxu0 %v7215_v58  ;;  %v7267_v54 = vld [vmem:[%s9441_s1 + $0x428] sm:$0xff]   ;;  %v7271_v58 = vld [vmem:[%s9441_s1 + $0x430] sm:$0xff]  }
  0x65   :  { %6568 = vmatpush3.bf16.msra.mxu1 %v7216_v59  ;;  %6547 = vmatprep.subr.bf16.mxu0 %v7217_v60  ;;  %v7272_v59 = vld [vmem:[%s9441_s1 + $0x4b0] sm:$0xff]   ;;  %v7273_v60 = vld [vmem:[%s9441_s1 + $0x478] sm:$0xff]  }
  0x66   :  { %6569 = vmatprep.subr.bf16.mxu1 %v7218_v61  ;;  %4773 = vmatprep.mubr.bf16.mxu0 %v5848_v28  ;;  %v7274_v61 = vld [vmem:[%s9441_s1 + $0x4f8] sm:$0xff]   ;;  %v7297_v28 = vld [vmem:[%s9441_s1 + $0x568] sm:$0xff]  }
  0x67   :  { %4814 = vmatprep.mubr.bf16.mxu1 %v5850_v31  ;;  %v7300_v31 = vld [vmem:[%s9441_s1 + $0x5a8] sm:$0xff]  }
  0x68   :  { %6548 = vmatpush3.bf16.msra.mxu0 %v7219_v62  ;;  %v7275_v62 = vld [vmem:[%s9441_s1 + $0x438] sm:$0xff]  }
  0x69   :  { %6570 = vmatpush3.bf16.msra.mxu1 %v7220_v63  ;;  %6549 = vmatprep.subr.bf16.mxu0 %v7221_v0  ;;  %v7276_v63 = vld [vmem:[%s9441_s1 + $0x4b8] sm:$0xff]   ;;  %v23_v0 = vld [vmem:[%s9442_s0 + $0x40] sm:$0xff] }
  0x6a   :  { %6571 = vmatprep.subr.bf16.mxu1 %v7222_v1  ;;  %v55_v1 = vld [vmem:[%s9442_s0 + $0x140] sm:$0xff] }
  0x6c   :  { %6550 = vmatpush3.bf16.msra.mxu0 %v7223_v2  ;;  %v5851_v2 = vcombine.low %v23_v0, %v55_v1 }
  0x6d   :  { %6572 = vmatpush3.bf16.msra.mxu1 %v7224_v3  ;;  %6551 = vmatprep.subr.bf16.mxu0 %v7225_v4  ;;  %v5852_v3 = vcombine.high %v23_v0, %v55_v1  ;;  %v24_v4 = vld [vmem:[%s9442_s0 + $0x48] sm:$0xff]  ;;  %v7325_v0 = vld [vmem:[%s9441_s1 + $0x660] sm:$0xff]  }
  0x6e   :  { %6573 = vmatprep.subr.bf16.mxu1 %v7226_v5  ;;  %v56_v5 = vld [vmem:[%s9442_s0 + $0x148] sm:$0xff]  ;;  %v7326_v1 = vld [vmem:[%s9441_s1 + $0x6e0] sm:$0xff]  }
  0x70   :  { %6552 = vmatpush3.bf16.msra.mxu0 %v7227_v6  ;;  %v5853_v6 = vcombine.low %v24_v4, %v56_v5 }
  0x71   :  { %6574 = vmatpush3.bf16.msra.mxu1 %v7228_v7  ;;  %6553 = vmatprep.subr.bf16.mxu0 %v7229_v8  ;;  %v5854_v7 = vcombine.high %v24_v4, %v56_v5  ;;  %v7277_v8 = vld [vmem:[%s9441_s1 + $0x540] sm:$0xff]   ;;  %v7329_v4 = vld [vmem:[%s9441_s1 + $0x668] sm:$0xff]  }
  0x72   :  { %6575 = vmatprep.subr.bf16.mxu1 %v7230_v9  ;;  %v7278_v9 = vld [vmem:[%s9441_s1 + $0x5c0] sm:$0xff]   ;;  %v7330_v5 = vld [vmem:[%s9441_s1 + $0x6e8] sm:$0xff]  }
  0x74   :  { %6554 = vmatpush3.bf16.msra.mxu0 %v7231_v10  ;;  %v7279_v10 = vld [vmem:[%s9441_s1 + $0x500] sm:$0xff]  }
  0x75   :  { %6576 = vmatpush3.bf16.msra.mxu1 %v7232_v11  ;;  %6555 = vmatprep.subr.bf16.mxu0 %v7233_v12  ;;  %v7280_v11 = vld [vmem:[%s9441_s1 + $0x580] sm:$0xff]   ;;  %v7281_v12 = vld [vmem:[%s9441_s1 + $0x548] sm:$0xff]  }
  0x76   :  { %6577 = vmatprep.subr.bf16.mxu1 %v7234_v13  ;;  %v7282_v13 = vld [vmem:[%s9441_s1 + $0x5c8] sm:$0xff]  }
  0x78   :  { %6556 = vmatpush3.bf16.msra.mxu0 %v7235_v14  ;;  %v7283_v14 = vld [vmem:[%s9441_s1 + $0x508] sm:$0xff]  }
  0x79   :  { %6578 = vmatpush3.bf16.msra.mxu1 %v7236_v15  ;;  %6557 = vmatprep.subr.bf16.mxu0 %v7237_v16  ;;  %v7284_v15 = vld [vmem:[%s9441_s1 + $0x588] sm:$0xff]   ;;  %v7285_v16 = vld [vmem:[%s9441_s1 + $0x550] sm:$0xff]  }
  0x7a   :  { %6579 = vmatprep.subr.bf16.mxu1 %v7238_v17  ;;  %v7286_v17 = vld [vmem:[%s9441_s1 + $0x5d0] sm:$0xff]  }
  0x7c   :  { %6558 = vmatpush3.bf16.msra.mxu0 %v7239_v18  ;;  %v7287_v18 = vld [vmem:[%s9441_s1 + $0x510] sm:$0xff]  }
  0x7d   :  { %6580 = vmatpush3.bf16.msra.mxu1 %v7240_v19  ;;  %6559 = vmatprep.subr.bf16.mxu0 %v7241_v20  ;;  %v7288_v19 = vld [vmem:[%s9441_s1 + $0x590] sm:$0xff]   ;;  %v7289_v20 = vld [vmem:[%s9441_s1 + $0x558] sm:$0xff]  }
  0x7e   :  { %6581 = vmatprep.subr.bf16.mxu1 %v7242_v21  ;;  %v7290_v21 = vld [vmem:[%s9441_s1 + $0x5d8] sm:$0xff]  }
  0x80   :  { %6560 = vmatpush3.bf16.msra.mxu0 %v7243_v22  ;;  %v7291_v22 = vld [vmem:[%s9441_s1 + $0x518] sm:$0xff]  }
  0x81   :  { %6582 = vmatpush3.bf16.msra.mxu1 %v7244_v23  ;;  %6589 = vmatprep.subr.bf16.mxu0 %v7245_v32  ;;  %v7292_v23 = vld [vmem:[%s9441_s1 + $0x598] sm:$0xff]   ;;  %v7301_v32 = vld [vmem:[%s9441_s1 + $0x570] sm:$0xff]  }
  0x82   :  { %6611 = vmatprep.subr.bf16.mxu1 %v7246_v33  ;;  %v7302_v33 = vld [vmem:[%s9441_s1 + $0x5f0] sm:$0xff]  }
  0x83   :  { %4774 = vmatmul.mubr.bf16.vlgmr.msra.gmra.mrb[12].mxu0 %v5847_v27  ;;  %v7296_v27 = vld [vmem:[%s9441_s1 + $0x5a0] sm:$0xff]  }
  0x84   :  { %4815 = vmatmul.mubr.bf16.vlgmr.msra.gmra.mrb[12].mxu1 %v5849_v30  ;;  %6590 = vmatpush3.bf16.msra.mxu0 %v7247_v34  ;;  %v7299_v30 = vld [vmem:[%s9441_s1 + $0x528] sm:$0xff]   ;;  %v7303_v34 = vld [vmem:[%s9441_s1 + $0x530] sm:$0xff]  }
  0x85   :  { %6612 = vmatpush3.bf16.msra.mxu1 %v7248_v35  ;;  %6591 = vmatprep.subr.bf16.mxu0 %v7249_v36  ;;  %v7304_v35 = vld [vmem:[%s9441_s1 + $0x5b0] sm:$0xff]   ;;  %v7305_v36 = vld [vmem:[%s9441_s1 + $0x578] sm:$0xff]  }
  0x86   :  { %6613 = vmatprep.subr.bf16.mxu1 %v7250_v37  ;;  %4855 = vmatprep.mubr.bf16.mxu0 %v5852_v3  ;;  %v7306_v37 = vld [vmem:[%s9441_s1 + $0x5f8] sm:$0xff]   ;;  %v7328_v3 = vld [vmem:[%s9441_s1 + $0x6a0] sm:$0xff]  }
  0x87   :  { %4896 = vmatprep.mubr.bf16.mxu1 %v5854_v7  ;;  %v7332_v7 = vld [vmem:[%s9441_s1 + $0x6a8] sm:$0xff]  }
  0x88   :  { %6592 = vmatpush3.bf16.msra.mxu0 %v7251_v38  ;;  %v7307_v38 = vld [vmem:[%s9441_s1 + $0x538] sm:$0xff]  }
  0x89   :  { %6614 = vmatpush3.bf16.msra.mxu1 %v7252_v39  ;;  %6593 = vmatprep.subr.bf16.mxu0 %v7253_v40  ;;  %v7308_v39 = vld [vmem:[%s9441_s1 + $0x5b8] sm:$0xff]   ;;  %v25_v40 = vld [vmem:[%s9442_s0 + $0x50] sm:$0xff] }
  0x8a   :  { %6615 = vmatprep.subr.bf16.mxu1 %v7254_v41  ;;  %v57_v41 = vld [vmem:[%s9442_s0 + $0x150] sm:$0xff] }
  0x8c   :  { %6594 = vmatpush3.bf16.msra.mxu0 %v7255_v42  ;;  %v26_v42 = vld [vmem:[%s9442_s0 + $0x58] sm:$0xff] }
  0x8d   :  { %6616 = vmatpush3.bf16.msra.mxu1 %v7256_v43  ;;  %6595 = vmatprep.subr.bf16.mxu0 %v7257_v44  ;;  %v58_v43 = vld [vmem:[%s9442_s0 + $0x158] sm:$0xff]  ;;  %v5855_v44 = vcombine.low %v25_v40, %v57_v41 }
  0x8e   :  { %6617 = vmatprep.subr.bf16.mxu1 %v7258_v45  ;;  %v5856_v45 = vcombine.high %v25_v40, %v57_v41  ;;  %v7356_v41 = vld [vmem:[%s9441_s1 + $0x798] sm:$0xff]  }
  0x90   :  { %6596 = vmatpush3.bf16.msra.mxu0 %v7259_v46  ;;  %v5857_v46 = vcombine.low %v26_v42, %v58_v43 }
  0x91   :  { %6618 = vmatpush3.bf16.msra.mxu1 %v7260_v47  ;;  %6597 = vmatprep.subr.bf16.mxu0 %v7261_v48  ;;  %v5858_v47 = vcombine.high %v26_v42, %v58_v43  ;;  %v7309_v48 = vld [vmem:[%s9441_s1 + $0x640] sm:$0xff]  }
  0x92   :  { %6619 = vmatprep.subr.bf16.mxu1 %v7262_v49  ;;  %v7310_v49 = vld [vmem:[%s9441_s1 + $0x6c0] sm:$0xff]  }
  0x93   :  { %v7357_v43 = vld [vmem:[%s9441_s1 + $0x760] sm:$0xff]  }
  0x94   :  { %6598 = vmatpush3.bf16.msra.mxu0 %v7263_v50  ;;  %v7311_v50 = vld [vmem:[%s9441_s1 + $0x600] sm:$0xff]  }
  0x95   :  { %6620 = vmatpush3.bf16.msra.mxu1 %v7264_v51  ;;  %6599 = vmatprep.subr.bf16.mxu0 %v7265_v52  ;;  %v7312_v51 = vld [vmem:[%s9441_s1 + $0x680] sm:$0xff]   ;;  %v7313_v52 = vld [vmem:[%s9441_s1 + $0x648] sm:$0xff]  }
  0x96   :  { %6621 = vmatprep.subr.bf16.mxu1 %v7266_v53  ;;  %v7314_v53 = vld [vmem:[%s9441_s1 + $0x6c8] sm:$0xff]  }
  0x98   :  { %6600 = vmatpush3.bf16.msra.mxu0 %v7267_v54  ;;  %v7315_v54 = vld [vmem:[%s9441_s1 + $0x608] sm:$0xff]  }
  0x99   :  { %6622 = vmatpush3.bf16.msra.mxu1 %v7268_v55  ;;  %6601 = vmatprep.subr.bf16.mxu0 %v7269_v56  ;;  %v7316_v55 = vld [vmem:[%s9441_s1 + $0x688] sm:$0xff]   ;;  %v7317_v56 = vld [vmem:[%s9441_s1 + $0x650] sm:$0xff]  }
  0x9a   :  { %6623 = vmatprep.subr.bf16.mxu1 %v7270_v57  ;;  %v7318_v57 = vld [vmem:[%s9441_s1 + $0x6d0] sm:$0xff]  }
  0x9c   :  { %6602 = vmatpush3.bf16.msra.mxu0 %v7271_v58  ;;  %v7319_v58 = vld [vmem:[%s9441_s1 + $0x610] sm:$0xff]  }
  0x9d   :  { %6624 = vmatpush3.bf16.msra.mxu1 %v7272_v59  ;;  %6603 = vmatprep.subr.bf16.mxu0 %v7273_v60  ;;  %v7320_v59 = vld [vmem:[%s9441_s1 + $0x690] sm:$0xff]   ;;  %v7321_v60 = vld [vmem:[%s9441_s1 + $0x658] sm:$0xff]  }
  0x9e   :  { %6625 = vmatprep.subr.bf16.mxu1 %v7274_v61  ;;  %v7322_v61 = vld [vmem:[%s9441_s1 + $0x6d8] sm:$0xff]  }
  0xa0   :  { %6604 = vmatpush3.bf16.msra.mxu0 %v7275_v62  ;;  %v7323_v62 = vld [vmem:[%s9441_s1 + $0x618] sm:$0xff]  }
  0xa1   :  { %6626 = vmatpush3.bf16.msra.mxu1 %v7276_v63  ;;  %6633 = vmatprep.subr.bf16.mxu0 %v7277_v8  ;;  %v7324_v63 = vld [vmem:[%s9441_s1 + $0x698] sm:$0xff]   ;;  %v7333_v8 = vld [vmem:[%s9441_s1 + $0x670] sm:$0xff]  }
  0xa2   :  { %6655 = vmatprep.subr.bf16.mxu1 %v7278_v9  ;;  %v7334_v9 = vld [vmem:[%s9441_s1 + $0x6f0] sm:$0xff]  }
  0xa3   :  { %4856 = vmatmul.mubr.bf16.vlgmr.msra.gmra.mrb[16].mxu0 %v5851_v2  ;;  %v7327_v2 = vld [vmem:[%s9441_s1 + $0x620] sm:$0xff]  }
  0xa4   :  { %4897 = vmatmul.mubr.bf16.vlgmr.msra.gmra.mrb[16].mxu1 %v5853_v6  ;;  %6634 = vmatpush3.bf16.msra.mxu0 %v7279_v10  ;;  %v7331_v6 = vld [vmem:[%s9441_s1 + $0x628] sm:$0xff]   ;;  %v7335_v10 = vld [vmem:[%s9441_s1 + $0x630] sm:$0xff]  }
  0xa5   :  { %6656 = vmatpush3.bf16.msra.mxu1 %v7280_v11  ;;  %6635 = vmatprep.subr.bf16.mxu0 %v7281_v12  ;;  %v7336_v11 = vld [vmem:[%s9441_s1 + $0x6b0] sm:$0xff]   ;;  %v7337_v12 = vld [vmem:[%s9441_s1 + $0x678] sm:$0xff]  }
  0xa6   :  { %6657 = vmatprep.subr.bf16.mxu1 %v7282_v13  ;;  %4937 = vmatprep.mubr.bf16.mxu0 %v5856_v45  ;;  %v7338_v13 = vld [vmem:[%s9441_s1 + $0x6f8] sm:$0xff]  }
  0xa7   :  { %4978 = vmatprep.mubr.bf16.mxu1 %v5858_v47 }
  0xa8   :  { %6636 = vmatpush3.bf16.msra.mxu0 %v7283_v14  ;;  %v7339_v14 = vld [vmem:[%s9441_s1 + $0x638] sm:$0xff]  }
  0xa9   :  { %6658 = vmatpush3.bf16.msra.mxu1 %v7284_v15  ;;  %6637 = vmatprep.subr.bf16.mxu0 %v7285_v16  ;;  %v7340_v15 = vld [vmem:[%s9441_s1 + $0x6b8] sm:$0xff]   ;;  %v27_v16 = vld [vmem:[%s9442_s0 + $0x60] sm:$0xff] }
  0xaa   :  { %6659 = vmatprep.subr.bf16.mxu1 %v7286_v17  ;;  %v59_v17 = vld [vmem:[%s9442_s0 + $0x160] sm:$0xff] }
  0xac   :  { %6638 = vmatpush3.bf16.msra.mxu0 %v7287_v18  ;;  %v28_v18 = vld [vmem:[%s9442_s0 + $0x68] sm:$0xff] }
  0xad   :  { %6660 = vmatpush3.bf16.msra.mxu1 %v7288_v19  ;;  %6639 = vmatprep.subr.bf16.mxu0 %v7289_v20  ;;  %v5859_v19 = vcombine.low %v27_v16, %v59_v17  ;;  %v5860_v20 = vcombine.high %v27_v16, %v59_v17  ;;  %v7375_v16 = vld [vmem:[%s9441_s1 + $0x800] sm:$0xff]  }
  0xae   :  { %6661 = vmatprep.subr.bf16.mxu1 %v7290_v21  ;;  %v60_v21 = vld [vmem:[%s9442_s0 + $0x168] sm:$0xff]  ;;  %v7376_v17 = vld [vmem:[%s9441_s1 + $0x880] sm:$0xff]  }
  0xb0   :  { %6640 = vmatpush3.bf16.msra.mxu0 %v7291_v22  ;;  %v5861_v22 = vcombine.low %v28_v18, %v60_v21 }
  0xb1   :  { %6662 = vmatpush3.bf16.msra.mxu1 %v7292_v23  ;;  %6641 = vmatprep.subr.bf16.mxu0 %v7293_v24  ;;  %v5862_v23 = vcombine.high %v28_v18, %v60_v21  ;;  %v7341_v24 = vld [vmem:[%s9441_s1 + $0x740] sm:$0xff]   ;;  %v7377_v18 = vld [vmem:[%s9441_s1 + $0x848] sm:$0xff]  }
  0xb2   :  { %6663 = vmatprep.subr.bf16.mxu1 %v7294_v25  ;;  %v7342_v25 = vld [vmem:[%s9441_s1 + $0x7c0] sm:$0xff]   ;;  %v7380_v21 = vld [vmem:[%s9441_s1 + $0x888] sm:$0xff]  }
  0xb4   :  { %6642 = vmatpush3.bf16.msra.mxu0 %v7295_v26  ;;  %v7343_v26 = vld [vmem:[%s9441_s1 + $0x700] sm:$0xff]  }
  0xb5   :  { %6664 = vmatpush3.bf16.msra.mxu1 %v7296_v27  ;;  %6643 = vmatprep.subr.bf16.mxu0 %v7297_v28  ;;  %v7344_v27 = vld [vmem:[%s9441_s1 + $0x780] sm:$0xff]   ;;  %v7345_v28 = vld [vmem:[%s9441_s1 + $0x748] sm:$0xff]  }
  0xb6   :  { %6665 = vmatprep.subr.bf16.mxu1 %v7298_v29  ;;  %v7346_v29 = vld [vmem:[%s9441_s1 + $0x7c8] sm:$0xff]  }
  0xb8   :  { %6644 = vmatpush3.bf16.msra.mxu0 %v7299_v30  ;;  %v7347_v30 = vld [vmem:[%s9441_s1 + $0x708] sm:$0xff]  }
  0xb9   :  { %6666 = vmatpush3.bf16.msra.mxu1 %v7300_v31  ;;  %6645 = vmatprep.subr.bf16.mxu0 %v7301_v32  ;;  %v7348_v31 = vld [vmem:[%s9441_s1 + $0x788] sm:$0xff]   ;;  %v7349_v32 = vld [vmem:[%s9441_s1 + $0x750] sm:$0xff]  }
  0xba   :  { %6667 = vmatprep.subr.bf16.mxu1 %v7302_v33  ;;  %v7350_v33 = vld [vmem:[%s9441_s1 + $0x7d0] sm:$0xff]  }
  0xbc   :  { %6646 = vmatpush3.bf16.msra.mxu0 %v7303_v34  ;;  %v7351_v34 = vld [vmem:[%s9441_s1 + $0x710] sm:$0xff]  }
  0xbd   :  { %6668 = vmatpush3.bf16.msra.mxu1 %v7304_v35  ;;  %6647 = vmatprep.subr.bf16.mxu0 %v7305_v36  ;;  %v7352_v35 = vld [vmem:[%s9441_s1 + $0x790] sm:$0xff]   ;;  %v7353_v36 = vld [vmem:[%s9441_s1 + $0x758] sm:$0xff]  }
  0xbe   :  { %6669 = vmatprep.subr.bf16.mxu1 %v7306_v37  ;;  %v7354_v37 = vld [vmem:[%s9441_s1 + $0x7d8] sm:$0xff]  }
  0xc0   :  { %6648 = vmatpush3.bf16.msra.mxu0 %v7307_v38 }
  0xc1   :  { %6670 = vmatpush3.bf16.msra.mxu1 %v7308_v39  ;;  %6677 = vmatprep.subr.bf16.mxu0 %v7309_v48  ;;  %v7355_v39 = vld [vmem:[%s9441_s1 + $0x718] sm:$0xff]  }
  0xc2   :  { %6699 = vmatprep.subr.bf16.mxu1 %v7310_v49  ;;  %v7359_v49 = vld [vmem:[%s9441_s1 + $0x720] sm:$0xff]  }
  0xc3   :  { %4938 = vmatmul.mubr.bf16.vlgmr.msra.gmra.mrb[20].mxu0 %v5855_v44 }
  0xc4   :  { %4979 = vmatmul.mubr.bf16.vlgmr.msra.gmra.mrb[20].mxu1 %v5857_v46  ;;  %6678 = vmatpush3.bf16.msra.mxu0 %v7311_v50  ;;  %v7358_v46 = vld [vmem:[%s9441_s1 + $0x7e0] sm:$0xff]  }
  0xc5   :  { %6700 = vmatpush3.bf16.msra.mxu1 %v7312_v51  ;;  %6679 = vmatprep.subr.bf16.mxu0 %v7313_v52  ;;  %v7360_v51 = vld [vmem:[%s9441_s1 + $0x7a0] sm:$0xff]  }
  0xc6   :  { %6701 = vmatprep.subr.bf16.mxu1 %v7314_v53  ;;  %5019 = vmatprep.mubr.bf16.mxu0 %v5860_v20  ;;  %v7379_v20 = vld [vmem:[%s9441_s1 + $0x808] sm:$0xff]  }
  0xc7   :  { %5060 = vmatprep.mubr.bf16.mxu1 %v5862_v23  ;;  %v7382_v23 = vld [vmem:[%s9441_s1 + $0x8d0] sm:$0xff]  }
  0xc8   :  { %6680 = vmatpush3.bf16.msra.mxu0 %v7315_v54  ;;  %v7361_v54 = vld [vmem:[%s9441_s1 + $0x768] sm:$0xff]  }
  0xc9   :  { %6702 = vmatpush3.bf16.msra.mxu1 %v7316_v55  ;;  %6681 = vmatprep.subr.bf16.mxu0 %v7317_v56 }
  0xca   :  { %6703 = vmatprep.subr.bf16.mxu1 %v7318_v57  ;;  %v7362_v57 = vld [vmem:[%s9441_s1 + $0x7e8] sm:$0xff]  }
  0xcc   :  { %6682 = vmatpush3.bf16.msra.mxu0 %v7319_v58 }
  0xcd   :  { %6704 = vmatpush3.bf16.msra.mxu1 %v7320_v59  ;;  %6683 = vmatprep.subr.bf16.mxu0 %v7321_v60  ;;  %v7363_v59 = vld [vmem:[%s9441_s1 + $0x728] sm:$0xff]  }
  0xce   :  { %6705 = vmatprep.subr.bf16.mxu1 %v7322_v61  ;;  %v7364_v60 = vld [vmem:[%s9441_s1 + $0x7a8] sm:$0xff]  }
  0xd0   :  { %6684 = vmatpush3.bf16.msra.mxu0 %v7323_v62  ;;  %v7365_v62 = vld [vmem:[%s9441_s1 + $0x770] sm:$0xff]  }
  0xd1   :  { %6706 = vmatpush3.bf16.msra.mxu1 %v7324_v63  ;;  %6685 = vmatprep.subr.bf16.mxu0 %v7325_v0  ;;  %v7366_v63 = vld [vmem:[%s9441_s1 + $0x7f0] sm:$0xff]  }
  0xd2   :  { %6707 = vmatprep.subr.bf16.mxu1 %v7326_v1  ;;  %v7367_v0 = vld [vmem:[%s9441_s1 + $0x730] sm:$0xff]  }
  0xd3   :  { %v7368_v1 = vld [vmem:[%s9441_s1 + $0x7b0] sm:$0xff]  }
  0xd4   :  { %6686 = vmatpush3.bf16.msra.mxu0 %v7327_v2  ;;  %v7369_v2 = vld [vmem:[%s9441_s1 + $0x778] sm:$0xff]  }
  0xd5   :  { %6708 = vmatpush3.bf16.msra.mxu1 %v7328_v3  ;;  %6687 = vmatprep.subr.bf16.mxu0 %v7329_v4  ;;  %v7370_v3 = vld [vmem:[%s9441_s1 + $0x7f8] sm:$0xff]  }
  0xd6   :  { %6709 = vmatprep.subr.bf16.mxu1 %v7330_v5  ;;  %v7371_v4 = vld [vmem:[%s9441_s1 + $0x738] sm:$0xff]  }
  0xd7   :  { %v7372_v5 = vld [vmem:[%s9441_s1 + $0x7b8] sm:$0xff]  }
  0xd8   :  { %6688 = vmatpush3.bf16.msra.mxu0 %v7331_v6  ;;  %v29_v6 = vld [vmem:[%s9442_s0 + $0x70] sm:$0xff] }
  0xd9   :  { %6710 = vmatpush3.bf16.msra.mxu1 %v7332_v7  ;;  %6689 = vmatprep.subr.bf16.mxu0 %v7333_v8  ;;  %v61_v7 = vld [vmem:[%s9442_s0 + $0x170] sm:$0xff] }
  0xda   :  { %6711 = vmatprep.subr.bf16.mxu1 %v7334_v9  ;;  %v5863_v8 = vcombine.low %v29_v6, %v61_v7  ;;  %v5864_v9 = vcombine.high %v29_v6, %v61_v7  ;;  %v7405_v6 = vld [vmem:[%s9441_s1 + $0x940] sm:$0xff]  }
  0xdb   :  { %v7406_v7 = vld [vmem:[%s9441_s1 + $0x9c0] sm:$0xff]  }
  0xdc   :  { %6690 = vmatpush3.bf16.msra.mxu0 %v7335_v10  ;;  %v30_v10 = vld [vmem:[%s9442_s0 + $0x78] sm:$0xff] }
  0xdd   :  { %6712 = vmatpush3.bf16.msra.mxu1 %v7336_v11  ;;  %6691 = vmatprep.subr.bf16.mxu0 %v7337_v12  ;;  %v62_v11 = vld [vmem:[%s9442_s0 + $0x178] sm:$0xff] }
  0xde   :  { %6713 = vmatprep.subr.bf16.mxu1 %v7338_v13  ;;  %v5865_v12 = vcombine.low %v30_v10, %v62_v11  ;;  %v5866_v13 = vcombine.high %v30_v10, %v62_v11  ;;  %v7409_v10 = vld [vmem:[%s9441_s1 + $0x948] sm:$0xff]  }
  0xdf   :  { %v7410_v11 = vld [vmem:[%s9441_s1 + $0x9c8] sm:$0xff]  }
  0xe0   :  { %6692 = vmatpush3.bf16.msra.mxu0 %v7339_v14  ;;  %v7373_v14 = vld [vmem:[%s9441_s1 + $0x840] sm:$0xff]  }
  0xe1   :  { %6714 = vmatpush3.bf16.msra.mxu1 %v7340_v15  ;;  %6721 = vmatprep.subr.bf16.mxu0 %v7341_v24  ;;  %v7374_v15 = vld [vmem:[%s9441_s1 + $0x8c0] sm:$0xff]   ;;  %v7383_v24 = vld [vmem:[%s9441_s1 + $0x810] sm:$0xff]  }
  0xe2   :  { %6743 = vmatprep.subr.bf16.mxu1 %v7342_v25  ;;  %v7384_v25 = vld [vmem:[%s9441_s1 + $0x890] sm:$0xff]  }
  0xe3   :  { %5020 = vmatmul.mubr.bf16.vlgmr.msra.gmra.mrb[24].mxu0 %v5859_v19  ;;  %v7378_v19 = vld [vmem:[%s9441_s1 + $0x8c8] sm:$0xff]  }
  0xe4   :  { %5061 = vmatmul.mubr.bf16.vlgmr.msra.gmra.mrb[24].mxu1 %v5861_v22  ;;  %6722 = vmatpush3.bf16.msra.mxu0 %v7343_v26  ;;  %v7381_v22 = vld [vmem:[%s9441_s1 + $0x850] sm:$0xff]   ;;  %v7385_v26 = vld [vmem:[%s9441_s1 + $0x858] sm:$0xff]  }
  0xe5   :  { %6744 = vmatpush3.bf16.msra.mxu1 %v7344_v27  ;;  %6723 = vmatprep.subr.bf16.mxu0 %v7345_v28  ;;  %v7386_v27 = vld [vmem:[%s9441_s1 + $0x8d8] sm:$0xff]  }
  0xe6   :  { %6745 = vmatprep.subr.bf16.mxu1 %v7346_v29  ;;  %5101 = vmatprep.mubr.bf16.mxu0 %v5864_v9  ;;  %v7387_v29 = vld [vmem:[%s9441_s1 + $0x818] sm:$0xff]   ;;  %v7408_v9 = vld [vmem:[%s9441_s1 + $0x980] sm:$0xff]  }
  0xe7   :  { %5142 = vmatprep.mubr.bf16.mxu1 %v5866_v13  ;;  %v7412_v13 = vld [vmem:[%s9441_s1 + $0x988] sm:$0xff]  }
  0xe8   :  { %6724 = vmatpush3.bf16.msra.mxu0 %v7347_v30 }
  0xe9   :  { %6746 = vmatpush3.bf16.msra.mxu1 %v7348_v31  ;;  %6725 = vmatprep.subr.bf16.mxu0 %v7349_v32  ;;  %v7388_v31 = vld [vmem:[%s9441_s1 + $0x898] sm:$0xff]  }
  0xea   :  { %6747 = vmatprep.subr.bf16.mxu1 %v7350_v33  ;;  %v7389_v33 = vld [vmem:[%s9441_s1 + $0x860] sm:$0xff]  }
  0xec   :  { %6726 = vmatpush3.bf16.msra.mxu0 %v7351_v34 }
  0xed   :  { %6748 = vmatpush3.bf16.msra.mxu1 %v7352_v35  ;;  %6727 = vmatprep.subr.bf16.mxu0 %v7353_v36  ;;  %v7390_v36 = vld [vmem:[%s9441_s1 + $0x8e0] sm:$0xff]  }
  0xee   :  { %6749 = vmatprep.subr.bf16.mxu1 %v7354_v37 }
  0xf0   :  { %6728 = vmatpush3.bf16.msra.mxu0 %v7355_v39  ;;  %v7391_v39 = vld [vmem:[%s9441_s1 + $0x820] sm:$0xff]  }
  0xf1   :  { %6750 = vmatpush3.bf16.msra.mxu1 %v7356_v41  ;;  %6729 = vmatprep.subr.bf16.mxu0 %v7357_v43 }
  0xf2   :  { %6751 = vmatprep.subr.bf16.mxu1 %v7358_v46 }
  0xf4   :  { %6730 = vmatpush3.bf16.msra.mxu0 %v7359_v49 }
  0xf5   :  { %6752 = vmatpush3.bf16.msra.mxu1 %v7360_v51  ;;  %6731 = vmatprep.subr.bf16.mxu0 %v7361_v54  ;;  %v7397_v54 = vld [vmem:[%s9441_s1 + $0x870] sm:$0xff]  }
  0xf6   :  { %v6429_v38 = vpop.f32.mrb[0].mxu0  ;;  %6753 = vmatprep.subr.bf16.mxu1 %v7362_v57  ;;  %v7400_v57 = vld [vmem:[%s9441_s1 + $0x8b0] sm:$0xff]  }
  0xf7   :  { %v6451_v40 = vpop.f32.mrb[0].mxu1  ;;  %v6430_v42 = vpop.f32.mrb[1].mxu0 }
  0xf8   :  { %v6431_v44 = vadd.f32 %v6430_v42, %v6429_v38  ;;  %v6452_v45 = vpop.f32.mrb[1].mxu1  ;;  %v6432_v48 = vpop.f32.mrb[2].mxu0  ;;  %6732 = vmatpush3.bf16.msra.mxu0 %v7363_v59  ;;  %v7392_v42 = vld [vmem:[%s9441_s1 + $0x8a0] sm:$0xff]   ;;  %v7402_v59 = vld [vmem:[%s9441_s1 + $0x8f8] sm:$0xff]  }
  0xf9   :  { %v6453_v47 = vadd.f32 %v6452_v45, %v6451_v40  ;;  %v6454_v50 = vpop.f32.mrb[2].mxu1  ;;  %v6433_v53 = vpop.f32.mrb[3].mxu0  ;;  %6754 = vmatpush3.bf16.msra.mxu1 %v7364_v60  ;;  %6733 = vmatprep.subr.bf16.mxu0 %v7365_v62  ;;  %v7393_v45 = vld [vmem:[%s9441_s1 + $0x868] sm:$0xff]   ;;  %v7403_v60 = vld [vmem:[%s9441_s1 + $0x838] sm:$0xff]   ;;  %v31_v62 = vld [vmem:[%s9442_s0 + $0x80] sm:$0xff] }
  0xfa   :  { %v6434_v55 = vadd.f32 %v6433_v53, %v6432_v48  ;;  %v6455_v56 = vpop.f32.mrb[3].mxu1  ;;  %6755 = vmatprep.subr.bf16.mxu1 %v7366_v63  ;;  %v7394_v48 = vld [vmem:[%s9441_s1 + $0x8e8] sm:$0xff]   ;;  %v63_v63 = vld [vmem:[%s9442_s0 + $0x180] sm:$0xff] }
  0xfb   :  { %v8469_v52 = vadd.f32 %v6453_v47, %v6431_v44  ;;  %v6456_v58 = vadd.f32 %v6455_v56, %v6454_v50  ;;  %v7395_v50 = vld [vmem:[%s9441_s1 + $0x828] sm:$0xff]   ;;  %v7399_v56 = vld [vmem:[%s9441_s1 + $0x830] sm:$0xff]  }
  0xfc   :  { %6734 = vmatpush3.bf16.msra.mxu0 %v7367_v0  ;;  %v32_v0 = vld [vmem:[%s9442_s0 + $0x88] sm:$0xff] }
  0xfd   :  { %v8483_v61 = vadd.f32 %v6456_v58, %v6434_v55  ;;  %6756 = vmatpush3.bf16.msra.mxu1 %v7368_v1  ;;  %6735 = vmatprep.subr.bf16.mxu0 %v7369_v2  ;;  %v7398_v55 = vld [vmem:[%s9441_s1 + $0x8f0] sm:$0xff]   ;;  %v7401_v58 = vld [vmem:[%s9441_s1 + $0x878] sm:$0xff]   ;;  %v64_v1 = vld [vmem:[%s9442_s0 + $0x188] sm:$0xff]  ;;  %v5867_v2 = vcombine.low %v31_v62, %v63_v63 }
  0xfe   :  { %6757 = vmatprep.subr.bf16.mxu1 %v7370_v3  ;;  %v5868_v3 = vcombine.high %v31_v62, %v63_v63  ;;  %v7437_v62 = vld [vmem:[%s9441_s1 + $0xa40] sm:$0xff]  }
  0xff   :  { %v7438_v63 = vld [vmem:[%s9441_s1 + $0xac0] sm:$0xff]  }
 0x100   :  { %6736 = vmatpush3.bf16.msra.mxu0 %v7371_v4  ;;  %v5869_v4 = vcombine.low %v32_v0, %v64_v1 }
 0x101   :  { %6758 = vmatpush3.bf16.msra.mxu1 %v7372_v5  ;;  %6765 = vmatprep.subr.bf16.mxu0 %v7373_v14  ;;  %v5870_v5 = vcombine.high %v32_v0, %v64_v1  ;;  %v7413_v14 = vld [vmem:[%s9441_s1 + $0x950] sm:$0xff]   ;;  %v7439_v0 = vld [vmem:[%s9441_s1 + $0xa00] sm:$0xff]  }
 0x102   :  { %6787 = vmatprep.subr.bf16.mxu1 %v7374_v15  ;;  %v7414_v15 = vld [vmem:[%s9441_s1 + $0x9d0] sm:$0xff]   ;;  %v7440_v1 = vld [vmem:[%s9441_s1 + $0xa80] sm:$0xff]  }
 0x103   :  { %5102 = vmatmul.mubr.bf16.vlgmr.msra.gmra.mrb[28].mxu0 %v5863_v8  ;;  %v7407_v8 = vld [vmem:[%s9441_s1 + $0x900] sm:$0xff]  }
 0x104   :  { %5143 = vmatmul.mubr.bf16.vlgmr.msra.gmra.mrb[28].mxu1 %v5865_v12  ;;  %6766 = vmatpush3.bf16.msra.mxu0 %v7375_v16  ;;  %v7411_v12 = vld [vmem:[%s9441_s1 + $0x908] sm:$0xff]   ;;  %v7415_v16 = vld [vmem:[%s9441_s1 + $0x910] sm:$0xff]  }
 0x105   :  { %6788 = vmatpush3.bf16.msra.mxu1 %v7376_v17  ;;  %6767 = vmatprep.subr.bf16.mxu0 %v7377_v18  ;;  %v7416_v17 = vld [vmem:[%s9441_s1 + $0x990] sm:$0xff]   ;;  %v7417_v18 = vld [vmem:[%s9441_s1 + $0x958] sm:$0xff]  }
 0x106   :  { %6789 = vmatprep.subr.bf16.mxu1 %v7378_v19  ;;  %5183 = vmatprep.mubr.bf16.mxu0 %v5868_v3  ;;  %v7418_v19 = vld [vmem:[%s9441_s1 + $0x9d8] sm:$0xff]   ;;  %v7442_v3 = vld [vmem:[%s9441_s1 + $0xac8] sm:$0xff]  }
 0x107   :  { %5224 = vmatprep.mubr.bf16.mxu1 %v5870_v5  ;;  %v7444_v5 = vld [vmem:[%s9441_s1 + $0xa88] sm:$0xff]  }
 0x108   :  { %6768 = vmatpush3.bf16.msra.mxu0 %v7379_v20  ;;  %v7419_v20 = vld [vmem:[%s9441_s1 + $0x918] sm:$0xff]  }
 0x109   :  { %6790 = vmatpush3.bf16.msra.mxu1 %v7380_v21  ;;  %6769 = vmatprep.subr.bf16.mxu0 %v7381_v22  ;;  %v7420_v22 = vld [vmem:[%s9441_s1 + $0x998] sm:$0xff]  }
 0x10a   :  { %6791 = vmatprep.subr.bf16.mxu1 %v7382_v23 }
 0x10c   :  { %6770 = vmatpush3.bf16.msra.mxu0 %v7383_v24  ;;  %v7421_v24 = vld [vmem:[%s9441_s1 + $0x960] sm:$0xff]  }
 0x10d   :  { %6792 = vmatpush3.bf16.msra.mxu1 %v7384_v25  ;;  %6771 = vmatprep.subr.bf16.mxu0 %v7385_v26  ;;  %v7422_v26 = vld [vmem:[%s9441_s1 + $0x9e0] sm:$0xff]  }
 0x10e   :  { %6793 = vmatprep.subr.bf16.mxu1 %v7386_v27 }
 0x110   :  { %6772 = vmatpush3.bf16.msra.mxu0 %v7387_v29  ;;  %v7423_v29 = vld [vmem:[%s9441_s1 + $0x920] sm:$0xff]  }
 0x111   :  { %6794 = vmatpush3.bf16.msra.mxu1 %v7388_v31  ;;  %6773 = vmatprep.subr.bf16.mxu0 %v7389_v33 }
 0x112   :  { %6795 = vmatprep.subr.bf16.mxu1 %v7390_v36 }
 0x114   :  { %6774 = vmatpush3.bf16.msra.mxu0 %v7391_v39 }
 0x115   :  { %6796 = vmatpush3.bf16.msra.mxu1 %v7392_v42  ;;  %6775 = vmatprep.subr.bf16.mxu0 %v7393_v45  ;;  %v7429_v45 = vld [vmem:[%s9441_s1 + $0x970] sm:$0xff]  }
 0x116   :  { %v6473_v28 = vpop.f32.mrb[4].mxu0  ;;  %6797 = vmatprep.subr.bf16.mxu1 %v7394_v48  ;;  %v7431_v48 = vld [vmem:[%s9441_s1 + $0x930] sm:$0xff]  }
 0x117   :  { %v6495_v30 = vpop.f32.mrb[4].mxu1  ;;  %v6474_v32 = vpop.f32.mrb[5].mxu0 }
 0x118   :  { %v6475_v34 = vadd.f32 %v6474_v32, %v6473_v28  ;;  %v6496_v35 = vpop.f32.mrb[5].mxu1  ;;  %v6476_v38 = vpop.f32.mrb[6].mxu0  ;;  %6776 = vmatpush3.bf16.msra.mxu0 %v7395_v50  ;;  %v7424_v32 = vld [vmem:[%s9441_s1 + $0x9a0] sm:$0xff]   ;;  %v7433_v50 = vld [vmem:[%s9441_s1 + $0x978] sm:$0xff]  }
 0x119   :  { %v6497_v37 = vadd.f32 %v6496_v35, %v6495_v30  ;;  %v6498_v41 = vpop.f32.mrb[6].mxu1  ;;  %v6477_v43 = vpop.f32.mrb[7].mxu0  ;;  %6777 = vmatprep.subr.bf16.mxu0 %v7397_v54  ;;  %v7425_v35 = vld [vmem:[%s9441_s1 + $0x968] sm:$0xff]   ;;  %v33_v54 = vld [vmem:[%s9442_s0 + $0x90] sm:$0xff] }
 0x11a   :  { %v4612_v40 = vadd.f32 %v6475_v34, %v8469_v52  ;;  %v6478_v46 = vadd.f32 %v6477_v43, %v6476_v38  ;;  %v6499_v47 = vpop.f32.mrb[7].mxu1  ;;  %v7396_v52 = vld [vmem:[%s9441_s1 + $0x8a8] sm:$0xff]  }
 0x11b   :  { %v6500_v49 = vadd.f32 %v6499_v47, %v6498_v41  ;;  %6798 = vmatpush3.bf16.msra.mxu1 %v7396_v52  ;;  %v7426_v38 = vld [vmem:[%s9441_s1 + $0x9e8] sm:$0xff]   ;;  %v7430_v47 = vld [vmem:[%s9441_s1 + $0x9f0] sm:$0xff]   ;;  %v7435_v52 = vld [vmem:[%s9441_s1 + $0x938] sm:$0xff]  }
 0x11c   :  { %v8582_v44 = vadd.f32 %v6497_v37, %v4612_v40  ;;  %v4615_v51 = vadd.f32 %v6478_v46, %v8483_v61  ;;  %6799 = vmatprep.subr.bf16.mxu1 %v7398_v55  ;;  %6778 = vmatpush3.bf16.msra.mxu0 %v7399_v56  ;;  %v7404_v61 = vld [vmem:[%s9441_s1 + $0x8b8] sm:$0xff]   ;;  %v7427_v41 = vld [vmem:[%s9441_s1 + $0x928] sm:$0xff]   ;;  %v65_v55 = vld [vmem:[%s9442_s0 + $0x190] sm:$0xff] }
 0x11d   :  { %6779 = vmatprep.subr.bf16.mxu0 %v7401_v58  ;;  %v7428_v43 = vld [vmem:[%s9441_s1 + $0x9a8] sm:$0xff]   ;;  %v34_v56 = vld [vmem:[%s9442_s0 + $0x98] sm:$0xff]  ;;  %v5872_v58 = vcombine.high %v33_v54, %v65_v55 }
 0x11e   :  { %v8597_v53 = vadd.f32 %v6500_v49, %v4615_v51  ;;  %v7432_v49 = vld [vmem:[%s9441_s1 + $0x9b0] sm:$0xff]   ;;  %v7434_v51 = vld [vmem:[%s9441_s1 + $0x9f8] sm:$0xff]  }
 0x11f   :  { %6800 = vmatpush3.bf16.msra.mxu1 %v7400_v57  ;;  %v5871_v57 = vcombine.low %v33_v54, %v65_v55  ;;  %v7469_v54 = vld [vmem:[%s9441_s1 + $0xb40] sm:$0xff]  }
 0x120   :  { %6801 = vmatprep.subr.bf16.mxu1 %v7402_v59  ;;  %6780 = vmatpush3.bf16.msra.mxu0 %v7403_v60  ;;  %v66_v59 = vld [vmem:[%s9442_s0 + $0x198] sm:$0xff]  ;;  %v7470_v55 = vld [vmem:[%s9441_s1 + $0xbc0] sm:$0xff]  }
 0x121   :  { %6809 = vmatprep.subr.bf16.mxu0 %v7405_v6  ;;  %v5873_v60 = vcombine.low %v34_v56, %v66_v59  ;;  %v7445_v6 = vld [vmem:[%s9441_s1 + $0xa50] sm:$0xff]  }
 0x123   :  { %6802 = vmatpush3.bf16.msra.mxu1 %v7404_v61  ;;  %5184 = vmatmul.mubr.bf16.vlgmr.msra.gmra.mrb[32].mxu0 %v5867_v2  ;;  %v5874_v61 = vcombine.high %v34_v56, %v66_v59  ;;  %v7441_v2 = vld [vmem:[%s9441_s1 + $0xa48] sm:$0xff]   ;;  %v7471_v56 = vld [vmem:[%s9441_s1 + $0xb00] sm:$0xff]  }
 0x124   :  { %6831 = vmatprep.subr.bf16.mxu1 %v7406_v7  ;;  %6810 = vmatpush3.bf16.msra.mxu0 %v7407_v8  ;;  %v7446_v7 = vld [vmem:[%s9441_s1 + $0xad0] sm:$0xff]   ;;  %v7474_v59 = vld [vmem:[%s9441_s1 + $0xbc8] sm:$0xff]  }
 0x125   :  { %6811 = vmatprep.subr.bf16.mxu0 %v7409_v10  ;;  %5265 = vmatprep.mubr.bf16.mxu0 %v5872_v58  ;;  %v7447_v8 = vld [vmem:[%s9441_s1 + $0xa10] sm:$0xff]   ;;  %v7449_v10 = vld [vmem:[%s9441_s1 + $0xa58] sm:$0xff]   ;;  %v7473_v58 = vld [vmem:[%s9441_s1 + $0xb48] sm:$0xff]  }
 0x126   :  { %5225 = vmatmul.mubr.bf16.vlgmr.msra.gmra.mrb[32].mxu1 %v5869_v4  ;;  %v7443_v4 = vld [vmem:[%s9441_s1 + $0xa08] sm:$0xff]  }
 0x127   :  { %6832 = vmatpush3.bf16.msra.mxu1 %v7408_v9  ;;  %5306 = vmatprep.mubr.bf16.mxu1 %v5874_v61  ;;  %v7448_v9 = vld [vmem:[%s9441_s1 + $0xa90] sm:$0xff]   ;;  %v7476_v61 = vld [vmem:[%s9441_s1 + $0xb88] sm:$0xff]  }
 0x128   :  { %6833 = vmatprep.subr.bf16.mxu1 %v7410_v11  ;;  %6812 = vmatpush3.bf16.msra.mxu0 %v7411_v12  ;;  %v7450_v11 = vld [vmem:[%s9441_s1 + $0xad8] sm:$0xff]  }
 0x129   :  { %6813 = vmatprep.subr.bf16.mxu0 %v7413_v14 }
 0x12b   :  { %6834 = vmatpush3.bf16.msra.mxu1 %v7412_v13  ;;  %v7451_v13 = vld [vmem:[%s9441_s1 + $0xa18] sm:$0xff]  }
 0x12c   :  { %6835 = vmatprep.subr.bf16.mxu1 %v7414_v15  ;;  %6814 = vmatpush3.bf16.msra.mxu0 %v7415_v16  ;;  %v7452_v15 = vld [vmem:[%s9441_s1 + $0xa98] sm:$0xff]  }
 0x12d   :  { %6815 = vmatprep.subr.bf16.mxu0 %v7417_v18 }
 0x12f   :  { %6836 = vmatpush3.bf16.msra.mxu1 %v7416_v17  ;;  %v7453_v17 = vld [vmem:[%s9441_s1 + $0xa60] sm:$0xff]  }
 0x130   :  { %6837 = vmatprep.subr.bf16.mxu1 %v7418_v19  ;;  %6816 = vmatpush3.bf16.msra.mxu0 %v7419_v20  ;;  %v7454_v20 = vld [vmem:[%s9441_s1 + $0xae0] sm:$0xff]  }
 0x131   :  { %6817 = vmatprep.subr.bf16.mxu0 %v7421_v24 }
 0x133   :  { %6838 = vmatpush3.bf16.msra.mxu1 %v7420_v22 }
 0x134   :  { %6839 = vmatprep.subr.bf16.mxu1 %v7422_v26  ;;  %6818 = vmatpush3.bf16.msra.mxu0 %v7423_v29  ;;  %v7456_v26 = vld [vmem:[%s9441_s1 + $0xaa0] sm:$0xff]   ;;  %v7457_v29 = vld [vmem:[%s9441_s1 + $0xa68] sm:$0xff]  }
 0x135   :  { %6819 = vmatprep.subr.bf16.mxu0 %v7425_v35 }
 0x136   :  { %v6517_v21 = vpop.f32.mrb[8].mxu0 }
 0x137   :  { %v6539_v23 = vpop.f32.mrb[8].mxu1  ;;  %v6518_v25 = vpop.f32.mrb[9].mxu0  ;;  %6840 = vmatpush3.bf16.msra.mxu1 %v7424_v32  ;;  %v7458_v32 = vld [vmem:[%s9441_s1 + $0xae8] sm:$0xff]  }
 0x138   :  { %v6519_v27 = vadd.f32 %v6518_v25, %v6517_v21  ;;  %v6540_v28 = vpop.f32.mrb[9].mxu1  ;;  %v6520_v31 = vpop.f32.mrb[10].mxu0  ;;  %6841 = vmatprep.subr.bf16.mxu1 %v7426_v38  ;;  %6820 = vmatpush3.bf16.msra.mxu0 %v7427_v41  ;;  %v7461_v38 = vld [vmem:[%s9441_s1 + $0xa70] sm:$0xff]  }
 0x139   :  { %v6541_v30 = vadd.f32 %v6540_v28, %v6539_v23  ;;  %v6542_v34 = vpop.f32.mrb[10].mxu1  ;;  %v6521_v36 = vpop.f32.mrb[11].mxu0  ;;  %6821 = vmatprep.subr.bf16.mxu0 %v7429_v45  ;;  %v7455_v23 = vld [vmem:[%s9441_s1 + $0xa20] sm:$0xff]   ;;  %v7464_v41 = vld [vmem:[%s9441_s1 + $0xab0] sm:$0xff]   ;;  %v7468_v45 = vld [vmem:[%s9441_s1 + $0xab8] sm:$0xff]  }
 0x13a   :  { %v4694_v33 = vadd.f32 %v6519_v27, %v8582_v44  ;;  %v6522_v39 = vadd.f32 %v6521_v36, %v6520_v31  ;;  %v6543_v40 = vpop.f32.mrb[11].mxu1  ;;  %v7460_v36 = vld [vmem:[%s9441_s1 + $0xaa8] sm:$0xff]  }
 0x13b   :  { %v6544_v42 = vadd.f32 %v6543_v40, %v6542_v34  ;;  %6842 = vmatpush3.bf16.msra.mxu1 %v7428_v43  ;;  %v7459_v34 = vld [vmem:[%s9441_s1 + $0xa28] sm:$0xff]   ;;  %v7463_v40 = vld [vmem:[%s9441_s1 + $0xa30] sm:$0xff]   ;;  %v7466_v43 = vld [vmem:[%s9441_s1 + $0xaf8] sm:$0xff]  }
 0x13c   :  { %v8699_v37 = vadd.f32 %v6541_v30, %v4694_v33  ;;  %v4697_v44 = vadd.f32 %v6522_v39, %v8597_v53  ;;  %6843 = vmatprep.subr.bf16.mxu1 %v7430_v47  ;;  %6822 = vmatpush3.bf16.msra.mxu0 %v7431_v48  ;;  %v7436_v53 = vld [vmem:[%s9441_s1 + $0x9b8] sm:$0xff]   ;;  %v7462_v39 = vld [vmem:[%s9441_s1 + $0xaf0] sm:$0xff]   ;;  %v67_v47 = vld [vmem:[%s9442_s0 + $0x1a0] sm:$0xff] }
 0x13d   :  { %6823 = vmatprep.subr.bf16.mxu0 %v7433_v50  ;;  %v36_v50 = vld [vmem:[%s9442_s0 + $0xa8] sm:$0xff] }
 0x13e   :  { %v8714_v46 = vadd.f32 %v6544_v42, %v4697_v44  ;;  %v7465_v42 = vld [vmem:[%s9441_s1 + $0xa78] sm:$0xff]  }
 0x13f   :  { %6844 = vmatpush3.bf16.msra.mxu1 %v7432_v49  ;;  %v7467_v44 = vld [vmem:[%s9441_s1 + $0xa38] sm:$0xff]  }
 0x140   :  { %6845 = vmatprep.subr.bf16.mxu1 %v7434_v51  ;;  %6824 = vmatpush3.bf16.msra.mxu0 %v7435_v52  ;;  %v68_v51 = vld [vmem:[%s9442_s0 + $0x1a8] sm:$0xff] }
 0x141   :  { %6853 = vmatprep.subr.bf16.mxu0 %v7437_v62  ;;  %v5877_v52 = vcombine.low %v36_v50, %v68_v51  ;;  %v7477_v62 = vld [vmem:[%s9441_s1 + $0xb50] sm:$0xff]  }
 0x143   :  { %6846 = vmatpush3.bf16.msra.mxu1 %v7436_v53  ;;  %5266 = vmatmul.mubr.bf16.vlgmr.msra.gmra.mrb[36].mxu0 %v5871_v57  ;;  %v5878_v53 = vcombine.high %v36_v50, %v68_v51  ;;  %v7472_v57 = vld [vmem:[%s9441_s1 + $0xb80] sm:$0xff]   ;;  %v7505_v50 = vld [vmem:[%s9441_s1 + $0xc48] sm:$0xff]  }
 0x144   :  { %6875 = vmatprep.subr.bf16.mxu1 %v7438_v63  ;;  %6854 = vmatpush3.bf16.msra.mxu0 %v7439_v0  ;;  %v7478_v63 = vld [vmem:[%s9441_s1 + $0xbd0] sm:$0xff]   ;;  %v7506_v51 = vld [vmem:[%s9441_s1 + $0xcc8] sm:$0xff]  }
 0x145   :  { %6855 = vmatprep.subr.bf16.mxu0 %v7441_v2  ;;  %v7479_v0 = vld [vmem:[%s9441_s1 + $0xb10] sm:$0xff]   ;;  %v7481_v2 = vld [vmem:[%s9441_s1 + $0xb58] sm:$0xff]  }
 0x146   :  { %5307 = vmatmul.mubr.bf16.vlgmr.msra.gmra.mrb[36].mxu1 %v5873_v60  ;;  %v7475_v60 = vld [vmem:[%s9441_s1 + $0xb08] sm:$0xff]  }
 0x147   :  { %6876 = vmatpush3.bf16.msra.mxu1 %v7440_v1  ;;  %5388 = vmatprep.mubr.bf16.mxu1 %v5878_v53  ;;  %v7480_v1 = vld [vmem:[%s9441_s1 + $0xb90] sm:$0xff]   ;;  %v7508_v53 = vld [vmem:[%s9441_s1 + $0xc88] sm:$0xff]  }
 0x148   :  { %6877 = vmatprep.subr.bf16.mxu1 %v7442_v3  ;;  %6856 = vmatpush3.bf16.msra.mxu0 %v7443_v4  ;;  %v7482_v3 = vld [vmem:[%s9441_s1 + $0xbd8] sm:$0xff]  }
 0x149   :  { %6857 = vmatprep.subr.bf16.mxu0 %v7445_v6 }
 0x14b   :  { %6878 = vmatpush3.bf16.msra.mxu1 %v7444_v5  ;;  %v7483_v5 = vld [vmem:[%s9441_s1 + $0xb18] sm:$0xff]  }
 0x14c   :  { %6879 = vmatprep.subr.bf16.mxu1 %v7446_v7  ;;  %6858 = vmatpush3.bf16.msra.mxu0 %v7447_v8  ;;  %v7484_v7 = vld [vmem:[%s9441_s1 + $0xb98] sm:$0xff]  }
 0x14d   :  { %6859 = vmatprep.subr.bf16.mxu0 %v7449_v10 }
 0x14f   :  { %6880 = vmatpush3.bf16.msra.mxu1 %v7448_v9  ;;  %v7485_v9 = vld [vmem:[%s9441_s1 + $0xb60] sm:$0xff]  }
 0x150   :  { %6881 = vmatprep.subr.bf16.mxu1 %v7450_v11  ;;  %6860 = vmatpush3.bf16.msra.mxu0 %v7451_v13 }
 0x151   :  { %6861 = vmatprep.subr.bf16.mxu0 %v7453_v17 }
 0x153   :  { %6882 = vmatpush3.bf16.msra.mxu1 %v7452_v15  ;;  %v7487_v15 = vld [vmem:[%s9441_s1 + $0xb20] sm:$0xff]  }
 0x154   :  { %6883 = vmatprep.subr.bf16.mxu1 %v7454_v20  ;;  %6862 = vmatpush3.bf16.msra.mxu0 %v7455_v23 }
 0x155   :  { %6863 = vmatprep.subr.bf16.mxu0 %v7457_v29 }
 0x156   :  { %v6561_v12 = vpop.f32.mrb[12].mxu0 }
 0x157   :  { %v6583_v14 = vpop.f32.mrb[12].mxu1  ;;  %v6562_v16 = vpop.f32.mrb[13].mxu0  ;;  %6884 = vmatpush3.bf16.msra.mxu1 %v7456_v26  ;;  %v7491_v26 = vld [vmem:[%s9441_s1 + $0xb28] sm:$0xff]  }
 0x158   :  { %v6563_v18 = vadd.f32 %v6562_v16, %v6561_v12  ;;  %v6584_v19 = vpop.f32.mrb[13].mxu1  ;;  %v6564_v22 = vpop.f32.mrb[14].mxu0  ;;  %6885 = vmatprep.subr.bf16.mxu1 %v7458_v32  ;;  %6864 = vmatpush3.bf16.msra.mxu0 %v7459_v34  ;;  %v7486_v12 = vld [vmem:[%s9441_s1 + $0xbe0] sm:$0xff]   ;;  %v7495_v32 = vld [vmem:[%s9441_s1 + $0xb30] sm:$0xff]   ;;  %v7497_v34 = vld [vmem:[%s9441_s1 + $0xb78] sm:$0xff]  }
 0x159   :  { %v6585_v21 = vadd.f32 %v6584_v19, %v6583_v14  ;;  %v6586_v25 = vpop.f32.mrb[14].mxu1  ;;  %v6565_v27 = vpop.f32.mrb[15].mxu0  ;;  %6865 = vmatprep.subr.bf16.mxu0 %v7461_v38  ;;  %v37_v38 = vld [vmem:[%s9442_s0 + $0xb0] sm:$0xff] }
 0x15a   :  { %v4776_v24 = vadd.f32 %v6563_v18, %v8699_v37  ;;  %v6566_v30 = vadd.f32 %v6565_v27, %v6564_v22  ;;  %v6587_v31 = vpop.f32.mrb[15].mxu1  ;;  %v7488_v18 = vld [vmem:[%s9441_s1 + $0xba0] sm:$0xff]  }
 0x15b   :  { %v6588_v33 = vadd.f32 %v6587_v31, %v6586_v25  ;;  %6886 = vmatpush3.bf16.msra.mxu1 %v7460_v36  ;;  %v7494_v31 = vld [vmem:[%s9441_s1 + $0xbf0] sm:$0xff]   ;;  %v7499_v36 = vld [vmem:[%s9441_s1 + $0xb38] sm:$0xff]  }
 0x15c   :  { %v8810_v28 = vadd.f32 %v6585_v21, %v4776_v24  ;;  %v4779_v35 = vadd.f32 %v6566_v30, %v8714_v46  ;;  %6887 = vmatprep.subr.bf16.mxu1 %v7462_v39  ;;  %6866 = vmatpush3.bf16.msra.mxu0 %v7463_v40  ;;  %v35_v46 = vld [vmem:[%s9442_s0 + $0xa0] sm:$0xff]  ;;  %v7489_v21 = vld [vmem:[%s9441_s1 + $0xb68] sm:$0xff]   ;;  %v7493_v30 = vld [vmem:[%s9441_s1 + $0xb70] sm:$0xff]  }
 0x15d   :  { %6867 = vmatprep.subr.bf16.mxu0 %v7465_v42  ;;  %v5875_v48 = vcombine.low %v35_v46, %v67_v47  ;;  %v5876_v49 = vcombine.high %v35_v46, %v67_v47  ;;  %v7490_v24 = vld [vmem:[%s9441_s1 + $0xbe8] sm:$0xff]   ;;  %v69_v39 = vld [vmem:[%s9442_s0 + $0x1b0] sm:$0xff]  ;;  %v38_v40 = vld [vmem:[%s9442_s0 + $0xb8] sm:$0xff] }
 0x15e   :  { %v8825_v37 = vadd.f32 %v6588_v33, %v4779_v35  ;;  %v7496_v33 = vld [vmem:[%s9441_s1 + $0xbb0] sm:$0xff]   ;;  %v7498_v35 = vld [vmem:[%s9441_s1 + $0xbf8] sm:$0xff]   ;;  %v5879_v42 = vcombine.low %v37_v38, %v69_v39  ;;  %v7501_v46 = vld [vmem:[%s9441_s1 + $0xc40] sm:$0xff]  }
 0x15f   :  { %6888 = vmatpush3.bf16.msra.mxu1 %v7464_v41  ;;  %5347 = vmatprep.mubr.bf16.mxu0 %v5876_v49  ;;  %v70_v41 = vld [vmem:[%s9442_s0 + $0x1b8] sm:$0xff]  ;;  %v7502_v47 = vld [vmem:[%s9441_s1 + $0xcc0] sm:$0xff]  }
 0x160   :  { %6889 = vmatprep.subr.bf16.mxu1 %v7466_v43  ;;  %6868 = vmatpush3.bf16.msra.mxu0 %v7467_v44  ;;  %v5880_v43 = vcombine.high %v37_v38, %v69_v39  ;;  %v5881_v44 = vcombine.low %v38_v40, %v70_v41  ;;  %v7504_v49 = vld [vmem:[%s9441_s1 + $0xc80] sm:$0xff]  }
 0x161   :  { %6897 = vmatprep.subr.bf16.mxu0 %v7469_v54  ;;  %v7509_v54 = vld [vmem:[%s9441_s1 + $0xc50] sm:$0xff]   ;;  %v7533_v38 = vld [vmem:[%s9441_s1 + $0xd40] sm:$0xff]  }
 0x162   :  { %v7534_v39 = vld [vmem:[%s9441_s1 + $0xdc0] sm:$0xff]  }
 0x163   :  { %6890 = vmatpush3.bf16.msra.mxu1 %v7468_v45  ;;  %5348 = vmatmul.mubr.bf16.vlgmr.msra.gmra.mrb[40].mxu0 %v5875_v48  ;;  %v5882_v45 = vcombine.high %v38_v40, %v70_v41  ;;  %v7503_v48 = vld [vmem:[%s9441_s1 + $0xc00] sm:$0xff]  }
 0x164   :  { %6919 = vmatprep.subr.bf16.mxu1 %v7470_v55  ;;  %6898 = vmatpush3.bf16.msra.mxu0 %v7471_v56  ;;  %v7510_v55 = vld [vmem:[%s9441_s1 + $0xcd0] sm:$0xff]   ;;  %v7535_v40 = vld [vmem:[%s9441_s1 + $0xd00] sm:$0xff]  }
 0x165   :  { %6899 = vmatprep.subr.bf16.mxu0 %v7473_v58  ;;  %5429 = vmatprep.mubr.bf16.mxu0 %v5880_v43  ;;  %v7511_v56 = vld [vmem:[%s9441_s1 + $0xc10] sm:$0xff]   ;;  %v7513_v58 = vld [vmem:[%s9441_s1 + $0xc58] sm:$0xff]   ;;  %v7536_v41 = vld [vmem:[%s9441_s1 + $0xd80] sm:$0xff]  }
 0x166   :  { %5389 = vmatmul.mubr.bf16.vlgmr.msra.gmra.mrb[40].mxu1 %v5877_v52  ;;  %v7507_v52 = vld [vmem:[%s9441_s1 + $0xc08] sm:$0xff]  }
 0x167   :  { %6920 = vmatpush3.bf16.msra.mxu1 %v7472_v57  ;;  %5470 = vmatprep.mubr.bf16.mxu1 %v5882_v45  ;;  %v7512_v57 = vld [vmem:[%s9441_s1 + $0xc90] sm:$0xff]   ;;  %v7538_v43 = vld [vmem:[%s9441_s1 + $0xdc8] sm:$0xff]  }
 0x168   :  { %6921 = vmatprep.subr.bf16.mxu1 %v7474_v59  ;;  %6900 = vmatpush3.bf16.msra.mxu0 %v7475_v60  ;;  %v7514_v59 = vld [vmem:[%s9441_s1 + $0xcd8] sm:$0xff]   ;;  %v7540_v45 = vld [vmem:[%s9441_s1 + $0xd88] sm:$0xff]  }
 0x169   :  { %6901 = vmatprep.subr.bf16.mxu0 %v7477_v62  ;;  %v7515_v60 = vld [vmem:[%s9441_s1 + $0xc18] sm:$0xff]  }
 0x16a   :  { %v7516_v62 = vld [vmem:[%s9441_s1 + $0xc98] sm:$0xff]  }
 0x16b   :  { %6922 = vmatpush3.bf16.msra.mxu1 %v7476_v61 }
 0x16c   :  { %6923 = vmatprep.subr.bf16.mxu1 %v7478_v63  ;;  %6902 = vmatpush3.bf16.msra.mxu0 %v7479_v0  ;;  %v7517_v0 = vld [vmem:[%s9441_s1 + $0xc60] sm:$0xff]  }
 0x16d   :  { %6903 = vmatprep.subr.bf16.mxu0 %v7481_v2  ;;  %v7518_v2 = vld [vmem:[%s9441_s1 + $0xce0] sm:$0xff]  }
 0x16f   :  { %6924 = vmatpush3.bf16.msra.mxu1 %v7480_v1 }
 0x170   :  { %6925 = vmatprep.subr.bf16.mxu1 %v7482_v3  ;;  %6904 = vmatpush3.bf16.msra.mxu0 %v7483_v5  ;;  %v7519_v5 = vld [vmem:[%s9441_s1 + $0xc20] sm:$0xff]  }
 0x171   :  { %6905 = vmatprep.subr.bf16.mxu0 %v7485_v9 }
 0x173   :  { %6926 = vmatpush3.bf16.msra.mxu1 %v7484_v7 }
 0x174   :  { %6927 = vmatprep.subr.bf16.mxu1 %v7486_v12  ;;  %6906 = vmatpush3.bf16.msra.mxu0 %v7487_v15 }
 0x175   :  { %6907 = vmatprep.subr.bf16.mxu0 %v7489_v21  ;;  %v7525_v21 = vld [vmem:[%s9441_s1 + $0xc70] sm:$0xff]  }
 0x176   :  { %v6605_v4 = vpop.f32.mrb[16].mxu0 }
 0x177   :  { %v6627_v6 = vpop.f32.mrb[16].mxu1  ;;  %v6606_v8 = vpop.f32.mrb[17].mxu0  ;;  %6928 = vmatpush3.bf16.msra.mxu1 %v7488_v18 }
 0x178   :  { %v6607_v10 = vadd.f32 %v6606_v8, %v6605_v4  ;;  %v6628_v11 = vpop.f32.mrb[17].mxu1  ;;  %v6608_v14 = vpop.f32.mrb[18].mxu0  ;;  %6929 = vmatprep.subr.bf16.mxu1 %v7490_v24  ;;  %6908 = vmatpush3.bf16.msra.mxu0 %v7491_v26  ;;  %v7520_v8 = vld [vmem:[%s9441_s1 + $0xca0] sm:$0xff]   ;;  %v7527_v24 = vld [vmem:[%s9441_s1 + $0xc30] sm:$0xff]   ;;  %v7529_v26 = vld [vmem:[%s9441_s1 + $0xc78] sm:$0xff]  }
 0x179   :  { %v6629_v13 = vadd.f32 %v6628_v11, %v6627_v6  ;;  %v6630_v17 = vpop.f32.mrb[18].mxu1  ;;  %v6609_v19 = vpop.f32.mrb[19].mxu0  ;;  %6909 = vmatprep.subr.bf16.mxu0 %v7493_v30  ;;  %v7521_v11 = vld [vmem:[%s9441_s1 + $0xc68] sm:$0xff]   ;;  %v39_v30 = vld [vmem:[%s9442_s0 + $0xc0] sm:$0xff] }
 0x17a   :  { %v4858_v16 = vadd.f32 %v6607_v10, %v8810_v28  ;;  %v6610_v22 = vadd.f32 %v6609_v19, %v6608_v14  ;;  %v6631_v23 = vpop.f32.mrb[19].mxu1  ;;  %v7492_v28 = vld [vmem:[%s9441_s1 + $0xba8] sm:$0xff]  }
 0x17b   :  { %v6632_v25 = vadd.f32 %v6631_v23, %v6630_v17  ;;  %6930 = vmatpush3.bf16.msra.mxu1 %v7492_v28  ;;  %v7522_v14 = vld [vmem:[%s9441_s1 + $0xce8] sm:$0xff]   ;;  %v7526_v23 = vld [vmem:[%s9441_s1 + $0xcf0] sm:$0xff]   ;;  %v7531_v28 = vld [vmem:[%s9441_s1 + $0xc38] sm:$0xff]  }
 0x17c   :  { %v8924_v20 = vadd.f32 %v6629_v13, %v4858_v16  ;;  %v4861_v27 = vadd.f32 %v6610_v22, %v8825_v37  ;;  %6931 = vmatprep.subr.bf16.mxu1 %v7494_v31  ;;  %6910 = vmatpush3.bf16.msra.mxu0 %v7495_v32  ;;  %v7500_v37 = vld [vmem:[%s9441_s1 + $0xbb8] sm:$0xff]   ;;  %v7523_v17 = vld [vmem:[%s9441_s1 + $0xc28] sm:$0xff]   ;;  %v71_v31 = vld [vmem:[%s9442_s0 + $0x1c0] sm:$0xff] }
 0x17d   :  { %6911 = vmatprep.subr.bf16.mxu0 %v7497_v34  ;;  %v7524_v19 = vld [vmem:[%s9441_s1 + $0xca8] sm:$0xff]   ;;  %v5884_v34 = vcombine.high %v39_v30, %v71_v31 }
 0x17e   :  { %v8939_v29 = vadd.f32 %v6632_v25, %v4861_v27  ;;  %v7528_v25 = vld [vmem:[%s9441_s1 + $0xcb0] sm:$0xff]   ;;  %v7530_v27 = vld [vmem:[%s9441_s1 + $0xcf8] sm:$0xff]   ;;  %v40_v32 = vld [vmem:[%s9442_s0 + $0xc8] sm:$0xff] }
 0x17f   :  { %6932 = vmatpush3.bf16.msra.mxu1 %v7496_v33  ;;  %v5883_v33 = vcombine.low %v39_v30, %v71_v31  ;;  %v7565_v30 = vld [vmem:[%s9441_s1 + $0xe40] sm:$0xff]  }
 0x180   :  { %6933 = vmatprep.subr.bf16.mxu1 %v7498_v35  ;;  %6912 = vmatpush3.bf16.msra.mxu0 %v7499_v36  ;;  %v72_v35 = vld [vmem:[%s9442_s0 + $0x1c8] sm:$0xff]  ;;  %v7566_v31 = vld [vmem:[%s9441_s1 + $0xec0] sm:$0xff]  }
 0x181   :  { %6941 = vmatprep.subr.bf16.mxu0 %v7501_v46  ;;  %v5885_v36 = vcombine.low %v40_v32, %v72_v35  ;;  %v7541_v46 = vld [vmem:[%s9441_s1 + $0xd50] sm:$0xff]  }
 0x183   :  { %6934 = vmatpush3.bf16.msra.mxu1 %v7500_v37  ;;  %5430 = vmatmul.mubr.bf16.vlgmr.msra.gmra.mrb[44].mxu0 %v5879_v42  ;;  %v5886_v37 = vcombine.high %v40_v32, %v72_v35  ;;  %v7537_v42 = vld [vmem:[%s9441_s1 + $0xd48] sm:$0xff]   ;;  %v7567_v32 = vld [vmem:[%s9441_s1 + $0xe00] sm:$0xff]  }
 0x184   :  { %6963 = vmatprep.subr.bf16.mxu1 %v7502_v47  ;;  %6942 = vmatpush3.bf16.msra.mxu0 %v7503_v48  ;;  %v7542_v47 = vld [vmem:[%s9441_s1 + $0xdd0] sm:$0xff]   ;;  %v7570_v35 = vld [vmem:[%s9441_s1 + $0xec8] sm:$0xff]  }
 0x185   :  { %6943 = vmatprep.subr.bf16.mxu0 %v7505_v50  ;;  %5511 = vmatprep.mubr.bf16.mxu0 %v5884_v34  ;;  %v7543_v48 = vld [vmem:[%s9441_s1 + $0xd10] sm:$0xff]   ;;  %v7545_v50 = vld [vmem:[%s9441_s1 + $0xd58] sm:$0xff]   ;;  %v7569_v34 = vld [vmem:[%s9441_s1 + $0xe48] sm:$0xff]  }
 0x186   :  { %5471 = vmatmul.mubr.bf16.vlgmr.msra.gmra.mrb[44].mxu1 %v5881_v44  ;;  %v7539_v44 = vld [vmem:[%s9441_s1 + $0xd08] sm:$0xff]  }
 0x187   :  { %6964 = vmatpush3.bf16.msra.mxu1 %v7504_v49  ;;  %5552 = vmatprep.mubr.bf16.mxu1 %v5886_v37  ;;  %v7544_v49 = vld [vmem:[%s9441_s1 + $0xd90] sm:$0xff]   ;;  %v7572_v37 = vld [vmem:[%s9441_s1 + $0xe88] sm:$0xff]  }
 0x188   :  { %6965 = vmatprep.subr.bf16.mxu1 %v7506_v51  ;;  %6944 = vmatpush3.bf16.msra.mxu0 %v7507_v52  ;;  %v7546_v51 = vld [vmem:[%s9441_s1 + $0xdd8] sm:$0xff]  }
 0x189   :  { %6945 = vmatprep.subr.bf16.mxu0 %v7509_v54 }
 0x18b   :  { %6966 = vmatpush3.bf16.msra.mxu1 %v7508_v53  ;;  %v7547_v53 = vld [vmem:[%s9441_s1 + $0xd18] sm:$0xff]  }
 0x18c   :  { %6967 = vmatprep.subr.bf16.mxu1 %v7510_v55  ;;  %6946 = vmatpush3.bf16.msra.mxu0 %v7511_v56  ;;  %v7548_v55 = vld [vmem:[%s9441_s1 + $0xd98] sm:$0xff]  }
 0x18d   :  { %6947 = vmatprep.subr.bf16.mxu0 %v7513_v58 }
 0x18f   :  { %6968 = vmatpush3.bf16.msra.mxu1 %v7512_v57  ;;  %v7549_v57 = vld [vmem:[%s9441_s1 + $0xd60] sm:$0xff]  }
 0x190   :  { %6969 = vmatprep.subr.bf16.mxu1 %v7514_v59  ;;  %6948 = vmatpush3.bf16.msra.mxu0 %v7515_v60  ;;  %v7550_v60 = vld [vmem:[%s9441_s1 + $0xde0] sm:$0xff]  }
 0x191   :  { %6949 = vmatprep.subr.bf16.mxu0 %v7517_v0 }
 0x193   :  { %6970 = vmatpush3.bf16.msra.mxu1 %v7516_v62 }
 0x194   :  { %6971 = vmatprep.subr.bf16.mxu1 %v7518_v2  ;;  %6950 = vmatpush3.bf16.msra.mxu0 %v7519_v5  ;;  %v7552_v2 = vld [vmem:[%s9441_s1 + $0xda0] sm:$0xff]   ;;  %v7553_v5 = vld [vmem:[%s9441_s1 + $0xd68] sm:$0xff]  }
 0x195   :  { %6951 = vmatprep.subr.bf16.mxu0 %v7521_v11 }
 0x196   :  { %v6649_v61 = vpop.f32.mrb[20].mxu0 }
 0x197   :  { %v6671_v63 = vpop.f32.mrb[20].mxu1  ;;  %v6650_v1 = vpop.f32.mrb[21].mxu0  ;;  %6972 = vmatpush3.bf16.msra.mxu1 %v7520_v8  ;;  %v7554_v8 = vld [vmem:[%s9441_s1 + $0xde8] sm:$0xff]  }
 0x198   :  { %v6651_v3 = vadd.f32 %v6650_v1, %v6649_v61  ;;  %v6672_v4 = vpop.f32.mrb[21].mxu1  ;;  %v6652_v7 = vpop.f32.mrb[22].mxu0  ;;  %6973 = vmatprep.subr.bf16.mxu1 %v7522_v14  ;;  %6952 = vmatpush3.bf16.msra.mxu0 %v7523_v17  ;;  %v7557_v14 = vld [vmem:[%s9441_s1 + $0xd70] sm:$0xff]  }
 0x199   :  { %v6673_v6 = vadd.f32 %v6672_v4, %v6671_v63  ;;  %v6674_v10 = vpop.f32.mrb[22].mxu1  ;;  %v6653_v12 = vpop.f32.mrb[23].mxu0  ;;  %6953 = vmatprep.subr.bf16.mxu0 %v7525_v21  ;;  %v7551_v63 = vld [vmem:[%s9441_s1 + $0xd20] sm:$0xff]   ;;  %v7560_v17 = vld [vmem:[%s9441_s1 + $0xdb0] sm:$0xff]   ;;  %v7564_v21 = vld [vmem:[%s9441_s1 + $0xdb8] sm:$0xff]  }
 0x19a   :  { %v4940_v9 = vadd.f32 %v6651_v3, %v8924_v20  ;;  %v6654_v15 = vadd.f32 %v6653_v12, %v6652_v7  ;;  %v6675_v16 = vpop.f32.mrb[23].mxu1  ;;  %v7556_v12 = vld [vmem:[%s9441_s1 + $0xda8] sm:$0xff]  }
 0x19b   :  { %v6676_v18 = vadd.f32 %v6675_v16, %v6674_v10  ;;  %6974 = vmatpush3.bf16.msra.mxu1 %v7524_v19  ;;  %v7555_v10 = vld [vmem:[%s9441_s1 + $0xd28] sm:$0xff]   ;;  %v7559_v16 = vld [vmem:[%s9441_s1 + $0xd30] sm:$0xff]   ;;  %v7562_v19 = vld [vmem:[%s9441_s1 + $0xdf8] sm:$0xff]  }
 0x19c   :  { %v9041_v13 = vadd.f32 %v6673_v6, %v4940_v9  ;;  %v4943_v20 = vadd.f32 %v6654_v15, %v8939_v29  ;;  %6975 = vmatprep.subr.bf16.mxu1 %v7526_v23  ;;  %6954 = vmatpush3.bf16.msra.mxu0 %v7527_v24  ;;  %v7532_v29 = vld [vmem:[%s9441_s1 + $0xcb8] sm:$0xff]   ;;  %v7558_v15 = vld [vmem:[%s9441_s1 + $0xdf0] sm:$0xff]  }
 0x19d   :  { %6955 = vmatprep.subr.bf16.mxu0 %v7529_v26  ;;  %v73_v23 = vld [vmem:[%s9442_s0 + $0x1d0] sm:$0xff]  ;;  %v42_v26 = vld [vmem:[%s9442_s0 + $0xd8] sm:$0xff] }
 0x19e   :  { %v9056_v22 = vadd.f32 %v6676_v18, %v4943_v20  ;;  %v7561_v18 = vld [vmem:[%s9441_s1 + $0xd78] sm:$0xff]  }
 0x19f   :  { %6976 = vmatpush3.bf16.msra.mxu1 %v7528_v25  ;;  %v7563_v20 = vld [vmem:[%s9441_s1 + $0xd38] sm:$0xff]  }
 0x1a0   :  { %6977 = vmatprep.subr.bf16.mxu1 %v7530_v27  ;;  %6956 = vmatpush3.bf16.msra.mxu0 %v7531_v28  ;;  %v74_v27 = vld [vmem:[%s9442_s0 + $0x1d8] sm:$0xff] }
 0x1a1   :  { %6985 = vmatprep.subr.bf16.mxu0 %v7533_v38  ;;  %v5889_v28 = vcombine.low %v42_v26, %v74_v27  ;;  %v7573_v38 = vld [vmem:[%s9441_s1 + $0xe50] sm:$0xff]  }
 0x1a3   :  { %6978 = vmatpush3.bf16.msra.mxu1 %v7532_v29  ;;  %5512 = vmatmul.mubr.bf16.vlgmr.msra.gmra.mrb[48].mxu0 %v5883_v33  ;;  %v5890_v29 = vcombine.high %v42_v26, %v74_v27  ;;  %v7568_v33 = vld [vmem:[%s9441_s1 + $0xe80] sm:$0xff]   ;;  %v7601_v26 = vld [vmem:[%s9441_s1 + $0xf48] sm:$0xff]  }
 0x1a4   :  { %7007 = vmatprep.subr.bf16.mxu1 %v7534_v39  ;;  %6986 = vmatpush3.bf16.msra.mxu0 %v7535_v40  ;;  %v7574_v39 = vld [vmem:[%s9441_s1 + $0xed0] sm:$0xff]   ;;  %v7602_v27 = vld [vmem:[%s9441_s1 + $0xfc8] sm:$0xff]  }
 0x1a5   :  { %6987 = vmatprep.subr.bf16.mxu0 %v7537_v42  ;;  %v7575_v40 = vld [vmem:[%s9441_s1 + $0xe10] sm:$0xff]   ;;  %v7577_v42 = vld [vmem:[%s9441_s1 + $0xe58] sm:$0xff]  }
 0x1a6   :  { %5553 = vmatmul.mubr.bf16.vlgmr.msra.gmra.mrb[48].mxu1 %v5885_v36  ;;  %v7571_v36 = vld [vmem:[%s9441_s1 + $0xe08] sm:$0xff]  }
 0x1a7   :  { %7008 = vmatpush3.bf16.msra.mxu1 %v7536_v41  ;;  %5634 = vmatprep.mubr.bf16.mxu1 %v5890_v29  ;;  %v7576_v41 = vld [vmem:[%s9441_s1 + $0xe90] sm:$0xff]   ;;  %v7604_v29 = vld [vmem:[%s9441_s1 + $0xf88] sm:$0xff]  }
 0x1a8   :  { %7009 = vmatprep.subr.bf16.mxu1 %v7538_v43  ;;  %6988 = vmatpush3.bf16.msra.mxu0 %v7539_v44  ;;  %v7578_v43 = vld [vmem:[%s9441_s1 + $0xed8] sm:$0xff]  }
 0x1a9   :  { %6989 = vmatprep.subr.bf16.mxu0 %v7541_v46 }
 0x1ab   :  { %7010 = vmatpush3.bf16.msra.mxu1 %v7540_v45  ;;  %v7579_v45 = vld [vmem:[%s9441_s1 + $0xe18] sm:$0xff]  }
 0x1ac   :  { %7011 = vmatprep.subr.bf16.mxu1 %v7542_v47  ;;  %6990 = vmatpush3.bf16.msra.mxu0 %v7543_v48  ;;  %v7580_v47 = vld [vmem:[%s9441_s1 + $0xe98] sm:$0xff]  }
 0x1ad   :  { %6991 = vmatprep.subr.bf16.mxu0 %v7545_v50 }
 0x1af   :  { %7012 = vmatpush3.bf16.msra.mxu1 %v7544_v49  ;;  %v7581_v49 = vld [vmem:[%s9441_s1 + $0xe60] sm:$0xff]  }
 0x1b0   :  { %7013 = vmatprep.subr.bf16.mxu1 %v7546_v51  ;;  %6992 = vmatpush3.bf16.msra.mxu0 %v7547_v53 }
 0x1b1   :  { %6993 = vmatprep.subr.bf16.mxu0 %v7549_v57 }
 0x1b3   :  { %7014 = vmatpush3.bf16.msra.mxu1 %v7548_v55  ;;  %v7583_v55 = vld [vmem:[%s9441_s1 + $0xe20] sm:$0xff]  }
 0x1b4   :  { %7015 = vmatprep.subr.bf16.mxu1 %v7550_v60  ;;  %6994 = vmatpush3.bf16.msra.mxu0 %v7551_v63 }
 0x1b5   :  { %6995 = vmatprep.subr.bf16.mxu0 %v7553_v5 }
 0x1b6   :  { %v6693_v52 = vpop.f32.mrb[24].mxu0 }
 0x1b7   :  { %v6715_v54 = vpop.f32.mrb[24].mxu1  ;;  %v6694_v56 = vpop.f32.mrb[25].mxu0  ;;  %7016 = vmatpush3.bf16.msra.mxu1 %v7552_v2  ;;  %v7587_v2 = vld [vmem:[%s9441_s1 + $0xe28] sm:$0xff]  }
 0x1b8   :  { %v6695_v58 = vadd.f32 %v6694_v56, %v6693_v52  ;;  %v6716_v59 = vpop.f32.mrb[25].mxu1  ;;  %v6696_v62 = vpop.f32.mrb[26].mxu0  ;;  %7017 = vmatprep.subr.bf16.mxu1 %v7554_v8  ;;  %6996 = vmatpush3.bf16.msra.mxu0 %v7555_v10  ;;  %v7582_v52 = vld [vmem:[%s9441_s1 + $0xee0] sm:$0xff]   ;;  %v7591_v8 = vld [vmem:[%s9441_s1 + $0xe30] sm:$0xff]   ;;  %v7593_v10 = vld [vmem:[%s9441_s1 + $0xe78] sm:$0xff]  }
 0x1b9   :  { %v6717_v61 = vadd.f32 %v6716_v59, %v6715_v54  ;;  %v6718_v1 = vpop.f32.mrb[26].mxu1  ;;  %v6697_v3 = vpop.f32.mrb[27].mxu0  ;;  %6997 = vmatprep.subr.bf16.mxu0 %v7557_v14  ;;  %v43_v14 = vld [vmem:[%s9442_s0 + $0xe0] sm:$0xff] }
 0x1ba   :  { %v5022_v0 = vadd.f32 %v6695_v58, %v9041_v13  ;;  %v6698_v6 = vadd.f32 %v6697_v3, %v6696_v62  ;;  %v6719_v7 = vpop.f32.mrb[27].mxu1  ;;  %v7584_v58 = vld [vmem:[%s9441_s1 + $0xea0] sm:$0xff]  }
 0x1bb   :  { %v6720_v9 = vadd.f32 %v6719_v7, %v6718_v1  ;;  %7018 = vmatpush3.bf16.msra.mxu1 %v7556_v12  ;;  %v7590_v7 = vld [vmem:[%s9441_s1 + $0xef0] sm:$0xff]   ;;  %v7595_v12 = vld [vmem:[%s9441_s1 + $0xe38] sm:$0xff]  }
 0x1bc   :  { %v9152_v4 = vadd.f32 %v6717_v61, %v5022_v0  ;;  %v5025_v11 = vadd.f32 %v6698_v6, %v9056_v22  ;;  %7019 = vmatprep.subr.bf16.mxu1 %v7558_v15  ;;  %6998 = vmatpush3.bf16.msra.mxu0 %v7559_v16  ;;  %v41_v22 = vld [vmem:[%s9442_s0 + $0xd0] sm:$0xff]  ;;  %v7585_v61 = vld [vmem:[%s9441_s1 + $0xe68] sm:$0xff]   ;;  %v75_v15 = vld [vmem:[%s9442_s0 + $0x1e0] sm:$0xff] }
 0x1bd   :  { %6999 = vmatprep.subr.bf16.mxu0 %v7561_v18  ;;  %v5887_v24 = vcombine.low %v41_v22, %v73_v23  ;;  %v5888_v25 = vcombine.high %v41_v22, %v73_v23  ;;  %v7586_v0 = vld [vmem:[%s9441_s1 + $0xee8] sm:$0xff]   ;;  %v7589_v6 = vld [vmem:[%s9441_s1 + $0xe70] sm:$0xff]   ;;  %v5891_v18 = vcombine.low %v43_v14, %v75_v15  ;;  %v7597_v22 = vld [vmem:[%s9441_s1 + $0xf40] sm:$0xff]  }
 0x1be   :  { %v9167_v13 = vadd.f32 %v6720_v9, %v5025_v11  ;;  %v7592_v9 = vld [vmem:[%s9441_s1 + $0xeb0] sm:$0xff]   ;;  %v7594_v11 = vld [vmem:[%s9441_s1 + $0xef8] sm:$0xff]   ;;  %v44_v16 = vld [vmem:[%s9442_s0 + $0xe8] sm:$0xff] }
 0x1bf   :  { %7020 = vmatpush3.bf16.msra.mxu1 %v7560_v17  ;;  %5593 = vmatprep.mubr.bf16.mxu0 %v5888_v25  ;;  %v76_v17 = vld [vmem:[%s9442_s0 + $0x1e8] sm:$0xff]  ;;  %v7598_v23 = vld [vmem:[%s9441_s1 + $0xfc0] sm:$0xff]  }
 0x1c0   :  { %7021 = vmatprep.subr.bf16.mxu1 %v7562_v19  ;;  %7000 = vmatpush3.bf16.msra.mxu0 %v7563_v20  ;;  %v5892_v19 = vcombine.high %v43_v14, %v75_v15  ;;  %v5893_v20 = vcombine.low %v44_v16, %v76_v17  ;;  %v7600_v25 = vld [vmem:[%s9441_s1 + $0xf80] sm:$0xff]  }
 0x1c1   :  { %7029 = vmatprep.subr.bf16.mxu0 %v7565_v30  ;;  %v7605_v30 = vld [vmem:[%s9441_s1 + $0xf50] sm:$0xff]  }
 0x1c3   :  { %7022 = vmatpush3.bf16.msra.mxu1 %v7564_v21  ;;  %5594 = vmatmul.mubr.bf16.vlgmr.msra.gmra.mrb[52].mxu0 %v5887_v24  ;;  %v5894_v21 = vcombine.high %v44_v16, %v76_v17  ;;  %v7599_v24 = vld [vmem:[%s9441_s1 + $0xf00] sm:$0xff]  }
 0x1c4   :  { %7051 = vmatprep.subr.bf16.mxu1 %v7566_v31  ;;  %7030 = vmatpush3.bf16.msra.mxu0 %v7567_v32  ;;  %v7606_v31 = vld [vmem:[%s9441_s1 + $0xfd0] sm:$0xff]  }
 0x1c5   :  { %7031 = vmatprep.subr.bf16.mxu0 %v7569_v34  ;;  %5675 = vmatprep.mubr.bf16.mxu0 %v5892_v19  ;;  %v7607_v32 = vld [vmem:[%s9441_s1 + $0xf10] sm:$0xff]   ;;  %v7609_v34 = vld [vmem:[%s9441_s1 + $0xf58] sm:$0xff]  }
 0x1c6   :  { %5635 = vmatmul.mubr.bf16.vlgmr.msra.gmra.mrb[52].mxu1 %v5889_v28  ;;  %v7603_v28 = vld [vmem:[%s9441_s1 + $0xf08] sm:$0xff]  }
 0x1c7   :  { %7052 = vmatpush3.bf16.msra.mxu1 %v7568_v33  ;;  %5716 = vmatprep.mubr.bf16.mxu1 %v5894_v21  ;;  %v7608_v33 = vld [vmem:[%s9441_s1 + $0xf90] sm:$0xff]  }
 0x1c8   :  { %7053 = vmatprep.subr.bf16.mxu1 %v7570_v35  ;;  %7032 = vmatpush3.bf16.msra.mxu0 %v7571_v36  ;;  %v7610_v35 = vld [vmem:[%s9441_s1 + $0xfd8] sm:$0xff]  }
 0x1c9   :  { %7033 = vmatprep.subr.bf16.mxu0 %v7573_v38  ;;  %v7611_v36 = vld [vmem:[%s9441_s1 + $0xf18] sm:$0xff]  }
 0x1ca   :  { %v7612_v38 = vld [vmem:[%s9441_s1 + $0xf98] sm:$0xff]  }
 0x1cb   :  { %7054 = vmatpush3.bf16.msra.mxu1 %v7572_v37 }
 0x1cc   :  { %7055 = vmatprep.subr.bf16.mxu1 %v7574_v39  ;;  %7034 = vmatpush3.bf16.msra.mxu0 %v7575_v40  ;;  %v7613_v40 = vld [vmem:[%s9441_s1 + $0xf60] sm:$0xff]  }
 0x1cd   :  { %7035 = vmatprep.subr.bf16.mxu0 %v7577_v42  ;;  %v7614_v42 = vld [vmem:[%s9441_s1 + $0xfe0] sm:$0xff]  }
 0x1cf   :  { %7056 = vmatpush3.bf16.msra.mxu1 %v7576_v41 }
 0x1d0   :  { %7057 = vmatprep.subr.bf16.mxu1 %v7578_v43  ;;  %7036 = vmatpush3.bf16.msra.mxu0 %v7579_v45  ;;  %v7615_v45 = vld [vmem:[%s9441_s1 + $0xf20] sm:$0xff]  }
 0x1d1   :  { %7037 = vmatprep.subr.bf16.mxu0 %v7581_v49 }
 0x1d3   :  { %7058 = vmatpush3.bf16.msra.mxu1 %v7580_v47 }
 0x1d4   :  { %7059 = vmatprep.subr.bf16.mxu1 %v7582_v52  ;;  %7038 = vmatpush3.bf16.msra.mxu0 %v7583_v55 }
 0x1d5   :  { %7039 = vmatprep.subr.bf16.mxu0 %v7585_v61  ;;  %v7621_v61 = vld [vmem:[%s9441_s1 + $0xf70] sm:$0xff]  }
 0x1d6   :  { %v6737_v44 = vpop.f32.mrb[28].mxu0 }
 0x1d7   :  { %v6759_v46 = vpop.f32.mrb[28].mxu1  ;;  %v6738_v48 = vpop.f32.mrb[29].mxu0  ;;  %7060 = vmatpush3.bf16.msra.mxu1 %v7584_v58 }
 0x1d8   :  { %v6739_v50 = vadd.f32 %v6738_v48, %v6737_v44  ;;  %v6760_v51 = vpop.f32.mrb[29].mxu1  ;;  %v6740_v54 = vpop.f32.mrb[30].mxu0  ;;  %7061 = vmatprep.subr.bf16.mxu1 %v7586_v0  ;;  %7040 = vmatpush3.bf16.msra.mxu0 %v7587_v2  ;;  %v7616_v48 = vld [vmem:[%s9441_s1 + $0xfa0] sm:$0xff]   ;;  %v7623_v0 = vld [vmem:[%s9441_s1 + $0xf30] sm:$0xff]   ;;  %v7625_v2 = vld [vmem:[%s9441_s1 + $0xf78] sm:$0xff]  }
 0x1d9   :  { %v6761_v53 = vadd.f32 %v6760_v51, %v6759_v46  ;;  %v6762_v57 = vpop.f32.mrb[30].mxu1  ;;  %v6741_v59 = vpop.f32.mrb[31].mxu0  ;;  %7041 = vmatprep.subr.bf16.mxu0 %v7589_v6  ;;  %v7617_v51 = vld [vmem:[%s9441_s1 + $0xf68] sm:$0xff]   ;;  %v45_v6 = vld [vmem:[%s9442_s0 + $0xf0] sm:$0xff] }
 0x1da   :  { %v5104_v56 = vadd.f32 %v6739_v50, %v9152_v4  ;;  %v6742_v62 = vadd.f32 %v6741_v59, %v6740_v54  ;;  %v6763_v63 = vpop.f32.mrb[31].mxu1  ;;  %v7588_v4 = vld [vmem:[%s9441_s1 + $0xea8] sm:$0xff]  }
 0x1db   :  { %v6764_v1 = vadd.f32 %v6763_v63, %v6762_v57  ;;  %7062 = vmatpush3.bf16.msra.mxu1 %v7588_v4  ;;  %v7618_v54 = vld [vmem:[%s9441_s1 + $0xfe8] sm:$0xff]   ;;  %v7622_v63 = vld [vmem:[%s9441_s1 + $0xff0] sm:$0xff]   ;;  %v7627_v4 = vld [vmem:[%s9441_s1 + $0xf38] sm:$0xff]  }
 0x1dc   :  { %v9266_v60 = vadd.f32 %v6761_v53, %v5104_v56  ;;  %v5107_v3 = vadd.f32 %v6742_v62, %v9167_v13  ;;  %7063 = vmatprep.subr.bf16.mxu1 %v7590_v7  ;;  %7042 = vmatpush3.bf16.msra.mxu0 %v7591_v8  ;;  %v7596_v13 = vld [vmem:[%s9441_s1 + $0xeb8] sm:$0xff]   ;;  %v7619_v57 = vld [vmem:[%s9441_s1 + $0xf28] sm:$0xff]   ;;  %v77_v7 = vld [vmem:[%s9442_s0 + $0x1f0] sm:$0xff] }
 0x1dd   :  { %7043 = vmatprep.subr.bf16.mxu0 %v7593_v10  ;;  %v7620_v59 = vld [vmem:[%s9441_s1 + $0xfa8] sm:$0xff]   ;;  %v46_v8 = vld [vmem:[%s9442_s0 + $0xf8] sm:$0xff]  ;;  %v5896_v10 = vcombine.high %v45_v6, %v77_v7 }
 0x1de   :  { %v9281_v5 = vadd.f32 %v6764_v1, %v5107_v3  ;;  %v7624_v1 = vld [vmem:[%s9441_s1 + $0xfb0] sm:$0xff]   ;;  %v7626_v3 = vld [vmem:[%s9441_s1 + $0xff8] sm:$0xff]  }
 0x1df   :  { %7064 = vmatpush3.bf16.msra.mxu1 %v7592_v9  ;;  %v5895_v9 = vcombine.low %v45_v6, %v77_v7 }
 0x1e0   :  { %7065 = vmatprep.subr.bf16.mxu1 %v7594_v11  ;;  %7044 = vmatpush3.bf16.msra.mxu0 %v7595_v12  ;;  %v78_v11 = vld [vmem:[%s9442_s0 + $0x1f8] sm:$0xff] }
 0x1e1   :  { %7073 = vmatprep.subr.bf16.mxu0 %v7597_v22  ;;  %v5897_v12 = vcombine.low %v46_v8, %v78_v11 }
 0x1e3   :  { %7066 = vmatpush3.bf16.msra.mxu1 %v7596_v13  ;;  %5676 = vmatmul.mubr.bf16.vlgmr.msra.gmra.mrb[56].mxu0 %v5891_v18  ;;  %v5898_v13 = vcombine.high %v46_v8, %v78_v11 }
 0x1e4   :  { %7095 = vmatprep.subr.bf16.mxu1 %v7598_v23  ;;  %7074 = vmatpush3.bf16.msra.mxu0 %v7599_v24 }
 0x1e5   :  { %7075 = vmatprep.subr.bf16.mxu0 %v7601_v26  ;;  %5757 = vmatprep.mubr.bf16.mxu0 %v5896_v10 }
 0x1e6   :  { %5717 = vmatmul.mubr.bf16.vlgmr.msra.gmra.mrb[56].mxu1 %v5893_v20 }
 0x1e7   :  { %7096 = vmatpush3.bf16.msra.mxu1 %v7600_v25  ;;  %5798 = vmatprep.mubr.bf16.mxu1 %v5898_v13 }
 0x1e8   :  { %7097 = vmatprep.subr.bf16.mxu1 %v7602_v27  ;;  %7076 = vmatpush3.bf16.msra.mxu0 %v7603_v28 }
 0x1e9   :  { %7077 = vmatprep.subr.bf16.mxu0 %v7605_v30 }
 0x1eb   :  { %7098 = vmatpush3.bf16.msra.mxu1 %v7604_v29 }
 0x1ec   :  { %7099 = vmatprep.subr.bf16.mxu1 %v7606_v31  ;;  %7078 = vmatpush3.bf16.msra.mxu0 %v7607_v32 }
 0x1ed   :  { %7079 = vmatprep.subr.bf16.mxu0 %v7609_v34 }
 0x1ef   :  { %7100 = vmatpush3.bf16.msra.mxu1 %v7608_v33 }
 0x1f0   :  { %7101 = vmatprep.subr.bf16.mxu1 %v7610_v35  ;;  %7080 = vmatpush3.bf16.msra.mxu0 %v7611_v36 }
 0x1f1   :  { %7081 = vmatprep.subr.bf16.mxu0 %v7613_v40 }
 0x1f3   :  { %7102 = vmatpush3.bf16.msra.mxu1 %v7612_v38 }
 0x1f4   :  { %7103 = vmatprep.subr.bf16.mxu1 %v7614_v42  ;;  %7082 = vmatpush3.bf16.msra.mxu0 %v7615_v45 }
 0x1f5   :  { %7083 = vmatprep.subr.bf16.mxu0 %v7617_v51 }
 0x1f6   :  { %v6781_v37 = vpop.f32.mrb[32].mxu0 }
 0x1f7   :  { %v6782_v41 = vpop.f32.mrb[33].mxu0  ;;  %7104 = vmatpush3.bf16.msra.mxu1 %v7616_v48 }
 0x1f8   :  { %v6783_v43 = vadd.f32 %v6782_v41, %v6781_v37  ;;  %v6784_v47 = vpop.f32.mrb[34].mxu0  ;;  %7105 = vmatprep.subr.bf16.mxu1 %v7618_v54  ;;  %7084 = vmatpush3.bf16.msra.mxu0 %v7619_v57 }
 0x1f9   :  { %v6803_v39 = vpop.f32.mrb[32].mxu1  ;;  %v6785_v52 = vpop.f32.mrb[35].mxu0  ;;  %7085 = vmatprep.subr.bf16.mxu0 %v7621_v61 }
 0x1fa   :  { %v6804_v44 = vpop.f32.mrb[33].mxu1  ;;  %v5186_v49 = vadd.f32 %v6783_v43, %v9266_v60  ;;  %v6786_v55 = vadd.f32 %v6785_v52, %v6784_v47 }
 0x1fb   :  { %v6805_v46 = vadd.f32 %v6804_v44, %v6803_v39  ;;  %v6806_v50 = vpop.f32.mrb[34].mxu1  ;;  %7106 = vmatpush3.bf16.msra.mxu1 %v7620_v59 }
 0x1fc   :  { %v6807_v56 = vpop.f32.mrb[35].mxu1  ;;  %v5189_v60 = vadd.f32 %v6786_v55, %v9281_v5  ;;  %7107 = vmatprep.subr.bf16.mxu1 %v7622_v63  ;;  %7086 = vmatpush3.bf16.msra.mxu0 %v7623_v0  ;;  %v7628_v5 = vld [vmem:[%s9441_s1 + $0xfb8] sm:$0xff]  }
 0x1fd   :  { %v5227_v53 = vadd.f32 %v6805_v46, %v5186_v49  ;;  %v6808_v58 = vadd.f32 %v6807_v56, %v6806_v50  ;;  %7087 = vmatprep.subr.bf16.mxu0 %v7625_v2 }
 0x1ff   :  { %v5230_v62 = vadd.f32 %v6808_v58, %v5189_v60  ;;  %7108 = vmatpush3.bf16.msra.mxu1 %v7624_v1 }
 0x200   :  { %7109 = vmatprep.subr.bf16.mxu1 %v7626_v3  ;;  %7088 = vmatpush3.bf16.msra.mxu0 %v7627_v4 }
 0x203   :  { %7110 = vmatpush3.bf16.msra.mxu1 %v7628_v5  ;;  %5758 = vmatmul.mubr.bf16.vlgmr.msra.gmra.mrb[60].mxu0 %v5895_v9 }
 0x206   :  { %5799 = vmatmul.mubr.bf16.vlgmr.msra.gmra.mrb[60].mxu1 %v5897_v12 }
 0x216   :  { %v6825_v14 = vpop.f32.mrb[36].mxu0 }
 0x217   :  { %v6826_v16 = vpop.f32.mrb[37].mxu0 }
 0x218   :  { %v6827_v17 = vadd.f32 %v6826_v16, %v6825_v14  ;;  %v6828_v19 = vpop.f32.mrb[38].mxu0 }
 0x219   :  { %v6847_v15 = vpop.f32.mrb[36].mxu1  ;;  %v6829_v22 = vpop.f32.mrb[39].mxu0 }
 0x21a   :  { %v6848_v18 = vpop.f32.mrb[37].mxu1  ;;  %v5268_v23 = vadd.f32 %v6827_v17, %v5227_v53  ;;  %v6830_v24 = vadd.f32 %v6829_v22, %v6828_v19 }
 0x21b   :  { %v6849_v20 = vadd.f32 %v6848_v18, %v6847_v15  ;;  %v6850_v21 = vpop.f32.mrb[38].mxu1 }
 0x21c   :  { %v6851_v25 = vpop.f32.mrb[39].mxu1  ;;  %v5271_v28 = vadd.f32 %v6830_v24, %v5230_v62 }
 0x21d   :  { %v6852_v26 = vadd.f32 %v6851_v25, %v6850_v21  ;;  %v5309_v27 = vadd.f32 %v6849_v20, %v5268_v23 }
 0x21f   :  { %v5312_v29 = vadd.f32 %v6852_v26, %v5271_v28 }
 0x236   :  { %v6869_v30 = vpop.f32.mrb[40].mxu0 }
 0x237   :  { %v6870_v32 = vpop.f32.mrb[41].mxu0 }
 0x238   :  { %v6871_v33 = vadd.f32 %v6870_v32, %v6869_v30  ;;  %v6872_v35 = vpop.f32.mrb[42].mxu0 }
 0x239   :  { %v6891_v31 = vpop.f32.mrb[40].mxu1  ;;  %v6873_v38 = vpop.f32.mrb[43].mxu0 }
 0x23a   :  { %v6892_v34 = vpop.f32.mrb[41].mxu1  ;;  %v5350_v39 = vadd.f32 %v6871_v33, %v5309_v27  ;;  %v6874_v40 = vadd.f32 %v6873_v38, %v6872_v35 }
 0x23b   :  { %v6893_v36 = vadd.f32 %v6892_v34, %v6891_v31  ;;  %v6894_v37 = vpop.f32.mrb[42].mxu1 }
 0x23c   :  { %v6895_v41 = vpop.f32.mrb[43].mxu1  ;;  %v5353_v44 = vadd.f32 %v6874_v40, %v5312_v29 }
 0x23d   :  { %v6896_v42 = vadd.f32 %v6895_v41, %v6894_v37  ;;  %v5391_v43 = vadd.f32 %v6893_v36, %v5350_v39 }
 0x23f   :  { %v5394_v45 = vadd.f32 %v6896_v42, %v5353_v44 }
 0x256   :  { %v6913_v46 = vpop.f32.mrb[44].mxu0 }
 0x257   :  { %v6914_v48 = vpop.f32.mrb[45].mxu0 }
 0x258   :  { %v6915_v50 = vadd.f32 %v6914_v48, %v6913_v46  ;;  %v6916_v52 = vpop.f32.mrb[46].mxu0 }
 0x259   :  { %v6935_v47 = vpop.f32.mrb[44].mxu1  ;;  %v6917_v54 = vpop.f32.mrb[47].mxu0 }
 0x25a   :  { %v6936_v49 = vpop.f32.mrb[45].mxu1  ;;  %v5432_v56 = vadd.f32 %v6915_v50, %v5391_v43  ;;  %v6918_v57 = vadd.f32 %v6917_v54, %v6916_v52 }
 0x25b   :  { %v6937_v51 = vadd.f32 %v6936_v49, %v6935_v47  ;;  %v6938_v53 = vpop.f32.mrb[46].mxu1 }
 0x25c   :  { %v6939_v55 = vpop.f32.mrb[47].mxu1  ;;  %v5435_v60 = vadd.f32 %v6918_v57, %v5394_v45 }
 0x25d   :  { %v6940_v58 = vadd.f32 %v6939_v55, %v6938_v53  ;;  %v5473_v59 = vadd.f32 %v6937_v51, %v5432_v56 }
 0x25f   :  { %v5476_v61 = vadd.f32 %v6940_v58, %v5435_v60  ;;  %v6411_v58 = vld [vmem:[%s9443_s2] ss:$0 sm:$0xff] }
 0x276   :  { %v6957_v62 = vpop.f32.mrb[48].mxu0 }
 0x277   :  { %v6958_v0 = vpop.f32.mrb[49].mxu0 }
 0x278   :  { %v6959_v1 = vadd.f32 %v6958_v0, %v6957_v62  ;;  %v6960_v3 = vpop.f32.mrb[50].mxu0  ;;  %v6412_v62 = vld [vmem:[%s9443_s2 + $0x1] ss:$0 sm:$0xff] }
 0x279   :  { %v6979_v63 = vpop.f32.mrb[48].mxu1  ;;  %v6961_v6 = vpop.f32.mrb[51].mxu0 }
 0x27a   :  { %v6980_v2 = vpop.f32.mrb[49].mxu1  ;;  %v5514_v7 = vadd.f32 %v6959_v1, %v5473_v59  ;;  %v6962_v8 = vadd.f32 %v6961_v6, %v6960_v3 }
 0x27b   :  { %v6981_v4 = vadd.f32 %v6980_v2, %v6979_v63  ;;  %v6982_v5 = vpop.f32.mrb[50].mxu1 }
 0x27c   :  { %v6983_v9 = vpop.f32.mrb[51].mxu1  ;;  %v5517_v12 = vadd.f32 %v6962_v8, %v5476_v61 }
 0x27d   :  { %v6984_v10 = vadd.f32 %v6983_v9, %v6982_v5  ;;  %v5555_v11 = vadd.f32 %v6981_v4, %v5514_v7 }
 0x27f   :  { %v5558_v13 = vadd.f32 %v6984_v10, %v5517_v12 }
 0x296   :  { %v7001_v14 = vpop.f32.mrb[52].mxu0 }
 0x297   :  { %v7002_v16 = vpop.f32.mrb[53].mxu0 }
 0x298   :  { %v7003_v17 = vadd.f32 %v7002_v16, %v7001_v14  ;;  %v7004_v19 = vpop.f32.mrb[54].mxu0 }
 0x299   :  { %v7023_v15 = vpop.f32.mrb[52].mxu1  ;;  %v7005_v22 = vpop.f32.mrb[55].mxu0 }
 0x29a   :  { %v7024_v18 = vpop.f32.mrb[53].mxu1  ;;  %v5596_v23 = vadd.f32 %v7003_v17, %v5555_v11  ;;  %v7006_v24 = vadd.f32 %v7005_v22, %v7004_v19 }
 0x29b   :  { %v7025_v20 = vadd.f32 %v7024_v18, %v7023_v15  ;;  %v7026_v21 = vpop.f32.mrb[54].mxu1 }
 0x29c   :  { %v7027_v25 = vpop.f32.mrb[55].mxu1  ;;  %v5599_v28 = vadd.f32 %v7006_v24, %v5558_v13 }
 0x29d   :  { %v7028_v26 = vadd.f32 %v7027_v25, %v7026_v21  ;;  %v5637_v27 = vadd.f32 %v7025_v20, %v5596_v23 }
 0x29f   :  { %v5640_v29 = vadd.f32 %v7028_v26, %v5599_v28 }
 0x2b6   :  { %v7045_v30 = vpop.f32.mrb[56].mxu0 }
 0x2b7   :  { %v7046_v32 = vpop.f32.mrb[57].mxu0 }
 0x2b8   :  { %v7047_v34 = vadd.f32 %v7046_v32, %v7045_v30  ;;  %v7048_v36 = vpop.f32.mrb[58].mxu0 }
 0x2b9   :  { %v7067_v31 = vpop.f32.mrb[56].mxu1  ;;  %v7049_v38 = vpop.f32.mrb[59].mxu0 }
 0x2ba   :  { %v7068_v33 = vpop.f32.mrb[57].mxu1  ;;  %v5678_v40 = vadd.f32 %v7047_v34, %v5637_v27  ;;  %v7050_v41 = vadd.f32 %v7049_v38, %v7048_v36 }
 0x2bb   :  { %v7069_v35 = vadd.f32 %v7068_v33, %v7067_v31  ;;  %v7070_v37 = vpop.f32.mrb[58].mxu1 }
 0x2bc   :  { %v7071_v39 = vpop.f32.mrb[59].mxu1  ;;  %v5681_v44 = vadd.f32 %v7050_v41, %v5640_v29 }
 0x2bd   :  { %v7072_v42 = vadd.f32 %v7071_v39, %v7070_v37  ;;  %v5719_v43 = vadd.f32 %v7069_v35, %v5678_v40 }
 0x2bf   :  { %v5722_v45 = vadd.f32 %v7072_v42, %v5681_v44 }
 0x2d6   :  { %v7089_v46 = vpop.f32.mrb[60].mxu0 }
 0x2d7   :  { %v7090_v48 = vpop.f32.mrb[61].mxu0 }
 0x2d8   :  { %v7091_v49 = vadd.f32 %v7090_v48, %v7089_v46  ;;  %v7092_v51 = vpop.f32.mrb[62].mxu0 }
 0x2d9   :  { %v7111_v47 = vpop.f32.mrb[60].mxu1  ;;  %v7093_v54 = vpop.f32.mrb[63].mxu0 }
 0x2da   :  { %v7112_v50 = vpop.f32.mrb[61].mxu1  ;;  %v5760_v55 = vadd.f32 %v7091_v49, %v5719_v43  ;;  %v7094_v56 = vadd.f32 %v7093_v54, %v7092_v51 }
 0x2db   :  { %v7113_v52 = vadd.f32 %v7112_v50, %v7111_v47  ;;  %v7114_v53 = vpop.f32.mrb[62].mxu1 }
 0x2dc   :  { %v7115_v57 = vpop.f32.mrb[63].mxu1  ;;  %v5763_v61 = vadd.f32 %v7094_v56, %v5722_v45 }
 0x2dd   :  { %v7116_v59 = vadd.f32 %v7115_v57, %v7114_v53  ;;  %v5801_v60 = vadd.f32 %v7113_v52, %v5760_v55 }
 0x2df   :  { %v5812_v63 = vmul.f32 %v6411_v58, %v5801_v60  ;;  %v5804_v0 = vadd.f32 %v7116_v59, %v5763_v61 }
 0x2e1   :  { %v5819_v1 = vadd.f32 %v6412_v62, %v5812_v63  ;;  %v5813_v2 = vmul.f32 %v6411_v58, %v5804_v0 }
 0x2e3   :  { %v5821_v3 = vmul.f32 0.5, %v5819_v1  ;;  %v5820_v4 = vadd.f32 %v6412_v62, %v5813_v2 }
 0x2e5   :  { %7629 = vtanh.f32 %v5821_v3  ;;  %v5822_v5 = vmul.f32 0.5, %v5820_v4 }
 0x2e7   :  { %7631 = vtanh.f32 %v5822_v5 }
 0x2ef   :  { %v7630_v6 = vpop.eup %7629 }
 0x2f0   :  { %v5825_v7 = vadd.f32 1.0, %v7630_v6 }
 0x2f1   :  { %v7632_v8 = vpop.eup %7631 }
 0x2f2   :  { %v5827_v9 = vmul.f32 0.5, %v5825_v7  ;;  %v5826_v10 = vadd.f32 1.0, %v7632_v8 }
 0x2f4   :  { %5829 = vst [vmem:[%s9444_s3] sm:$0xff] %v5827_v9  ;;  %v5828_v11 = vmul.f32 0.5, %v5826_v10 }
 0x2f6   :  { %5830 = vst [vmem:[%s9444_s3 + $0x8] sm:$0xff] %v5828_v11 }

</bundles_post_ra>
